<compile_context>
chip_gen: v7x
topology: tpu7x:2x2x1
jax: 0.10.0
libtpu: 0.0.40
codegen_flags: <defaults>
</compile_context>

<pallas_src>
import functools

import jax
import jax.numpy as jnp
from jax.experimental import pallas as pl
from jax.experimental.pallas import tpu as pltpu


_LANE = 128        # lane width: K padding granularity
_COUT_TILE = 128   # one lane-dense output-channel tile per grid step


def _round_up(x, m):
    return (x + m - 1) // m * m


# ----------------------------- Pallas kernel --------------------------------

def _conv_kernel(p_ref, w_ref, s_ref, b_ref, o_ref, *, relu, pool_q):
    """Fused im2col-matmul + BN affine + ReLU (+ optional 2x2 max-pool).

    p_ref : (R, Kp)   bf16 im2col patches, batch collapsed into rows.
    w_ref : (Kp, CT)  bf16 weight tile (CT = 128 output channels).
    s_ref : (1, CT)   f32 folded BN scale.
    b_ref : (1, CT)   f32 folded BN bias (conv bias folded in).
    o_ref : (Ro, CT)  f32 output tile; Ro = R (no pool) or R // 4 (pooled).

    When pool_q > 0 the patch rows are pre-ordered (dy, dx, n, hp, wp) so the
    4 members of every 2x2 pool window live in 4 contiguous row chunks of
    length pool_q; the pool is then 3 VPU maxima on sublane-aligned slices.
    """
    acc = jnp.dot(p_ref[...], w_ref[...], preferred_element_type=jnp.float32)
    y = acc * s_ref[...] + b_ref[...]
    if relu:
        y = jnp.maximum(y, 0.0)
    if pool_q:
        q = pool_q
        y = jnp.maximum(jnp.maximum(y[0:q], y[q:2 * q]),
                        jnp.maximum(y[2 * q:3 * q], y[3 * q:4 * q]))
    o_ref[...] = y.astype(o_ref.dtype)


# ------------------------------- wrapper -------------------------------------

def conv_bn_relu_pool(x, w, scale, bias, *, stride, pad, relu, pool):
    """Conv2d (+folded BN) (+ReLU) (+2x2 max-pool), NHWC.

    x : [N, H, W, Cin_x]  (Cin_x may exceed w's Cin: the extra channels are
        zero-padded lanes carried from the previous layer; w is zero-padded to
        match so they contribute nothing.)
    w : [KH, KW, Cin, Cout]
    """
    N, H, W, Cin_x = x.shape
    KH, KW, Cin_w, Cout = w.shape
    if Cin_w != Cin_x:
        w = jnp.pad(w, ((0, 0), (0, 0), (0, Cin_x - Cin_w), (0, 0)))
    Ho = (H + 2 * pad - KH) // stride + 1
    Wo = (W + 2 * pad - KW) // stride + 1

    # im2col (XLA glue): zero-pad, then stack the KH*KW shifted strided views.
    # TODO(synk): for large resolutions move im2col into the kernel (tile the
    # row dim, DMA input rows, build patches with strided pl.ds) to avoid the
    # KH*KW x HBM blow-up; at 32x32 it is negligible (~0.4 MB).
    xp = jnp.pad(x, ((0, 0), (pad, pad), (pad, pad), (0, 0)))
    cols = []
    for i in range(KH):
        for j in range(KW):
            cols.append(
                xp[:, i:i + stride * Ho:stride, j:j + stride * Wo:stride, :])
    patches = jnp.stack(cols, axis=3)            # [N, Ho, Wo, KH*KW, Cin_x]
    K = KH * KW * Cin_x
    patches = patches.reshape(N, Ho, Wo, K)      # feature order (kh, kw, cin)

    if pool:
        Hp, Wp = Ho // 2, Wo // 2
        q = N * Hp * Wp
        # Row order (dy, dx, n, hp, wp): pool-window members -> 4 contiguous
        # row chunks of length q, so the pool fuses into the kernel epilogue.
        patches = (patches.reshape(N, Hp, 2, Wp, 2, K)
                   .transpose(2, 4, 0, 1, 3, 5)
                   .reshape(4 * q, K))
        rows, out_rows, pool_q = 4 * q, q, q
    else:
        rows = N * Ho * Wo
        patches = patches.reshape(rows, K)
        out_rows, pool_q = rows, 0

    # Lane-align K and Cout (conv1: K 726->768, Cout 96->128). Zero padding
    # keeps results exact; padded output channels are identically zero.
    Kp = _round_up(K, _LANE)
    Cout_p = _round_up(Cout, _COUT_TILE)
    wmat = w.reshape(K, Cout)                    # same (kh, kw, cin) order
    wmat = jnp.pad(wmat, ((0, Kp - K), (0, Cout_p - Cout)))
    patches = jnp.pad(patches, ((0, 0), (0, Kp - K)))
    scale2 = jnp.pad(scale, (0, Cout_p - Cout)).reshape(1, Cout_p)
    bias2 = jnp.pad(bias, (0, Cout_p - Cout)).reshape(1, Cout_p)

    # bf16 operands for the MXU; accumulation + BN/ReLU/pool stay in f32.
    patches_b = patches.astype(jnp.bfloat16)
    wmat_b = wmat.astype(jnp.bfloat16)

    n_ct = Cout_p // _COUT_TILE
    out = pl.pallas_call(
        functools.partial(_conv_kernel, relu=relu, pool_q=pool_q),
        out_shape=jax.ShapeDtypeStruct((out_rows, Cout_p), jnp.float32),
        grid_spec=pltpu.PrefetchScalarGridSpec(
            num_scalar_prefetch=0,
            grid=(n_ct,),
            in_specs=[
                # Constant block index: fetched once, not re-DMA'd per step.
                # (Single-buffering via pipeline_mode would save a few hundred
                # KB of VMEM; skipped here since it is not needed at these
                # shapes.)
                pl.BlockSpec((rows, Kp), lambda j: (0, 0)),
                pl.BlockSpec((Kp, _COUT_TILE), lambda j: (0, j)),
                pl.BlockSpec((1, _COUT_TILE), lambda j: (0, j)),
                pl.BlockSpec((1, _COUT_TILE), lambda j: (0, j)),
            ],
            out_specs=pl.BlockSpec((out_rows, _COUT_TILE), lambda j: (0, j)),
        ),
        compiler_params=pltpu.CompilerParams(
            dimension_semantics=("parallel",)),
    )(patches_b, wmat_b, scale2, bias2)

    if pool:
        return out.reshape(N, Hp, Wp, Cout_p)
    return out.reshape(N, Ho, Wo, Cout_p)


# --------------------------- parameters / model ------------------------------

_LAYER_SPECS = [
    # (Cin, Cout, k, stride, pad, has_bn_and_relu)
    (6,   96, 11, 4, 5, True),
    (96, 256,  5, 1, 2, True),
    (256, 384, 3, 1, 1, True),
    (384, 384, 3, 1, 1, True),
    (384, 256, 3, 1, 1, False),   # conv5: no BN, no ReLU
]


def init_params(key):
    params = []
    eps = 1e-5
    for (cin, cout, k, s, p, has_bn) in _LAYER_SPECS:
        key, kw_, kb, kg, kbe, km, kv = jax.random.split(key, 7)
        fan_in = cin * k * k
        w = jax.random.normal(kw_, (k, k, cin, cout), jnp.float32) * (2.0 / fan_in) ** 0.5
        b = jax.random.normal(kb, (cout,), jnp.float32) * 0.05
        if has_bn:
            gamma = 1.0 + 0.1 * jax.random.normal(kg, (cout,), jnp.float32)
            beta = 0.1 * jax.random.normal(kbe, (cout,), jnp.float32)
            mean = 0.1 * jax.random.normal(km, (cout,), jnp.float32)
            var = 1.0 + jax.random.uniform(kv, (cout,), jnp.float32)
            scale = gamma / jnp.sqrt(var + eps)
            bias = beta - mean * scale + b * scale
        else:
            scale = jnp.ones((cout,), jnp.float32)
            bias = b
        params.append(dict(w=w, scale=scale, bias=bias,
                           stride=s, pad=p, relu=has_bn))
    return params


def img_encode(img_sf_nchw, params):
    x = jnp.transpose(img_sf_nchw, (0, 2, 3, 1))          # NCHW -> NHWC
    p1, p2, p3, p4, p5 = params
    # conv1 + bn1 + relu + 2x2 max-pool (fused)
    x = conv_bn_relu_pool(x, p1['w'], p1['scale'], p1['bias'],
                          stride=p1['stride'], pad=p1['pad'],
                          relu=True, pool=True)
    # conv2 + bn2 + relu + 2x2 max-pool (fused)
    x = conv_bn_relu_pool(x, p2['w'], p2['scale'], p2['bias'],
                          stride=p2['stride'], pad=p2['pad'],
                          relu=True, pool=True)
    x = conv_bn_relu_pool(x, p3['w'], p3['scale'], p3['bias'],
                          stride=p3['stride'], pad=p3['pad'],
                          relu=True, pool=False)
    x = conv_bn_relu_pool(x, p4['w'], p4['scale'], p4['bias'],
                          stride=p4['stride'], pad=p4['pad'],
                          relu=True, pool=False)
    x = conv_bn_relu_pool(x, p5['w'], p5['scale'], p5['bias'],
                          stride=p5['stride'], pad=p5['pad'],
                          relu=False, pool=False)
    return jnp.transpose(x, (0, 3, 1, 2))                  # NHWC -> NCHW


if __name__ == "__main__":
    key = jax.random.PRNGKey(0)
    k_x, k_p = jax.random.split(key)
    # Small input consistent with the module: batch=2, 6 channels, 32x32.
    img_sf = jax.random.normal(k_x, (2, 6, 32, 32), jnp.float32)
    params = init_params(k_p)

    fwd = jax.jit(lambda x: img_encode(x, params))
    out = fwd(img_sf)
    jax.block_until_ready(out)
    assert out.shape == (2, 256, 2, 2), out.shape
    assert out.dtype == jnp.float32
    print("KERNEL_OK")
</pallas_src>

<mosaic_0001>
module attributes {stable_mosaic.version = 11 : i64} {
  func.func @_conv_kernel(%arg0: i32, %arg1: memref<128x768xbf16, #tpu.memory_space<vmem>>, %arg2: memref<768x128xbf16, #tpu.memory_space<vmem>>, %arg3: memref<1x128xf32, #tpu.memory_space<vmem>>, %arg4: memref<1x128xf32, #tpu.memory_space<vmem>>, %arg5: memref<32x128xf32, #tpu.memory_space<vmem>>) attributes {dimension_semantics = [#tpu.dimension_semantics<parallel>], iteration_bounds = array<i64: 1>, scalar_prefetch = 0 : i64, scratch_operands = 0 : i64, tpu.core_type = #tpu.core_type<tc>, window_params = [{pipeline_mode = #tpu.pipeline_mode<synchronous>, transform_indices = @transform_0, window_bounds = array<i64: 128, 768>}, {transform_indices = @transform_1, window_bounds = array<i64: 768, 128>}, {transform_indices = @transform_2, window_bounds = array<i64: 1, 128>}, {transform_indices = @transform_3, window_bounds = array<i64: 1, 128>}, {transform_indices = @transform_4, window_bounds = array<i64: 32, 128>}]} {
    %c0 = arith.constant 0 : index
    %c0_0 = arith.constant 0 : index
    %0 = vector.load %arg1[%c0, %c0_0] : memref<128x768xbf16, #tpu.memory_space<vmem>>, vector<128x768xbf16>
    %c0_1 = arith.constant 0 : index
    %c0_2 = arith.constant 0 : index
    %1 = vector.load %arg2[%c0_1, %c0_2] : memref<768x128xbf16, #tpu.memory_space<vmem>>, vector<768x128xbf16>
    %cst = arith.constant dense<0.000000e+00> : vector<128x128xf32>
    %2 = tpu.matmul %0, %1, %cst {dimension_numbers = #tpu.dot_dimension_numbers<[1], [0], [0], [1], [0, 0, 1, 1], [], []>} : vector<128x768xbf16>, vector<768x128xbf16>, vector<128x128xf32> -> vector<128x128xf32>
    %c0_3 = arith.constant 0 : index
    %c0_4 = arith.constant 0 : index
    %3 = vector.load %arg3[%c0_3, %c0_4] : memref<1x128xf32, #tpu.memory_space<vmem>>, vector<1x128xf32>
    %4 = vector.broadcast %3 : vector<1x128xf32> to vector<128x128xf32>
    %5 = arith.mulf %2, %4 : vector<128x128xf32>
    %c0_5 = arith.constant 0 : index
    %c0_6 = arith.constant 0 : index
    %6 = vector.load %arg4[%c0_5, %c0_6] : memref<1x128xf32, #tpu.memory_space<vmem>>, vector<1x128xf32>
    %7 = vector.broadcast %6 : vector<1x128xf32> to vector<128x128xf32>
    %8 = arith.addf %5, %7 : vector<128x128xf32>
    %cst_7 = arith.constant 0.000000e+00 : f32
    %9 = vector.broadcast %cst_7 : f32 to vector<128x128xf32>
    %10 = arith.maximumf %8, %9 : vector<128x128xf32>
    %11 = vector.extract_strided_slice %10 {offsets = [0, 0], sizes = [32, 128], strides = [1, 1]} : vector<128x128xf32> to vector<32x128xf32>
    %12 = vector.extract_strided_slice %10 {offsets = [32, 0], sizes = [32, 128], strides = [1, 1]} : vector<128x128xf32> to vector<32x128xf32>
    %13 = arith.maximumf %11, %12 : vector<32x128xf32>
    %14 = vector.extract_strided_slice %10 {offsets = [64, 0], sizes = [32, 128], strides = [1, 1]} : vector<128x128xf32> to vector<32x128xf32>
    %15 = vector.extract_strided_slice %10 {offsets = [96, 0], sizes = [32, 128], strides = [1, 1]} : vector<128x128xf32> to vector<32x128xf32>
    %16 = arith.maximumf %14, %15 : vector<32x128xf32>
    %17 = arith.maximumf %13, %16 : vector<32x128xf32>
    %c0_8 = arith.constant 0 : index
    %c0_9 = arith.constant 0 : index
    %18 = vector.load %arg5[%c0_8, %c0_9] : memref<32x128xf32, #tpu.memory_space<vmem>>, vector<32x128xf32>
    tpu.vector_store %arg5[%c0_8, %c0_9], %17 {strides = array<i32>} : memref<32x128xf32, #tpu.memory_space<vmem>>, vector<32x128xf32>,
    return
  }
  func.func @transform_0(%arg0: i32) -> (i32, i32) {
    %c0_i32 = arith.constant 0 : i32
    %c0_i32_0 = arith.constant 0 : i32
    %c0_i32_1 = arith.constant 0 : i32
    return %c0_i32, %c0_i32_0 : i32, i32
  }
  func.func @transform_1(%arg0: i32) -> (i32, i32) {
    %c0_i32 = arith.constant 0 : i32
    %c0_i32_0 = arith.constant 0 : i32
    return %c0_i32, %arg0 : i32, i32
  }
  func.func @transform_2(%arg0: i32) -> (i32, i32) {
    %c0_i32 = arith.constant 0 : i32
    %c0_i32_0 = arith.constant 0 : i32
    return %c0_i32, %arg0 : i32, i32
  }
  func.func @transform_3(%arg0: i32) -> (i32, i32) {
    %c0_i32 = arith.constant 0 : i32
    %c0_i32_0 = arith.constant 0 : i32
    return %c0_i32, %arg0 : i32, i32
  }
  func.func @transform_4(%arg0: i32) -> (i32, i32) {
    %c0_i32 = arith.constant 0 : i32
    %c0_i32_0 = arith.constant 0 : i32
    return %c0_i32, %arg0 : i32, i32
  }
}

module attributes {stable_mosaic.version = 11 : i64} {
  func.func @_conv_kernel(%arg0: i32, %arg1: memref<32x3200xbf16, #tpu.memory_space<vmem>>, %arg2: memref<3200x128xbf16, #tpu.memory_space<vmem>>, %arg3: memref<1x128xf32, #tpu.memory_space<vmem>>, %arg4: memref<1x128xf32, #tpu.memory_space<vmem>>, %arg5: memref<8x128xf32, #tpu.memory_space<vmem>>) attributes {dimension_semantics = [#tpu.dimension_semantics<parallel>], iteration_bounds = array<i64: 2>, scalar_prefetch = 0 : i64, scratch_operands = 0 : i64, tpu.core_type = #tpu.core_type<tc>, window_params = [{pipeline_mode = #tpu.pipeline_mode<synchronous>, transform_indices = @transform_0, window_bounds = array<i64: 32, 3200>}, {transform_indices = @transform_1, window_bounds = array<i64: 3200, 128>}, {transform_indices = @transform_2, window_bounds = array<i64: 1, 128>}, {transform_indices = @transform_3, window_bounds = array<i64: 1, 128>}, {transform_indices = @transform_4, window_bounds = array<i64: 8, 128>}]} {
    %c0 = arith.constant 0 : index
    %c0_0 = arith.constant 0 : index
    %0 = vector.load %arg1[%c0, %c0_0] : memref<32x3200xbf16, #tpu.memory_space<vmem>>, vector<32x3200xbf16>
    %c0_1 = arith.constant 0 : index
    %c0_2 = arith.constant 0 : index
    %1 = vector.load %arg2[%c0_1, %c0_2] : memref<3200x128xbf16, #tpu.memory_space<vmem>>, vector<3200x128xbf16>
    %cst = arith.constant dense<0.000000e+00> : vector<32x128xf32>
    %2 = tpu.matmul %0, %1, %cst {dimension_numbers = #tpu.dot_dimension_numbers<[1], [0], [0], [1], [0, 0, 1, 1], [], []>} : vector<32x3200xbf16>, vector<3200x128xbf16>, vector<32x128xf32> -> vector<32x128xf32>
    %c0_3 = arith.constant 0 : index
    %c0_4 = arith.constant 0 : index
    %3 = vector.load %arg3[%c0_3, %c0_4] : memref<1x128xf32, #tpu.memory_space<vmem>>, vector<1x128xf32>
    %4 = vector.broadcast %3 : vector<1x128xf32> to vector<32x128xf32>
    %5 = arith.mulf %2, %4 : vector<32x128xf32>
    %c0_5 = arith.constant 0 : index
    %c0_6 = arith.constant 0 : index
    %6 = vector.load %arg4[%c0_5, %c0_6] : memref<1x128xf32, #tpu.memory_space<vmem>>, vector<1x128xf32>
    %7 = vector.broadcast %6 : vector<1x128xf32> to vector<32x128xf32>
    %8 = arith.addf %5, %7 : vector<32x128xf32>
    %cst_7 = arith.constant 0.000000e+00 : f32
    %9 = vector.broadcast %cst_7 : f32 to vector<32x128xf32>
    %10 = arith.maximumf %8, %9 : vector<32x128xf32>
    %11 = vector.extract_strided_slice %10 {offsets = [0, 0], sizes = [8, 128], strides = [1, 1]} : vector<32x128xf32> to vector<8x128xf32>
    %12 = vector.extract_strided_slice %10 {offsets = [8, 0], sizes = [8, 128], strides = [1, 1]} : vector<32x128xf32> to vector<8x128xf32>
    %13 = arith.maximumf %11, %12 : vector<8x128xf32>
    %14 = vector.extract_strided_slice %10 {offsets = [16, 0], sizes = [8, 128], strides = [1, 1]} : vector<32x128xf32> to vector<8x128xf32>
    %15 = vector.extract_strided_slice %10 {offsets = [24, 0], sizes = [8, 128], strides = [1, 1]} : vector<32x128xf32> to vector<8x128xf32>
    %16 = arith.maximumf %14, %15 : vector<8x128xf32>
    %17 = arith.maximumf %13, %16 : vector<8x128xf32>
    %c0_8 = arith.constant 0 : index
    %c0_9 = arith.constant 0 : index
    %18 = vector.load %arg5[%c0_8, %c0_9] : memref<8x128xf32, #tpu.memory_space<vmem>>, vector<8x128xf32>
    tpu.vector_store %arg5[%c0_8, %c0_9], %17 {strides = array<i32>} : memref<8x128xf32, #tpu.memory_space<vmem>>, vector<8x128xf32>,
    return
  }
  func.func @transform_0(%arg0: i32) -> (i32, i32) {
    %c0_i32 = arith.constant 0 : i32
    %c0_i32_0 = arith.constant 0 : i32
    %c0_i32_1 = arith.constant 0 : i32
    return %c0_i32, %c0_i32_0 : i32, i32
  }
  func.func @transform_1(%arg0: i32) -> (i32, i32) {
    %c0_i32 = arith.constant 0 : i32
    %c0_i32_0 = arith.constant 0 : i32
    return %c0_i32, %arg0 : i32, i32
  }
  func.func @transform_2(%arg0: i32) -> (i32, i32) {
    %c0_i32 = arith.constant 0 : i32
    %c0_i32_0 = arith.constant 0 : i32
    return %c0_i32, %arg0 : i32, i32
  }
  func.func @transform_3(%arg0: i32) -> (i32, i32) {
    %c0_i32 = arith.constant 0 : i32
    %c0_i32_0 = arith.constant 0 : i32
    return %c0_i32, %arg0 : i32, i32
  }
  func.func @transform_4(%arg0: i32) -> (i32, i32) {
    %c0_i32 = arith.constant 0 : i32
    %c0_i32_0 = arith.constant 0 : i32
    return %c0_i32, %arg0 : i32, i32
  }
}

module attributes {stable_mosaic.version = 11 : i64} {
  func.func @_conv_kernel(%arg0: i32, %arg1: memref<8x2304xbf16, #tpu.memory_space<vmem>>, %arg2: memref<2304x128xbf16, #tpu.memory_space<vmem>>, %arg3: memref<1x128xf32, #tpu.memory_space<vmem>>, %arg4: memref<1x128xf32, #tpu.memory_space<vmem>>, %arg5: memref<8x128xf32, #tpu.memory_space<vmem>>) attributes {dimension_semantics = [#tpu.dimension_semantics<parallel>], iteration_bounds = array<i64: 3>, scalar_prefetch = 0 : i64, scratch_operands = 0 : i64, tpu.core_type = #tpu.core_type<tc>, window_params = [{pipeline_mode = #tpu.pipeline_mode<synchronous>, transform_indices = @transform_0, window_bounds = array<i64: 8, 2304>}, {transform_indices = @transform_1, window_bounds = array<i64: 2304, 128>}, {transform_indices = @transform_2, window_bounds = array<i64: 1, 128>}, {transform_indices = @transform_3, window_bounds = array<i64: 1, 128>}, {transform_indices = @transform_4, window_bounds = array<i64: 8, 128>}]} {
    %c0 = arith.constant 0 : index
    %c0_0 = arith.constant 0 : index
    %0 = vector.load %arg1[%c0, %c0_0] : memref<8x2304xbf16, #tpu.memory_space<vmem>>, vector<8x2304xbf16>
    %c0_1 = arith.constant 0 : index
    %c0_2 = arith.constant 0 : index
    %1 = vector.load %arg2[%c0_1, %c0_2] : memref<2304x128xbf16, #tpu.memory_space<vmem>>, vector<2304x128xbf16>
    %cst = arith.constant dense<0.000000e+00> : vector<8x128xf32>
    %2 = tpu.matmul %0, %1, %cst {dimension_numbers = #tpu.dot_dimension_numbers<[1], [0], [0], [1], [0, 0, 1, 1], [], []>} : vector<8x2304xbf16>, vector<2304x128xbf16>, vector<8x128xf32> -> vector<8x128xf32>
    %c0_3 = arith.constant 0 : index
    %c0_4 = arith.constant 0 : index
    %3 = vector.load %arg3[%c0_3, %c0_4] : memref<1x128xf32, #tpu.memory_space<vmem>>, vector<1x128xf32>
    %4 = vector.broadcast %3 : vector<1x128xf32> to vector<8x128xf32>
    %5 = arith.mulf %2, %4 : vector<8x128xf32>
    %c0_5 = arith.constant 0 : index
    %c0_6 = arith.constant 0 : index
    %6 = vector.load %arg4[%c0_5, %c0_6] : memref<1x128xf32, #tpu.memory_space<vmem>>, vector<1x128xf32>
    %7 = vector.broadcast %6 : vector<1x128xf32> to vector<8x128xf32>
    %8 = arith.addf %5, %7 : vector<8x128xf32>
    %cst_7 = arith.constant 0.000000e+00 : f32
    %9 = vector.broadcast %cst_7 : f32 to vector<8x128xf32>
    %10 = arith.maximumf %8, %9 : vector<8x128xf32>
    %c0_8 = arith.constant 0 : index
    %c0_9 = arith.constant 0 : index
    %11 = vector.load %arg5[%c0_8, %c0_9] : memref<8x128xf32, #tpu.memory_space<vmem>>, vector<8x128xf32>
    tpu.vector_store %arg5[%c0_8, %c0_9], %10 {strides = array<i32>} : memref<8x128xf32, #tpu.memory_space<vmem>>, vector<8x128xf32>,
    return
  }
  func.func @transform_0(%arg0: i32) -> (i32, i32) {
    %c0_i32 = arith.constant 0 : i32
    %c0_i32_0 = arith.constant 0 : i32
    %c0_i32_1 = arith.constant 0 : i32
    return %c0_i32, %c0_i32_0 : i32, i32
  }
  func.func @transform_1(%arg0: i32) -> (i32, i32) {
    %c0_i32 = arith.constant 0 : i32
    %c0_i32_0 = arith.constant 0 : i32
    return %c0_i32, %arg0 : i32, i32
  }
  func.func @transform_2(%arg0: i32) -> (i32, i32) {
    %c0_i32 = arith.constant 0 : i32
    %c0_i32_0 = arith.constant 0 : i32
    return %c0_i32, %arg0 : i32, i32
  }
  func.func @transform_3(%arg0: i32) -> (i32, i32) {
    %c0_i32 = arith.constant 0 : i32
    %c0_i32_0 = arith.constant 0 : i32
    return %c0_i32, %arg0 : i32, i32
  }
  func.func @transform_4(%arg0: i32) -> (i32, i32) {
    %c0_i32 = arith.constant 0 : i32
    %c0_i32_0 = arith.constant 0 : i32
    return %c0_i32, %arg0 : i32, i32
  }
}

module attributes {stable_mosaic.version = 11 : i64} {
  func.func @_conv_kernel(%arg0: i32, %arg1: memref<8x3456xbf16, #tpu.memory_space<vmem>>, %arg2: memref<3456x128xbf16, #tpu.memory_space<vmem>>, %arg3: memref<1x128xf32, #tpu.memory_space<vmem>>, %arg4: memref<1x128xf32, #tpu.memory_space<vmem>>, %arg5: memref<8x128xf32, #tpu.memory_space<vmem>>) attributes {dimension_semantics = [#tpu.dimension_semantics<parallel>], iteration_bounds = array<i64: 3>, scalar_prefetch = 0 : i64, scratch_operands = 0 : i64, tpu.core_type = #tpu.core_type<tc>, window_params = [{pipeline_mode = #tpu.pipeline_mode<synchronous>, transform_indices = @transform_0, window_bounds = array<i64: 8, 3456>}, {transform_indices = @transform_1, window_bounds = array<i64: 3456, 128>}, {transform_indices = @transform_2, window_bounds = array<i64: 1, 128>}, {transform_indices = @transform_3, window_bounds = array<i64: 1, 128>}, {transform_indices = @transform_4, window_bounds = array<i64: 8, 128>}]} {
    %c0 = arith.constant 0 : index
    %c0_0 = arith.constant 0 : index
    %0 = vector.load %arg1[%c0, %c0_0] : memref<8x3456xbf16, #tpu.memory_space<vmem>>, vector<8x3456xbf16>
    %c0_1 = arith.constant 0 : index
    %c0_2 = arith.constant 0 : index
    %1 = vector.load %arg2[%c0_1, %c0_2] : memref<3456x128xbf16, #tpu.memory_space<vmem>>, vector<3456x128xbf16>
    %cst = arith.constant dense<0.000000e+00> : vector<8x128xf32>
    %2 = tpu.matmul %0, %1, %cst {dimension_numbers = #tpu.dot_dimension_numbers<[1], [0], [0], [1], [0, 0, 1, 1], [], []>} : vector<8x3456xbf16>, vector<3456x128xbf16>, vector<8x128xf32> -> vector<8x128xf32>
    %c0_3 = arith.constant 0 : index
    %c0_4 = arith.constant 0 : index
    %3 = vector.load %arg3[%c0_3, %c0_4] : memref<1x128xf32, #tpu.memory_space<vmem>>, vector<1x128xf32>
    %4 = vector.broadcast %3 : vector<1x128xf32> to vector<8x128xf32>
    %5 = arith.mulf %2, %4 : vector<8x128xf32>
    %c0_5 = arith.constant 0 : index
    %c0_6 = arith.constant 0 : index
    %6 = vector.load %arg4[%c0_5, %c0_6] : memref<1x128xf32, #tpu.memory_space<vmem>>, vector<1x128xf32>
    %7 = vector.broadcast %6 : vector<1x128xf32> to vector<8x128xf32>
    %8 = arith.addf %5, %7 : vector<8x128xf32>
    %cst_7 = arith.constant 0.000000e+00 : f32
    %9 = vector.broadcast %cst_7 : f32 to vector<8x128xf32>
    %10 = arith.maximumf %8, %9 : vector<8x128xf32>
    %c0_8 = arith.constant 0 : index
    %c0_9 = arith.constant 0 : index
    %11 = vector.load %arg5[%c0_8, %c0_9] : memref<8x128xf32, #tpu.memory_space<vmem>>, vector<8x128xf32>
    tpu.vector_store %arg5[%c0_8, %c0_9], %10 {strides = array<i32>} : memref<8x128xf32, #tpu.memory_space<vmem>>, vector<8x128xf32>,
    return
  }
  func.func @transform_0(%arg0: i32) -> (i32, i32) {
    %c0_i32 = arith.constant 0 : i32
    %c0_i32_0 = arith.constant 0 : i32
    %c0_i32_1 = arith.constant 0 : i32
    return %c0_i32, %c0_i32_0 : i32, i32
  }
  func.func @transform_1(%arg0: i32) -> (i32, i32) {
    %c0_i32 = arith.constant 0 : i32
    %c0_i32_0 = arith.constant 0 : i32
    return %c0_i32, %arg0 : i32, i32
  }
  func.func @transform_2(%arg0: i32) -> (i32, i32) {
    %c0_i32 = arith.constant 0 : i32
    %c0_i32_0 = arith.constant 0 : i32
    return %c0_i32, %arg0 : i32, i32
  }
  func.func @transform_3(%arg0: i32) -> (i32, i32) {
    %c0_i32 = arith.constant 0 : i32
    %c0_i32_0 = arith.constant 0 : i32
    return %c0_i32, %arg0 : i32, i32
  }
  func.func @transform_4(%arg0: i32) -> (i32, i32) {
    %c0_i32 = arith.constant 0 : i32
    %c0_i32_0 = arith.constant 0 : i32
    return %c0_i32, %arg0 : i32, i32
  }
}

module attributes {stable_mosaic.version = 11 : i64} {
  func.func @_conv_kernel(%arg0: i32, %arg1: memref<8x3456xbf16, #tpu.memory_space<vmem>>, %arg2: memref<3456x128xbf16, #tpu.memory_space<vmem>>, %arg3: memref<1x128xf32, #tpu.memory_space<vmem>>, %arg4: memref<1x128xf32, #tpu.memory_space<vmem>>, %arg5: memref<8x128xf32, #tpu.memory_space<vmem>>) attributes {dimension_semantics = [#tpu.dimension_semantics<parallel>], iteration_bounds = array<i64: 2>, scalar_prefetch = 0 : i64, scratch_operands = 0 : i64, tpu.core_type = #tpu.core_type<tc>, window_params = [{pipeline_mode = #tpu.pipeline_mode<synchronous>, transform_indices = @transform_0, window_bounds = array<i64: 8, 3456>}, {transform_indices = @transform_1, window_bounds = array<i64: 3456, 128>}, {transform_indices = @transform_2, window_bounds = array<i64: 1, 128>}, {transform_indices = @transform_3, window_bounds = array<i64: 1, 128>}, {transform_indices = @transform_4, window_bounds = array<i64: 8, 128>}]} {
    %c0 = arith.constant 0 : index
    %c0_0 = arith.constant 0 : index
    %0 = vector.load %arg1[%c0, %c0_0] : memref<8x3456xbf16, #tpu.memory_space<vmem>>, vector<8x3456xbf16>
    %c0_1 = arith.constant 0 : index
    %c0_2 = arith.constant 0 : index
    %1 = vector.load %arg2[%c0_1, %c0_2] : memref<3456x128xbf16, #tpu.memory_space<vmem>>, vector<3456x128xbf16>
    %cst = arith.constant dense<0.000000e+00> : vector<8x128xf32>
    %2 = tpu.matmul %0, %1, %cst {dimension_numbers = #tpu.dot_dimension_numbers<[1], [0], [0], [1], [0, 0, 1, 1], [], []>} : vector<8x3456xbf16>, vector<3456x128xbf16>, vector<8x128xf32> -> vector<8x128xf32>
    %c0_3 = arith.constant 0 : index
    %c0_4 = arith.constant 0 : index
    %3 = vector.load %arg3[%c0_3, %c0_4] : memref<1x128xf32, #tpu.memory_space<vmem>>, vector<1x128xf32>
    %4 = vector.broadcast %3 : vector<1x128xf32> to vector<8x128xf32>
    %5 = arith.mulf %2, %4 : vector<8x128xf32>
    %c0_5 = arith.constant 0 : index
    %c0_6 = arith.constant 0 : index
    %6 = vector.load %arg4[%c0_5, %c0_6] : memref<1x128xf32, #tpu.memory_space<vmem>>, vector<1x128xf32>
    %7 = vector.broadcast %6 : vector<1x128xf32> to vector<8x128xf32>
    %8 = arith.addf %5, %7 : vector<8x128xf32>
    %c0_7 = arith.constant 0 : index
    %c0_8 = arith.constant 0 : index
    %9 = vector.load %arg5[%c0_7, %c0_8] : memref<8x128xf32, #tpu.memory_space<vmem>>, vector<8x128xf32>
    tpu.vector_store %arg5[%c0_7, %c0_8], %8 {strides = array<i32>} : memref<8x128xf32, #tpu.memory_space<vmem>>, vector<8x128xf32>,
    return
  }
  func.func @transform_0(%arg0: i32) -> (i32, i32) {
    %c0_i32 = arith.constant 0 : i32
    %c0_i32_0 = arith.constant 0 : i32
    %c0_i32_1 = arith.constant 0 : i32
    return %c0_i32, %c0_i32_0 : i32, i32
  }
  func.func @transform_1(%arg0: i32) -> (i32, i32) {
    %c0_i32 = arith.constant 0 : i32
    %c0_i32_0 = arith.constant 0 : i32
    return %c0_i32, %arg0 : i32, i32
  }
  func.func @transform_2(%arg0: i32) -> (i32, i32) {
    %c0_i32 = arith.constant 0 : i32
    %c0_i32_0 = arith.constant 0 : i32
    return %c0_i32, %arg0 : i32, i32
  }
  func.func @transform_3(%arg0: i32) -> (i32, i32) {
    %c0_i32 = arith.constant 0 : i32
    %c0_i32_0 = arith.constant 0 : i32
    return %c0_i32, %arg0 : i32, i32
  }
  func.func @transform_4(%arg0: i32) -> (i32, i32) {
    %c0_i32 = arith.constant 0 : i32
    %c0_i32_0 = arith.constant 0 : i32
    return %c0_i32, %arg0 : i32, i32
  }
}

</mosaic_0001>

<bundles_post_ra>
// kernel: _lambda_.5
= control target key start
LH: loop header
LB: loop body
LE: loop exit
PB: predicated region body
PF: predicated region fallthrough
CT: control target
= control target key end

     0   :  { %s1904_s1 = inlined_call_operand.vmem [shape: bf16[768,128], index: 1, kind: input, shape index: {}]   ;;  %s1905_s0 = inlined_call_operand.vmem [shape: bf16[128,768], index: 0, kind: input, shape index: {}]   ;;  %s1906_s2 = inlined_call_operand.vmem [shape: f32[1,128], index: 2, kind: input, shape index: {}]   ;;  %s1907_s3 = inlined_call_operand.vmem [shape: f32[1,128], index: 3, kind: input, shape index: {}]   ;;  %s1908_s4 = inlined_call_operand.vmem [shape: f32[32,128], index: 4, kind: output, shape index: {}]  }
   0x1   :  { %v1369_v0 = vld [vmem:[%s1904_s1 + $0x40] sm:$0xff]   ;;  %v1371_v2 = vld [vmem:[%s1904_s1 + $0x48] sm:$0xff]   ;;  %v1373_v4 = vld [vmem:[%s1904_s1 + $0x50] sm:$0xff]  }
   0x2   :  { %v1370_v1 = vld [vmem:[%s1904_s1] sm:$0xff]   ;;  %1161 = vmatprep.subr.bf16.mxu0 %v1369_v0  ;;  %1353 = vmatprep.subr.bf16.mxu1 %v1369_v0  ;;  %v1372_v3 = vld [vmem:[%s1904_s1 + $0x8] sm:$0xff]   ;;  %v1374_v5 = vld [vmem:[%s1904_s1 + $0x10] sm:$0xff]  }
   0x3   :  { %1162 = vmatpush3.bf16.msra.mxu0 %v1370_v1  ;;  %1361 = vmatpush3.bf16.msra.mxu1 %v1370_v1  ;;  %v1375_v6 = vld [vmem:[%s1904_s1 + $0x58] sm:$0xff]   ;;  %v1377_v8 = vld [vmem:[%s1904_s1 + $0x60] sm:$0xff]   ;;  %v1379_v10 = vld [vmem:[%s1904_s1 + $0x68] sm:$0xff]  }
   0x4   :  { %1163 = vmatprep.subr.bf16.mxu0 %v1371_v2  ;;  %1354 = vmatprep.subr.bf16.mxu1 %v1371_v2  ;;  %v1376_v7 = vld [vmem:[%s1904_s1 + $0x18] sm:$0xff]   ;;  %v1378_v9 = vld [vmem:[%s1904_s1 + $0x20] sm:$0xff]   ;;  %v1380_v13 = vld [vmem:[%s1904_s1 + $0x28] sm:$0xff]  }
   0x5   :  { %v1387_v11 = vld [vmem:[%s1905_s0 + $0x4] ss:$24 sps:$4 sm:$0xff]   ;;  %v1381_v14 = vld [vmem:[%s1904_s1 + $0x70] sm:$0xff]   ;;  %v1385_v18 = vld [vmem:[%s1905_s0] ss:$24 sps:$4 sm:$0xff]  }
   0x6   :  { %v1390_v12 = vld [vmem:[%s1905_s0 + $0xc4] ss:$24 sps:$4 sm:$0xff]   ;;  %722 = vmatprep.mubr.bf16.mxu0 %v1387_v11  ;;  %v1382_v15 = vld [vmem:[%s1904_s1 + $0x30] sm:$0xff]   ;;  %v1388_v19 = vld [vmem:[%s1905_s0 + $0xc0] ss:$24 sps:$4 sm:$0xff]  }
   0x7   :  { %1164 = vmatpush3.bf16.msra.mxu0 %v1372_v3  ;;  %1362 = vmatpush3.bf16.msra.mxu1 %v1372_v3  ;;  %v1383_v16 = vld [vmem:[%s1904_s1 + $0x78] sm:$0xff]   ;;  %v1391_v20 = vld [vmem:[%s1904_s1 + $0xc0] sm:$0xff]   ;;  %v1395_v24 = vld [vmem:[%s1904_s1 + $0xc8] sm:$0xff]  }
   0x8   :  { %1165 = vmatprep.subr.bf16.mxu0 %v1373_v4  ;;  %1355 = vmatprep.subr.bf16.mxu1 %v1373_v4  ;;  %v1384_v17 = vld [vmem:[%s1904_s1 + $0x38] sm:$0xff]   ;;  %v1392_v21 = vld [vmem:[%s1904_s1 + $0x140] sm:$0xff]   ;;  %v1396_v25 = vld [vmem:[%s1904_s1 + $0x148] sm:$0xff]  }
   0x9   :  { %754 = vmatprep.mubr.bf16.mxu1 %v1390_v12  ;;  %v1393_v22 = vld [vmem:[%s1904_s1 + $0x80] sm:$0xff]   ;;  %v1399_v26 = vld [vmem:[%s1905_s0 + $0x34] ss:$24 sps:$4 sm:$0xff]   ;;  %v1403_v31 = vld [vmem:[%s1905_s0 + $0x30] ss:$24 sps:$4 sm:$0xff]  }
   0xa   :  { %v1394_v23 = vld [vmem:[%s1904_s1 + $0x100] sm:$0xff]   ;;  %v1397_v27 = vld [vmem:[%s1904_s1 + $0x88] sm:$0xff]   ;;  %v1405_v30 = vld [vmem:[%s1904_s1 + $0xd0] sm:$0xff]  }
   0xb   :  { %1166 = vmatpush3.bf16.msra.mxu0 %v1374_v5  ;;  %1363 = vmatpush3.bf16.msra.mxu1 %v1374_v5  ;;  %v1401_v28 = vld [vmem:[%s1905_s0 + $0xf4] ss:$24 sps:$4 sm:$0xff]   ;;  %v1404_v33 = vld [vmem:[%s1905_s0 + $0xf0] ss:$24 sps:$4 sm:$0xff]   ;;  %v1409_v36 = vld [vmem:[%s1904_s1 + $0xd8] sm:$0xff]  }
   0xc   :  { %1167 = vmatprep.subr.bf16.mxu0 %v1375_v6  ;;  %1356 = vmatprep.subr.bf16.mxu1 %v1375_v6  ;;  %v1398_v29 = vld [vmem:[%s1904_s1 + $0x108] sm:$0xff]   ;;  %v1406_v32 = vld [vmem:[%s1904_s1 + $0x150] sm:$0xff]   ;;  %v1410_v37 = vld [vmem:[%s1904_s1 + $0x158] sm:$0xff]  }
   0xd   :  { %v1407_v34 = vld [vmem:[%s1904_s1 + $0x90] sm:$0xff]   ;;  %v1413_v38 = vld [vmem:[%s1905_s0 + $0x64] ss:$24 sps:$4 sm:$0xff]   ;;  %v1417_v43 = vld [vmem:[%s1905_s0 + $0x60] ss:$24 sps:$4 sm:$0xff]  }
   0xe   :  { %v1408_v35 = vld [vmem:[%s1904_s1 + $0x110] sm:$0xff]   ;;  %v1411_v39 = vld [vmem:[%s1904_s1 + $0x98] sm:$0xff]   ;;  %v1419_v42 = vld [vmem:[%s1904_s1 + $0xe0] sm:$0xff]  }
   0xf   :  { %1168 = vmatpush3.bf16.msra.mxu0 %v1376_v7  ;;  %1364 = vmatpush3.bf16.msra.mxu1 %v1376_v7  ;;  %v1415_v40 = vld [vmem:[%s1905_s0 + $0x124] ss:$24 sps:$4 sm:$0xff]   ;;  %v1418_v44 = vld [vmem:[%s1905_s0 + $0x120] ss:$24 sps:$4 sm:$0xff]   ;;  %v1423_v48 = vld [vmem:[%s1904_s1 + $0xe8] sm:$0xff]  }
  0x10   :  { %1169 = vmatprep.subr.bf16.mxu0 %v1377_v8  ;;  %1357 = vmatprep.subr.bf16.mxu1 %v1377_v8  ;;  %v1412_v41 = vld [vmem:[%s1904_s1 + $0x118] sm:$0xff]   ;;  %v1420_v45 = vld [vmem:[%s1904_s1 + $0x160] sm:$0xff]   ;;  %v1424_v49 = vld [vmem:[%s1904_s1 + $0x168] sm:$0xff]  }
  0x11   :  { %v1421_v46 = vld [vmem:[%s1904_s1 + $0xa0] sm:$0xff]   ;;  %v1427_v50 = vld [vmem:[%s1905_s0 + $0x94] ss:$24 sps:$4 sm:$0xff]   ;;  %v1431_v55 = vld [vmem:[%s1905_s0 + $0x90] ss:$24 sps:$4 sm:$0xff]  }
  0x12   :  { %v1422_v47 = vld [vmem:[%s1904_s1 + $0x120] sm:$0xff]   ;;  %v1429_v51 = vld [vmem:[%s1905_s0 + $0x154] ss:$24 sps:$4 sm:$0xff]   ;;  %v1432_v56 = vld [vmem:[%s1905_s0 + $0x150] ss:$24 sps:$4 sm:$0xff]  }
  0x13   :  { %1170 = vmatpush3.bf16.msra.mxu0 %v1378_v9  ;;  %1365 = vmatpush3.bf16.msra.mxu1 %v1378_v9  ;;  %v1425_v52 = vld [vmem:[%s1904_s1 + $0xa8] sm:$0xff]   ;;  %v1433_v54 = vld [vmem:[%s1904_s1 + $0xf0] sm:$0xff]   ;;  %v1437_v60 = vld [vmem:[%s1904_s1 + $0xf8] sm:$0xff]  }
  0x14   :  { %1171 = vmatprep.subr.bf16.mxu0 %v1379_v10  ;;  %1358 = vmatprep.subr.bf16.mxu1 %v1379_v10  ;;  %v1426_v53 = vld [vmem:[%s1904_s1 + $0x128] sm:$0xff]   ;;  %v1434_v57 = vld [vmem:[%s1904_s1 + $0x170] sm:$0xff]   ;;  %v1438_v61 = vld [vmem:[%s1904_s1 + $0x178] sm:$0xff]  }
  0x15   :  { %v1435_v58 = vld [vmem:[%s1904_s1 + $0xb0] sm:$0xff]   ;;  %v1439_v62 = vld [vmem:[%s1904_s1 + $0xb8] sm:$0xff]   ;;  %v1443_v0 = vld [vmem:[%s1905_s0 + $0xc] ss:$24 sps:$4 sm:$0xff]  }
  0x16   :  { %v1436_v59 = vld [vmem:[%s1904_s1 + $0x130] sm:$0xff]   ;;  %v1440_v63 = vld [vmem:[%s1904_s1 + $0x138] sm:$0xff]   ;;  %v1441_v1 = vld [vmem:[%s1905_s0 + $0x8] ss:$24 sps:$4 sm:$0xff]  }
  0x17   :  { %1172 = vmatpush3.bf16.msra.mxu0 %v1380_v13  ;;  %1366 = vmatpush3.bf16.msra.mxu1 %v1380_v13  ;;  %v1446_v2 = vld [vmem:[%s1905_s0 + $0x14] ss:$24 sps:$4 sm:$0xff]   ;;  %v1444_v3 = vld [vmem:[%s1905_s0 + $0x10] ss:$24 sps:$4 sm:$0xff]   ;;  %v1449_v5 = vld [vmem:[%s1905_s0 + $0x44] ss:$24 sps:$4 sm:$0xff]  }
  0x18   :  { %1173 = vmatprep.subr.bf16.mxu0 %v1381_v14  ;;  %1359 = vmatprep.subr.bf16.mxu1 %v1381_v14  ;;  %v1447_v4 = vld [vmem:[%s1905_s0 + $0x3c] ss:$24 sps:$4 sm:$0xff]   ;;  %v1451_v6 = vld [vmem:[%s1905_s0 + $0x38] ss:$24 sps:$4 sm:$0xff]   ;;  %v1453_v8 = vld [vmem:[%s1905_s0 + $0x6c] ss:$24 sps:$4 sm:$0xff]  }
  0x19   :  { %v1452_v7 = vld [vmem:[%s1905_s0 + $0x40] ss:$24 sps:$4 sm:$0xff]   ;;  %v1455_v9 = vld [vmem:[%s1905_s0 + $0x74] ss:$24 sps:$4 sm:$0xff]   ;;  %v1458_v11 = vld [vmem:[%s1905_s0 + $0x70] ss:$24 sps:$4 sm:$0xff]  }
  0x1a   :  { %v1457_v10 = vld [vmem:[%s1905_s0 + $0x68] ss:$24 sps:$4 sm:$0xff]   ;;  %v1459_v12 = vld [vmem:[%s1905_s0 + $0x9c] ss:$24 sps:$4 sm:$0xff]   ;;  %v1463_v14 = vld [vmem:[%s1905_s0 + $0x98] ss:$24 sps:$4 sm:$0xff]  }
  0x1b   :  { %1174 = vmatpush3.bf16.msra.mxu0 %v1382_v15  ;;  %1367 = vmatpush3.bf16.msra.mxu1 %v1382_v15  ;;  %v1461_v13 = vld [vmem:[%s1905_s0 + $0xa4] ss:$24 sps:$4 sm:$0xff]   ;;  %v1464_v15 = vld [vmem:[%s1905_s0 + $0xa0] ss:$24 sps:$4 sm:$0xff]  }
  0x1c   :  { %1175 = vmatprep.subr.bf16.mxu0 %v1383_v16  ;;  %1360 = vmatprep.subr.bf16.mxu1 %v1383_v16  ;;  %v1465_v16 = vld [vmem:[%s1905_s0 + $0xcc] ss:$24 sps:$4 sm:$0xff]  }
  0x1f   :  { %1176 = vmatpush3.bf16.msra.mxu0 %v1384_v17  ;;  %1368 = vmatpush3.bf16.msra.mxu1 %v1384_v17  ;;  %v1467_v17 = vld [vmem:[%s1905_s0 + $0xd4] ss:$24 sps:$4 sm:$0xff]  }
  0x20   :  { %1225 = vmatprep.subr.bf16.mxu1 %v1391_v20  ;;  %1289 = vmatprep.subr.bf16.mxu0 %v1392_v21  ;;  %v1471_v20 = vld [vmem:[%s1905_s0 + $0xfc] ss:$24 sps:$4 sm:$0xff]  }
  0x21   :  { %v1473_v21 = vld [vmem:[%s1905_s0 + $0x104] ss:$24 sps:$4 sm:$0xff]  }
  0x22   :  { %723 = vmatmul.mubr.bf16.vlgmr.msra.gmra.mrb[0].mxu0 %v1385_v18  ;;  %755 = vmatmul.mubr.bf16.vlgmr.msra.gmra.mrb[0].mxu1 %v1388_v19  ;;  %v1469_v18 = vld [vmem:[%s1905_s0 + $0xc8] ss:$24 sps:$4 sm:$0xff]  }
  0x23   :  { %1226 = vmatpush3.bf16.msra.mxu1 %v1393_v22  ;;  %1290 = vmatpush3.bf16.msra.mxu0 %v1394_v23  ;;  %v1470_v19 = vld [vmem:[%s1905_s0 + $0xd0] ss:$24 sps:$4 sm:$0xff]   ;;  %v1476_v23 = vld [vmem:[%s1905_s0 + $0x100] ss:$24 sps:$4 sm:$0xff]  }
  0x24   :  { %1227 = vmatprep.subr.bf16.mxu1 %v1395_v24  ;;  %1291 = vmatprep.subr.bf16.mxu0 %v1396_v25  ;;  %v1475_v22 = vld [vmem:[%s1905_s0 + $0xf8] ss:$24 sps:$4 sm:$0xff]   ;;  %v1477_v24 = vld [vmem:[%s1905_s0 + $0x12c] ss:$24 sps:$4 sm:$0xff]  }
  0x25   :  { %730 = vmatprep.mubr.bf16.mxu0 %v1399_v26  ;;  %762 = vmatprep.mubr.bf16.mxu1 %v1401_v28  ;;  %v1479_v25 = vld [vmem:[%s1905_s0 + $0x134] ss:$24 sps:$4 sm:$0xff]   ;;  %v1481_v26 = vld [vmem:[%s1905_s0 + $0x128] ss:$24 sps:$4 sm:$0xff]  }
  0x26   :  { %v1483_v28 = vld [vmem:[%s1905_s0 + $0x15c] ss:$24 sps:$4 sm:$0xff]  }
  0x27   :  { %1228 = vmatpush3.bf16.msra.mxu1 %v1397_v27  ;;  %1292 = vmatpush3.bf16.msra.mxu0 %v1398_v29  ;;  %v1482_v27 = vld [vmem:[%s1905_s0 + $0x130] ss:$24 sps:$4 sm:$0xff]   ;;  %v1485_v29 = vld [vmem:[%s1905_s0 + $0x164] ss:$24 sps:$4 sm:$0xff]  }
  0x28   :  { %1229 = vmatprep.subr.bf16.mxu1 %v1405_v30  ;;  %1293 = vmatprep.subr.bf16.mxu0 %v1406_v32  ;;  %v1487_v30 = vld [vmem:[%s1905_s0 + $0x158] ss:$24 sps:$4 sm:$0xff]  }
  0x2a   :  { %731 = vmatmul.mubr.bf16.gmra.mrb[4].mxu0 %v1403_v31  ;;  %763 = vmatmul.mubr.bf16.gmra.mrb[4].mxu1 %v1404_v33  ;;  %v1488_v31 = vld [vmem:[%s1905_s0 + $0x160] ss:$24 sps:$4 sm:$0xff]  }
  0x2b   :  { %1230 = vmatpush3.bf16.msra.mxu1 %v1407_v34  ;;  %1294 = vmatpush3.bf16.msra.mxu0 %v1408_v35 }
  0x2c   :  { %1231 = vmatprep.subr.bf16.mxu1 %v1409_v36  ;;  %1295 = vmatprep.subr.bf16.mxu0 %v1410_v37 }
  0x2d   :  { %738 = vmatprep.mubr.bf16.mxu0 %v1413_v38  ;;  %770 = vmatprep.mubr.bf16.mxu1 %v1415_v40 }
  0x2f   :  { %1232 = vmatpush3.bf16.msra.mxu1 %v1411_v39  ;;  %1296 = vmatpush3.bf16.msra.mxu0 %v1412_v41 }
  0x30   :  { %1233 = vmatprep.subr.bf16.mxu1 %v1419_v42  ;;  %1297 = vmatprep.subr.bf16.mxu0 %v1420_v45 }
  0x32   :  { %739 = vmatmul.mubr.bf16.gmra.mrb[8].mxu0 %v1417_v43  ;;  %771 = vmatmul.mubr.bf16.gmra.mrb[8].mxu1 %v1418_v44 }
  0x33   :  { %1234 = vmatpush3.bf16.msra.mxu1 %v1421_v46  ;;  %1298 = vmatpush3.bf16.msra.mxu0 %v1422_v47 }
  0x34   :  { %1235 = vmatprep.subr.bf16.mxu1 %v1423_v48  ;;  %1299 = vmatprep.subr.bf16.mxu0 %v1424_v49 }
  0x35   :  { %746 = vmatprep.mubr.bf16.mxu0 %v1427_v50  ;;  %778 = vmatprep.mubr.bf16.mxu1 %v1429_v51 }
  0x37   :  { %1236 = vmatpush3.bf16.msra.mxu1 %v1425_v52  ;;  %1300 = vmatpush3.bf16.msra.mxu0 %v1426_v53 }
  0x38   :  { %1237 = vmatprep.subr.bf16.mxu1 %v1433_v54  ;;  %1301 = vmatprep.subr.bf16.mxu0 %v1434_v57 }
  0x3a   :  { %747 = vmatmul.mubr.bf16.gmra.mrb[12].mxu0 %v1431_v55  ;;  %779 = vmatmul.mubr.bf16.gmra.mrb[12].mxu1 %v1432_v56 }
  0x3b   :  { %1238 = vmatpush3.bf16.msra.mxu1 %v1435_v58  ;;  %1302 = vmatpush3.bf16.msra.mxu0 %v1436_v59 }
  0x3c   :  { %1239 = vmatprep.subr.bf16.mxu1 %v1437_v60  ;;  %1303 = vmatprep.subr.bf16.mxu0 %v1438_v61 }
  0x3d   :  { %819 = vmatprep.mubr.bf16.mxu1 %v1443_v0  ;;  %916 = vmatprep.mubr.bf16.mxu0 %v1446_v2 }
  0x3f   :  { %1240 = vmatpush3.bf16.msra.mxu1 %v1439_v62  ;;  %1304 = vmatpush3.bf16.msra.mxu0 %v1440_v63 }
  0x42   :  { %820 = vmatmul.mubr.bf16.vlgmr.msra.gmra.mrb[16].mxu1 %v1441_v1  ;;  %917 = vmatmul.mubr.bf16.vlgmr.msra.gmra.mrb[16].mxu0 %v1444_v3 }
  0x43   :  { %827 = vmatprep.mubr.bf16.mxu1 %v1447_v4  ;;  %924 = vmatprep.mubr.bf16.mxu0 %v1449_v5 }
  0x4a   :  { %828 = vmatmul.mubr.bf16.gmra.mrb[20].mxu1 %v1451_v6  ;;  %925 = vmatmul.mubr.bf16.gmra.mrb[20].mxu0 %v1452_v7 }
  0x4b   :  { %835 = vmatprep.mubr.bf16.mxu1 %v1453_v8  ;;  %932 = vmatprep.mubr.bf16.mxu0 %v1455_v9 }
  0x52   :  { %836 = vmatmul.mubr.bf16.gmra.mrb[24].mxu1 %v1457_v10  ;;  %933 = vmatmul.mubr.bf16.gmra.mrb[24].mxu0 %v1458_v11 }
  0x53   :  { %843 = vmatprep.mubr.bf16.mxu1 %v1459_v12  ;;  %940 = vmatprep.mubr.bf16.mxu0 %v1461_v13 }
  0x5a   :  { %844 = vmatmul.mubr.bf16.gmra.mrb[28].mxu1 %v1463_v14  ;;  %941 = vmatmul.mubr.bf16.gmra.mrb[28].mxu0 %v1464_v15 }
  0x5b   :  { %851 = vmatprep.mubr.bf16.mxu1 %v1465_v16  ;;  %948 = vmatprep.mubr.bf16.mxu0 %v1467_v17 }
  0x62   :  { %852 = vmatmul.mubr.bf16.gmra.mrb[32].mxu1 %v1469_v18  ;;  %949 = vmatmul.mubr.bf16.gmra.mrb[32].mxu0 %v1470_v19 }
  0x63   :  { %859 = vmatprep.mubr.bf16.mxu1 %v1471_v20  ;;  %956 = vmatprep.mubr.bf16.mxu0 %v1473_v21 }
  0x6a   :  { %860 = vmatmul.mubr.bf16.gmra.mrb[36].mxu1 %v1475_v22  ;;  %957 = vmatmul.mubr.bf16.gmra.mrb[36].mxu0 %v1476_v23 }
  0x6b   :  { %867 = vmatprep.mubr.bf16.mxu1 %v1477_v24  ;;  %964 = vmatprep.mubr.bf16.mxu0 %v1479_v25 }
  0x72   :  { %868 = vmatmul.mubr.bf16.gmra.mrb[40].mxu1 %v1481_v26  ;;  %965 = vmatmul.mubr.bf16.gmra.mrb[40].mxu0 %v1482_v27 }
  0x73   :  { %875 = vmatprep.mubr.bf16.mxu1 %v1483_v28  ;;  %972 = vmatprep.mubr.bf16.mxu0 %v1485_v29 }
  0x7a   :  { %876 = vmatmul.mubr.bf16.gmra.mrb[44].mxu1 %v1487_v30  ;;  %973 = vmatmul.mubr.bf16.gmra.mrb[44].mxu0 %v1488_v31 }
  0xf5   :  { %v1177_v32 = vpop.f32.mrb[0].mxu0  ;;  %v1201_v33 = vpop.f32.mrb[0].mxu1 }
  0xf6   :  { %v1178_v34 = vpop.f32.mrb[1].mxu0  ;;  %v1202_v35 = vpop.f32.mrb[1].mxu1 }
  0xf7   :  { %v1179_v36 = vadd.f32 %v1178_v34, %v1177_v32  ;;  %v1802_v37 = vadd.f32 %v1202_v35, %v1201_v33  ;;  %v1180_v38 = vpop.f32.mrb[2].mxu0  ;;  %v1204_v39 = vpop.f32.mrb[2].mxu1 }
  0xf8   :  { %v1181_v40 = vpop.f32.mrb[3].mxu0  ;;  %v1205_v41 = vpop.f32.mrb[3].mxu1 }
  0xf9   :  { %v1182_v42 = vadd.f32 %v1181_v40, %v1180_v38  ;;  %v1804_v43 = vadd.f32 %v1205_v41, %v1204_v39 }
  0xfd   :  { %v1183_v44 = vpop.f32.mrb[4].mxu0  ;;  %v1207_v45 = vpop.f32.mrb[4].mxu1 }
  0xfe   :  { %v1184_v46 = vpop.f32.mrb[5].mxu0  ;;  %v1208_v47 = vpop.f32.mrb[5].mxu1 }
  0xff   :  { %v1185_v48 = vadd.f32 %v1184_v46, %v1183_v44  ;;  %v1806_v49 = vadd.f32 %v1208_v47, %v1207_v45  ;;  %v1186_v50 = vpop.f32.mrb[6].mxu0  ;;  %v1210_v51 = vpop.f32.mrb[6].mxu1 }
 0x100   :  { %v1187_v52 = vpop.f32.mrb[7].mxu0  ;;  %v1211_v53 = vpop.f32.mrb[7].mxu1 }
 0x101   :  { %v1188_v54 = vadd.f32 %v1187_v52, %v1186_v50  ;;  %v1808_v55 = vadd.f32 %v1211_v53, %v1210_v51 }
 0x105   :  { %v1189_v56 = vpop.f32.mrb[8].mxu0  ;;  %v1213_v57 = vpop.f32.mrb[8].mxu1 }
 0x106   :  { %v1190_v58 = vpop.f32.mrb[9].mxu0  ;;  %v1214_v59 = vpop.f32.mrb[9].mxu1 }
 0x107   :  { %v1810_v60 = vadd.f32 %v1190_v58, %v1189_v56  ;;  %v1812_v61 = vadd.f32 %v1214_v59, %v1213_v57  ;;  %v1192_v62 = vpop.f32.mrb[10].mxu0  ;;  %v1216_v63 = vpop.f32.mrb[10].mxu1 }
 0x108   :  { %v1193_v0 = vpop.f32.mrb[11].mxu0  ;;  %v1217_v1 = vpop.f32.mrb[11].mxu1 }
 0x109   :  { %v1814_v2 = vadd.f32 %v1193_v0, %v1192_v62  ;;  %v1816_v3 = vadd.f32 %v1217_v1, %v1216_v63 }
 0x10d   :  { %v1195_v4 = vpop.f32.mrb[12].mxu0  ;;  %v1219_v5 = vpop.f32.mrb[12].mxu1 }
 0x10e   :  { %v1196_v6 = vpop.f32.mrb[13].mxu0  ;;  %v1220_v7 = vpop.f32.mrb[13].mxu1 }
 0x10f   :  { %v1818_v8 = vadd.f32 %v1196_v6, %v1195_v4  ;;  %v1820_v9 = vadd.f32 %v1220_v7, %v1219_v5  ;;  %v1198_v10 = vpop.f32.mrb[14].mxu0  ;;  %v1222_v11 = vpop.f32.mrb[14].mxu1 }
 0x110   :  { %v1199_v12 = vpop.f32.mrb[15].mxu0  ;;  %v1223_v13 = vpop.f32.mrb[15].mxu1 }
 0x111   :  { %v1822_v14 = vadd.f32 %v1199_v12, %v1198_v10  ;;  %v1824_v15 = vadd.f32 %v1223_v13, %v1222_v11 }
 0x115   :  { %v1241_v16 = vpop.f32.mrb[16].mxu1  ;;  %v1305_v17 = vpop.f32.mrb[16].mxu0 }
 0x116   :  { %v1242_v18 = vpop.f32.mrb[17].mxu1  ;;  %v1306_v19 = vpop.f32.mrb[17].mxu0 }
 0x117   :  { %v1243_v20 = vadd.f32 %v1242_v18, %v1241_v16  ;;  %v1307_v21 = vadd.f32 %v1306_v19, %v1305_v17  ;;  %v1244_v22 = vpop.f32.mrb[18].mxu1  ;;  %v1308_v23 = vpop.f32.mrb[18].mxu0 }
 0x118   :  { %v1245_v24 = vpop.f32.mrb[19].mxu1  ;;  %v1309_v25 = vpop.f32.mrb[19].mxu0 }
 0x119   :  { %v822_v26 = vadd.f32 %v1243_v20, %v1179_v36  ;;  %v1246_v27 = vadd.f32 %v1245_v24, %v1244_v22  ;;  %v1310_v28 = vadd.f32 %v1309_v25, %v1308_v23 }
 0x11b   :  { %v919_v29 = vadd.f32 %v1307_v21, %v822_v26  ;;  %v825_v30 = vadd.f32 %v1246_v27, %v1182_v42  ;;  %v1829_v42 = vld [vmem:[%s1906_s2] ss:$0 sm:$0xff] }
 0x11d   :  { %v922_v31 = vadd.f32 %v1310_v28, %v825_v30  ;;  %v1247_v32 = vpop.f32.mrb[20].mxu1  ;;  %v1311_v33 = vpop.f32.mrb[20].mxu0 }
 0x11e   :  { %v1248_v34 = vpop.f32.mrb[21].mxu1  ;;  %v1312_v35 = vpop.f32.mrb[21].mxu0 }
 0x11f   :  { %v1249_v38 = vadd.f32 %v1248_v34, %v1247_v32  ;;  %v1313_v39 = vadd.f32 %v1312_v35, %v1311_v33  ;;  %v1250_v40 = vpop.f32.mrb[22].mxu1  ;;  %v1314_v41 = vpop.f32.mrb[22].mxu0  ;;  %v989_v7 = vmul.f32 %v1829_v42, %v922_v31 }
 0x120   :  { %v1251_v44 = vpop.f32.mrb[23].mxu1  ;;  %v1315_v45 = vpop.f32.mrb[23].mxu0 }
 0x121   :  { %v830_v46 = vadd.f32 %v1249_v38, %v1185_v48  ;;  %v1252_v47 = vadd.f32 %v1251_v44, %v1250_v40  ;;  %v1316_v50 = vadd.f32 %v1315_v45, %v1314_v41  ;;  %v988_v48 = vmul.f32 %v1829_v42, %v919_v29 }
 0x123   :  { %v927_v51 = vadd.f32 %v1313_v39, %v830_v46  ;;  %v833_v36 = vadd.f32 %v1252_v47, %v1188_v54  ;;  %v1835_v54 = vld [vmem:[%s1907_s3] ss:$0 sm:$0xff] }
 0x124   :  { %v1011_v13 = vadd.f32 %v1835_v54, %v988_v48  ;;  %v1012_v20 = vadd.f32 %v1835_v54, %v989_v7 }
 0x125   :  { %v930_v52 = vadd.f32 %v1316_v50, %v833_v36  ;;  %v1253_v53 = vpop.f32.mrb[24].mxu1  ;;  %v1317_v56 = vpop.f32.mrb[24].mxu0  ;;  %v990_v28 = vmul.f32 %v1829_v42, %v927_v51 }
 0x126   :  { %v1254_v57 = vpop.f32.mrb[25].mxu1  ;;  %v1318_v58 = vpop.f32.mrb[25].mxu0  ;;  %v1028_v35 = vmax.f32 %v1012_v20, 0.0 }
 0x127   :  { %v1255_v59 = vadd.f32 %v1254_v57, %v1253_v53  ;;  %v1319_v62 = vadd.f32 %v1318_v58, %v1317_v56  ;;  %v1256_v63 = vpop.f32.mrb[26].mxu1  ;;  %v1320_v0 = vpop.f32.mrb[26].mxu0  ;;  %v991_v38 = vmul.f32 %v1829_v42, %v930_v52  ;;  %v1013_v46 = vadd.f32 %v1835_v54, %v990_v28 }
 0x128   :  { %v1257_v1 = vpop.f32.mrb[27].mxu1  ;;  %v1321_v4 = vpop.f32.mrb[27].mxu0 }
 0x129   :  { %v838_v5 = vadd.f32 %v1255_v59, %v1810_v60  ;;  %v1258_v6 = vadd.f32 %v1257_v1, %v1256_v63  ;;  %v1322_v10 = vadd.f32 %v1321_v4, %v1320_v0  ;;  %v1014_v53 = vadd.f32 %v1835_v54, %v991_v38 }
 0x12a   :  { %v1029_v0 = vmax.f32 %v1013_v46, 0.0 }
 0x12b   :  { %v935_v11 = vadd.f32 %v1319_v62, %v838_v5  ;;  %v841_v12 = vadd.f32 %v1258_v6, %v1814_v2  ;;  %v1027_v2 = vmax.f32 %v1011_v13, 0.0 }
 0x12d   :  { %v992_v16 = vmul.f32 %v1829_v42, %v935_v11  ;;  %v938_v17 = vadd.f32 %v1322_v10, %v841_v12  ;;  %v1259_v18 = vpop.f32.mrb[28].mxu1  ;;  %v1323_v19 = vpop.f32.mrb[28].mxu0  ;;  %v1030_v10 = vmax.f32 %v1014_v53, 0.0 }
 0x12e   :  { %v1260_v21 = vpop.f32.mrb[29].mxu1  ;;  %v1324_v22 = vpop.f32.mrb[29].mxu0 }
 0x12f   :  { %v1015_v60 = vadd.f32 %v1835_v54, %v992_v16  ;;  %v993_v23 = vmul.f32 %v1829_v42, %v938_v17  ;;  %v1261_v24 = vadd.f32 %v1260_v21, %v1259_v18  ;;  %v1325_v25 = vadd.f32 %v1324_v22, %v1323_v19  ;;  %v1262_v26 = vpop.f32.mrb[30].mxu1  ;;  %v1326_v27 = vpop.f32.mrb[30].mxu0 }
 0x130   :  { %v1263_v29 = vpop.f32.mrb[31].mxu1  ;;  %v1327_v30 = vpop.f32.mrb[31].mxu0 }
 0x131   :  { %v1031_v31 = vmax.f32 %v1015_v60, 0.0  ;;  %v1016_v32 = vadd.f32 %v1835_v54, %v993_v23  ;;  %v846_v33 = vadd.f32 %v1261_v24, %v1818_v8  ;;  %v1264_v34 = vadd.f32 %v1263_v29, %v1262_v26 }
 0x132   :  { %v1328_v39 = vadd.f32 %v1327_v30, %v1326_v27 }
 0x133   :  { %v1849_v40 = vmax.f32 %v1027_v2, %v1031_v31  ;;  %v1032_v41 = vmax.f32 %v1016_v32, 0.0  ;;  %v943_v44 = vadd.f32 %v1325_v25, %v846_v33  ;;  %v849_v45 = vadd.f32 %v1264_v34, %v1822_v14 }
 0x135   :  { %v1853_v47 = vmax.f32 %v1028_v35, %v1032_v41  ;;  %v994_v50 = vmul.f32 %v1829_v42, %v943_v44  ;;  %v946_v51 = vadd.f32 %v1328_v39, %v849_v45  ;;  %v1265_v36 = vpop.f32.mrb[32].mxu1  ;;  %v1329_v8 = vpop.f32.mrb[32].mxu0 }
 0x136   :  { %v1266_v56 = vpop.f32.mrb[33].mxu1  ;;  %v1330_v52 = vpop.f32.mrb[33].mxu0 }
 0x137   :  { %v1017_v57 = vadd.f32 %v1835_v54, %v994_v50  ;;  %v995_v58 = vmul.f32 %v1829_v42, %v946_v51  ;;  %v1267_v59 = vadd.f32 %v1266_v56, %v1265_v36  ;;  %v1331_v62 = vadd.f32 %v1330_v52, %v1329_v8  ;;  %v1268_v14 = vpop.f32.mrb[34].mxu1  ;;  %v1332_v63 = vpop.f32.mrb[34].mxu0 }
 0x138   :  { %v1269_v48 = vpop.f32.mrb[35].mxu1  ;;  %v1333_v1 = vpop.f32.mrb[35].mxu0 }
 0x139   :  { %v1033_v4 = vmax.f32 %v1017_v57, 0.0  ;;  %v1018_v5 = vadd.f32 %v1835_v54, %v995_v58  ;;  %v854_v6 = vadd.f32 %v1267_v59, %v1802_v37  ;;  %v1270_v7 = vadd.f32 %v1269_v48, %v1268_v14 }
 0x13a   :  { %v1334_v11 = vadd.f32 %v1333_v1, %v1332_v63 }
 0x13b   :  { %v1861_v12 = vmax.f32 %v1029_v0, %v1033_v4  ;;  %v1034_v13 = vmax.f32 %v1018_v5, 0.0  ;;  %v951_v16 = vadd.f32 %v1331_v62, %v854_v6  ;;  %v857_v17 = vadd.f32 %v1270_v7, %v1804_v43 }
 0x13d   :  { %v1864_v18 = vmax.f32 %v1030_v10, %v1034_v13  ;;  %v954_v19 = vadd.f32 %v1334_v11, %v857_v17  ;;  %v1271_v20 = vpop.f32.mrb[36].mxu1  ;;  %v1335_v21 = vpop.f32.mrb[36].mxu0  ;;  %v996_v45 = vmul.f32 %v1829_v42, %v951_v16 }
 0x13e   :  { %v1272_v22 = vpop.f32.mrb[37].mxu1  ;;  %v1336_v60 = vpop.f32.mrb[37].mxu0 }
 0x13f   :  { %v1273_v23 = vadd.f32 %v1272_v22, %v1271_v20  ;;  %v1337_v24 = vadd.f32 %v1336_v60, %v1335_v21  ;;  %v1274_v25 = vpop.f32.mrb[38].mxu1  ;;  %v1338_v37 = vpop.f32.mrb[38].mxu0  ;;  %v997_v36 = vmul.f32 %v1829_v42, %v954_v19  ;;  %v1019_v56 = vadd.f32 %v1835_v54, %v996_v45 }
 0x140   :  { %v1275_v26 = vpop.f32.mrb[39].mxu1  ;;  %v1339_v27 = vpop.f32.mrb[39].mxu0 }
 0x141   :  { %v862_v2 = vadd.f32 %v1273_v23, %v1806_v49  ;;  %v1276_v28 = vadd.f32 %v1275_v26, %v1274_v25  ;;  %v1340_v29 = vadd.f32 %v1339_v27, %v1338_v37  ;;  %v1020_v62 = vadd.f32 %v1835_v54, %v997_v36 }
 0x143   :  { %v959_v30 = vadd.f32 %v1337_v24, %v862_v2  ;;  %v865_v43 = vadd.f32 %v1276_v28, %v1808_v55  ;;  %v1036_v19 = vmax.f32 %v1020_v62, 0.0 }
 0x145   :  { %v962_v31 = vadd.f32 %v1340_v29, %v865_v43  ;;  %v1277_v32 = vpop.f32.mrb[40].mxu1  ;;  %v1341_v33 = vpop.f32.mrb[40].mxu0  ;;  %v998_v6 = vmul.f32 %v1829_v42, %v959_v30 }
 0x146   :  { %v1278_v34 = vpop.f32.mrb[41].mxu1  ;;  %v1342_v35 = vpop.f32.mrb[41].mxu0 }
 0x147   :  { %v1279_v38 = vadd.f32 %v1278_v34, %v1277_v32  ;;  %v1343_v39 = vadd.f32 %v1342_v35, %v1341_v33  ;;  %v1280_v41 = vpop.f32.mrb[42].mxu1  ;;  %v1344_v44 = vpop.f32.mrb[42].mxu0  ;;  %v999_v20 = vmul.f32 %v1829_v42, %v962_v31  ;;  %v1021_v25 = vadd.f32 %v1835_v54, %v998_v6 }
 0x148   :  { %v1281_v46 = vpop.f32.mrb[43].mxu1  ;;  %v1345_v50 = vpop.f32.mrb[43].mxu0 }
 0x149   :  { %v870_v49 = vadd.f32 %v1279_v38, %v1812_v61  ;;  %v1282_v51 = vadd.f32 %v1281_v46, %v1280_v41  ;;  %v1346_v8 = vadd.f32 %v1345_v50, %v1344_v44  ;;  %v1037_v30 = vmax.f32 %v1021_v25, 0.0 }
 0x14b   :  { %v967_v55 = vadd.f32 %v1343_v39, %v870_v49  ;;  %v873_v53 = vadd.f32 %v1282_v51, %v1816_v3  ;;  %v1035_v3 = vmax.f32 %v1019_v56, 0.0 }
 0x14d   :  { %v1000_v52 = vmul.f32 %v1829_v42, %v967_v55  ;;  %v970_v57 = vadd.f32 %v1346_v8, %v873_v53  ;;  %v1283_v58 = vpop.f32.mrb[44].mxu1  ;;  %v1347_v59 = vpop.f32.mrb[44].mxu0 }
 0x14e   :  { %v1284_v14 = vpop.f32.mrb[45].mxu1  ;;  %v1348_v63 = vpop.f32.mrb[45].mxu0 }
 0x14f   :  { %v1023_v61 = vadd.f32 %v1835_v54, %v1000_v52  ;;  %v1001_v0 = vmul.f32 %v1829_v42, %v970_v57  ;;  %v1285_v48 = vadd.f32 %v1284_v14, %v1283_v58  ;;  %v1349_v1 = vadd.f32 %v1348_v63, %v1347_v59  ;;  %v1286_v4 = vpop.f32.mrb[46].mxu1  ;;  %v1350_v5 = vpop.f32.mrb[46].mxu0 }
 0x150   :  { %v1287_v7 = vpop.f32.mrb[47].mxu1  ;;  %v1351_v10 = vpop.f32.mrb[47].mxu0 }
 0x151   :  { %v1039_v11 = vmax.f32 %v1023_v61, 0.0  ;;  %v1024_v13 = vadd.f32 %v1835_v54, %v1001_v0  ;;  %v878_v16 = vadd.f32 %v1285_v48, %v1820_v9  ;;  %v1288_v17 = vadd.f32 %v1287_v7, %v1286_v4 }
 0x152   :  { %v1352_v21 = vadd.f32 %v1351_v10, %v1350_v5  ;;  %v1022_v9 = vadd.f32 %v1835_v54, %v999_v20 }
 0x153   :  { %v1047_v22 = vmax.f32 %v1035_v3, %v1039_v11  ;;  %v1040_v60 = vmax.f32 %v1024_v13, 0.0  ;;  %v975_v23 = vadd.f32 %v1349_v1, %v878_v16  ;;  %v881_v24 = vadd.f32 %v1288_v17, %v1824_v15 }
 0x154   :  { %v1038_v31 = vmax.f32 %v1022_v9, 0.0 }
 0x155   :  { %v1051_v37 = vmax.f32 %v1849_v40, %v1047_v22  ;;  %v1048_v26 = vmax.f32 %v1036_v19, %v1040_v60  ;;  %v1002_v27 = vmul.f32 %v1829_v42, %v975_v23  ;;  %v978_v2 = vadd.f32 %v1352_v21, %v881_v24 }
 0x157   :  { %1055 = vst [vmem:[%s1908_s4] sm:$0xff] %v1051_v37  ;;  %v1052_v28 = vmax.f32 %v1853_v47, %v1048_v26  ;;  %v1025_v29 = vadd.f32 %v1835_v54, %v1002_v27  ;;  %v1003_v15 = vmul.f32 %v1829_v42, %v978_v2 }
 0x159   :  { %1056 = vst [vmem:[%s1908_s4 + $0x8] sm:$0xff] %v1052_v28  ;;  %v1041_v40 = vmax.f32 %v1025_v29, 0.0  ;;  %v1026_v43 = vadd.f32 %v1835_v54, %v1003_v15 }
 0x15b   :  { %v1049_v32 = vmax.f32 %v1037_v30, %v1041_v40  ;;  %v1042_v33 = vmax.f32 %v1026_v43, 0.0 }
 0x15d   :  { %v1053_v34 = vmax.f32 %v1861_v12, %v1049_v32  ;;  %v1050_v35 = vmax.f32 %v1038_v31, %v1042_v33 }
 0x15f   :  { %1057 = vst [vmem:[%s1908_s4 + $0x10] sm:$0xff] %v1053_v34  ;;  %v1054_v42 = vmax.f32 %v1864_v18, %v1050_v35 }
 0x161   :  { %1058 = vst [vmem:[%s1908_s4 + $0x18] sm:$0xff] %v1054_v42 }

// kernel: _lambda_.6
= control target key start
LH: loop header
LB: loop body
LE: loop exit
PB: predicated region body
PF: predicated region fallthrough
CT: control target
= control target key end

     0   :  { %s5486_s15 = smov 0   ;;  %s5488_s16 = smov 0   ;;  %s6707_s0 = inlined_call_operand.vmem [shape: bf16[32,3200], index: 0, kind: input, shape index: {}]   ;;  %s6708_s1 = inlined_call_operand.vmem [shape: bf16[3200,256], index: 1, kind: input, shape index: {}]   ;;  %s6709_s2 = inlined_call_operand.vmem [shape: f32[1,256], index: 2, kind: input, shape index: {}]   ;;  %s6710_s3 = inlined_call_operand.vmem [shape: f32[1,256], index: 3, kind: input, shape index: {}]   ;;  %s6711_s4 = inlined_call_operand.vmem [shape: f32[8,256], index: 4, kind: output, shape index: {}]  }
   0x1   :  { %s5490_s17 = smov 0  }
   0x2 LB: > { %s4510_s18 = sadd.s32 4294967295, %s5459_s17   ;;  %s5503_s19 = sadd.s32 1, %s5459_s17   ;;  %s5459_s17 = sphi %s5490_s17, %s6714_s17   ;;  %s5455_s16 = sphi %s5488_s16, %s6713_s16   ;;  %s5451_s15 = sphi %s5486_s15, %s6712_s15  }
   0x3   : > { %s39_s20 = ssub.s32 %s5459_s17, %s5503_s19  ;;  %s42_s21 = sadd.s32 1, %s5455_s16 }
   0x4   : > { %p40_p0 = scmp.eq.s32.totalorder %s39_s20, 0  ;;  %p49_p1 = scmp.ne.s32.totalorder %s5455_s16, %s5451_s15 }
   0x5   : > { %p50_p2 = scmp.eq.s32.totalorder %s5459_s17, 0  ;;  %p4513_p4 = scmp.ge.s32.totalorder %s5459_s17, 2 }
   0x6   : > { %s5512_s22 = scalar_select %p40_p0, %s5455_s16, %s42_s21  }
   0x7   : > { %p51_p3 = por %p50_p2, %p49_p1  ;;  %156 = sbr.rel (%p4513_p4) target bundleno = 285 (0x11d), region = 20 }
   0xe   : > { %159 = sbr.rel (!%p51_p3) target bundleno = 285 (0x11d), region = 24  ;;  %s161_s23 = sand.u32 (%p51_p3), 1, %s5455_s16  }
   0xf   : > { %s4514_s24 = sshll.u32 (%p51_p3), %s5459_s17, 2  ;;  %s5137_s25 = smul.u32 (%p51_p3), 1600, %s161_s23 }
  0x10   : > { %s5520_s28 = scalar_lea.vmem (%p51_p3), %s6708_s1, %s4514_s24 }
  0x11   : > { %v181_v0 = vld [vmem:[%s5520_s28] sm:$0xf] (%p51_p3)  ;;  %v183_v1 = vld [vmem:[%s5520_s28 + $0x8] sm:$0xf] (%p51_p3)  ;;  %v185_v2 = vld [vmem:[%s5520_s28 + $0x10] sm:$0xf] (%p51_p3) }
  0x12   : > { %v187_v3 = vld [vmem:[%s5520_s28 + $0x18] sm:$0xf] (%p51_p3)  ;;  %v189_v4 = vld [vmem:[%s5520_s28 + $0x20] sm:$0xf] (%p51_p3)  ;;  %s5527_s29 = scalar_lea.vmem (%p51_p3), [#allocation2], %s5137_s25 }
  0x13   : > { %182 = vst [vmem:[%s5527_s29] sm:$0xf] (%p51_p3), %v181_v0  ;;  %184 = vst [vmem:[%s5527_s29 + $0x4] sm:$0xf] (%p51_p3), %v183_v1  ;;  %v191_v5 = vld [vmem:[%s5520_s28 + $0x28] sm:$0xf] (%p51_p3) }
  0x14   : > { %186 = vst [vmem:[%s5527_s29 + $0x8] sm:$0xf] (%p51_p3), %v185_v2  ;;  %188 = vst [vmem:[%s5527_s29 + $0xc] sm:$0xf] (%p51_p3), %v187_v3  ;;  %v193_v6 = vld [vmem:[%s5520_s28 + $0x30] sm:$0xf] (%p51_p3) }
  0x15   : > { %190 = vst [vmem:[%s5527_s29 + $0x10] sm:$0xf] %v189_v4  ;;  %v195_v7 = vld [vmem:[%s5520_s28 + $0x38] sm:$0xf]  ;;  %192 = vst [vmem:[%s5527_s29 + $0x14] sm:$0xf] %v191_v5 }
  0x16   : > { %194 = vst [vmem:[%s5527_s29 + $0x18] sm:$0xf] %v193_v6  ;;  %196 = vst [vmem:[%s5527_s29 + $0x1c] sm:$0xf] %v195_v7  ;;  %v197_v8 = vld [vmem:[%s5520_s28 + $0x40] sm:$0xf] }
  0x17   : > { %v199_v9 = vld [vmem:[%s5520_s28 + $0x48] sm:$0xf]  ;;  %v201_v10 = vld [vmem:[%s5520_s28 + $0x50] sm:$0xf]  ;;  %198 = vst [vmem:[%s5527_s29 + $0x20] sm:$0xf] %v197_v8 }
  0x18   : > { %200 = vst [vmem:[%s5527_s29 + $0x24] sm:$0xf] %v199_v9  ;;  %202 = vst [vmem:[%s5527_s29 + $0x28] sm:$0xf] %v201_v10  ;;  %v203_v11 = vld [vmem:[%s5520_s28 + $0x58] sm:$0xf] }
  0x19   : > { %v205_v12 = vld [vmem:[%s5520_s28 + $0x60] sm:$0xf]  ;;  %v207_v13 = vld [vmem:[%s5520_s28 + $0x68] sm:$0xf]  ;;  %204 = vst [vmem:[%s5527_s29 + $0x2c] sm:$0xf] %v203_v11 }
  0x1a   : > { %206 = vst [vmem:[%s5527_s29 + $0x30] sm:$0xf] %v205_v12  ;;  %208 = vst [vmem:[%s5527_s29 + $0x34] sm:$0xf] %v207_v13  ;;  %v209_v14 = vld [vmem:[%s5520_s28 + $0x70] sm:$0xf] }
  0x1b   : > { %v211_v15 = vld [vmem:[%s5520_s28 + $0x78] sm:$0xf]  ;;  %v213_v16 = vld [vmem:[%s5520_s28 + $0x80] sm:$0xf]  ;;  %210 = vst [vmem:[%s5527_s29 + $0x38] sm:$0xf] %v209_v14 }
  0x1c   : > { %212 = vst [vmem:[%s5527_s29 + $0x3c] sm:$0xf] %v211_v15  ;;  %214 = vst [vmem:[%s5527_s29 + $0x40] sm:$0xf] %v213_v16  ;;  %v215_v17 = vld [vmem:[%s5520_s28 + $0x88] sm:$0xf] }
  0x1d   : > { %v217_v18 = vld [vmem:[%s5520_s28 + $0x90] sm:$0xf]  ;;  %v219_v19 = vld [vmem:[%s5520_s28 + $0x98] sm:$0xf]  ;;  %216 = vst [vmem:[%s5527_s29 + $0x44] sm:$0xf] %v215_v17 }
  0x1e   : > { %218 = vst [vmem:[%s5527_s29 + $0x48] sm:$0xf] %v217_v18  ;;  %220 = vst [vmem:[%s5527_s29 + $0x4c] sm:$0xf] %v219_v19  ;;  %v221_v20 = vld [vmem:[%s5520_s28 + $0xa0] sm:$0xf] }
  0x1f   : > { %v223_v21 = vld [vmem:[%s5520_s28 + $0xa8] sm:$0xf]  ;;  %v225_v22 = vld [vmem:[%s5520_s28 + $0xb0] sm:$0xf]  ;;  %222 = vst [vmem:[%s5527_s29 + $0x50] sm:$0xf] %v221_v20 }
  0x20   : > { %224 = vst [vmem:[%s5527_s29 + $0x54] sm:$0xf] %v223_v21  ;;  %226 = vst [vmem:[%s5527_s29 + $0x58] sm:$0xf] %v225_v22  ;;  %v227_v23 = vld [vmem:[%s5520_s28 + $0xb8] sm:$0xf] }
  0x21   : > { %v229_v24 = vld [vmem:[%s5520_s28 + $0xc0] sm:$0xf]  ;;  %v231_v25 = vld [vmem:[%s5520_s28 + $0xc8] sm:$0xf]  ;;  %228 = vst [vmem:[%s5527_s29 + $0x5c] sm:$0xf] %v227_v23 }
  0x22   : > { %230 = vst [vmem:[%s5527_s29 + $0x60] sm:$0xf] %v229_v24  ;;  %232 = vst [vmem:[%s5527_s29 + $0x64] sm:$0xf] %v231_v25  ;;  %v233_v26 = vld [vmem:[%s5520_s28 + $0xd0] sm:$0xf] }
  0x23   : > { %v235_v27 = vld [vmem:[%s5520_s28 + $0xd8] sm:$0xf]  ;;  %v237_v28 = vld [vmem:[%s5520_s28 + $0xe0] sm:$0xf]  ;;  %234 = vst [vmem:[%s5527_s29 + $0x68] sm:$0xf] %v233_v26 }
  0x24   : > { %236 = vst [vmem:[%s5527_s29 + $0x6c] sm:$0xf] %v235_v27  ;;  %238 = vst [vmem:[%s5527_s29 + $0x70] sm:$0xf] %v237_v28  ;;  %v239_v29 = vld [vmem:[%s5520_s28 + $0xe8] sm:$0xf] }
  0x25   : > { %v241_v30 = vld [vmem:[%s5520_s28 + $0xf0] sm:$0xf]  ;;  %v243_v31 = vld [vmem:[%s5520_s28 + $0xf8] sm:$0xf]  ;;  %240 = vst [vmem:[%s5527_s29 + $0x74] sm:$0xf] %v239_v29 }
  0x26   : > { %242 = vst [vmem:[%s5527_s29 + $0x78] sm:$0xf] %v241_v30  ;;  %244 = vst [vmem:[%s5527_s29 + $0x7c] sm:$0xf] %v243_v31  ;;  %v245_v32 = vld [vmem:[%s5520_s28 + $0x100] sm:$0xf] }
  0x27   : > { %v247_v33 = vld [vmem:[%s5520_s28 + $0x108] sm:$0xf]  ;;  %v249_v34 = vld [vmem:[%s5520_s28 + $0x110] sm:$0xf]  ;;  %246 = vst [vmem:[%s5527_s29 + $0x80] sm:$0xf] %v245_v32 }
  0x28   : > { %248 = vst [vmem:[%s5527_s29 + $0x84] sm:$0xf] %v247_v33  ;;  %250 = vst [vmem:[%s5527_s29 + $0x88] sm:$0xf] %v249_v34  ;;  %v251_v35 = vld [vmem:[%s5520_s28 + $0x118] sm:$0xf] }
  0x29   : > { %v253_v36 = vld [vmem:[%s5520_s28 + $0x120] sm:$0xf]  ;;  %v255_v37 = vld [vmem:[%s5520_s28 + $0x128] sm:$0xf]  ;;  %252 = vst [vmem:[%s5527_s29 + $0x8c] sm:$0xf] %v251_v35 }
  0x2a   : > { %254 = vst [vmem:[%s5527_s29 + $0x90] sm:$0xf] %v253_v36  ;;  %256 = vst [vmem:[%s5527_s29 + $0x94] sm:$0xf] %v255_v37  ;;  %v257_v38 = vld [vmem:[%s5520_s28 + $0x130] sm:$0xf] }
  0x2b   : > { %v259_v39 = vld [vmem:[%s5520_s28 + $0x138] sm:$0xf]  ;;  %v261_v40 = vld [vmem:[%s5520_s28 + $0x140] sm:$0xf]  ;;  %258 = vst [vmem:[%s5527_s29 + $0x98] sm:$0xf] %v257_v38 }
  0x2c   : > { %260 = vst [vmem:[%s5527_s29 + $0x9c] sm:$0xf] %v259_v39  ;;  %262 = vst [vmem:[%s5527_s29 + $0xa0] sm:$0xf] %v261_v40  ;;  %v263_v41 = vld [vmem:[%s5520_s28 + $0x148] sm:$0xf] }
  0x2d   : > { %v265_v42 = vld [vmem:[%s5520_s28 + $0x150] sm:$0xf]  ;;  %v267_v43 = vld [vmem:[%s5520_s28 + $0x158] sm:$0xf]  ;;  %264 = vst [vmem:[%s5527_s29 + $0xa4] sm:$0xf] %v263_v41 }
  0x2e   : > { %266 = vst [vmem:[%s5527_s29 + $0xa8] sm:$0xf] %v265_v42  ;;  %268 = vst [vmem:[%s5527_s29 + $0xac] sm:$0xf] %v267_v43  ;;  %v269_v44 = vld [vmem:[%s5520_s28 + $0x160] sm:$0xf] }
  0x2f   : > { %v271_v45 = vld [vmem:[%s5520_s28 + $0x168] sm:$0xf]  ;;  %v273_v46 = vld [vmem:[%s5520_s28 + $0x170] sm:$0xf]  ;;  %270 = vst [vmem:[%s5527_s29 + $0xb0] sm:$0xf] %v269_v44 }
  0x30   : > { %272 = vst [vmem:[%s5527_s29 + $0xb4] sm:$0xf] %v271_v45  ;;  %274 = vst [vmem:[%s5527_s29 + $0xb8] sm:$0xf] %v273_v46  ;;  %v275_v47 = vld [vmem:[%s5520_s28 + $0x178] sm:$0xf] }
  0x31   : > { %v277_v48 = vld [vmem:[%s5520_s28 + $0x180] sm:$0xf]  ;;  %v279_v49 = vld [vmem:[%s5520_s28 + $0x188] sm:$0xf]  ;;  %276 = vst [vmem:[%s5527_s29 + $0xbc] sm:$0xf] %v275_v47 }
  0x32   : > { %278 = vst [vmem:[%s5527_s29 + $0xc0] sm:$0xf] %v277_v48  ;;  %280 = vst [vmem:[%s5527_s29 + $0xc4] sm:$0xf] %v279_v49  ;;  %v281_v50 = vld [vmem:[%s5520_s28 + $0x190] sm:$0xf] }
  0x33   : > { %v283_v51 = vld [vmem:[%s5520_s28 + $0x198] sm:$0xf]  ;;  %v285_v52 = vld [vmem:[%s5520_s28 + $0x1a0] sm:$0xf]  ;;  %282 = vst [vmem:[%s5527_s29 + $0xc8] sm:$0xf] %v281_v50 }
  0x34   : > { %284 = vst [vmem:[%s5527_s29 + $0xcc] sm:$0xf] %v283_v51  ;;  %286 = vst [vmem:[%s5527_s29 + $0xd0] sm:$0xf] %v285_v52  ;;  %v287_v53 = vld [vmem:[%s5520_s28 + $0x1a8] sm:$0xf] }
  0x35   : > { %v289_v54 = vld [vmem:[%s5520_s28 + $0x1b0] sm:$0xf]  ;;  %v291_v55 = vld [vmem:[%s5520_s28 + $0x1b8] sm:$0xf]  ;;  %288 = vst [vmem:[%s5527_s29 + $0xd4] sm:$0xf] %v287_v53 }
  0x36   : > { %290 = vst [vmem:[%s5527_s29 + $0xd8] sm:$0xf] %v289_v54  ;;  %292 = vst [vmem:[%s5527_s29 + $0xdc] sm:$0xf] %v291_v55  ;;  %v293_v56 = vld [vmem:[%s5520_s28 + $0x1c0] sm:$0xf] }
  0x37   : > { %v295_v57 = vld [vmem:[%s5520_s28 + $0x1c8] sm:$0xf]  ;;  %v297_v58 = vld [vmem:[%s5520_s28 + $0x1d0] sm:$0xf]  ;;  %294 = vst [vmem:[%s5527_s29 + $0xe0] sm:$0xf] %v293_v56 }
  0x38   : > { %296 = vst [vmem:[%s5527_s29 + $0xe4] sm:$0xf] %v295_v57  ;;  %298 = vst [vmem:[%s5527_s29 + $0xe8] sm:$0xf] %v297_v58  ;;  %v299_v59 = vld [vmem:[%s5520_s28 + $0x1d8] sm:$0xf] }
  0x39   : > { %v301_v60 = vld [vmem:[%s5520_s28 + $0x1e0] sm:$0xf]  ;;  %v303_v61 = vld [vmem:[%s5520_s28 + $0x1e8] sm:$0xf]  ;;  %300 = vst [vmem:[%s5527_s29 + $0xec] sm:$0xf] %v299_v59 }
  0x3a   : > { %302 = vst [vmem:[%s5527_s29 + $0xf0] sm:$0xf] %v301_v60  ;;  %304 = vst [vmem:[%s5527_s29 + $0xf4] sm:$0xf] %v303_v61  ;;  %v305_v62 = vld [vmem:[%s5520_s28 + $0x1f0] sm:$0xf] }
  0x3b   : > { %v307_v63 = vld [vmem:[%s5520_s28 + $0x1f8] sm:$0xf]  ;;  %v309_v0 = vld [vmem:[%s5520_s28 + $0x200] sm:$0xf]  ;;  %306 = vst [vmem:[%s5527_s29 + $0xf8] sm:$0xf] %v305_v62 }
  0x3c   : > { %308 = vst [vmem:[%s5527_s29 + $0xfc] sm:$0xf] %v307_v63  ;;  %310 = vst [vmem:[%s5527_s29 + $0x100] sm:$0xf] %v309_v0  ;;  %v311_v1 = vld [vmem:[%s5520_s28 + $0x208] sm:$0xf] }
  0x3d   : > { %v313_v2 = vld [vmem:[%s5520_s28 + $0x210] sm:$0xf]  ;;  %v315_v3 = vld [vmem:[%s5520_s28 + $0x218] sm:$0xf]  ;;  %312 = vst [vmem:[%s5527_s29 + $0x104] sm:$0xf] %v311_v1 }
  0x3e   : > { %314 = vst [vmem:[%s5527_s29 + $0x108] sm:$0xf] %v313_v2  ;;  %316 = vst [vmem:[%s5527_s29 + $0x10c] sm:$0xf] %v315_v3  ;;  %v317_v4 = vld [vmem:[%s5520_s28 + $0x220] sm:$0xf] }
  0x3f   : > { %v319_v5 = vld [vmem:[%s5520_s28 + $0x228] sm:$0xf]  ;;  %v321_v6 = vld [vmem:[%s5520_s28 + $0x230] sm:$0xf]  ;;  %318 = vst [vmem:[%s5527_s29 + $0x110] sm:$0xf] %v317_v4 }
  0x40   : > { %320 = vst [vmem:[%s5527_s29 + $0x114] sm:$0xf] %v319_v5  ;;  %322 = vst [vmem:[%s5527_s29 + $0x118] sm:$0xf] %v321_v6  ;;  %v323_v7 = vld [vmem:[%s5520_s28 + $0x238] sm:$0xf] }
  0x41   : > { %v325_v8 = vld [vmem:[%s5520_s28 + $0x240] sm:$0xf]  ;;  %v327_v9 = vld [vmem:[%s5520_s28 + $0x248] sm:$0xf]  ;;  %324 = vst [vmem:[%s5527_s29 + $0x11c] sm:$0xf] %v323_v7 }
  0x42   : > { %326 = vst [vmem:[%s5527_s29 + $0x120] sm:$0xf] %v325_v8  ;;  %328 = vst [vmem:[%s5527_s29 + $0x124] sm:$0xf] %v327_v9  ;;  %v329_v10 = vld [vmem:[%s5520_s28 + $0x250] sm:$0xf] }
  0x43   : > { %v331_v11 = vld [vmem:[%s5520_s28 + $0x258] sm:$0xf]  ;;  %v333_v12 = vld [vmem:[%s5520_s28 + $0x260] sm:$0xf]  ;;  %330 = vst [vmem:[%s5527_s29 + $0x128] sm:$0xf] %v329_v10 }
  0x44   : > { %332 = vst [vmem:[%s5527_s29 + $0x12c] sm:$0xf] %v331_v11  ;;  %334 = vst [vmem:[%s5527_s29 + $0x130] sm:$0xf] %v333_v12  ;;  %v335_v13 = vld [vmem:[%s5520_s28 + $0x268] sm:$0xf] }
  0x45   : > { %v337_v14 = vld [vmem:[%s5520_s28 + $0x270] sm:$0xf]  ;;  %v339_v15 = vld [vmem:[%s5520_s28 + $0x278] sm:$0xf]  ;;  %336 = vst [vmem:[%s5527_s29 + $0x134] sm:$0xf] %v335_v13 }
  0x46   : > { %338 = vst [vmem:[%s5527_s29 + $0x138] sm:$0xf] %v337_v14  ;;  %340 = vst [vmem:[%s5527_s29 + $0x13c] sm:$0xf] %v339_v15  ;;  %v341_v16 = vld [vmem:[%s5520_s28 + $0x280] sm:$0xf] }
  0x47   : > { %v343_v17 = vld [vmem:[%s5520_s28 + $0x288] sm:$0xf]  ;;  %v345_v18 = vld [vmem:[%s5520_s28 + $0x290] sm:$0xf]  ;;  %342 = vst [vmem:[%s5527_s29 + $0x140] sm:$0xf] %v341_v16 }
  0x48   : > { %344 = vst [vmem:[%s5527_s29 + $0x144] sm:$0xf] %v343_v17  ;;  %346 = vst [vmem:[%s5527_s29 + $0x148] sm:$0xf] %v345_v18  ;;  %v347_v19 = vld [vmem:[%s5520_s28 + $0x298] sm:$0xf] }
  0x49   : > { %v349_v20 = vld [vmem:[%s5520_s28 + $0x2a0] sm:$0xf]  ;;  %v351_v21 = vld [vmem:[%s5520_s28 + $0x2a8] sm:$0xf]  ;;  %348 = vst [vmem:[%s5527_s29 + $0x14c] sm:$0xf] %v347_v19 }
  0x4a   : > { %350 = vst [vmem:[%s5527_s29 + $0x150] sm:$0xf] %v349_v20  ;;  %352 = vst [vmem:[%s5527_s29 + $0x154] sm:$0xf] %v351_v21  ;;  %v353_v22 = vld [vmem:[%s5520_s28 + $0x2b0] sm:$0xf] }
  0x4b   : > { %v355_v23 = vld [vmem:[%s5520_s28 + $0x2b8] sm:$0xf]  ;;  %v357_v24 = vld [vmem:[%s5520_s28 + $0x2c0] sm:$0xf]  ;;  %354 = vst [vmem:[%s5527_s29 + $0x158] sm:$0xf] %v353_v22 }
  0x4c   : > { %356 = vst [vmem:[%s5527_s29 + $0x15c] sm:$0xf] %v355_v23  ;;  %358 = vst [vmem:[%s5527_s29 + $0x160] sm:$0xf] %v357_v24  ;;  %v359_v25 = vld [vmem:[%s5520_s28 + $0x2c8] sm:$0xf] }
  0x4d   : > { %v361_v26 = vld [vmem:[%s5520_s28 + $0x2d0] sm:$0xf]  ;;  %v363_v27 = vld [vmem:[%s5520_s28 + $0x2d8] sm:$0xf]  ;;  %360 = vst [vmem:[%s5527_s29 + $0x164] sm:$0xf] %v359_v25 }
  0x4e   : > { %362 = vst [vmem:[%s5527_s29 + $0x168] sm:$0xf] %v361_v26  ;;  %364 = vst [vmem:[%s5527_s29 + $0x16c] sm:$0xf] %v363_v27  ;;  %v365_v28 = vld [vmem:[%s5520_s28 + $0x2e0] sm:$0xf] }
  0x4f   : > { %v367_v29 = vld [vmem:[%s5520_s28 + $0x2e8] sm:$0xf]  ;;  %v369_v30 = vld [vmem:[%s5520_s28 + $0x2f0] sm:$0xf]  ;;  %366 = vst [vmem:[%s5527_s29 + $0x170] sm:$0xf] %v365_v28 }
  0x50   : > { %368 = vst [vmem:[%s5527_s29 + $0x174] sm:$0xf] %v367_v29  ;;  %370 = vst [vmem:[%s5527_s29 + $0x178] sm:$0xf] %v369_v30  ;;  %v371_v31 = vld [vmem:[%s5520_s28 + $0x2f8] sm:$0xf] }
  0x51   : > { %v373_v32 = vld [vmem:[%s5520_s28 + $0x300] sm:$0xf]  ;;  %v375_v33 = vld [vmem:[%s5520_s28 + $0x308] sm:$0xf]  ;;  %372 = vst [vmem:[%s5527_s29 + $0x17c] sm:$0xf] %v371_v31 }
  0x52   : > { %374 = vst [vmem:[%s5527_s29 + $0x180] sm:$0xf] %v373_v32  ;;  %376 = vst [vmem:[%s5527_s29 + $0x184] sm:$0xf] %v375_v33  ;;  %v377_v34 = vld [vmem:[%s5520_s28 + $0x310] sm:$0xf] }
  0x53   : > { %v379_v35 = vld [vmem:[%s5520_s28 + $0x318] sm:$0xf]  ;;  %v381_v36 = vld [vmem:[%s5520_s28 + $0x320] sm:$0xf]  ;;  %378 = vst [vmem:[%s5527_s29 + $0x188] sm:$0xf] %v377_v34 }
  0x54   : > { %380 = vst [vmem:[%s5527_s29 + $0x18c] sm:$0xf] %v379_v35  ;;  %382 = vst [vmem:[%s5527_s29 + $0x190] sm:$0xf] %v381_v36  ;;  %v383_v37 = vld [vmem:[%s5520_s28 + $0x328] sm:$0xf] }
  0x55   : > { %v385_v38 = vld [vmem:[%s5520_s28 + $0x330] sm:$0xf]  ;;  %v387_v39 = vld [vmem:[%s5520_s28 + $0x338] sm:$0xf]  ;;  %384 = vst [vmem:[%s5527_s29 + $0x194] sm:$0xf] %v383_v37 }
  0x56   : > { %386 = vst [vmem:[%s5527_s29 + $0x198] sm:$0xf] %v385_v38  ;;  %388 = vst [vmem:[%s5527_s29 + $0x19c] sm:$0xf] %v387_v39  ;;  %v389_v40 = vld [vmem:[%s5520_s28 + $0x340] sm:$0xf] }
  0x57   : > { %v391_v41 = vld [vmem:[%s5520_s28 + $0x348] sm:$0xf]  ;;  %v393_v42 = vld [vmem:[%s5520_s28 + $0x350] sm:$0xf]  ;;  %390 = vst [vmem:[%s5527_s29 + $0x1a0] sm:$0xf] %v389_v40 }
  0x58   : > { %392 = vst [vmem:[%s5527_s29 + $0x1a4] sm:$0xf] %v391_v41  ;;  %394 = vst [vmem:[%s5527_s29 + $0x1a8] sm:$0xf] %v393_v42  ;;  %v395_v43 = vld [vmem:[%s5520_s28 + $0x358] sm:$0xf] }
  0x59   : > { %v397_v44 = vld [vmem:[%s5520_s28 + $0x360] sm:$0xf]  ;;  %v399_v45 = vld [vmem:[%s5520_s28 + $0x368] sm:$0xf]  ;;  %396 = vst [vmem:[%s5527_s29 + $0x1ac] sm:$0xf] %v395_v43 }
  0x5a   : > { %398 = vst [vmem:[%s5527_s29 + $0x1b0] sm:$0xf] %v397_v44  ;;  %400 = vst [vmem:[%s5527_s29 + $0x1b4] sm:$0xf] %v399_v45  ;;  %v401_v46 = vld [vmem:[%s5520_s28 + $0x370] sm:$0xf] }
  0x5b   : > { %v403_v47 = vld [vmem:[%s5520_s28 + $0x378] sm:$0xf]  ;;  %v405_v48 = vld [vmem:[%s5520_s28 + $0x380] sm:$0xf]  ;;  %402 = vst [vmem:[%s5527_s29 + $0x1b8] sm:$0xf] %v401_v46 }
  0x5c   : > { %404 = vst [vmem:[%s5527_s29 + $0x1bc] sm:$0xf] %v403_v47  ;;  %406 = vst [vmem:[%s5527_s29 + $0x1c0] sm:$0xf] %v405_v48  ;;  %v407_v49 = vld [vmem:[%s5520_s28 + $0x388] sm:$0xf] }
  0x5d   : > { %v409_v50 = vld [vmem:[%s5520_s28 + $0x390] sm:$0xf]  ;;  %v411_v51 = vld [vmem:[%s5520_s28 + $0x398] sm:$0xf]  ;;  %408 = vst [vmem:[%s5527_s29 + $0x1c4] sm:$0xf] %v407_v49 }
  0x5e   : > { %410 = vst [vmem:[%s5527_s29 + $0x1c8] sm:$0xf] %v409_v50  ;;  %412 = vst [vmem:[%s5527_s29 + $0x1cc] sm:$0xf] %v411_v51  ;;  %v413_v52 = vld [vmem:[%s5520_s28 + $0x3a0] sm:$0xf] }
  0x5f   : > { %v415_v53 = vld [vmem:[%s5520_s28 + $0x3a8] sm:$0xf]  ;;  %v417_v54 = vld [vmem:[%s5520_s28 + $0x3b0] sm:$0xf]  ;;  %414 = vst [vmem:[%s5527_s29 + $0x1d0] sm:$0xf] %v413_v52 }
  0x60   : > { %416 = vst [vmem:[%s5527_s29 + $0x1d4] sm:$0xf] %v415_v53  ;;  %418 = vst [vmem:[%s5527_s29 + $0x1d8] sm:$0xf] %v417_v54  ;;  %v419_v55 = vld [vmem:[%s5520_s28 + $0x3b8] sm:$0xf] }
  0x61   : > { %v421_v56 = vld [vmem:[%s5520_s28 + $0x3c0] sm:$0xf]  ;;  %v423_v57 = vld [vmem:[%s5520_s28 + $0x3c8] sm:$0xf]  ;;  %420 = vst [vmem:[%s5527_s29 + $0x1dc] sm:$0xf] %v419_v55 }
  0x62   : > { %422 = vst [vmem:[%s5527_s29 + $0x1e0] sm:$0xf] %v421_v56  ;;  %424 = vst [vmem:[%s5527_s29 + $0x1e4] sm:$0xf] %v423_v57  ;;  %v425_v58 = vld [vmem:[%s5520_s28 + $0x3d0] sm:$0xf] }
  0x63   : > { %v427_v59 = vld [vmem:[%s5520_s28 + $0x3d8] sm:$0xf]  ;;  %v429_v60 = vld [vmem:[%s5520_s28 + $0x3e0] sm:$0xf]  ;;  %426 = vst [vmem:[%s5527_s29 + $0x1e8] sm:$0xf] %v425_v58 }
  0x64   : > { %428 = vst [vmem:[%s5527_s29 + $0x1ec] sm:$0xf] %v427_v59  ;;  %430 = vst [vmem:[%s5527_s29 + $0x1f0] sm:$0xf] %v429_v60  ;;  %v431_v61 = vld [vmem:[%s5520_s28 + $0x3e8] sm:$0xf] }
  0x65   : > { %v433_v62 = vld [vmem:[%s5520_s28 + $0x3f0] sm:$0xf]  ;;  %v435_v63 = vld [vmem:[%s5520_s28 + $0x3f8] sm:$0xf]  ;;  %432 = vst [vmem:[%s5527_s29 + $0x1f4] sm:$0xf] %v431_v61 }
  0x66   : > { %434 = vst [vmem:[%s5527_s29 + $0x1f8] sm:$0xf] %v433_v62  ;;  %436 = vst [vmem:[%s5527_s29 + $0x1fc] sm:$0xf] %v435_v63  ;;  %v437_v0 = vld [vmem:[%s5520_s28 + $0x400] sm:$0xf] }
  0x67   : > { %v439_v1 = vld [vmem:[%s5520_s28 + $0x408] sm:$0xf]  ;;  %v441_v2 = vld [vmem:[%s5520_s28 + $0x410] sm:$0xf]  ;;  %438 = vst [vmem:[%s5527_s29 + $0x200] sm:$0xf] %v437_v0 }
  0x68   : > { %440 = vst [vmem:[%s5527_s29 + $0x204] sm:$0xf] %v439_v1  ;;  %442 = vst [vmem:[%s5527_s29 + $0x208] sm:$0xf] %v441_v2  ;;  %v443_v3 = vld [vmem:[%s5520_s28 + $0x418] sm:$0xf] }
  0x69   : > { %v445_v4 = vld [vmem:[%s5520_s28 + $0x420] sm:$0xf]  ;;  %v447_v5 = vld [vmem:[%s5520_s28 + $0x428] sm:$0xf]  ;;  %444 = vst [vmem:[%s5527_s29 + $0x20c] sm:$0xf] %v443_v3 }
  0x6a   : > { %446 = vst [vmem:[%s5527_s29 + $0x210] sm:$0xf] %v445_v4  ;;  %448 = vst [vmem:[%s5527_s29 + $0x214] sm:$0xf] %v447_v5  ;;  %v449_v6 = vld [vmem:[%s5520_s28 + $0x430] sm:$0xf] }
  0x6b   : > { %v451_v7 = vld [vmem:[%s5520_s28 + $0x438] sm:$0xf]  ;;  %v453_v8 = vld [vmem:[%s5520_s28 + $0x440] sm:$0xf]  ;;  %450 = vst [vmem:[%s5527_s29 + $0x218] sm:$0xf] %v449_v6 }
  0x6c   : > { %452 = vst [vmem:[%s5527_s29 + $0x21c] sm:$0xf] %v451_v7  ;;  %454 = vst [vmem:[%s5527_s29 + $0x220] sm:$0xf] %v453_v8  ;;  %v455_v9 = vld [vmem:[%s5520_s28 + $0x448] sm:$0xf] }
  0x6d   : > { %v457_v10 = vld [vmem:[%s5520_s28 + $0x450] sm:$0xf]  ;;  %v459_v11 = vld [vmem:[%s5520_s28 + $0x458] sm:$0xf]  ;;  %456 = vst [vmem:[%s5527_s29 + $0x224] sm:$0xf] %v455_v9 }
  0x6e   : > { %458 = vst [vmem:[%s5527_s29 + $0x228] sm:$0xf] %v457_v10  ;;  %460 = vst [vmem:[%s5527_s29 + $0x22c] sm:$0xf] %v459_v11  ;;  %v461_v12 = vld [vmem:[%s5520_s28 + $0x460] sm:$0xf] }
  0x6f   : > { %v463_v13 = vld [vmem:[%s5520_s28 + $0x468] sm:$0xf]  ;;  %v465_v14 = vld [vmem:[%s5520_s28 + $0x470] sm:$0xf]  ;;  %462 = vst [vmem:[%s5527_s29 + $0x230] sm:$0xf] %v461_v12 }
  0x70   : > { %464 = vst [vmem:[%s5527_s29 + $0x234] sm:$0xf] %v463_v13  ;;  %466 = vst [vmem:[%s5527_s29 + $0x238] sm:$0xf] %v465_v14  ;;  %v467_v15 = vld [vmem:[%s5520_s28 + $0x478] sm:$0xf] }
  0x71   : > { %v469_v16 = vld [vmem:[%s5520_s28 + $0x480] sm:$0xf]  ;;  %v471_v17 = vld [vmem:[%s5520_s28 + $0x488] sm:$0xf]  ;;  %468 = vst [vmem:[%s5527_s29 + $0x23c] sm:$0xf] %v467_v15 }
  0x72   : > { %470 = vst [vmem:[%s5527_s29 + $0x240] sm:$0xf] %v469_v16  ;;  %472 = vst [vmem:[%s5527_s29 + $0x244] sm:$0xf] %v471_v17  ;;  %v473_v18 = vld [vmem:[%s5520_s28 + $0x490] sm:$0xf] }
  0x73   : > { %v475_v19 = vld [vmem:[%s5520_s28 + $0x498] sm:$0xf]  ;;  %v477_v20 = vld [vmem:[%s5520_s28 + $0x4a0] sm:$0xf]  ;;  %474 = vst [vmem:[%s5527_s29 + $0x248] sm:$0xf] %v473_v18 }
  0x74   : > { %476 = vst [vmem:[%s5527_s29 + $0x24c] sm:$0xf] %v475_v19  ;;  %478 = vst [vmem:[%s5527_s29 + $0x250] sm:$0xf] %v477_v20  ;;  %v479_v21 = vld [vmem:[%s5520_s28 + $0x4a8] sm:$0xf] }
  0x75   : > { %v481_v22 = vld [vmem:[%s5520_s28 + $0x4b0] sm:$0xf]  ;;  %v483_v23 = vld [vmem:[%s5520_s28 + $0x4b8] sm:$0xf]  ;;  %480 = vst [vmem:[%s5527_s29 + $0x254] sm:$0xf] %v479_v21 }
  0x76   : > { %482 = vst [vmem:[%s5527_s29 + $0x258] sm:$0xf] %v481_v22  ;;  %484 = vst [vmem:[%s5527_s29 + $0x25c] sm:$0xf] %v483_v23  ;;  %v485_v24 = vld [vmem:[%s5520_s28 + $0x4c0] sm:$0xf] }
  0x77   : > { %v487_v25 = vld [vmem:[%s5520_s28 + $0x4c8] sm:$0xf]  ;;  %v489_v26 = vld [vmem:[%s5520_s28 + $0x4d0] sm:$0xf]  ;;  %486 = vst [vmem:[%s5527_s29 + $0x260] sm:$0xf] %v485_v24 }
  0x78   : > { %488 = vst [vmem:[%s5527_s29 + $0x264] sm:$0xf] %v487_v25  ;;  %490 = vst [vmem:[%s5527_s29 + $0x268] sm:$0xf] %v489_v26  ;;  %v491_v27 = vld [vmem:[%s5520_s28 + $0x4d8] sm:$0xf] }
  0x79   : > { %v493_v28 = vld [vmem:[%s5520_s28 + $0x4e0] sm:$0xf]  ;;  %v495_v29 = vld [vmem:[%s5520_s28 + $0x4e8] sm:$0xf]  ;;  %492 = vst [vmem:[%s5527_s29 + $0x26c] sm:$0xf] %v491_v27 }
  0x7a   : > { %494 = vst [vmem:[%s5527_s29 + $0x270] sm:$0xf] %v493_v28  ;;  %496 = vst [vmem:[%s5527_s29 + $0x274] sm:$0xf] %v495_v29  ;;  %v497_v30 = vld [vmem:[%s5520_s28 + $0x4f0] sm:$0xf] }
  0x7b   : > { %v499_v31 = vld [vmem:[%s5520_s28 + $0x4f8] sm:$0xf]  ;;  %v501_v32 = vld [vmem:[%s5520_s28 + $0x500] sm:$0xf]  ;;  %498 = vst [vmem:[%s5527_s29 + $0x278] sm:$0xf] %v497_v30 }
  0x7c   : > { %500 = vst [vmem:[%s5527_s29 + $0x27c] sm:$0xf] %v499_v31  ;;  %502 = vst [vmem:[%s5527_s29 + $0x280] sm:$0xf] %v501_v32  ;;  %v503_v33 = vld [vmem:[%s5520_s28 + $0x508] sm:$0xf] }
  0x7d   : > { %v505_v34 = vld [vmem:[%s5520_s28 + $0x510] sm:$0xf]  ;;  %v507_v35 = vld [vmem:[%s5520_s28 + $0x518] sm:$0xf]  ;;  %504 = vst [vmem:[%s5527_s29 + $0x284] sm:$0xf] %v503_v33 }
  0x7e   : > { %506 = vst [vmem:[%s5527_s29 + $0x288] sm:$0xf] %v505_v34  ;;  %508 = vst [vmem:[%s5527_s29 + $0x28c] sm:$0xf] %v507_v35  ;;  %v509_v36 = vld [vmem:[%s5520_s28 + $0x520] sm:$0xf] }
  0x7f   : > { %v511_v37 = vld [vmem:[%s5520_s28 + $0x528] sm:$0xf]  ;;  %v513_v38 = vld [vmem:[%s5520_s28 + $0x530] sm:$0xf]  ;;  %510 = vst [vmem:[%s5527_s29 + $0x290] sm:$0xf] %v509_v36 }
  0x80   : > { %512 = vst [vmem:[%s5527_s29 + $0x294] sm:$0xf] %v511_v37  ;;  %514 = vst [vmem:[%s5527_s29 + $0x298] sm:$0xf] %v513_v38  ;;  %v515_v39 = vld [vmem:[%s5520_s28 + $0x538] sm:$0xf] }
  0x81   : > { %v517_v40 = vld [vmem:[%s5520_s28 + $0x540] sm:$0xf]  ;;  %v519_v41 = vld [vmem:[%s5520_s28 + $0x548] sm:$0xf]  ;;  %516 = vst [vmem:[%s5527_s29 + $0x29c] sm:$0xf] %v515_v39 }
  0x82   : > { %518 = vst [vmem:[%s5527_s29 + $0x2a0] sm:$0xf] %v517_v40  ;;  %520 = vst [vmem:[%s5527_s29 + $0x2a4] sm:$0xf] %v519_v41  ;;  %v521_v42 = vld [vmem:[%s5520_s28 + $0x550] sm:$0xf] }
  0x83   : > { %v523_v43 = vld [vmem:[%s5520_s28 + $0x558] sm:$0xf]  ;;  %v525_v44 = vld [vmem:[%s5520_s28 + $0x560] sm:$0xf]  ;;  %522 = vst [vmem:[%s5527_s29 + $0x2a8] sm:$0xf] %v521_v42 }
  0x84   : > { %524 = vst [vmem:[%s5527_s29 + $0x2ac] sm:$0xf] %v523_v43  ;;  %526 = vst [vmem:[%s5527_s29 + $0x2b0] sm:$0xf] %v525_v44  ;;  %v527_v45 = vld [vmem:[%s5520_s28 + $0x568] sm:$0xf] }
  0x85   : > { %v529_v46 = vld [vmem:[%s5520_s28 + $0x570] sm:$0xf]  ;;  %v531_v47 = vld [vmem:[%s5520_s28 + $0x578] sm:$0xf]  ;;  %528 = vst [vmem:[%s5527_s29 + $0x2b4] sm:$0xf] %v527_v45 }
  0x86   : > { %530 = vst [vmem:[%s5527_s29 + $0x2b8] sm:$0xf] %v529_v46  ;;  %532 = vst [vmem:[%s5527_s29 + $0x2bc] sm:$0xf] %v531_v47  ;;  %v533_v48 = vld [vmem:[%s5520_s28 + $0x580] sm:$0xf] }
  0x87   : > { %v535_v49 = vld [vmem:[%s5520_s28 + $0x588] sm:$0xf]  ;;  %v537_v50 = vld [vmem:[%s5520_s28 + $0x590] sm:$0xf]  ;;  %534 = vst [vmem:[%s5527_s29 + $0x2c0] sm:$0xf] %v533_v48 }
  0x88   : > { %536 = vst [vmem:[%s5527_s29 + $0x2c4] sm:$0xf] %v535_v49  ;;  %538 = vst [vmem:[%s5527_s29 + $0x2c8] sm:$0xf] %v537_v50  ;;  %v539_v51 = vld [vmem:[%s5520_s28 + $0x598] sm:$0xf] }
  0x89   : > { %v541_v52 = vld [vmem:[%s5520_s28 + $0x5a0] sm:$0xf]  ;;  %v543_v53 = vld [vmem:[%s5520_s28 + $0x5a8] sm:$0xf]  ;;  %540 = vst [vmem:[%s5527_s29 + $0x2cc] sm:$0xf] %v539_v51 }
  0x8a   : > { %542 = vst [vmem:[%s5527_s29 + $0x2d0] sm:$0xf] %v541_v52  ;;  %544 = vst [vmem:[%s5527_s29 + $0x2d4] sm:$0xf] %v543_v53  ;;  %v545_v54 = vld [vmem:[%s5520_s28 + $0x5b0] sm:$0xf] }
  0x8b   : > { %v547_v55 = vld [vmem:[%s5520_s28 + $0x5b8] sm:$0xf]  ;;  %v549_v56 = vld [vmem:[%s5520_s28 + $0x5c0] sm:$0xf]  ;;  %546 = vst [vmem:[%s5527_s29 + $0x2d8] sm:$0xf] %v545_v54 }
  0x8c   : > { %548 = vst [vmem:[%s5527_s29 + $0x2dc] sm:$0xf] %v547_v55  ;;  %550 = vst [vmem:[%s5527_s29 + $0x2e0] sm:$0xf] %v549_v56  ;;  %v551_v57 = vld [vmem:[%s5520_s28 + $0x5c8] sm:$0xf] }
  0x8d   : > { %v553_v58 = vld [vmem:[%s5520_s28 + $0x5d0] sm:$0xf]  ;;  %v555_v59 = vld [vmem:[%s5520_s28 + $0x5d8] sm:$0xf]  ;;  %552 = vst [vmem:[%s5527_s29 + $0x2e4] sm:$0xf] %v551_v57 }
  0x8e   : > { %554 = vst [vmem:[%s5527_s29 + $0x2e8] sm:$0xf] %v553_v58  ;;  %556 = vst [vmem:[%s5527_s29 + $0x2ec] sm:$0xf] %v555_v59  ;;  %v557_v60 = vld [vmem:[%s5520_s28 + $0x5e0] sm:$0xf] }
  0x8f   : > { %v559_v61 = vld [vmem:[%s5520_s28 + $0x5e8] sm:$0xf]  ;;  %v561_v62 = vld [vmem:[%s5520_s28 + $0x5f0] sm:$0xf]  ;;  %558 = vst [vmem:[%s5527_s29 + $0x2f0] sm:$0xf] %v557_v60 }
  0x90   : > { %560 = vst [vmem:[%s5527_s29 + $0x2f4] sm:$0xf] %v559_v61  ;;  %562 = vst [vmem:[%s5527_s29 + $0x2f8] sm:$0xf] %v561_v62  ;;  %v563_v63 = vld [vmem:[%s5520_s28 + $0x5f8] sm:$0xf] }
  0x91   : > { %v565_v0 = vld [vmem:[%s5520_s28 + $0x600] sm:$0xf]  ;;  %v567_v1 = vld [vmem:[%s5520_s28 + $0x608] sm:$0xf]  ;;  %564 = vst [vmem:[%s5527_s29 + $0x2fc] sm:$0xf] %v563_v63 }
  0x92   : > { %566 = vst [vmem:[%s5527_s29 + $0x300] sm:$0xf] %v565_v0  ;;  %568 = vst [vmem:[%s5527_s29 + $0x304] sm:$0xf] %v567_v1  ;;  %v569_v2 = vld [vmem:[%s5520_s28 + $0x610] sm:$0xf] }
  0x93   : > { %v571_v3 = vld [vmem:[%s5520_s28 + $0x618] sm:$0xf]  ;;  %v573_v4 = vld [vmem:[%s5520_s28 + $0x620] sm:$0xf]  ;;  %570 = vst [vmem:[%s5527_s29 + $0x308] sm:$0xf] %v569_v2 }
  0x94   : > { %572 = vst [vmem:[%s5527_s29 + $0x30c] sm:$0xf] %v571_v3  ;;  %574 = vst [vmem:[%s5527_s29 + $0x310] sm:$0xf] %v573_v4  ;;  %v575_v5 = vld [vmem:[%s5520_s28 + $0x628] sm:$0xf] }
  0x95   : > { %v577_v6 = vld [vmem:[%s5520_s28 + $0x630] sm:$0xf]  ;;  %v579_v7 = vld [vmem:[%s5520_s28 + $0x638] sm:$0xf]  ;;  %576 = vst [vmem:[%s5527_s29 + $0x314] sm:$0xf] %v575_v5 }
  0x96   : > { %578 = vst [vmem:[%s5527_s29 + $0x318] sm:$0xf] %v577_v6  ;;  %580 = vst [vmem:[%s5527_s29 + $0x31c] sm:$0xf] %v579_v7  ;;  %v581_v8 = vld [vmem:[%s5520_s28 + $0x640] sm:$0xf] }
  0x97   : > { %v583_v9 = vld [vmem:[%s5520_s28 + $0x648] sm:$0xf]  ;;  %v585_v10 = vld [vmem:[%s5520_s28 + $0x650] sm:$0xf]  ;;  %582 = vst [vmem:[%s5527_s29 + $0x320] sm:$0xf] %v581_v8 }
  0x98   : > { %584 = vst [vmem:[%s5527_s29 + $0x324] sm:$0xf] %v583_v9  ;;  %586 = vst [vmem:[%s5527_s29 + $0x328] sm:$0xf] %v585_v10  ;;  %v587_v11 = vld [vmem:[%s5520_s28 + $0x658] sm:$0xf] }
  0x99   : > { %v589_v12 = vld [vmem:[%s5520_s28 + $0x660] sm:$0xf]  ;;  %v591_v13 = vld [vmem:[%s5520_s28 + $0x668] sm:$0xf]  ;;  %588 = vst [vmem:[%s5527_s29 + $0x32c] sm:$0xf] %v587_v11 }
  0x9a   : > { %590 = vst [vmem:[%s5527_s29 + $0x330] sm:$0xf] %v589_v12  ;;  %592 = vst [vmem:[%s5527_s29 + $0x334] sm:$0xf] %v591_v13  ;;  %v593_v14 = vld [vmem:[%s5520_s28 + $0x670] sm:$0xf] }
  0x9b   : > { %v595_v15 = vld [vmem:[%s5520_s28 + $0x678] sm:$0xf]  ;;  %v597_v16 = vld [vmem:[%s5520_s28 + $0x680] sm:$0xf]  ;;  %594 = vst [vmem:[%s5527_s29 + $0x338] sm:$0xf] %v593_v14 }
  0x9c   : > { %596 = vst [vmem:[%s5527_s29 + $0x33c] sm:$0xf] %v595_v15  ;;  %598 = vst [vmem:[%s5527_s29 + $0x340] sm:$0xf] %v597_v16  ;;  %v599_v17 = vld [vmem:[%s5520_s28 + $0x688] sm:$0xf] }
  0x9d   : > { %v601_v18 = vld [vmem:[%s5520_s28 + $0x690] sm:$0xf]  ;;  %v603_v19 = vld [vmem:[%s5520_s28 + $0x698] sm:$0xf]  ;;  %600 = vst [vmem:[%s5527_s29 + $0x344] sm:$0xf] %v599_v17 }
  0x9e   : > { %602 = vst [vmem:[%s5527_s29 + $0x348] sm:$0xf] %v601_v18  ;;  %604 = vst [vmem:[%s5527_s29 + $0x34c] sm:$0xf] %v603_v19  ;;  %v605_v20 = vld [vmem:[%s5520_s28 + $0x6a0] sm:$0xf] }
  0x9f   : > { %v607_v21 = vld [vmem:[%s5520_s28 + $0x6a8] sm:$0xf]  ;;  %v609_v22 = vld [vmem:[%s5520_s28 + $0x6b0] sm:$0xf]  ;;  %606 = vst [vmem:[%s5527_s29 + $0x350] sm:$0xf] %v605_v20 }
  0xa0   : > { %608 = vst [vmem:[%s5527_s29 + $0x354] sm:$0xf] %v607_v21  ;;  %610 = vst [vmem:[%s5527_s29 + $0x358] sm:$0xf] %v609_v22  ;;  %v611_v23 = vld [vmem:[%s5520_s28 + $0x6b8] sm:$0xf] }
  0xa1   : > { %v613_v24 = vld [vmem:[%s5520_s28 + $0x6c0] sm:$0xf]  ;;  %v615_v25 = vld [vmem:[%s5520_s28 + $0x6c8] sm:$0xf]  ;;  %612 = vst [vmem:[%s5527_s29 + $0x35c] sm:$0xf] %v611_v23 }
  0xa2   : > { %614 = vst [vmem:[%s5527_s29 + $0x360] sm:$0xf] %v613_v24  ;;  %616 = vst [vmem:[%s5527_s29 + $0x364] sm:$0xf] %v615_v25  ;;  %v617_v26 = vld [vmem:[%s5520_s28 + $0x6d0] sm:$0xf] }
  0xa3   : > { %v619_v27 = vld [vmem:[%s5520_s28 + $0x6d8] sm:$0xf]  ;;  %v621_v28 = vld [vmem:[%s5520_s28 + $0x6e0] sm:$0xf]  ;;  %618 = vst [vmem:[%s5527_s29 + $0x368] sm:$0xf] %v617_v26 }
  0xa4   : > { %620 = vst [vmem:[%s5527_s29 + $0x36c] sm:$0xf] %v619_v27  ;;  %622 = vst [vmem:[%s5527_s29 + $0x370] sm:$0xf] %v621_v28  ;;  %v623_v29 = vld [vmem:[%s5520_s28 + $0x6e8] sm:$0xf] }
  0xa5   : > { %v625_v30 = vld [vmem:[%s5520_s28 + $0x6f0] sm:$0xf]  ;;  %v627_v31 = vld [vmem:[%s5520_s28 + $0x6f8] sm:$0xf]  ;;  %624 = vst [vmem:[%s5527_s29 + $0x374] sm:$0xf] %v623_v29 }
  0xa6   : > { %626 = vst [vmem:[%s5527_s29 + $0x378] sm:$0xf] %v625_v30  ;;  %628 = vst [vmem:[%s5527_s29 + $0x37c] sm:$0xf] %v627_v31  ;;  %v629_v32 = vld [vmem:[%s5520_s28 + $0x700] sm:$0xf] }
  0xa7   : > { %v631_v33 = vld [vmem:[%s5520_s28 + $0x708] sm:$0xf]  ;;  %v633_v34 = vld [vmem:[%s5520_s28 + $0x710] sm:$0xf]  ;;  %630 = vst [vmem:[%s5527_s29 + $0x380] sm:$0xf] %v629_v32 }
  0xa8   : > { %632 = vst [vmem:[%s5527_s29 + $0x384] sm:$0xf] %v631_v33  ;;  %634 = vst [vmem:[%s5527_s29 + $0x388] sm:$0xf] %v633_v34  ;;  %v635_v35 = vld [vmem:[%s5520_s28 + $0x718] sm:$0xf] }
  0xa9   : > { %v637_v36 = vld [vmem:[%s5520_s28 + $0x720] sm:$0xf]  ;;  %v639_v37 = vld [vmem:[%s5520_s28 + $0x728] sm:$0xf]  ;;  %636 = vst [vmem:[%s5527_s29 + $0x38c] sm:$0xf] %v635_v35 }
  0xaa   : > { %638 = vst [vmem:[%s5527_s29 + $0x390] sm:$0xf] %v637_v36  ;;  %640 = vst [vmem:[%s5527_s29 + $0x394] sm:$0xf] %v639_v37  ;;  %v641_v38 = vld [vmem:[%s5520_s28 + $0x730] sm:$0xf] }
  0xab   : > { %v643_v39 = vld [vmem:[%s5520_s28 + $0x738] sm:$0xf]  ;;  %v645_v40 = vld [vmem:[%s5520_s28 + $0x740] sm:$0xf]  ;;  %642 = vst [vmem:[%s5527_s29 + $0x398] sm:$0xf] %v641_v38 }
  0xac   : > { %644 = vst [vmem:[%s5527_s29 + $0x39c] sm:$0xf] %v643_v39  ;;  %646 = vst [vmem:[%s5527_s29 + $0x3a0] sm:$0xf] %v645_v40  ;;  %v647_v41 = vld [vmem:[%s5520_s28 + $0x748] sm:$0xf] }
  0xad   : > { %v649_v42 = vld [vmem:[%s5520_s28 + $0x750] sm:$0xf]  ;;  %v651_v43 = vld [vmem:[%s5520_s28 + $0x758] sm:$0xf]  ;;  %648 = vst [vmem:[%s5527_s29 + $0x3a4] sm:$0xf] %v647_v41 }
  0xae   : > { %650 = vst [vmem:[%s5527_s29 + $0x3a8] sm:$0xf] %v649_v42  ;;  %652 = vst [vmem:[%s5527_s29 + $0x3ac] sm:$0xf] %v651_v43  ;;  %v653_v44 = vld [vmem:[%s5520_s28 + $0x760] sm:$0xf] }
  0xaf   : > { %v655_v45 = vld [vmem:[%s5520_s28 + $0x768] sm:$0xf]  ;;  %v657_v46 = vld [vmem:[%s5520_s28 + $0x770] sm:$0xf]  ;;  %654 = vst [vmem:[%s5527_s29 + $0x3b0] sm:$0xf] %v653_v44 }
  0xb0   : > { %656 = vst [vmem:[%s5527_s29 + $0x3b4] sm:$0xf] %v655_v45  ;;  %658 = vst [vmem:[%s5527_s29 + $0x3b8] sm:$0xf] %v657_v46  ;;  %v659_v47 = vld [vmem:[%s5520_s28 + $0x778] sm:$0xf] }
  0xb1   : > { %v661_v48 = vld [vmem:[%s5520_s28 + $0x780] sm:$0xf]  ;;  %v663_v49 = vld [vmem:[%s5520_s28 + $0x788] sm:$0xf]  ;;  %660 = vst [vmem:[%s5527_s29 + $0x3bc] sm:$0xf] %v659_v47 }
  0xb2   : > { %662 = vst [vmem:[%s5527_s29 + $0x3c0] sm:$0xf] %v661_v48  ;;  %664 = vst [vmem:[%s5527_s29 + $0x3c4] sm:$0xf] %v663_v49  ;;  %v665_v50 = vld [vmem:[%s5520_s28 + $0x790] sm:$0xf] }
  0xb3   : > { %v667_v51 = vld [vmem:[%s5520_s28 + $0x798] sm:$0xf]  ;;  %v669_v52 = vld [vmem:[%s5520_s28 + $0x7a0] sm:$0xf]  ;;  %666 = vst [vmem:[%s5527_s29 + $0x3c8] sm:$0xf] %v665_v50 }
  0xb4   : > { %668 = vst [vmem:[%s5527_s29 + $0x3cc] sm:$0xf] %v667_v51  ;;  %670 = vst [vmem:[%s5527_s29 + $0x3d0] sm:$0xf] %v669_v52  ;;  %v671_v53 = vld [vmem:[%s5520_s28 + $0x7a8] sm:$0xf] }
  0xb5   : > { %v673_v54 = vld [vmem:[%s5520_s28 + $0x7b0] sm:$0xf]  ;;  %v675_v55 = vld [vmem:[%s5520_s28 + $0x7b8] sm:$0xf]  ;;  %672 = vst [vmem:[%s5527_s29 + $0x3d4] sm:$0xf] %v671_v53 }
  0xb6   : > { %674 = vst [vmem:[%s5527_s29 + $0x3d8] sm:$0xf] %v673_v54  ;;  %676 = vst [vmem:[%s5527_s29 + $0x3dc] sm:$0xf] %v675_v55  ;;  %v677_v56 = vld [vmem:[%s5520_s28 + $0x7c0] sm:$0xf] }
  0xb7   : > { %v679_v57 = vld [vmem:[%s5520_s28 + $0x7c8] sm:$0xf]  ;;  %v681_v58 = vld [vmem:[%s5520_s28 + $0x7d0] sm:$0xf]  ;;  %678 = vst [vmem:[%s5527_s29 + $0x3e0] sm:$0xf] %v677_v56 }
  0xb8   : > { %680 = vst [vmem:[%s5527_s29 + $0x3e4] sm:$0xf] %v679_v57  ;;  %682 = vst [vmem:[%s5527_s29 + $0x3e8] sm:$0xf] %v681_v58  ;;  %v683_v59 = vld [vmem:[%s5520_s28 + $0x7d8] sm:$0xf] }
  0xb9   : > { %v685_v60 = vld [vmem:[%s5520_s28 + $0x7e0] sm:$0xf]  ;;  %v687_v61 = vld [vmem:[%s5520_s28 + $0x7e8] sm:$0xf]  ;;  %684 = vst [vmem:[%s5527_s29 + $0x3ec] sm:$0xf] %v683_v59 }
  0xba   : > { %686 = vst [vmem:[%s5527_s29 + $0x3f0] sm:$0xf] %v685_v60  ;;  %688 = vst [vmem:[%s5527_s29 + $0x3f4] sm:$0xf] %v687_v61  ;;  %v689_v62 = vld [vmem:[%s5520_s28 + $0x7f0] sm:$0xf] }
  0xbb   : > { %v691_v63 = vld [vmem:[%s5520_s28 + $0x7f8] sm:$0xf]  ;;  %v693_v0 = vld [vmem:[%s5520_s28 + $0x800] sm:$0xf]  ;;  %690 = vst [vmem:[%s5527_s29 + $0x3f8] sm:$0xf] %v689_v62 }
  0xbc   : > { %692 = vst [vmem:[%s5527_s29 + $0x3fc] sm:$0xf] %v691_v63  ;;  %694 = vst [vmem:[%s5527_s29 + $0x400] sm:$0xf] %v693_v0  ;;  %v695_v1 = vld [vmem:[%s5520_s28 + $0x808] sm:$0xf] }
  0xbd   : > { %v697_v2 = vld [vmem:[%s5520_s28 + $0x810] sm:$0xf]  ;;  %v699_v3 = vld [vmem:[%s5520_s28 + $0x818] sm:$0xf]  ;;  %696 = vst [vmem:[%s5527_s29 + $0x404] sm:$0xf] %v695_v1 }
  0xbe   : > { %698 = vst [vmem:[%s5527_s29 + $0x408] sm:$0xf] %v697_v2  ;;  %700 = vst [vmem:[%s5527_s29 + $0x40c] sm:$0xf] %v699_v3  ;;  %v701_v4 = vld [vmem:[%s5520_s28 + $0x820] sm:$0xf] }
  0xbf   : > { %v703_v5 = vld [vmem:[%s5520_s28 + $0x828] sm:$0xf]  ;;  %v705_v6 = vld [vmem:[%s5520_s28 + $0x830] sm:$0xf]  ;;  %702 = vst [vmem:[%s5527_s29 + $0x410] sm:$0xf] %v701_v4 }
  0xc0   : > { %704 = vst [vmem:[%s5527_s29 + $0x414] sm:$0xf] %v703_v5  ;;  %706 = vst [vmem:[%s5527_s29 + $0x418] sm:$0xf] %v705_v6  ;;  %v707_v7 = vld [vmem:[%s5520_s28 + $0x838] sm:$0xf] }
  0xc1   : > { %v709_v8 = vld [vmem:[%s5520_s28 + $0x840] sm:$0xf]  ;;  %v711_v9 = vld [vmem:[%s5520_s28 + $0x848] sm:$0xf]  ;;  %708 = vst [vmem:[%s5527_s29 + $0x41c] sm:$0xf] %v707_v7 }
  0xc2   : > { %710 = vst [vmem:[%s5527_s29 + $0x420] sm:$0xf] %v709_v8  ;;  %712 = vst [vmem:[%s5527_s29 + $0x424] sm:$0xf] %v711_v9  ;;  %v713_v10 = vld [vmem:[%s5520_s28 + $0x850] sm:$0xf] }
  0xc3   : > { %v715_v11 = vld [vmem:[%s5520_s28 + $0x858] sm:$0xf]  ;;  %v717_v12 = vld [vmem:[%s5520_s28 + $0x860] sm:$0xf]  ;;  %714 = vst [vmem:[%s5527_s29 + $0x428] sm:$0xf] %v713_v10 }
  0xc4   : > { %716 = vst [vmem:[%s5527_s29 + $0x42c] sm:$0xf] %v715_v11  ;;  %718 = vst [vmem:[%s5527_s29 + $0x430] sm:$0xf] %v717_v12  ;;  %v719_v13 = vld [vmem:[%s5520_s28 + $0x868] sm:$0xf] }
  0xc5   : > { %v721_v14 = vld [vmem:[%s5520_s28 + $0x870] sm:$0xf]  ;;  %v723_v15 = vld [vmem:[%s5520_s28 + $0x878] sm:$0xf]  ;;  %720 = vst [vmem:[%s5527_s29 + $0x434] sm:$0xf] %v719_v13 }
  0xc6   : > { %722 = vst [vmem:[%s5527_s29 + $0x438] sm:$0xf] %v721_v14  ;;  %724 = vst [vmem:[%s5527_s29 + $0x43c] sm:$0xf] %v723_v15  ;;  %v725_v16 = vld [vmem:[%s5520_s28 + $0x880] sm:$0xf] }
  0xc7   : > { %v727_v17 = vld [vmem:[%s5520_s28 + $0x888] sm:$0xf]  ;;  %v729_v18 = vld [vmem:[%s5520_s28 + $0x890] sm:$0xf]  ;;  %726 = vst [vmem:[%s5527_s29 + $0x440] sm:$0xf] %v725_v16 }
  0xc8   : > { %728 = vst [vmem:[%s5527_s29 + $0x444] sm:$0xf] %v727_v17  ;;  %730 = vst [vmem:[%s5527_s29 + $0x448] sm:$0xf] %v729_v18  ;;  %v731_v19 = vld [vmem:[%s5520_s28 + $0x898] sm:$0xf] }
  0xc9   : > { %v733_v20 = vld [vmem:[%s5520_s28 + $0x8a0] sm:$0xf]  ;;  %v735_v21 = vld [vmem:[%s5520_s28 + $0x8a8] sm:$0xf]  ;;  %732 = vst [vmem:[%s5527_s29 + $0x44c] sm:$0xf] %v731_v19 }
  0xca   : > { %734 = vst [vmem:[%s5527_s29 + $0x450] sm:$0xf] %v733_v20  ;;  %736 = vst [vmem:[%s5527_s29 + $0x454] sm:$0xf] %v735_v21  ;;  %v737_v22 = vld [vmem:[%s5520_s28 + $0x8b0] sm:$0xf] }
  0xcb   : > { %v739_v23 = vld [vmem:[%s5520_s28 + $0x8b8] sm:$0xf]  ;;  %v741_v24 = vld [vmem:[%s5520_s28 + $0x8c0] sm:$0xf]  ;;  %738 = vst [vmem:[%s5527_s29 + $0x458] sm:$0xf] %v737_v22 }
  0xcc   : > { %740 = vst [vmem:[%s5527_s29 + $0x45c] sm:$0xf] %v739_v23  ;;  %742 = vst [vmem:[%s5527_s29 + $0x460] sm:$0xf] %v741_v24  ;;  %v743_v25 = vld [vmem:[%s5520_s28 + $0x8c8] sm:$0xf] }
  0xcd   : > { %v745_v26 = vld [vmem:[%s5520_s28 + $0x8d0] sm:$0xf]  ;;  %v747_v27 = vld [vmem:[%s5520_s28 + $0x8d8] sm:$0xf]  ;;  %744 = vst [vmem:[%s5527_s29 + $0x464] sm:$0xf] %v743_v25 }
  0xce   : > { %746 = vst [vmem:[%s5527_s29 + $0x468] sm:$0xf] %v745_v26  ;;  %748 = vst [vmem:[%s5527_s29 + $0x46c] sm:$0xf] %v747_v27  ;;  %v749_v28 = vld [vmem:[%s5520_s28 + $0x8e0] sm:$0xf] }
  0xcf   : > { %v751_v29 = vld [vmem:[%s5520_s28 + $0x8e8] sm:$0xf]  ;;  %v753_v30 = vld [vmem:[%s5520_s28 + $0x8f0] sm:$0xf]  ;;  %750 = vst [vmem:[%s5527_s29 + $0x470] sm:$0xf] %v749_v28 }
  0xd0   : > { %752 = vst [vmem:[%s5527_s29 + $0x474] sm:$0xf] %v751_v29  ;;  %754 = vst [vmem:[%s5527_s29 + $0x478] sm:$0xf] %v753_v30  ;;  %v755_v31 = vld [vmem:[%s5520_s28 + $0x8f8] sm:$0xf] }
  0xd1   : > { %v757_v32 = vld [vmem:[%s5520_s28 + $0x900] sm:$0xf]  ;;  %v759_v33 = vld [vmem:[%s5520_s28 + $0x908] sm:$0xf]  ;;  %756 = vst [vmem:[%s5527_s29 + $0x47c] sm:$0xf] %v755_v31 }
  0xd2   : > { %758 = vst [vmem:[%s5527_s29 + $0x480] sm:$0xf] %v757_v32  ;;  %760 = vst [vmem:[%s5527_s29 + $0x484] sm:$0xf] %v759_v33  ;;  %v761_v34 = vld [vmem:[%s5520_s28 + $0x910] sm:$0xf] }
  0xd3   : > { %v763_v35 = vld [vmem:[%s5520_s28 + $0x918] sm:$0xf]  ;;  %v765_v36 = vld [vmem:[%s5520_s28 + $0x920] sm:$0xf]  ;;  %762 = vst [vmem:[%s5527_s29 + $0x488] sm:$0xf] %v761_v34 }
  0xd4   : > { %764 = vst [vmem:[%s5527_s29 + $0x48c] sm:$0xf] %v763_v35  ;;  %766 = vst [vmem:[%s5527_s29 + $0x490] sm:$0xf] %v765_v36  ;;  %v767_v37 = vld [vmem:[%s5520_s28 + $0x928] sm:$0xf] }
  0xd5   : > { %v769_v38 = vld [vmem:[%s5520_s28 + $0x930] sm:$0xf]  ;;  %v771_v39 = vld [vmem:[%s5520_s28 + $0x938] sm:$0xf]  ;;  %768 = vst [vmem:[%s5527_s29 + $0x494] sm:$0xf] %v767_v37 }
  0xd6   : > { %770 = vst [vmem:[%s5527_s29 + $0x498] sm:$0xf] %v769_v38  ;;  %772 = vst [vmem:[%s5527_s29 + $0x49c] sm:$0xf] %v771_v39  ;;  %v773_v40 = vld [vmem:[%s5520_s28 + $0x940] sm:$0xf] }
  0xd7   : > { %v775_v41 = vld [vmem:[%s5520_s28 + $0x948] sm:$0xf]  ;;  %v777_v42 = vld [vmem:[%s5520_s28 + $0x950] sm:$0xf]  ;;  %774 = vst [vmem:[%s5527_s29 + $0x4a0] sm:$0xf] %v773_v40 }
  0xd8   : > { %776 = vst [vmem:[%s5527_s29 + $0x4a4] sm:$0xf] %v775_v41  ;;  %778 = vst [vmem:[%s5527_s29 + $0x4a8] sm:$0xf] %v777_v42  ;;  %v779_v43 = vld [vmem:[%s5520_s28 + $0x958] sm:$0xf] }
  0xd9   : > { %v781_v44 = vld [vmem:[%s5520_s28 + $0x960] sm:$0xf]  ;;  %v783_v45 = vld [vmem:[%s5520_s28 + $0x968] sm:$0xf]  ;;  %780 = vst [vmem:[%s5527_s29 + $0x4ac] sm:$0xf] %v779_v43 }
  0xda   : > { %782 = vst [vmem:[%s5527_s29 + $0x4b0] sm:$0xf] %v781_v44  ;;  %784 = vst [vmem:[%s5527_s29 + $0x4b4] sm:$0xf] %v783_v45  ;;  %v785_v46 = vld [vmem:[%s5520_s28 + $0x970] sm:$0xf] }
  0xdb   : > { %v787_v47 = vld [vmem:[%s5520_s28 + $0x978] sm:$0xf]  ;;  %v789_v48 = vld [vmem:[%s5520_s28 + $0x980] sm:$0xf]  ;;  %786 = vst [vmem:[%s5527_s29 + $0x4b8] sm:$0xf] %v785_v46 }
  0xdc   : > { %788 = vst [vmem:[%s5527_s29 + $0x4bc] sm:$0xf] %v787_v47  ;;  %790 = vst [vmem:[%s5527_s29 + $0x4c0] sm:$0xf] %v789_v48  ;;  %v791_v49 = vld [vmem:[%s5520_s28 + $0x988] sm:$0xf] }
  0xdd   : > { %v793_v50 = vld [vmem:[%s5520_s28 + $0x990] sm:$0xf]  ;;  %v795_v51 = vld [vmem:[%s5520_s28 + $0x998] sm:$0xf]  ;;  %792 = vst [vmem:[%s5527_s29 + $0x4c4] sm:$0xf] %v791_v49 }
  0xde   : > { %794 = vst [vmem:[%s5527_s29 + $0x4c8] sm:$0xf] %v793_v50  ;;  %796 = vst [vmem:[%s5527_s29 + $0x4cc] sm:$0xf] %v795_v51  ;;  %v797_v52 = vld [vmem:[%s5520_s28 + $0x9a0] sm:$0xf] }
  0xdf   : > { %v799_v53 = vld [vmem:[%s5520_s28 + $0x9a8] sm:$0xf]  ;;  %v801_v54 = vld [vmem:[%s5520_s28 + $0x9b0] sm:$0xf]  ;;  %798 = vst [vmem:[%s5527_s29 + $0x4d0] sm:$0xf] %v797_v52 }
  0xe0   : > { %800 = vst [vmem:[%s5527_s29 + $0x4d4] sm:$0xf] %v799_v53  ;;  %802 = vst [vmem:[%s5527_s29 + $0x4d8] sm:$0xf] %v801_v54  ;;  %v803_v55 = vld [vmem:[%s5520_s28 + $0x9b8] sm:$0xf] }
  0xe1   : > { %v805_v56 = vld [vmem:[%s5520_s28 + $0x9c0] sm:$0xf]  ;;  %v807_v57 = vld [vmem:[%s5520_s28 + $0x9c8] sm:$0xf]  ;;  %804 = vst [vmem:[%s5527_s29 + $0x4dc] sm:$0xf] %v803_v55 }
  0xe2   : > { %806 = vst [vmem:[%s5527_s29 + $0x4e0] sm:$0xf] %v805_v56  ;;  %808 = vst [vmem:[%s5527_s29 + $0x4e4] sm:$0xf] %v807_v57  ;;  %v809_v58 = vld [vmem:[%s5520_s28 + $0x9d0] sm:$0xf] }
  0xe3   : > { %v811_v59 = vld [vmem:[%s5520_s28 + $0x9d8] sm:$0xf]  ;;  %v813_v60 = vld [vmem:[%s5520_s28 + $0x9e0] sm:$0xf]  ;;  %810 = vst [vmem:[%s5527_s29 + $0x4e8] sm:$0xf] %v809_v58 }
  0xe4   : > { %812 = vst [vmem:[%s5527_s29 + $0x4ec] sm:$0xf] %v811_v59  ;;  %814 = vst [vmem:[%s5527_s29 + $0x4f0] sm:$0xf] %v813_v60  ;;  %v815_v61 = vld [vmem:[%s5520_s28 + $0x9e8] sm:$0xf] }
  0xe5   : > { %v817_v62 = vld [vmem:[%s5520_s28 + $0x9f0] sm:$0xf]  ;;  %v819_v63 = vld [vmem:[%s5520_s28 + $0x9f8] sm:$0xf]  ;;  %816 = vst [vmem:[%s5527_s29 + $0x4f4] sm:$0xf] %v815_v61 }
  0xe6   : > { %818 = vst [vmem:[%s5527_s29 + $0x4f8] sm:$0xf] %v817_v62  ;;  %820 = vst [vmem:[%s5527_s29 + $0x4fc] sm:$0xf] %v819_v63  ;;  %v821_v0 = vld [vmem:[%s5520_s28 + $0xa00] sm:$0xf] }
  0xe7   : > { %v823_v1 = vld [vmem:[%s5520_s28 + $0xa08] sm:$0xf]  ;;  %v825_v2 = vld [vmem:[%s5520_s28 + $0xa10] sm:$0xf]  ;;  %822 = vst [vmem:[%s5527_s29 + $0x500] sm:$0xf] %v821_v0 }
  0xe8   : > { %824 = vst [vmem:[%s5527_s29 + $0x504] sm:$0xf] %v823_v1  ;;  %826 = vst [vmem:[%s5527_s29 + $0x508] sm:$0xf] %v825_v2  ;;  %v827_v3 = vld [vmem:[%s5520_s28 + $0xa18] sm:$0xf] }
  0xe9   : > { %v829_v4 = vld [vmem:[%s5520_s28 + $0xa20] sm:$0xf]  ;;  %v831_v5 = vld [vmem:[%s5520_s28 + $0xa28] sm:$0xf]  ;;  %828 = vst [vmem:[%s5527_s29 + $0x50c] sm:$0xf] %v827_v3 }
  0xea   : > { %830 = vst [vmem:[%s5527_s29 + $0x510] sm:$0xf] %v829_v4  ;;  %832 = vst [vmem:[%s5527_s29 + $0x514] sm:$0xf] %v831_v5  ;;  %v833_v6 = vld [vmem:[%s5520_s28 + $0xa30] sm:$0xf] }
  0xeb   : > { %v835_v7 = vld [vmem:[%s5520_s28 + $0xa38] sm:$0xf]  ;;  %v837_v8 = vld [vmem:[%s5520_s28 + $0xa40] sm:$0xf]  ;;  %834 = vst [vmem:[%s5527_s29 + $0x518] sm:$0xf] %v833_v6 }
  0xec   : > { %836 = vst [vmem:[%s5527_s29 + $0x51c] sm:$0xf] %v835_v7  ;;  %838 = vst [vmem:[%s5527_s29 + $0x520] sm:$0xf] %v837_v8  ;;  %v839_v9 = vld [vmem:[%s5520_s28 + $0xa48] sm:$0xf] }
  0xed   : > { %v841_v10 = vld [vmem:[%s5520_s28 + $0xa50] sm:$0xf]  ;;  %v843_v11 = vld [vmem:[%s5520_s28 + $0xa58] sm:$0xf]  ;;  %840 = vst [vmem:[%s5527_s29 + $0x524] sm:$0xf] %v839_v9 }
  0xee   : > { %842 = vst [vmem:[%s5527_s29 + $0x528] sm:$0xf] %v841_v10  ;;  %844 = vst [vmem:[%s5527_s29 + $0x52c] sm:$0xf] %v843_v11  ;;  %v845_v12 = vld [vmem:[%s5520_s28 + $0xa60] sm:$0xf] }
  0xef   : > { %v847_v13 = vld [vmem:[%s5520_s28 + $0xa68] sm:$0xf]  ;;  %v849_v14 = vld [vmem:[%s5520_s28 + $0xa70] sm:$0xf]  ;;  %846 = vst [vmem:[%s5527_s29 + $0x530] sm:$0xf] %v845_v12 }
  0xf0   : > { %848 = vst [vmem:[%s5527_s29 + $0x534] sm:$0xf] %v847_v13  ;;  %850 = vst [vmem:[%s5527_s29 + $0x538] sm:$0xf] %v849_v14  ;;  %v851_v15 = vld [vmem:[%s5520_s28 + $0xa78] sm:$0xf] }
  0xf1   : > { %v853_v16 = vld [vmem:[%s5520_s28 + $0xa80] sm:$0xf]  ;;  %v855_v17 = vld [vmem:[%s5520_s28 + $0xa88] sm:$0xf]  ;;  %852 = vst [vmem:[%s5527_s29 + $0x53c] sm:$0xf] %v851_v15 }
  0xf2   : > { %854 = vst [vmem:[%s5527_s29 + $0x540] sm:$0xf] %v853_v16  ;;  %856 = vst [vmem:[%s5527_s29 + $0x544] sm:$0xf] %v855_v17  ;;  %v857_v18 = vld [vmem:[%s5520_s28 + $0xa90] sm:$0xf] }
  0xf3   : > { %v859_v19 = vld [vmem:[%s5520_s28 + $0xa98] sm:$0xf]  ;;  %v861_v20 = vld [vmem:[%s5520_s28 + $0xaa0] sm:$0xf]  ;;  %858 = vst [vmem:[%s5527_s29 + $0x548] sm:$0xf] %v857_v18 }
  0xf4   : > { %860 = vst [vmem:[%s5527_s29 + $0x54c] sm:$0xf] %v859_v19  ;;  %862 = vst [vmem:[%s5527_s29 + $0x550] sm:$0xf] %v861_v20  ;;  %v863_v21 = vld [vmem:[%s5520_s28 + $0xaa8] sm:$0xf] }
  0xf5   : > { %v865_v22 = vld [vmem:[%s5520_s28 + $0xab0] sm:$0xf]  ;;  %v867_v23 = vld [vmem:[%s5520_s28 + $0xab8] sm:$0xf]  ;;  %864 = vst [vmem:[%s5527_s29 + $0x554] sm:$0xf] %v863_v21 }
  0xf6   : > { %866 = vst [vmem:[%s5527_s29 + $0x558] sm:$0xf] %v865_v22  ;;  %868 = vst [vmem:[%s5527_s29 + $0x55c] sm:$0xf] %v867_v23  ;;  %v869_v24 = vld [vmem:[%s5520_s28 + $0xac0] sm:$0xf] }
  0xf7   : > { %v871_v25 = vld [vmem:[%s5520_s28 + $0xac8] sm:$0xf]  ;;  %v873_v26 = vld [vmem:[%s5520_s28 + $0xad0] sm:$0xf]  ;;  %870 = vst [vmem:[%s5527_s29 + $0x560] sm:$0xf] %v869_v24 }
  0xf8   : > { %872 = vst [vmem:[%s5527_s29 + $0x564] sm:$0xf] %v871_v25  ;;  %874 = vst [vmem:[%s5527_s29 + $0x568] sm:$0xf] %v873_v26  ;;  %v875_v27 = vld [vmem:[%s5520_s28 + $0xad8] sm:$0xf] }
  0xf9   : > { %v877_v28 = vld [vmem:[%s5520_s28 + $0xae0] sm:$0xf]  ;;  %v879_v29 = vld [vmem:[%s5520_s28 + $0xae8] sm:$0xf]  ;;  %876 = vst [vmem:[%s5527_s29 + $0x56c] sm:$0xf] %v875_v27 }
  0xfa   : > { %878 = vst [vmem:[%s5527_s29 + $0x570] sm:$0xf] %v877_v28  ;;  %880 = vst [vmem:[%s5527_s29 + $0x574] sm:$0xf] %v879_v29  ;;  %v881_v30 = vld [vmem:[%s5520_s28 + $0xaf0] sm:$0xf] }
  0xfb   : > { %v883_v31 = vld [vmem:[%s5520_s28 + $0xaf8] sm:$0xf]  ;;  %v885_v32 = vld [vmem:[%s5520_s28 + $0xb00] sm:$0xf]  ;;  %882 = vst [vmem:[%s5527_s29 + $0x578] sm:$0xf] %v881_v30 }
  0xfc   : > { %884 = vst [vmem:[%s5527_s29 + $0x57c] sm:$0xf] %v883_v31  ;;  %886 = vst [vmem:[%s5527_s29 + $0x580] sm:$0xf] %v885_v32  ;;  %v887_v33 = vld [vmem:[%s5520_s28 + $0xb08] sm:$0xf] }
  0xfd   : > { %v889_v34 = vld [vmem:[%s5520_s28 + $0xb10] sm:$0xf]  ;;  %v891_v35 = vld [vmem:[%s5520_s28 + $0xb18] sm:$0xf]  ;;  %888 = vst [vmem:[%s5527_s29 + $0x584] sm:$0xf] %v887_v33 }
  0xfe   : > { %890 = vst [vmem:[%s5527_s29 + $0x588] sm:$0xf] %v889_v34  ;;  %892 = vst [vmem:[%s5527_s29 + $0x58c] sm:$0xf] %v891_v35  ;;  %v893_v36 = vld [vmem:[%s5520_s28 + $0xb20] sm:$0xf] }
  0xff   : > { %v895_v37 = vld [vmem:[%s5520_s28 + $0xb28] sm:$0xf]  ;;  %v897_v38 = vld [vmem:[%s5520_s28 + $0xb30] sm:$0xf]  ;;  %894 = vst [vmem:[%s5527_s29 + $0x590] sm:$0xf] %v893_v36 }
 0x100   : > { %896 = vst [vmem:[%s5527_s29 + $0x594] sm:$0xf] %v895_v37  ;;  %898 = vst [vmem:[%s5527_s29 + $0x598] sm:$0xf] %v897_v38  ;;  %v899_v39 = vld [vmem:[%s5520_s28 + $0xb38] sm:$0xf] }
 0x101   : > { %v901_v40 = vld [vmem:[%s5520_s28 + $0xb40] sm:$0xf]  ;;  %v903_v41 = vld [vmem:[%s5520_s28 + $0xb48] sm:$0xf]  ;;  %900 = vst [vmem:[%s5527_s29 + $0x59c] sm:$0xf] %v899_v39 }
 0x102   : > { %902 = vst [vmem:[%s5527_s29 + $0x5a0] sm:$0xf] %v901_v40  ;;  %904 = vst [vmem:[%s5527_s29 + $0x5a4] sm:$0xf] %v903_v41  ;;  %v905_v42 = vld [vmem:[%s5520_s28 + $0xb50] sm:$0xf] }
 0x103   : > { %v907_v43 = vld [vmem:[%s5520_s28 + $0xb58] sm:$0xf]  ;;  %v909_v44 = vld [vmem:[%s5520_s28 + $0xb60] sm:$0xf]  ;;  %906 = vst [vmem:[%s5527_s29 + $0x5a8] sm:$0xf] %v905_v42 }
 0x104   : > { %908 = vst [vmem:[%s5527_s29 + $0x5ac] sm:$0xf] %v907_v43  ;;  %910 = vst [vmem:[%s5527_s29 + $0x5b0] sm:$0xf] %v909_v44  ;;  %v911_v45 = vld [vmem:[%s5520_s28 + $0xb68] sm:$0xf] }
 0x105   : > { %v913_v46 = vld [vmem:[%s5520_s28 + $0xb70] sm:$0xf]  ;;  %v915_v47 = vld [vmem:[%s5520_s28 + $0xb78] sm:$0xf]  ;;  %912 = vst [vmem:[%s5527_s29 + $0x5b4] sm:$0xf] %v911_v45 }
 0x106   : > { %914 = vst [vmem:[%s5527_s29 + $0x5b8] sm:$0xf] %v913_v46  ;;  %916 = vst [vmem:[%s5527_s29 + $0x5bc] sm:$0xf] %v915_v47  ;;  %v917_v48 = vld [vmem:[%s5520_s28 + $0xb80] sm:$0xf] }
 0x107   : > { %v919_v49 = vld [vmem:[%s5520_s28 + $0xb88] sm:$0xf]  ;;  %v921_v50 = vld [vmem:[%s5520_s28 + $0xb90] sm:$0xf]  ;;  %918 = vst [vmem:[%s5527_s29 + $0x5c0] sm:$0xf] %v917_v48 }
 0x108   : > { %920 = vst [vmem:[%s5527_s29 + $0x5c4] sm:$0xf] %v919_v49  ;;  %922 = vst [vmem:[%s5527_s29 + $0x5c8] sm:$0xf] %v921_v50  ;;  %v923_v51 = vld [vmem:[%s5520_s28 + $0xb98] sm:$0xf] }
 0x109   : > { %v925_v52 = vld [vmem:[%s5520_s28 + $0xba0] sm:$0xf]  ;;  %v927_v53 = vld [vmem:[%s5520_s28 + $0xba8] sm:$0xf]  ;;  %924 = vst [vmem:[%s5527_s29 + $0x5cc] sm:$0xf] %v923_v51 }
 0x10a   : > { %926 = vst [vmem:[%s5527_s29 + $0x5d0] sm:$0xf] %v925_v52  ;;  %928 = vst [vmem:[%s5527_s29 + $0x5d4] sm:$0xf] %v927_v53  ;;  %v929_v54 = vld [vmem:[%s5520_s28 + $0xbb0] sm:$0xf] }
 0x10b   : > { %v931_v55 = vld [vmem:[%s5520_s28 + $0xbb8] sm:$0xf]  ;;  %v933_v56 = vld [vmem:[%s5520_s28 + $0xbc0] sm:$0xf]  ;;  %930 = vst [vmem:[%s5527_s29 + $0x5d8] sm:$0xf] %v929_v54 }
 0x10c   : > { %932 = vst [vmem:[%s5527_s29 + $0x5dc] sm:$0xf] %v931_v55  ;;  %934 = vst [vmem:[%s5527_s29 + $0x5e0] sm:$0xf] %v933_v56  ;;  %v935_v57 = vld [vmem:[%s5520_s28 + $0xbc8] sm:$0xf] }
 0x10d   : > { %v937_v58 = vld [vmem:[%s5520_s28 + $0xbd0] sm:$0xf]  ;;  %v939_v59 = vld [vmem:[%s5520_s28 + $0xbd8] sm:$0xf]  ;;  %936 = vst [vmem:[%s5527_s29 + $0x5e4] sm:$0xf] %v935_v57 }
 0x10e   : > { %938 = vst [vmem:[%s5527_s29 + $0x5e8] sm:$0xf] %v937_v58  ;;  %940 = vst [vmem:[%s5527_s29 + $0x5ec] sm:$0xf] %v939_v59  ;;  %v941_v60 = vld [vmem:[%s5520_s28 + $0xbe0] sm:$0xf] }
 0x10f   : > { %v943_v61 = vld [vmem:[%s5520_s28 + $0xbe8] sm:$0xf]  ;;  %v945_v62 = vld [vmem:[%s5520_s28 + $0xbf0] sm:$0xf]  ;;  %942 = vst [vmem:[%s5527_s29 + $0x5f0] sm:$0xf] %v941_v60 }
 0x110   : > { %944 = vst [vmem:[%s5527_s29 + $0x5f4] sm:$0xf] %v943_v61  ;;  %946 = vst [vmem:[%s5527_s29 + $0x5f8] sm:$0xf] %v945_v62  ;;  %v947_v63 = vld [vmem:[%s5520_s28 + $0xbf8] sm:$0xf] }
 0x111   : > { %v949_v0 = vld [vmem:[%s5520_s28 + $0xc00] sm:$0xf]  ;;  %v951_v1 = vld [vmem:[%s5520_s28 + $0xc08] sm:$0xf]  ;;  %948 = vst [vmem:[%s5527_s29 + $0x5fc] sm:$0xf] %v947_v63 }
 0x112   : > { %950 = vst [vmem:[%s5527_s29 + $0x600] sm:$0xf] %v949_v0  ;;  %952 = vst [vmem:[%s5527_s29 + $0x604] sm:$0xf] %v951_v1  ;;  %v953_v2 = vld [vmem:[%s5520_s28 + $0xc10] sm:$0xf] }
 0x113   : > { %v955_v3 = vld [vmem:[%s5520_s28 + $0xc18] sm:$0xf]  ;;  %v957_v4 = vld [vmem:[%s5520_s28 + $0xc20] sm:$0xf]  ;;  %954 = vst [vmem:[%s5527_s29 + $0x608] sm:$0xf] %v953_v2 }
 0x114   : > { %956 = vst [vmem:[%s5527_s29 + $0x60c] sm:$0xf] %v955_v3  ;;  %958 = vst [vmem:[%s5527_s29 + $0x610] sm:$0xf] %v957_v4  ;;  %v959_v5 = vld [vmem:[%s5520_s28 + $0xc28] sm:$0xf] }
 0x115   : > { %v961_v6 = vld [vmem:[%s5520_s28 + $0xc30] sm:$0xf]  ;;  %v963_v7 = vld [vmem:[%s5520_s28 + $0xc38] sm:$0xf]  ;;  %960 = vst [vmem:[%s5527_s29 + $0x614] sm:$0xf] %v959_v5 }
 0x116   : > { %962 = vst [vmem:[%s5527_s29 + $0x618] sm:$0xf] %v961_v6  ;;  %964 = vst [vmem:[%s5527_s29 + $0x61c] sm:$0xf] %v963_v7  ;;  %v965_v8 = vld [vmem:[%s5520_s28 + $0xc40] sm:$0xf] }
 0x117   : > { %v967_v9 = vld [vmem:[%s5520_s28 + $0xc48] sm:$0xf]  ;;  %v969_v10 = vld [vmem:[%s5520_s28 + $0xc50] sm:$0xf]  ;;  %966 = vst [vmem:[%s5527_s29 + $0x620] sm:$0xf] %v965_v8 }
 0x118   : > { %968 = vst [vmem:[%s5527_s29 + $0x624] sm:$0xf] %v967_v9  ;;  %970 = vst [vmem:[%s5527_s29 + $0x628] sm:$0xf] %v969_v10  ;;  %v971_v11 = vld [vmem:[%s5520_s28 + $0xc58] sm:$0xf] }
 0x119   : > { %v973_v12 = vld [vmem:[%s5520_s28 + $0xc60] sm:$0xf]  ;;  %v975_v13 = vld [vmem:[%s5520_s28 + $0xc68] sm:$0xf]  ;;  %972 = vst [vmem:[%s5527_s29 + $0x62c] sm:$0xf] %v971_v11 }
 0x11a   : > { %974 = vst [vmem:[%s5527_s29 + $0x630] sm:$0xf] %v973_v12  ;;  %976 = vst [vmem:[%s5527_s29 + $0x634] sm:$0xf] %v975_v13  ;;  %v977_v14 = vld [vmem:[%s5520_s28 + $0xc70] sm:$0xf] }
 0x11b   : > { %v979_v15 = vld [vmem:[%s5520_s28 + $0xc78] sm:$0xf]  ;;  %978 = vst [vmem:[%s5527_s29 + $0x638] sm:$0xf] %v977_v14 }
 0x11c   : > { %980 = vst [vmem:[%s5527_s29 + $0x63c] sm:$0xf] %v979_v15 }
 0x11d PF: > { %p4515_p5 = scmp.ge.s32.totalorder %s5459_s17, 1  ;;  %p1814_p6 = scmp.lt.s32.totalorder %s5459_s17, 3 }
 0x11f   : > { %p1815_p7 = pnand %p4515_p5, %p1814_p6 }
 0x120   : > { %s1821_s30 = sand.u32 (!%p1815_p7), 1, %s5451_s15   ;;  %v5197_v16 = vld [vmem:[%s6707_s0 + $0x4] ss:$100 sps:$4 sm:$0xff] (!%p1815_p7)   ;;  %v5200_v17 = vld [vmem:[%s6707_s0 + $0xc] ss:$100 sps:$4 sm:$0xff] (!%p1815_p7)   ;;  %p1851_p8 = scmp.lt.s32.totalorder (!%p1815_p7), %s4510_s18, 1 }
 0x121   : > { %1818 = sbr.rel (%p1815_p7) target bundleno = 747 (0x2eb), region = 73  ;;  %3798 = vmatprep.mubr.bf16.mxu0 (!%p1815_p7), %v5197_v16  ;;  %3847 = vmatprep.mubr.bf16.mxu1 (!%p1815_p7), %v5200_v17  ;;  %v5195_v48 = vld [vmem:[%s6707_s0] ss:$100 sps:$4 sm:$0xff] (!%p1815_p7)   ;;  %v5198_v50 = vld [vmem:[%s6707_s0 + $0x8] ss:$100 sps:$4 sm:$0xff] (!%p1815_p7)  }
 0x122   : > { %s5138_s5 = smul.u32 (!%p1815_p7), 1600, %s1821_s30  ;;  %v5222_v52 = vld [vmem:[%s6707_s0 + $0xcc] ss:$100 sps:$4 sm:$0xff] (!%p1815_p7)   ;;  %v5224_v10 = vld [vmem:[%s6707_s0 + $0xd4] ss:$100 sps:$4 sm:$0xff] (!%p1815_p7)  }
 0x123   : > { %v5227_v12 = vld [vmem:[%s6707_s0 + $0xc8] ss:$100 sps:$4 sm:$0xff] (!%p1815_p7)   ;;  %v5228_v13 = vld [vmem:[%s6707_s0 + $0xd0] ss:$100 sps:$4 sm:$0xff] (!%p1815_p7)  }
 0x124   : > { %s6333_s10 = scalar_lea.vmem (!%p1815_p7), [#allocation2], %s5138_s5 }
 0x125   : > { %v5163_v18 = vld [vmem:[%s6333_s10 + $0x40] sm:$0xff] (!%p1815_p7)   ;;  %v5167_v22 = vld [vmem:[%s6333_s10 + $0x48] sm:$0xff] (!%p1815_p7)   ;;  %v5171_v26 = vld [vmem:[%s6333_s10 + $0x50] sm:$0xff] (!%p1815_p7)  }
 0x126   : > { %v5164_v19 = vld [vmem:[%s6333_s10 + $0xc0] sm:$0xff] (!%p1815_p7)   ;;  %4771 = vmatprep.subr.bf16.mxu0 (!%p1815_p7), %v5163_v18  ;;  %v5168_v23 = vld [vmem:[%s6333_s10 + $0xc8] sm:$0xff] (!%p1815_p7)   ;;  %v5172_v27 = vld [vmem:[%s6333_s10 + $0xd0] sm:$0xff] (!%p1815_p7)  }
 0x127   : > { %v5165_v20 = vld [vmem:[%s6333_s10] sm:$0xff] (!%p1815_p7)   ;;  %4799 = vmatprep.subr.bf16.mxu1 (!%p1815_p7), %v5164_v19  ;;  %v5169_v24 = vld [vmem:[%s6333_s10 + $0x8] sm:$0xff] (!%p1815_p7)   ;;  %v5173_v28 = vld [vmem:[%s6333_s10 + $0x10] sm:$0xff] (!%p1815_p7)  }
 0x128   : > { %v5166_v21 = vld [vmem:[%s6333_s10 + $0x80] sm:$0xff]   ;;  %4772 = vmatpush3.bf16.msra.mxu0 %v5165_v20  ;;  %v5170_v25 = vld [vmem:[%s6333_s10 + $0x88] sm:$0xff]   ;;  %v5174_v29 = vld [vmem:[%s6333_s10 + $0x90] sm:$0xff]   ;;  %s6716_s18 = smov (!%p1851_p8, %s4510_s18), 1 }
 0x129   : > { %4800 = vmatpush3.bf16.msra.mxu1 %v5166_v21  ;;  %4773 = vmatprep.subr.bf16.mxu0 %v5167_v22  ;;  %v5175_v30 = vld [vmem:[%s6333_s10 + $0x58] sm:$0xff]   ;;  %v5179_v34 = vld [vmem:[%s6333_s10 + $0x60] sm:$0xff]   ;;  %v5183_v38 = vld [vmem:[%s6333_s10 + $0x68] sm:$0xff]   ;;  %s1853_s7 = scalar_lea.vmem %s6709_s2, %s6716_s18  ;;  %s1856_s11 = scalar_lea.vmem %s6710_s3, %s6716_s18 }
 0x12a   : > { %4801 = vmatprep.subr.bf16.mxu1 %v5168_v23  ;;  %v5176_v31 = vld [vmem:[%s6333_s10 + $0xd8] sm:$0xff]   ;;  %v5180_v35 = vld [vmem:[%s6333_s10 + $0xe0] sm:$0xff]   ;;  %v5184_v39 = vld [vmem:[%s6333_s10 + $0xe8] sm:$0xff]   ;;  %s4516_s17 = sshll.u32 %s6716_s18, 3 }
 0x12b   : > { %v5177_v32 = vld [vmem:[%s6333_s10 + $0x18] sm:$0xff]   ;;  %v5181_v36 = vld [vmem:[%s6333_s10 + $0x20] sm:$0xff]   ;;  %v5185_v40 = vld [vmem:[%s6333_s10 + $0x28] sm:$0xff]   ;;  %s1860_s14 = scalar_lea.vmem %s6711_s4, %s4516_s17 }
 0x12c   : > { %4774 = vmatpush3.bf16.msra.mxu0 %v5169_v24  ;;  %v5178_v33 = vld [vmem:[%s6333_s10 + $0x98] sm:$0xff]   ;;  %v5182_v37 = vld [vmem:[%s6333_s10 + $0xa0] sm:$0xff]   ;;  %v5186_v41 = vld [vmem:[%s6333_s10 + $0xa8] sm:$0xff]  }
 0x12d   : > { %4802 = vmatpush3.bf16.msra.mxu1 %v5170_v25  ;;  %4775 = vmatprep.subr.bf16.mxu0 %v5171_v26  ;;  %v5187_v42 = vld [vmem:[%s6333_s10 + $0x70] sm:$0xff]   ;;  %v5191_v46 = vld [vmem:[%s6333_s10 + $0x78] sm:$0xff]   ;;  %v5201_v53 = vld [vmem:[%s6333_s10 + $0x140] sm:$0xff]  }
 0x12e   : > { %4803 = vmatprep.subr.bf16.mxu1 %v5172_v27  ;;  %v5188_v43 = vld [vmem:[%s6333_s10 + $0xf0] sm:$0xff]   ;;  %v5192_v47 = vld [vmem:[%s6333_s10 + $0xf8] sm:$0xff]   ;;  %v5202_v54 = vld [vmem:[%s6333_s10 + $0x100] sm:$0xff]  }
 0x12f   : > { %v5189_v44 = vld [vmem:[%s6333_s10 + $0x30] sm:$0xff]   ;;  %v5193_v49 = vld [vmem:[%s6333_s10 + $0x38] sm:$0xff]   ;;  %v5203_v55 = vld [vmem:[%s6333_s10 + $0x1c0] sm:$0xff]  }
 0x130   : > { %4776 = vmatpush3.bf16.msra.mxu0 %v5173_v28  ;;  %v5190_v45 = vld [vmem:[%s6333_s10 + $0xb0] sm:$0xff]   ;;  %v5194_v51 = vld [vmem:[%s6333_s10 + $0xb8] sm:$0xff]   ;;  %v5204_v56 = vld [vmem:[%s6333_s10 + $0x180] sm:$0xff]  }
 0x131   : > { %4804 = vmatpush3.bf16.msra.mxu1 %v5174_v29  ;;  %4777 = vmatprep.subr.bf16.mxu0 %v5175_v30  ;;  %v5205_v57 = vld [vmem:[%s6333_s10 + $0x148] sm:$0xff]   ;;  %v5209_v61 = vld [vmem:[%s6333_s10 + $0x150] sm:$0xff]   ;;  %v5213_v1 = vld [vmem:[%s6333_s10 + $0x158] sm:$0xff]  }
 0x132   : > { %4805 = vmatprep.subr.bf16.mxu1 %v5176_v31  ;;  %v5206_v58 = vld [vmem:[%s6333_s10 + $0x108] sm:$0xff]   ;;  %v5210_v62 = vld [vmem:[%s6333_s10 + $0x110] sm:$0xff]   ;;  %v5214_v2 = vld [vmem:[%s6333_s10 + $0x118] sm:$0xff]  }
 0x133   : > { %v5207_v59 = vld [vmem:[%s6333_s10 + $0x1c8] sm:$0xff]   ;;  %v5211_v63 = vld [vmem:[%s6333_s10 + $0x1d0] sm:$0xff]   ;;  %v5215_v3 = vld [vmem:[%s6333_s10 + $0x1d8] sm:$0xff]  }
 0x134   : > { %4778 = vmatpush3.bf16.msra.mxu0 %v5177_v32  ;;  %v5208_v60 = vld [vmem:[%s6333_s10 + $0x188] sm:$0xff]   ;;  %v5212_v0 = vld [vmem:[%s6333_s10 + $0x190] sm:$0xff]   ;;  %v5216_v4 = vld [vmem:[%s6333_s10 + $0x198] sm:$0xff]  }
 0x135   : > { %4806 = vmatpush3.bf16.msra.mxu1 %v5178_v33  ;;  %4779 = vmatprep.subr.bf16.mxu0 %v5179_v34  ;;  %v5217_v5 = vld [vmem:[%s6333_s10 + $0x160] sm:$0xff]   ;;  %v5221_v9 = vld [vmem:[%s6333_s10 + $0x168] sm:$0xff]   ;;  %v5231_v16 = vld [vmem:[%s6333_s10 + $0x170] sm:$0xff]  }
 0x136   : > { %4807 = vmatprep.subr.bf16.mxu1 %v5180_v35  ;;  %v5218_v6 = vld [vmem:[%s6333_s10 + $0x120] sm:$0xff]   ;;  %v5226_v11 = vld [vmem:[%s6333_s10 + $0x128] sm:$0xff]   ;;  %v5232_v17 = vld [vmem:[%s6333_s10 + $0x130] sm:$0xff]  }
 0x137   : > { %v5219_v7 = vld [vmem:[%s6333_s10 + $0x1e0] sm:$0xff]   ;;  %v5229_v14 = vld [vmem:[%s6333_s10 + $0x1e8] sm:$0xff]   ;;  %v5233_v18 = vld [vmem:[%s6333_s10 + $0x1f0] sm:$0xff]  }
 0x138   : > { %4780 = vmatpush3.bf16.msra.mxu0 %v5181_v36  ;;  %v5220_v8 = vld [vmem:[%s6333_s10 + $0x1a0] sm:$0xff]   ;;  %v5230_v15 = vld [vmem:[%s6333_s10 + $0x1a8] sm:$0xff]   ;;  %v5234_v19 = vld [vmem:[%s6333_s10 + $0x1b0] sm:$0xff]  }
 0x139   : > { %4808 = vmatpush3.bf16.msra.mxu1 %v5182_v37  ;;  %4781 = vmatprep.subr.bf16.mxu0 %v5183_v38  ;;  %v5235_v20 = vld [vmem:[%s6333_s10 + $0x178] sm:$0xff]   ;;  %v5238_v23 = vld [vmem:[%s6707_s0 + $0x10] ss:$100 sps:$4 sm:$0xff]   ;;  %v5242_v26 = vld [vmem:[%s6333_s10 + $0x240] sm:$0xff]  }
 0x13a   : > { %4809 = vmatprep.subr.bf16.mxu1 %v5184_v39  ;;  %v5236_v21 = vld [vmem:[%s6333_s10 + $0x138] sm:$0xff]   ;;  %v5246_v29 = vld [vmem:[%s6333_s10 + $0x200] sm:$0xff]   ;;  %v5249_v32 = vld [vmem:[%s6333_s10 + $0x248] sm:$0xff]  }
 0x13b   : > { %v5237_v22 = vld [vmem:[%s6333_s10 + $0x1f8] sm:$0xff]   ;;  %v5247_v30 = vld [vmem:[%s6333_s10 + $0x2c0] sm:$0xff]   ;;  %v5250_v33 = vld [vmem:[%s6333_s10 + $0x208] sm:$0xff]  }
 0x13c   : > { %4782 = vmatpush3.bf16.msra.mxu0 %v5185_v40  ;;  %v5240_v24 = vld [vmem:[%s6707_s0 + $0x14] ss:$100 sps:$4 sm:$0xff]   ;;  %v5245_v28 = vld [vmem:[%s6707_s0 + $0x1c] ss:$100 sps:$4 sm:$0xff]   ;;  %v5251_v34 = vld [vmem:[%s6333_s10 + $0x2c8] sm:$0xff]  }
 0x13d   : > { %4810 = vmatpush3.bf16.msra.mxu1 %v5186_v41  ;;  %4783 = vmatprep.subr.bf16.mxu0 %v5187_v42  ;;  %v5241_v25 = vld [vmem:[%s6333_s10 + $0x1b8] sm:$0xff]   ;;  %v5248_v31 = vld [vmem:[%s6333_s10 + $0x280] sm:$0xff]   ;;  %v5254_v36 = vld [vmem:[%s6333_s10 + $0x288] sm:$0xff]  }
 0x13e   : > { %4811 = vmatprep.subr.bf16.mxu1 %v5188_v43  ;;  %v5243_v27 = vld [vmem:[%s6707_s0 + $0x18] ss:$100 sps:$4 sm:$0xff]   ;;  %v5256_v38 = vld [vmem:[%s6333_s10 + $0x250] sm:$0xff]   ;;  %v5257_v39 = vld [vmem:[%s6707_s0 + $0xe4] ss:$100 sps:$4 sm:$0xff]  }
 0x13f   : > { %v5252_v35 = vld [vmem:[%s6707_s0 + $0xdc] ss:$100 sps:$4 sm:$0xff]   ;;  %v5259_v40 = vld [vmem:[%s6333_s10 + $0x210] sm:$0xff]  }
 0x140   : > { %4784 = vmatpush3.bf16.msra.mxu0 %v5189_v44  ;;  %v5255_v37 = vld [vmem:[%s6707_s0 + $0xd8] ss:$100 sps:$4 sm:$0xff]   ;;  %v5260_v41 = vld [vmem:[%s6707_s0 + $0xe0] ss:$100 sps:$4 sm:$0xff]   ;;  %v5261_v42 = vld [vmem:[%s6333_s10 + $0x2d0] sm:$0xff]  }
 0x141   : > { %4812 = vmatpush3.bf16.msra.mxu1 %v5190_v45  ;;  %4785 = vmatprep.subr.bf16.mxu0 %v5191_v46  ;;  %v5262_v43 = vld [vmem:[%s6333_s10 + $0x290] sm:$0xff]   ;;  %v5263_v44 = vld [vmem:[%s6333_s10 + $0x258] sm:$0xff]  }
 0x142   : > { %4813 = vmatprep.subr.bf16.mxu1 %v5192_v47  ;;  %v5264_v45 = vld [vmem:[%s6333_s10 + $0x218] sm:$0xff]  }
 0x143   : > { %v5265_v46 = vld [vmem:[%s6333_s10 + $0x2d8] sm:$0xff]  }
 0x144   : > { %4786 = vmatpush3.bf16.msra.mxu0 %v5193_v49  ;;  %v5266_v47 = vld [vmem:[%s6333_s10 + $0x298] sm:$0xff]   ;;  %v5268_v49 = vld [vmem:[%s6333_s10 + $0x220] sm:$0xff]  }
 0x145   : > { %4814 = vmatpush3.bf16.msra.mxu1 %v5194_v51  ;;  %4827 = vmatprep.subr.bf16.mxu0 %v5201_v53  ;;  %v5270_v51 = vld [vmem:[%s6333_s10 + $0x2a0] sm:$0xff]   ;;  %v5272_v53 = vld [vmem:[%s6333_s10 + $0x228] sm:$0xff]  }
 0x146   : > { %4855 = vmatprep.subr.bf16.mxu1 %v5203_v55  ;;  %v5274_v55 = vld [vmem:[%s6333_s10 + $0x2a8] sm:$0xff]  }
 0x147   : > { %3799 = vmatmul.mubr.bf16.vlgmr.msra.gmra.mrb[0].mxu0 %v5195_v48  ;;  %v5267_v48 = vld [vmem:[%s6333_s10 + $0x260] sm:$0xff]  }
 0x148   : > { %3848 = vmatmul.mubr.bf16.vlgmr.msra.gmra.mrb[0].mxu1 %v5198_v50  ;;  %4828 = vmatpush3.bf16.msra.mxu0 %v5202_v54  ;;  %v5269_v50 = vld [vmem:[%s6333_s10 + $0x2e0] sm:$0xff]   ;;  %v5273_v54 = vld [vmem:[%s6333_s10 + $0x2e8] sm:$0xff]  }
 0x149   : > { %3806 = vmatprep.mubr.bf16.mxu0 %v5222_v52  ;;  %4856 = vmatpush3.bf16.msra.mxu1 %v5204_v56  ;;  %v5271_v52 = vld [vmem:[%s6333_s10 + $0x268] sm:$0xff]   ;;  %v5275_v56 = vld [vmem:[%s6333_s10 + $0x270] sm:$0xff]  }
 0x14a   : > { %4829 = vmatprep.subr.bf16.mxu0 %v5205_v57  ;;  %4857 = vmatprep.subr.bf16.mxu1 %v5207_v59  ;;  %v5276_v57 = vld [vmem:[%s6333_s10 + $0x230] sm:$0xff]  }
 0x14b   : > { %3855 = vmatprep.mubr.bf16.mxu1 %v5224_v10  ;;  %v5278_v59 = vld [vmem:[%s6333_s10 + $0x2b0] sm:$0xff]   ;;  %v5295_v10 = vld [vmem:[%s6333_s10 + $0x3c8] sm:$0xff]  }
 0x14c   : > { %4830 = vmatpush3.bf16.msra.mxu0 %v5206_v58  ;;  %v5277_v58 = vld [vmem:[%s6333_s10 + $0x2f0] sm:$0xff]  }
 0x14d   : > { %4858 = vmatpush3.bf16.msra.mxu1 %v5208_v60  ;;  %4831 = vmatprep.subr.bf16.mxu0 %v5209_v61  ;;  %v5279_v60 = vld [vmem:[%s6333_s10 + $0x278] sm:$0xff]  }
 0x14e   : > { %4859 = vmatprep.subr.bf16.mxu1 %v5211_v63  ;;  %v5280_v61 = vld [vmem:[%s6333_s10 + $0x238] sm:$0xff]   ;;  %v5282_v63 = vld [vmem:[%s6707_s0 + $0x20] ss:$100 sps:$4 sm:$0xff]  }
 0x14f   : > { %3807 = vmatmul.mubr.bf16.gmra.mrb[4].mxu0 %v5227_v12  ;;  %v5298_v12 = vld [vmem:[%s6333_s10 + $0x388] sm:$0xff]  }
 0x150   : > { %4832 = vmatpush3.bf16.msra.mxu0 %v5210_v62  ;;  %3856 = vmatmul.mubr.bf16.gmra.mrb[4].mxu1 %v5228_v13  ;;  %v5281_v62 = vld [vmem:[%s6333_s10 + $0x2f8] sm:$0xff]   ;;  %v5299_v13 = vld [vmem:[%s6707_s0 + $0xe8] ss:$100 sps:$4 sm:$0xff]  }
 0x151   : > { %4860 = vmatpush3.bf16.msra.mxu1 %v5212_v0  ;;  %4833 = vmatprep.subr.bf16.mxu0 %v5213_v1  ;;  %v5284_v0 = vld [vmem:[%s6707_s0 + $0x24] ss:$100 sps:$4 sm:$0xff]   ;;  %v5285_v1 = vld [vmem:[%s6333_s10 + $0x2b8] sm:$0xff]  }
 0x152   : > { %4861 = vmatprep.subr.bf16.mxu1 %v5215_v3  ;;  %3896 = vmatprep.mubr.bf16.mxu0 %v5240_v24  ;;  %v5287_v3 = vld [vmem:[%s6707_s0 + $0x28] ss:$100 sps:$4 sm:$0xff]   ;;  %v5311_v24 = vld [vmem:[%s6333_s10 + $0x360] sm:$0xff]  }
 0x153   : > { %3945 = vmatprep.mubr.bf16.mxu1 %v5245_v28  ;;  %v5315_v28 = vld [vmem:[%s6333_s10 + $0x368] sm:$0xff]  }
 0x154   : > { %4834 = vmatpush3.bf16.msra.mxu0 %v5214_v2  ;;  %v5286_v2 = vld [vmem:[%s6333_s10 + $0x340] sm:$0xff]  }
 0x155   : > { %4862 = vmatpush3.bf16.msra.mxu1 %v5216_v4  ;;  %4835 = vmatprep.subr.bf16.mxu0 %v5217_v5  ;;  %v5289_v4 = vld [vmem:[%s6707_s0 + $0x2c] ss:$100 sps:$4 sm:$0xff]   ;;  %v5290_v5 = vld [vmem:[%s6333_s10 + $0x300] sm:$0xff]  }
 0x156   : > { %4863 = vmatprep.subr.bf16.mxu1 %v5219_v7  ;;  %v5292_v7 = vld [vmem:[%s6333_s10 + $0x380] sm:$0xff]  }
 0x158   : > { %4836 = vmatpush3.bf16.msra.mxu0 %v5218_v6  ;;  %v5291_v6 = vld [vmem:[%s6333_s10 + $0x3c0] sm:$0xff]  }
 0x159   : > { %4864 = vmatpush3.bf16.msra.mxu1 %v5220_v8  ;;  %4837 = vmatprep.subr.bf16.mxu0 %v5221_v9  ;;  %v5293_v8 = vld [vmem:[%s6333_s10 + $0x348] sm:$0xff]  }
 0x15a   : > { %4865 = vmatprep.subr.bf16.mxu1 %v5229_v14  ;;  %v5294_v9 = vld [vmem:[%s6333_s10 + $0x308] sm:$0xff]   ;;  %v5300_v14 = vld [vmem:[%s6333_s10 + $0x350] sm:$0xff]  }
 0x15c   : > { %4838 = vmatpush3.bf16.msra.mxu0 %v5226_v11  ;;  %v5296_v11 = vld [vmem:[%s6707_s0 + $0xec] ss:$100 sps:$4 sm:$0xff]  }
 0x15d   : > { %4866 = vmatpush3.bf16.msra.mxu1 %v5230_v15  ;;  %4839 = vmatprep.subr.bf16.mxu0 %v5231_v16  ;;  %v5301_v15 = vld [vmem:[%s6707_s0 + $0xf4] ss:$100 sps:$4 sm:$0xff]  }
 0x15e   : > { %4867 = vmatprep.subr.bf16.mxu1 %v5233_v18  ;;  %v5303_v16 = vld [vmem:[%s6333_s10 + $0x310] sm:$0xff]  }
 0x15f   : > { %v5305_v18 = vld [vmem:[%s6333_s10 + $0x3d0] sm:$0xff]  }
 0x160   : > { %4840 = vmatpush3.bf16.msra.mxu0 %v5232_v17  ;;  %v5304_v17 = vld [vmem:[%s6707_s0 + $0xf0] ss:$100 sps:$4 sm:$0xff]  }
 0x161   : > { %4868 = vmatpush3.bf16.msra.mxu1 %v5234_v19  ;;  %4841 = vmatprep.subr.bf16.mxu0 %v5235_v20  ;;  %v5306_v19 = vld [vmem:[%s6333_s10 + $0x390] sm:$0xff]   ;;  %v5307_v20 = vld [vmem:[%s6333_s10 + $0x358] sm:$0xff]  }
 0x162   : > { %4869 = vmatprep.subr.bf16.mxu1 %v5237_v22  ;;  %v5309_v22 = vld [vmem:[%s6333_s10 + $0x3d8] sm:$0xff]  }
 0x164   : > { %4842 = vmatpush3.bf16.msra.mxu0 %v5236_v21  ;;  %v5308_v21 = vld [vmem:[%s6333_s10 + $0x318] sm:$0xff]  }
 0x165   : > { %4870 = vmatpush3.bf16.msra.mxu1 %v5241_v25  ;;  %4883 = vmatprep.subr.bf16.mxu0 %v5242_v26  ;;  %v5312_v25 = vld [vmem:[%s6333_s10 + $0x320] sm:$0xff]  }
 0x166   : > { %4911 = vmatprep.subr.bf16.mxu1 %v5247_v30  ;;  %v5313_v26 = vld [vmem:[%s6333_s10 + $0x3e0] sm:$0xff]   ;;  %v5317_v30 = vld [vmem:[%s6333_s10 + $0x3e8] sm:$0xff]  }
 0x167   : > { %3897 = vmatmul.mubr.bf16.vlgmr.msra.gmra.mrb[8].mxu0 %v5238_v23  ;;  %v5310_v23 = vld [vmem:[%s6333_s10 + $0x398] sm:$0xff]  }
 0x168   : > { %4884 = vmatpush3.bf16.msra.mxu0 %v5246_v29  ;;  %3946 = vmatmul.mubr.bf16.vlgmr.msra.gmra.mrb[8].mxu1 %v5243_v27  ;;  %v5314_v27 = vld [vmem:[%s6333_s10 + $0x3a0] sm:$0xff]   ;;  %v5316_v29 = vld [vmem:[%s6333_s10 + $0x328] sm:$0xff]  }
 0x169   : > { %4912 = vmatpush3.bf16.msra.mxu1 %v5248_v31  ;;  %4885 = vmatprep.subr.bf16.mxu0 %v5249_v32  ;;  %v5318_v31 = vld [vmem:[%s6333_s10 + $0x3a8] sm:$0xff]   ;;  %v5319_v32 = vld [vmem:[%s6333_s10 + $0x370] sm:$0xff]  }
 0x16a   : > { %4913 = vmatprep.subr.bf16.mxu1 %v5251_v34  ;;  %3904 = vmatprep.mubr.bf16.mxu0 %v5252_v35  ;;  %v5321_v34 = vld [vmem:[%s6333_s10 + $0x3f0] sm:$0xff]  }
 0x16b   : > { %3953 = vmatprep.mubr.bf16.mxu1 %v5257_v39  ;;  %v5322_v35 = vld [vmem:[%s6333_s10 + $0x3b0] sm:$0xff]  }
 0x16c   : > { %4886 = vmatpush3.bf16.msra.mxu0 %v5250_v33  ;;  %v5320_v33 = vld [vmem:[%s6333_s10 + $0x330] sm:$0xff]  }
 0x16d   : > { %4914 = vmatpush3.bf16.msra.mxu1 %v5254_v36  ;;  %4887 = vmatprep.subr.bf16.mxu0 %v5256_v38  ;;  %v5323_v36 = vld [vmem:[%s6333_s10 + $0x378] sm:$0xff]   ;;  %v5326_v39 = vld [vmem:[%s6707_s0 + $0x30] ss:$100 sps:$4 sm:$0xff]  }
 0x16e   : > { %4915 = vmatprep.subr.bf16.mxu1 %v5261_v42  ;;  %v5325_v38 = vld [vmem:[%s6333_s10 + $0x3f8] sm:$0xff]   ;;  %v5330_v42 = vld [vmem:[%s6333_s10 + $0x440] sm:$0xff]  }
 0x16f   : > { %3905 = vmatmul.mubr.bf16.gmra.mrb[12].mxu0 %v5255_v37  ;;  %v5324_v37 = vld [vmem:[%s6333_s10 + $0x338] sm:$0xff]  }
 0x170   : > { %4888 = vmatpush3.bf16.msra.mxu0 %v5259_v40  ;;  %3954 = vmatmul.mubr.bf16.gmra.mrb[12].mxu1 %v5260_v41  ;;  %v5328_v40 = vld [vmem:[%s6707_s0 + $0x34] ss:$100 sps:$4 sm:$0xff]  }
 0x171   : > { %4916 = vmatpush3.bf16.msra.mxu1 %v5262_v43  ;;  %4889 = vmatprep.subr.bf16.mxu0 %v5263_v44  ;;  %v5329_v41 = vld [vmem:[%s6333_s10 + $0x3b8] sm:$0xff]  }
 0x172   : > { %4917 = vmatprep.subr.bf16.mxu1 %v5265_v46  ;;  %3994 = vmatprep.mubr.bf16.mxu0 %v5284_v0  ;;  %v5331_v43 = vld [vmem:[%s6707_s0 + $0x38] ss:$100 sps:$4 sm:$0xff]   ;;  %v5335_v46 = vld [vmem:[%s6333_s10 + $0x4c0] sm:$0xff]  }
 0x173   : > { %4043 = vmatprep.mubr.bf16.mxu1 %v5289_v4  ;;  %v5333_v44 = vld [vmem:[%s6707_s0 + $0x3c] ss:$100 sps:$4 sm:$0xff]   ;;  %v5359_v4 = vld [vmem:[%s6333_s10 + $0x468] sm:$0xff]  }
 0x174   : > { %4890 = vmatpush3.bf16.msra.mxu0 %v5264_v45  ;;  %v5334_v45 = vld [vmem:[%s6333_s10 + $0x400] sm:$0xff]  }
 0x175   : > { %4918 = vmatpush3.bf16.msra.mxu1 %v5266_v47  ;;  %4891 = vmatprep.subr.bf16.mxu0 %v5267_v48  ;;  %v5336_v47 = vld [vmem:[%s6333_s10 + $0x480] sm:$0xff]   ;;  %v5337_v48 = vld [vmem:[%s6333_s10 + $0x448] sm:$0xff]  }
 0x176   : > { %4919 = vmatprep.subr.bf16.mxu1 %v5269_v50  ;;  %v5339_v50 = vld [vmem:[%s6333_s10 + $0x4c8] sm:$0xff]   ;;  %v5355_v0 = vld [vmem:[%s6333_s10 + $0x460] sm:$0xff]  }
 0x178   : > { %4892 = vmatpush3.bf16.msra.mxu0 %v5268_v49  ;;  %v5338_v49 = vld [vmem:[%s6333_s10 + $0x408] sm:$0xff]  }
 0x179   : > { %4920 = vmatpush3.bf16.msra.mxu1 %v5270_v51  ;;  %4893 = vmatprep.subr.bf16.mxu0 %v5271_v52  ;;  %v5340_v51 = vld [vmem:[%s6707_s0 + $0xfc] ss:$100 sps:$4 sm:$0xff]   ;;  %v5342_v52 = vld [vmem:[%s6333_s10 + $0x488] sm:$0xff]  }
 0x17a   : > { %4921 = vmatprep.subr.bf16.mxu1 %v5273_v54  ;;  %v5344_v54 = vld [vmem:[%s6333_s10 + $0x450] sm:$0xff]  }
 0x17c   : > { %4894 = vmatpush3.bf16.msra.mxu0 %v5272_v53  ;;  %v5343_v53 = vld [vmem:[%s6707_s0 + $0xf8] ss:$100 sps:$4 sm:$0xff]  }
 0x17d   : > { %4922 = vmatpush3.bf16.msra.mxu1 %v5274_v55  ;;  %4895 = vmatprep.subr.bf16.mxu0 %v5275_v56  ;;  %v5345_v55 = vld [vmem:[%s6707_s0 + $0x104] ss:$100 sps:$4 sm:$0xff]   ;;  %v5347_v56 = vld [vmem:[%s6333_s10 + $0x410] sm:$0xff]  }
 0x17e   : > { %4923 = vmatprep.subr.bf16.mxu1 %v5277_v58  ;;  %v5349_v58 = vld [vmem:[%s6333_s10 + $0x4d0] sm:$0xff]  }
 0x180   : > { %4896 = vmatpush3.bf16.msra.mxu0 %v5276_v57  ;;  %v5348_v57 = vld [vmem:[%s6707_s0 + $0x100] ss:$100 sps:$4 sm:$0xff]  }
 0x181   : > { %4924 = vmatpush3.bf16.msra.mxu1 %v5278_v59  ;;  %4897 = vmatprep.subr.bf16.mxu0 %v5279_v60  ;;  %v5350_v59 = vld [vmem:[%s6333_s10 + $0x490] sm:$0xff]   ;;  %v5351_v60 = vld [vmem:[%s6333_s10 + $0x458] sm:$0xff]  }
 0x182   : > { %4925 = vmatprep.subr.bf16.mxu1 %v5281_v62  ;;  %v5353_v62 = vld [vmem:[%s6333_s10 + $0x4d8] sm:$0xff]  }
 0x184   : > { %4898 = vmatpush3.bf16.msra.mxu0 %v5280_v61  ;;  %v5352_v61 = vld [vmem:[%s6333_s10 + $0x418] sm:$0xff]  }
 0x185   : > { %4926 = vmatpush3.bf16.msra.mxu1 %v5285_v1  ;;  %4939 = vmatprep.subr.bf16.mxu0 %v5286_v2  ;;  %v5356_v1 = vld [vmem:[%s6333_s10 + $0x420] sm:$0xff]  }
 0x186   : > { %4967 = vmatprep.subr.bf16.mxu1 %v5291_v6  ;;  %v5357_v2 = vld [vmem:[%s6333_s10 + $0x4e0] sm:$0xff]   ;;  %v5361_v6 = vld [vmem:[%s6333_s10 + $0x4e8] sm:$0xff]  }
 0x187   : > { %3995 = vmatmul.mubr.bf16.vlgmr.msra.gmra.mrb[16].mxu0 %v5282_v63  ;;  %v5354_v63 = vld [vmem:[%s6333_s10 + $0x498] sm:$0xff]  }
 0x188   : > { %4940 = vmatpush3.bf16.msra.mxu0 %v5290_v5  ;;  %4044 = vmatmul.mubr.bf16.vlgmr.msra.gmra.mrb[16].mxu1 %v5287_v3  ;;  %v5358_v3 = vld [vmem:[%s6333_s10 + $0x4a0] sm:$0xff]   ;;  %v5360_v5 = vld [vmem:[%s6333_s10 + $0x428] sm:$0xff]  }
 0x189   : > { %4968 = vmatpush3.bf16.msra.mxu1 %v5292_v7  ;;  %4941 = vmatprep.subr.bf16.mxu0 %v5293_v8  ;;  %v5362_v7 = vld [vmem:[%s6333_s10 + $0x4a8] sm:$0xff]   ;;  %v5363_v8 = vld [vmem:[%s6333_s10 + $0x470] sm:$0xff]  }
 0x18a   : > { %4969 = vmatprep.subr.bf16.mxu1 %v5295_v10  ;;  %4002 = vmatprep.mubr.bf16.mxu0 %v5296_v11  ;;  %v5365_v10 = vld [vmem:[%s6333_s10 + $0x4f0] sm:$0xff]  }
 0x18b   : > { %4051 = vmatprep.mubr.bf16.mxu1 %v5301_v15  ;;  %v5366_v11 = vld [vmem:[%s6333_s10 + $0x4b0] sm:$0xff]   ;;  %v5370_v15 = vld [vmem:[%s6707_s0 + $0x40] ss:$100 sps:$4 sm:$0xff]  }
 0x18c   : > { %4942 = vmatpush3.bf16.msra.mxu0 %v5294_v9  ;;  %v5364_v9 = vld [vmem:[%s6333_s10 + $0x430] sm:$0xff]  }
 0x18d   : > { %4970 = vmatpush3.bf16.msra.mxu1 %v5298_v12  ;;  %4943 = vmatprep.subr.bf16.mxu0 %v5300_v14  ;;  %v5367_v12 = vld [vmem:[%s6333_s10 + $0x478] sm:$0xff]  }
 0x18e   : > { %4971 = vmatprep.subr.bf16.mxu1 %v5305_v18  ;;  %v5369_v14 = vld [vmem:[%s6333_s10 + $0x4f8] sm:$0xff]   ;;  %v5374_v18 = vld [vmem:[%s6333_s10 + $0x540] sm:$0xff]  }
 0x18f   : > { %4003 = vmatmul.mubr.bf16.gmra.mrb[20].mxu0 %v5299_v13  ;;  %v5368_v13 = vld [vmem:[%s6333_s10 + $0x438] sm:$0xff]  }
 0x190   : > { %4944 = vmatpush3.bf16.msra.mxu0 %v5303_v16  ;;  %4052 = vmatmul.mubr.bf16.gmra.mrb[20].mxu1 %v5304_v17  ;;  %v5372_v16 = vld [vmem:[%s6707_s0 + $0x44] ss:$100 sps:$4 sm:$0xff]   ;;  %v5373_v17 = vld [vmem:[%s6333_s10 + $0x4b8] sm:$0xff]  }
 0x191   : > { %4972 = vmatpush3.bf16.msra.mxu1 %v5306_v19  ;;  %4945 = vmatprep.subr.bf16.mxu0 %v5307_v20  ;;  %v5375_v19 = vld [vmem:[%s6707_s0 + $0x48] ss:$100 sps:$4 sm:$0xff]  }
 0x192   : > { %4973 = vmatprep.subr.bf16.mxu1 %v5309_v22  ;;  %4092 = vmatprep.mubr.bf16.mxu0 %v5328_v40  ;;  %v5377_v20 = vld [vmem:[%s6707_s0 + $0x4c] ss:$100 sps:$4 sm:$0xff]   ;;  %v5379_v22 = vld [vmem:[%s6333_s10 + $0x5c0] sm:$0xff]  }
 0x193   : > { %4141 = vmatprep.mubr.bf16.mxu1 %v5333_v44  ;;  %v5399_v40 = vld [vmem:[%s6333_s10 + $0x560] sm:$0xff]   ;;  %v5403_v44 = vld [vmem:[%s6333_s10 + $0x568] sm:$0xff]  }
 0x194   : > { %4946 = vmatpush3.bf16.msra.mxu0 %v5308_v21  ;;  %v5378_v21 = vld [vmem:[%s6333_s10 + $0x500] sm:$0xff]  }
 0x195   : > { %4974 = vmatpush3.bf16.msra.mxu1 %v5310_v23  ;;  %4947 = vmatprep.subr.bf16.mxu0 %v5311_v24  ;;  %v5380_v23 = vld [vmem:[%s6333_s10 + $0x580] sm:$0xff]   ;;  %v5381_v24 = vld [vmem:[%s6333_s10 + $0x548] sm:$0xff]  }
 0x196   : > { %4975 = vmatprep.subr.bf16.mxu1 %v5313_v26  ;;  %v5383_v26 = vld [vmem:[%s6333_s10 + $0x5c8] sm:$0xff]  }
 0x198   : > { %4948 = vmatpush3.bf16.msra.mxu0 %v5312_v25  ;;  %v5382_v25 = vld [vmem:[%s6333_s10 + $0x508] sm:$0xff]  }
 0x199   : > { %4976 = vmatpush3.bf16.msra.mxu1 %v5314_v27  ;;  %4949 = vmatprep.subr.bf16.mxu0 %v5315_v28  ;;  %v5384_v27 = vld [vmem:[%s6707_s0 + $0x10c] ss:$100 sps:$4 sm:$0xff]  }
 0x19a   : > { %4977 = vmatprep.subr.bf16.mxu1 %v5317_v30  ;;  %v5386_v28 = vld [vmem:[%s6333_s10 + $0x588] sm:$0xff]   ;;  %v5388_v30 = vld [vmem:[%s6333_s10 + $0x550] sm:$0xff]  }
 0x19c   : > { %4950 = vmatpush3.bf16.msra.mxu0 %v5316_v29  ;;  %v5387_v29 = vld [vmem:[%s6707_s0 + $0x108] ss:$100 sps:$4 sm:$0xff]  }
 0x19d   : > { %4978 = vmatpush3.bf16.msra.mxu1 %v5318_v31  ;;  %4951 = vmatprep.subr.bf16.mxu0 %v5319_v32  ;;  %v5389_v31 = vld [vmem:[%s6707_s0 + $0x114] ss:$100 sps:$4 sm:$0xff]  }
 0x19e   : > { %4979 = vmatprep.subr.bf16.mxu1 %v5321_v34  ;;  %v5391_v32 = vld [vmem:[%s6333_s10 + $0x510] sm:$0xff]  }
 0x19f   : > { %v5393_v34 = vld [vmem:[%s6333_s10 + $0x5d0] sm:$0xff]  }
 0x1a0   : > { %4952 = vmatpush3.bf16.msra.mxu0 %v5320_v33  ;;  %v5392_v33 = vld [vmem:[%s6707_s0 + $0x110] ss:$100 sps:$4 sm:$0xff]  }
 0x1a1   : > { %4980 = vmatpush3.bf16.msra.mxu1 %v5322_v35  ;;  %4953 = vmatprep.subr.bf16.mxu0 %v5323_v36  ;;  %v5394_v35 = vld [vmem:[%s6333_s10 + $0x590] sm:$0xff]   ;;  %v5395_v36 = vld [vmem:[%s6333_s10 + $0x558] sm:$0xff]  }
 0x1a2   : > { %4981 = vmatprep.subr.bf16.mxu1 %v5325_v38  ;;  %v5397_v38 = vld [vmem:[%s6333_s10 + $0x5d8] sm:$0xff]  }
 0x1a4   : > { %4954 = vmatpush3.bf16.msra.mxu0 %v5324_v37  ;;  %v5396_v37 = vld [vmem:[%s6333_s10 + $0x518] sm:$0xff]  }
 0x1a5   : > { %4982 = vmatpush3.bf16.msra.mxu1 %v5329_v41  ;;  %4995 = vmatprep.subr.bf16.mxu0 %v5330_v42  ;;  %v5400_v41 = vld [vmem:[%s6333_s10 + $0x520] sm:$0xff]  }
 0x1a6   : > { %5023 = vmatprep.subr.bf16.mxu1 %v5335_v46  ;;  %v5401_v42 = vld [vmem:[%s6333_s10 + $0x5e0] sm:$0xff]   ;;  %v5405_v46 = vld [vmem:[%s6333_s10 + $0x5e8] sm:$0xff]  }
 0x1a7   : > { %4093 = vmatmul.mubr.bf16.vlgmr.msra.gmra.mrb[24].mxu0 %v5326_v39  ;;  %v5398_v39 = vld [vmem:[%s6333_s10 + $0x598] sm:$0xff]  }
 0x1a8   : > { %4996 = vmatpush3.bf16.msra.mxu0 %v5334_v45  ;;  %4142 = vmatmul.mubr.bf16.vlgmr.msra.gmra.mrb[24].mxu1 %v5331_v43  ;;  %v5402_v43 = vld [vmem:[%s6333_s10 + $0x5a0] sm:$0xff]   ;;  %v5404_v45 = vld [vmem:[%s6333_s10 + $0x528] sm:$0xff]  }
 0x1a9   : > { %5024 = vmatpush3.bf16.msra.mxu1 %v5336_v47  ;;  %4997 = vmatprep.subr.bf16.mxu0 %v5337_v48  ;;  %v5406_v47 = vld [vmem:[%s6333_s10 + $0x5a8] sm:$0xff]   ;;  %v5407_v48 = vld [vmem:[%s6333_s10 + $0x570] sm:$0xff]  }
 0x1aa   : > { %5025 = vmatprep.subr.bf16.mxu1 %v5339_v50  ;;  %4100 = vmatprep.mubr.bf16.mxu0 %v5340_v51  ;;  %v5409_v50 = vld [vmem:[%s6333_s10 + $0x5f0] sm:$0xff]  }
 0x1ab   : > { %4149 = vmatprep.mubr.bf16.mxu1 %v5345_v55  ;;  %v5410_v51 = vld [vmem:[%s6333_s10 + $0x5b0] sm:$0xff]  }
 0x1ac   : > { %4998 = vmatpush3.bf16.msra.mxu0 %v5338_v49  ;;  %v5408_v49 = vld [vmem:[%s6333_s10 + $0x530] sm:$0xff]  }
 0x1ad   : > { %5026 = vmatpush3.bf16.msra.mxu1 %v5342_v52  ;;  %4999 = vmatprep.subr.bf16.mxu0 %v5344_v54  ;;  %v5411_v52 = vld [vmem:[%s6333_s10 + $0x578] sm:$0xff]   ;;  %v5414_v55 = vld [vmem:[%s6707_s0 + $0x50] ss:$100 sps:$4 sm:$0xff]  }
 0x1ae   : > { %5027 = vmatprep.subr.bf16.mxu1 %v5349_v58  ;;  %v5413_v54 = vld [vmem:[%s6333_s10 + $0x5f8] sm:$0xff]   ;;  %v5418_v58 = vld [vmem:[%s6333_s10 + $0x600] sm:$0xff]  }
 0x1af   : > { %4101 = vmatmul.mubr.bf16.gmra.mrb[28].mxu0 %v5343_v53  ;;  %v5412_v53 = vld [vmem:[%s6333_s10 + $0x538] sm:$0xff]  }
 0x1b0   : > { %5000 = vmatpush3.bf16.msra.mxu0 %v5347_v56  ;;  %4150 = vmatmul.mubr.bf16.gmra.mrb[28].mxu1 %v5348_v57  ;;  %v5416_v56 = vld [vmem:[%s6707_s0 + $0x54] ss:$100 sps:$4 sm:$0xff]  }
 0x1b1   : > { %5028 = vmatpush3.bf16.msra.mxu1 %v5350_v59  ;;  %5001 = vmatprep.subr.bf16.mxu0 %v5351_v60  ;;  %v5417_v57 = vld [vmem:[%s6333_s10 + $0x5b8] sm:$0xff]  }
 0x1b2   : > { %5029 = vmatprep.subr.bf16.mxu1 %v5353_v62  ;;  %4190 = vmatprep.mubr.bf16.mxu0 %v5372_v16  ;;  %v5419_v59 = vld [vmem:[%s6707_s0 + $0x58] ss:$100 sps:$4 sm:$0xff]  }
 0x1b3   : > { %4239 = vmatprep.mubr.bf16.mxu1 %v5377_v20  ;;  %v5421_v60 = vld [vmem:[%s6707_s0 + $0x5c] ss:$100 sps:$4 sm:$0xff]  }
 0x1b4   : > { %5002 = vmatpush3.bf16.msra.mxu0 %v5352_v61  ;;  %v5422_v61 = vld [vmem:[%s6333_s10 + $0x608] sm:$0xff]   ;;  %v5423_v62 = vld [vmem:[%s6707_s0 + $0x11c] ss:$100 sps:$4 sm:$0xff]  }
 0x1b5   : > { %5030 = vmatpush3.bf16.msra.mxu1 %v5354_v63  ;;  %5003 = vmatprep.subr.bf16.mxu0 %v5355_v0  ;;  %v5425_v63 = vld [vmem:[%s6707_s0 + $0x118] ss:$100 sps:$4 sm:$0xff]   ;;  %v5426_v0 = vld [vmem:[%s6333_s10 + $0x610] sm:$0xff]  }
 0x1b6   : > { %5031 = vmatprep.subr.bf16.mxu1 %v5357_v2  ;;  %v5430_v2 = vld [vmem:[%s6333_s10 + $0x618] sm:$0xff]  }
 0x1b8   : > { %5004 = vmatpush3.bf16.msra.mxu0 %v5356_v1  ;;  %v5427_v1 = vld [vmem:[%s6707_s0 + $0x124] ss:$100 sps:$4 sm:$0xff]  }
 0x1b9   : > { %5032 = vmatpush3.bf16.msra.mxu1 %v5358_v3  ;;  %5005 = vmatprep.subr.bf16.mxu0 %v5359_v4  ;;  %v5429_v3 = vld [vmem:[%s6707_s0 + $0x120] ss:$100 sps:$4 sm:$0xff]  }
 0x1ba   : > { %5033 = vmatprep.subr.bf16.mxu1 %v5361_v6  ;;  %v5431_v4 = vld [vmem:[%s6333_s10 + $0x620] sm:$0xff]   ;;  %v5432_v6 = vld [vmem:[%s6333_s10 + $0x628] sm:$0xff]  }
 0x1bc   : > { %5006 = vmatpush3.bf16.msra.mxu0 %v5360_v5  ;;  %v5435_v5 = vld [vmem:[%s6707_s0 + $0x60] ss:$100 sps:$4 sm:$0xff]  }
 0x1bd   : > { %5034 = vmatpush3.bf16.msra.mxu1 %v5362_v7  ;;  %5007 = vmatprep.subr.bf16.mxu0 %v5363_v8  ;;  %v5433_v7 = vld [vmem:[%s6333_s10 + $0x630] sm:$0xff]   ;;  %v5434_v8 = vld [vmem:[%s6333_s10 + $0x638] sm:$0xff]  }
 0x1be   : > { %5035 = vmatprep.subr.bf16.mxu1 %v5365_v10 }
 0x1c0   : > { %5008 = vmatpush3.bf16.msra.mxu0 %v5364_v9  ;;  %v5436_v9 = vld [vmem:[%s6707_s0 + $0x128] ss:$100 sps:$4 sm:$0xff]  }
 0x1c1   : > { %5036 = vmatpush3.bf16.msra.mxu1 %v5366_v11  ;;  %5009 = vmatprep.subr.bf16.mxu0 %v5367_v12 }
 0x1c2   : > { %5037 = vmatprep.subr.bf16.mxu1 %v5369_v14 }
 0x1c4   : > { %5010 = vmatpush3.bf16.msra.mxu0 %v5368_v13 }
 0x1c5   : > { %5038 = vmatpush3.bf16.msra.mxu1 %v5373_v17  ;;  %5051 = vmatprep.subr.bf16.mxu0 %v5374_v18 }
 0x1c6   : > { %5079 = vmatprep.subr.bf16.mxu1 %v5379_v22 }
 0x1c7   : > { %4191 = vmatmul.mubr.bf16.vlgmr.msra.gmra.mrb[32].mxu0 %v5370_v15 }
 0x1c8   : > { %5052 = vmatpush3.bf16.msra.mxu0 %v5378_v21  ;;  %4240 = vmatmul.mubr.bf16.vlgmr.msra.gmra.mrb[32].mxu1 %v5375_v19 }
 0x1c9   : > { %5080 = vmatpush3.bf16.msra.mxu1 %v5380_v23  ;;  %5053 = vmatprep.subr.bf16.mxu0 %v5381_v24 }
 0x1ca   : > { %5081 = vmatprep.subr.bf16.mxu1 %v5383_v26  ;;  %4198 = vmatprep.mubr.bf16.mxu0 %v5384_v27 }
 0x1cb   : > { %4247 = vmatprep.mubr.bf16.mxu1 %v5389_v31 }
 0x1cc   : > { %5054 = vmatpush3.bf16.msra.mxu0 %v5382_v25 }
 0x1cd   : > { %5082 = vmatpush3.bf16.msra.mxu1 %v5386_v28  ;;  %5055 = vmatprep.subr.bf16.mxu0 %v5388_v30 }
 0x1ce   : > { %5083 = vmatprep.subr.bf16.mxu1 %v5393_v34 }
 0x1cf   : > { %4199 = vmatmul.mubr.bf16.gmra.mrb[36].mxu0 %v5387_v29 }
 0x1d0   : > { %5056 = vmatpush3.bf16.msra.mxu0 %v5391_v32  ;;  %4248 = vmatmul.mubr.bf16.gmra.mrb[36].mxu1 %v5392_v33 }
 0x1d1   : > { %5084 = vmatpush3.bf16.msra.mxu1 %v5394_v35  ;;  %5057 = vmatprep.subr.bf16.mxu0 %v5395_v36 }
 0x1d2   : > { %5085 = vmatprep.subr.bf16.mxu1 %v5397_v38  ;;  %4288 = vmatprep.mubr.bf16.mxu0 %v5416_v56 }
 0x1d3   : > { %4337 = vmatprep.mubr.bf16.mxu1 %v5421_v60 }
 0x1d4   : > { %5058 = vmatpush3.bf16.msra.mxu0 %v5396_v37 }
 0x1d5   : > { %5086 = vmatpush3.bf16.msra.mxu1 %v5398_v39  ;;  %5059 = vmatprep.subr.bf16.mxu0 %v5399_v40 }
 0x1d6   : > { %5087 = vmatprep.subr.bf16.mxu1 %v5401_v42 }
 0x1d8   : > { %5060 = vmatpush3.bf16.msra.mxu0 %v5400_v41 }
 0x1d9   : > { %5088 = vmatpush3.bf16.msra.mxu1 %v5402_v43  ;;  %5061 = vmatprep.subr.bf16.mxu0 %v5403_v44 }
 0x1da   : > { %5089 = vmatprep.subr.bf16.mxu1 %v5405_v46 }
 0x1dc   : > { %5062 = vmatpush3.bf16.msra.mxu0 %v5404_v45 }
 0x1dd   : > { %5090 = vmatpush3.bf16.msra.mxu1 %v5406_v47  ;;  %5063 = vmatprep.subr.bf16.mxu0 %v5407_v48 }
 0x1de   : > { %5091 = vmatprep.subr.bf16.mxu1 %v5409_v50 }
 0x1e0   : > { %5064 = vmatpush3.bf16.msra.mxu0 %v5408_v49 }
 0x1e1   : > { %5092 = vmatpush3.bf16.msra.mxu1 %v5410_v51  ;;  %5065 = vmatprep.subr.bf16.mxu0 %v5411_v52 }
 0x1e2   : > { %5093 = vmatprep.subr.bf16.mxu1 %v5413_v54 }
 0x1e4   : > { %5066 = vmatpush3.bf16.msra.mxu0 %v5412_v53 }
 0x1e5   : > { %5094 = vmatpush3.bf16.msra.mxu1 %v5417_v57  ;;  %5117 = vmatprep.subr.bf16.mxu0 %v5418_v58 }
 0x1e7   : > { %4289 = vmatmul.mubr.bf16.vlgmr.msra.gmra.mrb[40].mxu0 %v5414_v55 }
 0x1e8   : > { %5118 = vmatpush3.bf16.msra.mxu0 %v5418_v58  ;;  %4338 = vmatmul.mubr.bf16.vlgmr.msra.gmra.mrb[40].mxu1 %v5419_v59 }
 0x1e9   : > { %5119 = vmatprep.subr.bf16.mxu0 %v5422_v61  ;;  %4296 = vmatprep.mubr.bf16.mxu0 %v5423_v62 }
 0x1ea   : > { %4345 = vmatprep.mubr.bf16.mxu1 %v5427_v1 }
 0x1ec   : > { %5120 = vmatpush3.bf16.msra.mxu0 %v5422_v61 }
 0x1ed   : > { %5121 = vmatprep.subr.bf16.mxu0 %v5426_v0 }
 0x1ef   : > { %4297 = vmatmul.mubr.bf16.gmra.mrb[44].mxu0 %v5425_v63 }
 0x1f0   : > { %5122 = vmatpush3.bf16.msra.mxu0 %v5426_v0  ;;  %4346 = vmatmul.mubr.bf16.gmra.mrb[44].mxu1 %v5429_v3 }
 0x1f1   : > { %5123 = vmatprep.subr.bf16.mxu0 %v5430_v2  ;;  %5133 = vmatprep.mubr.bf16.mxu0 %v5435_v5 }
 0x1f4   : > { %5124 = vmatpush3.bf16.msra.mxu0 %v5430_v2 }
 0x1f5   : > { %5125 = vmatprep.subr.bf16.mxu0 %v5431_v4 }
 0x1f8   : > { %5126 = vmatpush3.bf16.msra.mxu0 %v5431_v4 }
 0x1f9   : > { %5127 = vmatprep.subr.bf16.mxu0 %v5432_v6 }
 0x1fc   : > { %5128 = vmatpush3.bf16.msra.mxu0 %v5432_v6 }
 0x1fd   : > { %5129 = vmatprep.subr.bf16.mxu0 %v5433_v7 }
 0x200   : > { %5130 = vmatpush3.bf16.msra.mxu0 %v5433_v7 }
 0x201   : > { %5131 = vmatprep.subr.bf16.mxu0 %v5434_v8 }
 0x204   : > { %5132 = vmatpush3.bf16.msra.mxu0 %v5434_v8 }
 0x207   : > { %5134 = vmatmul.mubr.bf16.vlgmr.msra.gmra.mrb[48].mxu0 %v5436_v9 }
 0x21a   : > { %v4787_v10 = vpop.f32.mrb[0].mxu0 }
 0x21b   : > { %v4815_v11 = vpop.f32.mrb[0].mxu1  ;;  %v4788_v12 = vpop.f32.mrb[1].mxu0 }
 0x21c   : > { %v4789_v13 = vadd.f32 %v4788_v12, %v4787_v10  ;;  %v4816_v14 = vpop.f32.mrb[1].mxu1  ;;  %v4790_v15 = vpop.f32.mrb[2].mxu0 }
 0x21d   : > { %v4817_v16 = vadd.f32 %v4816_v14, %v4815_v11  ;;  %v4818_v17 = vpop.f32.mrb[2].mxu1  ;;  %v4791_v18 = vpop.f32.mrb[3].mxu0 }
 0x21e   : > { %v4792_v19 = vadd.f32 %v4791_v18, %v4790_v15  ;;  %v4819_v20 = vpop.f32.mrb[3].mxu1 }
 0x21f   : > { %v3850_v21 = vadd.f32 %v4817_v16, %v4789_v13  ;;  %v4820_v22 = vadd.f32 %v4819_v20, %v4818_v17 }
 0x221   : > { %v3853_v23 = vadd.f32 %v4820_v22, %v4792_v19 }
 0x222   : > { %v4793_v24 = vpop.f32.mrb[4].mxu0 }
 0x223   : > { %v4821_v25 = vpop.f32.mrb[4].mxu1  ;;  %v4794_v26 = vpop.f32.mrb[5].mxu0 }
 0x224   : > { %v4822_v27 = vpop.f32.mrb[5].mxu1  ;;  %v4795_v28 = vadd.f32 %v4794_v26, %v4793_v24  ;;  %v4796_v30 = vpop.f32.mrb[6].mxu0 }
 0x225   : > { %v4823_v29 = vadd.f32 %v4822_v27, %v4821_v25  ;;  %v4824_v31 = vpop.f32.mrb[6].mxu1  ;;  %v4797_v32 = vpop.f32.mrb[7].mxu0 }
 0x226   : > { %v4825_v33 = vpop.f32.mrb[7].mxu1  ;;  %v4798_v35 = vadd.f32 %v4797_v32, %v4796_v30 }
 0x227   : > { %v3858_v34 = vadd.f32 %v4823_v29, %v4795_v28  ;;  %v4826_v36 = vadd.f32 %v4825_v33, %v4824_v31 }
 0x229   : > { %v3861_v37 = vadd.f32 %v4826_v36, %v4798_v35 }
 0x23a   : > { %v4843_v38 = vpop.f32.mrb[8].mxu0 }
 0x23b   : > { %v4844_v39 = vpop.f32.mrb[9].mxu0  ;;  %v4871_v42 = vpop.f32.mrb[8].mxu1 }
 0x23c   : > { %v4845_v40 = vadd.f32 %v4844_v39, %v4843_v38  ;;  %v4846_v41 = vpop.f32.mrb[10].mxu0  ;;  %v4872_v46 = vpop.f32.mrb[9].mxu1 }
 0x23d   : > { %v4847_v43 = vpop.f32.mrb[11].mxu0  ;;  %v4873_v47 = vadd.f32 %v4872_v46, %v4871_v42  ;;  %v4874_v48 = vpop.f32.mrb[10].mxu1 }
 0x23e   : > { %v3899_v44 = vadd.f32 %v4845_v40, %v3850_v21  ;;  %v4848_v45 = vadd.f32 %v4847_v43, %v4846_v41  ;;  %v4875_v50 = vpop.f32.mrb[11].mxu1 }
 0x23f   : > { %v4876_v52 = vadd.f32 %v4875_v50, %v4874_v48 }
 0x240   : > { %v3902_v49 = vadd.f32 %v4848_v45, %v3853_v23  ;;  %v3948_v51 = vadd.f32 %v4873_v47, %v3899_v44 }
 0x242   : > { %v3951_v53 = vadd.f32 %v4876_v52, %v3902_v49  ;;  %v4849_v54 = vpop.f32.mrb[12].mxu0 }
 0x243   : > { %v4850_v55 = vpop.f32.mrb[13].mxu0  ;;  %v4877_v58 = vpop.f32.mrb[12].mxu1 }
 0x244   : > { %v4851_v56 = vadd.f32 %v4850_v55, %v4849_v54  ;;  %v4852_v57 = vpop.f32.mrb[14].mxu0  ;;  %v4878_v62 = vpop.f32.mrb[13].mxu1 }
 0x245   : > { %v4853_v59 = vpop.f32.mrb[15].mxu0  ;;  %v4879_v63 = vadd.f32 %v4878_v62, %v4877_v58  ;;  %v4880_v0 = vpop.f32.mrb[14].mxu1 }
 0x246   : > { %v3907_v60 = vadd.f32 %v4851_v56, %v3858_v34  ;;  %v4854_v61 = vadd.f32 %v4853_v59, %v4852_v57  ;;  %v4881_v2 = vpop.f32.mrb[15].mxu1 }
 0x247   : > { %v4882_v4 = vadd.f32 %v4881_v2, %v4880_v0 }
 0x248   : > { %v3910_v1 = vadd.f32 %v4854_v61, %v3861_v37  ;;  %v3956_v3 = vadd.f32 %v4879_v63, %v3907_v60 }
 0x24a   : > { %v3959_v5 = vadd.f32 %v4882_v4, %v3910_v1 }
 0x25a   : > { %v4899_v6 = vpop.f32.mrb[16].mxu0 }
 0x25b   : > { %v4900_v7 = vpop.f32.mrb[17].mxu0  ;;  %v4927_v12 = vpop.f32.mrb[16].mxu1 }
 0x25c   : > { %v4901_v8 = vadd.f32 %v4900_v7, %v4899_v6  ;;  %v4902_v9 = vpop.f32.mrb[18].mxu0  ;;  %v4928_v14 = vpop.f32.mrb[17].mxu1 }
 0x25d   : > { %v4903_v10 = vpop.f32.mrb[19].mxu0  ;;  %v4929_v16 = vadd.f32 %v4928_v14, %v4927_v12  ;;  %v4930_v17 = vpop.f32.mrb[18].mxu1 }
 0x25e   : > { %v3997_v11 = vadd.f32 %v4901_v8, %v3948_v51  ;;  %v4904_v13 = vadd.f32 %v4903_v10, %v4902_v9  ;;  %v4931_v18 = vpop.f32.mrb[19].mxu1 }
 0x25f   : > { %v4932_v20 = vadd.f32 %v4931_v18, %v4930_v17 }
 0x260   : > { %v4000_v15 = vadd.f32 %v4904_v13, %v3951_v53  ;;  %v4046_v19 = vadd.f32 %v4929_v16, %v3997_v11 }
 0x262   : > { %v4049_v21 = vadd.f32 %v4932_v20, %v4000_v15  ;;  %v4905_v22 = vpop.f32.mrb[20].mxu0 }
 0x263   : > { %v4906_v23 = vpop.f32.mrb[21].mxu0  ;;  %v4933_v26 = vpop.f32.mrb[20].mxu1 }
 0x264   : > { %v4907_v24 = vadd.f32 %v4906_v23, %v4905_v22  ;;  %v4908_v25 = vpop.f32.mrb[22].mxu0  ;;  %v4934_v30 = vpop.f32.mrb[21].mxu1 }
 0x265   : > { %v4909_v27 = vpop.f32.mrb[23].mxu0  ;;  %v4935_v31 = vadd.f32 %v4934_v30, %v4933_v26  ;;  %v4936_v32 = vpop.f32.mrb[22].mxu1 }
 0x266   : > { %v4005_v28 = vadd.f32 %v4907_v24, %v3956_v3  ;;  %v4910_v29 = vadd.f32 %v4909_v27, %v4908_v25  ;;  %v4937_v34 = vpop.f32.mrb[23].mxu1 }
 0x267   : > { %v4938_v36 = vadd.f32 %v4937_v34, %v4936_v32 }
 0x268   : > { %v4008_v33 = vadd.f32 %v4910_v29, %v3959_v5  ;;  %v4054_v35 = vadd.f32 %v4935_v31, %v4005_v28 }
 0x26a   : > { %v4057_v37 = vadd.f32 %v4938_v36, %v4008_v33 }
 0x27a   : > { %v4955_v38 = vpop.f32.mrb[24].mxu0 }
 0x27b   : > { %v4956_v39 = vpop.f32.mrb[25].mxu0  ;;  %v4983_v42 = vpop.f32.mrb[24].mxu1 }
 0x27c   : > { %v4957_v40 = vadd.f32 %v4956_v39, %v4955_v38  ;;  %v4958_v41 = vpop.f32.mrb[26].mxu0  ;;  %v4984_v46 = vpop.f32.mrb[25].mxu1 }
 0x27d   : > { %v4959_v43 = vpop.f32.mrb[27].mxu0  ;;  %v4985_v47 = vadd.f32 %v4984_v46, %v4983_v42  ;;  %v4986_v48 = vpop.f32.mrb[26].mxu1 }
 0x27e   : > { %v4095_v44 = vadd.f32 %v4957_v40, %v4046_v19  ;;  %v4960_v45 = vadd.f32 %v4959_v43, %v4958_v41  ;;  %v4987_v50 = vpop.f32.mrb[27].mxu1 }
 0x27f   : > { %v4988_v52 = vadd.f32 %v4987_v50, %v4986_v48 }
 0x280   : > { %v4098_v49 = vadd.f32 %v4960_v45, %v4049_v21  ;;  %v4144_v51 = vadd.f32 %v4985_v47, %v4095_v44 }
 0x282   : > { %v4147_v53 = vadd.f32 %v4988_v52, %v4098_v49  ;;  %v4961_v54 = vpop.f32.mrb[28].mxu0 }
 0x283   : > { %v4962_v55 = vpop.f32.mrb[29].mxu0  ;;  %v4989_v60 = vpop.f32.mrb[28].mxu1 }
 0x284   : > { %v4963_v56 = vadd.f32 %v4962_v55, %v4961_v54  ;;  %v4964_v57 = vpop.f32.mrb[30].mxu0  ;;  %v4990_v62 = vpop.f32.mrb[29].mxu1 }
 0x285   : > { %v4965_v58 = vpop.f32.mrb[31].mxu0  ;;  %v4991_v0 = vadd.f32 %v4990_v62, %v4989_v60  ;;  %v4992_v1 = vpop.f32.mrb[30].mxu1 }
 0x286   : > { %v4103_v59 = vadd.f32 %v4963_v56, %v4054_v35  ;;  %v4966_v61 = vadd.f32 %v4965_v58, %v4964_v57  ;;  %v4993_v2 = vpop.f32.mrb[31].mxu1 }
 0x287   : > { %v4994_v4 = vadd.f32 %v4993_v2, %v4992_v1 }
 0x288   : > { %v4106_v63 = vadd.f32 %v4966_v61, %v4057_v37  ;;  %v4152_v3 = vadd.f32 %v4991_v0, %v4103_v59 }
 0x28a   : > { %v4155_v5 = vadd.f32 %v4994_v4, %v4106_v63 }
 0x29a   : > { %v5011_v6 = vpop.f32.mrb[32].mxu0 }
 0x29b   : > { %v5012_v7 = vpop.f32.mrb[33].mxu0  ;;  %v5039_v10 = vpop.f32.mrb[32].mxu1 }
 0x29c   : > { %v5013_v8 = vadd.f32 %v5012_v7, %v5011_v6  ;;  %v5014_v9 = vpop.f32.mrb[34].mxu0  ;;  %v5040_v14 = vpop.f32.mrb[33].mxu1  ;;  %v4767_v7 = vld [vmem:[%s1853_s7] ss:$0 sm:$0xff] }
 0x29d   : > { %v5015_v11 = vpop.f32.mrb[35].mxu0  ;;  %v5041_v15 = vadd.f32 %v5040_v14, %v5039_v10  ;;  %v5042_v16 = vpop.f32.mrb[34].mxu1  ;;  %v4768_v10 = vld [vmem:[%s1856_s11] ss:$0 sm:$0xff] }
 0x29e   : > { %v4193_v12 = vadd.f32 %v5013_v8, %v4144_v51  ;;  %v5016_v13 = vadd.f32 %v5015_v11, %v5014_v9  ;;  %v5043_v18 = vpop.f32.mrb[35].mxu1 }
 0x29f   : > { %v5044_v20 = vadd.f32 %v5043_v18, %v5042_v16 }
 0x2a0   : > { %v4196_v17 = vadd.f32 %v5016_v13, %v4147_v53  ;;  %v4242_v19 = vadd.f32 %v5041_v15, %v4193_v12 }
 0x2a2   : > { %v4245_v21 = vadd.f32 %v5044_v20, %v4196_v17  ;;  %v5017_v22 = vpop.f32.mrb[36].mxu0 }
 0x2a3   : > { %v5018_v23 = vpop.f32.mrb[37].mxu0  ;;  %v5045_v26 = vpop.f32.mrb[36].mxu1 }
 0x2a4   : > { %v5019_v24 = vadd.f32 %v5018_v23, %v5017_v22  ;;  %v5020_v25 = vpop.f32.mrb[38].mxu0  ;;  %v5046_v30 = vpop.f32.mrb[37].mxu1 }
 0x2a5   : > { %v5021_v27 = vpop.f32.mrb[39].mxu0  ;;  %v5047_v31 = vadd.f32 %v5046_v30, %v5045_v26  ;;  %v5048_v32 = vpop.f32.mrb[38].mxu1 }
 0x2a6   : > { %v4201_v28 = vadd.f32 %v5019_v24, %v4152_v3  ;;  %v5022_v29 = vadd.f32 %v5021_v27, %v5020_v25  ;;  %v5049_v34 = vpop.f32.mrb[39].mxu1 }
 0x2a7   : > { %v5050_v36 = vadd.f32 %v5049_v34, %v5048_v32 }
 0x2a8   : > { %v4204_v33 = vadd.f32 %v5022_v29, %v4155_v5  ;;  %v4250_v35 = vadd.f32 %v5047_v31, %v4201_v28 }
 0x2aa   : > { %v4253_v37 = vadd.f32 %v5050_v36, %v4204_v33 }
 0x2ba   : > { %v5067_v38 = vpop.f32.mrb[40].mxu0 }
 0x2bb   : > { %v5068_v39 = vpop.f32.mrb[41].mxu0  ;;  %v5095_v44 = vpop.f32.mrb[40].mxu1 }
 0x2bc   : > { %v5069_v40 = vadd.f32 %v5068_v39, %v5067_v38  ;;  %v5070_v41 = vpop.f32.mrb[42].mxu0  ;;  %v5096_v46 = vpop.f32.mrb[41].mxu1 }
 0x2bd   : > { %v5071_v42 = vpop.f32.mrb[43].mxu0  ;;  %v5097_v48 = vadd.f32 %v5096_v46, %v5095_v44  ;;  %v5098_v49 = vpop.f32.mrb[42].mxu1 }
 0x2be   : > { %v4291_v43 = vadd.f32 %v5069_v40, %v4242_v19  ;;  %v5072_v45 = vadd.f32 %v5071_v42, %v5070_v41  ;;  %v5099_v50 = vpop.f32.mrb[43].mxu1 }
 0x2bf   : > { %v5100_v51 = vadd.f32 %v5099_v50, %v5098_v49 }
 0x2c0   : > { %v4294_v47 = vadd.f32 %v5072_v45, %v4245_v21  ;;  %v4340_v53 = vadd.f32 %v5097_v48, %v4291_v43 }
 0x2c2   : > { %v5073_v52 = vpop.f32.mrb[44].mxu0  ;;  %v4343_v57 = vadd.f32 %v5100_v51, %v4294_v47 }
 0x2c3   : > { %v5074_v54 = vpop.f32.mrb[45].mxu0  ;;  %v5101_v60 = vpop.f32.mrb[44].mxu1 }
 0x2c4   : > { %v5075_v55 = vadd.f32 %v5074_v54, %v5073_v52  ;;  %v5076_v56 = vpop.f32.mrb[46].mxu0  ;;  %v5102_v62 = vpop.f32.mrb[45].mxu1 }
 0x2c5   : > { %v5077_v58 = vpop.f32.mrb[47].mxu0  ;;  %v5103_v0 = vadd.f32 %v5102_v62, %v5101_v60  ;;  %v5104_v1 = vpop.f32.mrb[46].mxu1 }
 0x2c6   : > { %v4299_v59 = vadd.f32 %v5075_v55, %v4250_v35  ;;  %v5078_v61 = vadd.f32 %v5077_v58, %v5076_v56  ;;  %v5105_v2 = vpop.f32.mrb[47].mxu1 }
 0x2c7   : > { %v5106_v3 = vadd.f32 %v5105_v2, %v5104_v1 }
 0x2c8   : > { %v4302_v63 = vadd.f32 %v5078_v61, %v4253_v37  ;;  %v4348_v4 = vadd.f32 %v5103_v0, %v4299_v59 }
 0x2ca   : > { %v4351_v5 = vadd.f32 %v5106_v3, %v4302_v63 }
 0x2da   : > { %v5135_v6 = vpop.f32.mrb[48].mxu0 }
 0x2db   : > { %v4397_v8 = vadd.f32 %v5135_v6, %v4348_v4  ;;  %v4388_v9 = vpop.f32.mrb[49].mxu0 }
 0x2dc   : > { %v4389_v11 = vadd.f32 %v4388_v9, %v4340_v53  ;;  %v5136_v12 = vpop.f32.mrb[50].mxu0 }
 0x2dd   : > { %v4412_v13 = vmul.f32 %v4767_v7, %v4397_v8  ;;  %v4400_v14 = vadd.f32 %v5136_v12, %v4351_v5  ;;  %v4391_v15 = vpop.f32.mrb[51].mxu0 }
 0x2de   : > { %v4410_v16 = vmul.f32 %v4767_v7, %v4389_v11  ;;  %v4392_v17 = vadd.f32 %v4391_v15, %v4343_v57 }
 0x2df   : > { %v4423_v18 = vadd.f32 %v4768_v10, %v4412_v13  ;;  %v4413_v19 = vmul.f32 %v4767_v7, %v4400_v14 }
 0x2e0   : > { %v4421_v20 = vadd.f32 %v4768_v10, %v4410_v16  ;;  %v4411_v21 = vmul.f32 %v4767_v7, %v4392_v17 }
 0x2e1   : > { %v4424_v22 = vadd.f32 %v4768_v10, %v4413_v19  ;;  %v4427_v24 = vmax.f32 %v4423_v18, 0.0 }
 0x2e2   : > { %v4422_v23 = vadd.f32 %v4768_v10, %v4411_v21  ;;  %v4425_v26 = vmax.f32 %v4421_v20, 0.0 }
 0x2e3   : > { %v4428_v25 = vmax.f32 %v4424_v22, 0.0 }
 0x2e4   : > { %v4426_v27 = vmax.f32 %v4422_v23, 0.0 }
 0x2e5   : > { %v4430_v28 = vmax.f32 %v4427_v24, %v4428_v25 }
 0x2e6   : > { %v4429_v29 = vmax.f32 %v4425_v26, %v4426_v27 }
 0x2e8   : > { %v4431_v30 = vmax.f32 %v4429_v29, %v4430_v28 }
 0x2ea   : > { %4432 = vst [vmem:[%s1860_s14] sm:$0xff] %v4431_v30 }
 0x2eb PF: > { %p11_p9 = scmp.ge.s32.totalorder %s5503_s19, 4   ;;  %s6712_s15 = smov %s5455_s16 }
 0x2ec   : > { %s6713_s16 = smov %s5512_s22  ;;  %s6714_s17 = smov %s5503_s19 }
 0x2ed   :  { %13 = sbr.rel (!%p11_p9) target bundleno = 2 (0x2), region = 118 }

// kernel: _lambda_.7
= control target key start
LH: loop header
LB: loop body
LE: loop exit
PB: predicated region body
PF: predicated region fallthrough
CT: control target
= control target key end

     0   :  { %s3701_s15 = smov 0   ;;  %s3703_s16 = smov 0   ;;  %s4550_s0 = inlined_call_operand.vmem [shape: bf16[8,2304], index: 0, kind: input, shape index: {}]   ;;  %s4551_s1 = inlined_call_operand.vmem [shape: bf16[2304,384], index: 1, kind: input, shape index: {}]   ;;  %s4552_s2 = inlined_call_operand.vmem [shape: f32[1,384], index: 2, kind: input, shape index: {}]   ;;  %s4553_s3 = inlined_call_operand.vmem [shape: f32[1,384], index: 3, kind: input, shape index: {}]   ;;  %s4554_s4 = inlined_call_operand.vmem [shape: f32[8,384], index: 4, kind: output, shape index: {}]  }
   0x1   :  { %s3705_s17 = smov 0  }
   0x2 LB: > { %s3093_s18 = sadd.s32 4294967295, %s3674_s17   ;;  %s3718_s19 = sadd.s32 1, %s3674_s17   ;;  %s3674_s17 = sphi %s3705_s17, %s4557_s17   ;;  %s3670_s16 = sphi %s3703_s16, %s4556_s16   ;;  %s3666_s15 = sphi %s3701_s15, %s4555_s15  }
   0x3   : > { %s39_s20 = ssub.s32 %s3674_s17, %s3718_s19  ;;  %s42_s21 = sadd.s32 1, %s3670_s16 }
   0x4   : > { %p40_p0 = scmp.eq.s32.totalorder %s39_s20, 0  ;;  %p49_p1 = scmp.ne.s32.totalorder %s3670_s16, %s3666_s15 }
   0x5   : > { %p50_p2 = scmp.eq.s32.totalorder %s3674_s17, 0  ;;  %p3096_p4 = scmp.ge.s32.totalorder %s3674_s17, 3 }
   0x6   : > { %s3727_s22 = scalar_select %p40_p0, %s3670_s16, %s42_s21  }
   0x7   : > { %p51_p3 = por %p50_p2, %p49_p1  ;;  %156 = sbr.rel (%p3096_p4) target bundleno = 210 (0xd2), region = 20 }
   0xe   : > { %159 = sbr.rel (!%p51_p3) target bundleno = 210 (0xd2), region = 24  ;;  %s161_s23 = sand.u32 (%p51_p3), 1, %s3670_s16  }
   0xf   : > { %s3097_s24 = sshll.u32 (%p51_p3), %s3674_s17, 2  ;;  %s3464_s25 = smul.u32 (%p51_p3), 1152, %s161_s23 }
  0x10   : > { %s3735_s28 = scalar_lea.vmem (%p51_p3), %s4551_s1, %s3097_s24 }
  0x11   : > { %v181_v0 = vld [vmem:[%s3735_s28] sm:$0xf] (%p51_p3)  ;;  %v183_v1 = vld [vmem:[%s3735_s28 + $0xc] sm:$0xf] (%p51_p3)  ;;  %v185_v2 = vld [vmem:[%s3735_s28 + $0x18] sm:$0xf] (%p51_p3) }
  0x12   : > { %v187_v3 = vld [vmem:[%s3735_s28 + $0x24] sm:$0xf] (%p51_p3)  ;;  %v189_v4 = vld [vmem:[%s3735_s28 + $0x30] sm:$0xf] (%p51_p3)  ;;  %s3742_s29 = scalar_lea.vmem (%p51_p3), [#allocation2], %s3464_s25 }
  0x13   : > { %182 = vst [vmem:[%s3742_s29] sm:$0xf] (%p51_p3), %v181_v0  ;;  %184 = vst [vmem:[%s3742_s29 + $0x4] sm:$0xf] (%p51_p3), %v183_v1  ;;  %v191_v5 = vld [vmem:[%s3735_s28 + $0x3c] sm:$0xf] (%p51_p3) }
  0x14   : > { %186 = vst [vmem:[%s3742_s29 + $0x8] sm:$0xf] (%p51_p3), %v185_v2  ;;  %188 = vst [vmem:[%s3742_s29 + $0xc] sm:$0xf] (%p51_p3), %v187_v3  ;;  %v193_v6 = vld [vmem:[%s3735_s28 + $0x48] sm:$0xf] (%p51_p3) }
  0x15   : > { %190 = vst [vmem:[%s3742_s29 + $0x10] sm:$0xf] %v189_v4  ;;  %v195_v7 = vld [vmem:[%s3735_s28 + $0x54] sm:$0xf]  ;;  %192 = vst [vmem:[%s3742_s29 + $0x14] sm:$0xf] %v191_v5 }
  0x16   : > { %194 = vst [vmem:[%s3742_s29 + $0x18] sm:$0xf] %v193_v6  ;;  %196 = vst [vmem:[%s3742_s29 + $0x1c] sm:$0xf] %v195_v7  ;;  %v197_v8 = vld [vmem:[%s3735_s28 + $0x60] sm:$0xf] }
  0x17   : > { %v199_v9 = vld [vmem:[%s3735_s28 + $0x6c] sm:$0xf]  ;;  %v201_v10 = vld [vmem:[%s3735_s28 + $0x78] sm:$0xf]  ;;  %198 = vst [vmem:[%s3742_s29 + $0x20] sm:$0xf] %v197_v8 }
  0x18   : > { %200 = vst [vmem:[%s3742_s29 + $0x24] sm:$0xf] %v199_v9  ;;  %202 = vst [vmem:[%s3742_s29 + $0x28] sm:$0xf] %v201_v10  ;;  %v203_v11 = vld [vmem:[%s3735_s28 + $0x84] sm:$0xf] }
  0x19   : > { %v205_v12 = vld [vmem:[%s3735_s28 + $0x90] sm:$0xf]  ;;  %v207_v13 = vld [vmem:[%s3735_s28 + $0x9c] sm:$0xf]  ;;  %204 = vst [vmem:[%s3742_s29 + $0x2c] sm:$0xf] %v203_v11 }
  0x1a   : > { %206 = vst [vmem:[%s3742_s29 + $0x30] sm:$0xf] %v205_v12  ;;  %208 = vst [vmem:[%s3742_s29 + $0x34] sm:$0xf] %v207_v13  ;;  %v209_v14 = vld [vmem:[%s3735_s28 + $0xa8] sm:$0xf] }
  0x1b   : > { %v211_v15 = vld [vmem:[%s3735_s28 + $0xb4] sm:$0xf]  ;;  %v213_v16 = vld [vmem:[%s3735_s28 + $0xc0] sm:$0xf]  ;;  %210 = vst [vmem:[%s3742_s29 + $0x38] sm:$0xf] %v209_v14 }
  0x1c   : > { %212 = vst [vmem:[%s3742_s29 + $0x3c] sm:$0xf] %v211_v15  ;;  %214 = vst [vmem:[%s3742_s29 + $0x40] sm:$0xf] %v213_v16  ;;  %v215_v17 = vld [vmem:[%s3735_s28 + $0xcc] sm:$0xf] }
  0x1d   : > { %v217_v18 = vld [vmem:[%s3735_s28 + $0xd8] sm:$0xf]  ;;  %v219_v19 = vld [vmem:[%s3735_s28 + $0xe4] sm:$0xf]  ;;  %216 = vst [vmem:[%s3742_s29 + $0x44] sm:$0xf] %v215_v17 }
  0x1e   : > { %218 = vst [vmem:[%s3742_s29 + $0x48] sm:$0xf] %v217_v18  ;;  %220 = vst [vmem:[%s3742_s29 + $0x4c] sm:$0xf] %v219_v19  ;;  %v221_v20 = vld [vmem:[%s3735_s28 + $0xf0] sm:$0xf] }
  0x1f   : > { %v223_v21 = vld [vmem:[%s3735_s28 + $0xfc] sm:$0xf]  ;;  %v225_v22 = vld [vmem:[%s3735_s28 + $0x108] sm:$0xf]  ;;  %222 = vst [vmem:[%s3742_s29 + $0x50] sm:$0xf] %v221_v20 }
  0x20   : > { %224 = vst [vmem:[%s3742_s29 + $0x54] sm:$0xf] %v223_v21  ;;  %226 = vst [vmem:[%s3742_s29 + $0x58] sm:$0xf] %v225_v22  ;;  %v227_v23 = vld [vmem:[%s3735_s28 + $0x114] sm:$0xf] }
  0x21   : > { %v229_v24 = vld [vmem:[%s3735_s28 + $0x120] sm:$0xf]  ;;  %v231_v25 = vld [vmem:[%s3735_s28 + $0x12c] sm:$0xf]  ;;  %228 = vst [vmem:[%s3742_s29 + $0x5c] sm:$0xf] %v227_v23 }
  0x22   : > { %230 = vst [vmem:[%s3742_s29 + $0x60] sm:$0xf] %v229_v24  ;;  %232 = vst [vmem:[%s3742_s29 + $0x64] sm:$0xf] %v231_v25  ;;  %v233_v26 = vld [vmem:[%s3735_s28 + $0x138] sm:$0xf] }
  0x23   : > { %v235_v27 = vld [vmem:[%s3735_s28 + $0x144] sm:$0xf]  ;;  %v237_v28 = vld [vmem:[%s3735_s28 + $0x150] sm:$0xf]  ;;  %234 = vst [vmem:[%s3742_s29 + $0x68] sm:$0xf] %v233_v26 }
  0x24   : > { %236 = vst [vmem:[%s3742_s29 + $0x6c] sm:$0xf] %v235_v27  ;;  %238 = vst [vmem:[%s3742_s29 + $0x70] sm:$0xf] %v237_v28  ;;  %v239_v29 = vld [vmem:[%s3735_s28 + $0x15c] sm:$0xf] }
  0x25   : > { %v241_v30 = vld [vmem:[%s3735_s28 + $0x168] sm:$0xf]  ;;  %v243_v31 = vld [vmem:[%s3735_s28 + $0x174] sm:$0xf]  ;;  %240 = vst [vmem:[%s3742_s29 + $0x74] sm:$0xf] %v239_v29 }
  0x26   : > { %242 = vst [vmem:[%s3742_s29 + $0x78] sm:$0xf] %v241_v30  ;;  %244 = vst [vmem:[%s3742_s29 + $0x7c] sm:$0xf] %v243_v31  ;;  %v245_v32 = vld [vmem:[%s3735_s28 + $0x180] sm:$0xf] }
  0x27   : > { %v247_v33 = vld [vmem:[%s3735_s28 + $0x18c] sm:$0xf]  ;;  %v249_v34 = vld [vmem:[%s3735_s28 + $0x198] sm:$0xf]  ;;  %246 = vst [vmem:[%s3742_s29 + $0x80] sm:$0xf] %v245_v32 }
  0x28   : > { %248 = vst [vmem:[%s3742_s29 + $0x84] sm:$0xf] %v247_v33  ;;  %250 = vst [vmem:[%s3742_s29 + $0x88] sm:$0xf] %v249_v34  ;;  %v251_v35 = vld [vmem:[%s3735_s28 + $0x1a4] sm:$0xf] }
  0x29   : > { %v253_v36 = vld [vmem:[%s3735_s28 + $0x1b0] sm:$0xf]  ;;  %v255_v37 = vld [vmem:[%s3735_s28 + $0x1bc] sm:$0xf]  ;;  %252 = vst [vmem:[%s3742_s29 + $0x8c] sm:$0xf] %v251_v35 }
  0x2a   : > { %254 = vst [vmem:[%s3742_s29 + $0x90] sm:$0xf] %v253_v36  ;;  %256 = vst [vmem:[%s3742_s29 + $0x94] sm:$0xf] %v255_v37  ;;  %v257_v38 = vld [vmem:[%s3735_s28 + $0x1c8] sm:$0xf] }
  0x2b   : > { %v259_v39 = vld [vmem:[%s3735_s28 + $0x1d4] sm:$0xf]  ;;  %v261_v40 = vld [vmem:[%s3735_s28 + $0x1e0] sm:$0xf]  ;;  %258 = vst [vmem:[%s3742_s29 + $0x98] sm:$0xf] %v257_v38 }
  0x2c   : > { %260 = vst [vmem:[%s3742_s29 + $0x9c] sm:$0xf] %v259_v39  ;;  %262 = vst [vmem:[%s3742_s29 + $0xa0] sm:$0xf] %v261_v40  ;;  %v263_v41 = vld [vmem:[%s3735_s28 + $0x1ec] sm:$0xf] }
  0x2d   : > { %v265_v42 = vld [vmem:[%s3735_s28 + $0x1f8] sm:$0xf]  ;;  %v267_v43 = vld [vmem:[%s3735_s28 + $0x204] sm:$0xf]  ;;  %264 = vst [vmem:[%s3742_s29 + $0xa4] sm:$0xf] %v263_v41 }
  0x2e   : > { %266 = vst [vmem:[%s3742_s29 + $0xa8] sm:$0xf] %v265_v42  ;;  %268 = vst [vmem:[%s3742_s29 + $0xac] sm:$0xf] %v267_v43  ;;  %v269_v44 = vld [vmem:[%s3735_s28 + $0x210] sm:$0xf] }
  0x2f   : > { %v271_v45 = vld [vmem:[%s3735_s28 + $0x21c] sm:$0xf]  ;;  %v273_v46 = vld [vmem:[%s3735_s28 + $0x228] sm:$0xf]  ;;  %270 = vst [vmem:[%s3742_s29 + $0xb0] sm:$0xf] %v269_v44 }
  0x30   : > { %272 = vst [vmem:[%s3742_s29 + $0xb4] sm:$0xf] %v271_v45  ;;  %274 = vst [vmem:[%s3742_s29 + $0xb8] sm:$0xf] %v273_v46  ;;  %v275_v47 = vld [vmem:[%s3735_s28 + $0x234] sm:$0xf] }
  0x31   : > { %v277_v48 = vld [vmem:[%s3735_s28 + $0x240] sm:$0xf]  ;;  %v279_v49 = vld [vmem:[%s3735_s28 + $0x24c] sm:$0xf]  ;;  %276 = vst [vmem:[%s3742_s29 + $0xbc] sm:$0xf] %v275_v47 }
  0x32   : > { %278 = vst [vmem:[%s3742_s29 + $0xc0] sm:$0xf] %v277_v48  ;;  %280 = vst [vmem:[%s3742_s29 + $0xc4] sm:$0xf] %v279_v49  ;;  %v281_v50 = vld [vmem:[%s3735_s28 + $0x258] sm:$0xf] }
  0x33   : > { %v283_v51 = vld [vmem:[%s3735_s28 + $0x264] sm:$0xf]  ;;  %v285_v52 = vld [vmem:[%s3735_s28 + $0x270] sm:$0xf]  ;;  %282 = vst [vmem:[%s3742_s29 + $0xc8] sm:$0xf] %v281_v50 }
  0x34   : > { %284 = vst [vmem:[%s3742_s29 + $0xcc] sm:$0xf] %v283_v51  ;;  %286 = vst [vmem:[%s3742_s29 + $0xd0] sm:$0xf] %v285_v52  ;;  %v287_v53 = vld [vmem:[%s3735_s28 + $0x27c] sm:$0xf] }
  0x35   : > { %v289_v54 = vld [vmem:[%s3735_s28 + $0x288] sm:$0xf]  ;;  %v291_v55 = vld [vmem:[%s3735_s28 + $0x294] sm:$0xf]  ;;  %288 = vst [vmem:[%s3742_s29 + $0xd4] sm:$0xf] %v287_v53 }
  0x36   : > { %290 = vst [vmem:[%s3742_s29 + $0xd8] sm:$0xf] %v289_v54  ;;  %292 = vst [vmem:[%s3742_s29 + $0xdc] sm:$0xf] %v291_v55  ;;  %v293_v56 = vld [vmem:[%s3735_s28 + $0x2a0] sm:$0xf] }
  0x37   : > { %v295_v57 = vld [vmem:[%s3735_s28 + $0x2ac] sm:$0xf]  ;;  %v297_v58 = vld [vmem:[%s3735_s28 + $0x2b8] sm:$0xf]  ;;  %294 = vst [vmem:[%s3742_s29 + $0xe0] sm:$0xf] %v293_v56 }
  0x38   : > { %296 = vst [vmem:[%s3742_s29 + $0xe4] sm:$0xf] %v295_v57  ;;  %298 = vst [vmem:[%s3742_s29 + $0xe8] sm:$0xf] %v297_v58  ;;  %v299_v59 = vld [vmem:[%s3735_s28 + $0x2c4] sm:$0xf] }
  0x39   : > { %v301_v60 = vld [vmem:[%s3735_s28 + $0x2d0] sm:$0xf]  ;;  %v303_v61 = vld [vmem:[%s3735_s28 + $0x2dc] sm:$0xf]  ;;  %300 = vst [vmem:[%s3742_s29 + $0xec] sm:$0xf] %v299_v59 }
  0x3a   : > { %302 = vst [vmem:[%s3742_s29 + $0xf0] sm:$0xf] %v301_v60  ;;  %304 = vst [vmem:[%s3742_s29 + $0xf4] sm:$0xf] %v303_v61  ;;  %v305_v62 = vld [vmem:[%s3735_s28 + $0x2e8] sm:$0xf] }
  0x3b   : > { %v307_v63 = vld [vmem:[%s3735_s28 + $0x2f4] sm:$0xf]  ;;  %v309_v0 = vld [vmem:[%s3735_s28 + $0x300] sm:$0xf]  ;;  %306 = vst [vmem:[%s3742_s29 + $0xf8] sm:$0xf] %v305_v62 }
  0x3c   : > { %308 = vst [vmem:[%s3742_s29 + $0xfc] sm:$0xf] %v307_v63  ;;  %310 = vst [vmem:[%s3742_s29 + $0x100] sm:$0xf] %v309_v0  ;;  %v311_v1 = vld [vmem:[%s3735_s28 + $0x30c] sm:$0xf] }
  0x3d   : > { %v313_v2 = vld [vmem:[%s3735_s28 + $0x318] sm:$0xf]  ;;  %v315_v3 = vld [vmem:[%s3735_s28 + $0x324] sm:$0xf]  ;;  %312 = vst [vmem:[%s3742_s29 + $0x104] sm:$0xf] %v311_v1 }
  0x3e   : > { %314 = vst [vmem:[%s3742_s29 + $0x108] sm:$0xf] %v313_v2  ;;  %316 = vst [vmem:[%s3742_s29 + $0x10c] sm:$0xf] %v315_v3  ;;  %v317_v4 = vld [vmem:[%s3735_s28 + $0x330] sm:$0xf] }
  0x3f   : > { %v319_v5 = vld [vmem:[%s3735_s28 + $0x33c] sm:$0xf]  ;;  %v321_v6 = vld [vmem:[%s3735_s28 + $0x348] sm:$0xf]  ;;  %318 = vst [vmem:[%s3742_s29 + $0x110] sm:$0xf] %v317_v4 }
  0x40   : > { %320 = vst [vmem:[%s3742_s29 + $0x114] sm:$0xf] %v319_v5  ;;  %322 = vst [vmem:[%s3742_s29 + $0x118] sm:$0xf] %v321_v6  ;;  %v323_v7 = vld [vmem:[%s3735_s28 + $0x354] sm:$0xf] }
  0x41   : > { %v325_v8 = vld [vmem:[%s3735_s28 + $0x360] sm:$0xf]  ;;  %v327_v9 = vld [vmem:[%s3735_s28 + $0x36c] sm:$0xf]  ;;  %324 = vst [vmem:[%s3742_s29 + $0x11c] sm:$0xf] %v323_v7 }
  0x42   : > { %326 = vst [vmem:[%s3742_s29 + $0x120] sm:$0xf] %v325_v8  ;;  %328 = vst [vmem:[%s3742_s29 + $0x124] sm:$0xf] %v327_v9  ;;  %v329_v10 = vld [vmem:[%s3735_s28 + $0x378] sm:$0xf] }
  0x43   : > { %v331_v11 = vld [vmem:[%s3735_s28 + $0x384] sm:$0xf]  ;;  %v333_v12 = vld [vmem:[%s3735_s28 + $0x390] sm:$0xf]  ;;  %330 = vst [vmem:[%s3742_s29 + $0x128] sm:$0xf] %v329_v10 }
  0x44   : > { %332 = vst [vmem:[%s3742_s29 + $0x12c] sm:$0xf] %v331_v11  ;;  %334 = vst [vmem:[%s3742_s29 + $0x130] sm:$0xf] %v333_v12  ;;  %v335_v13 = vld [vmem:[%s3735_s28 + $0x39c] sm:$0xf] }
  0x45   : > { %v337_v14 = vld [vmem:[%s3735_s28 + $0x3a8] sm:$0xf]  ;;  %v339_v15 = vld [vmem:[%s3735_s28 + $0x3b4] sm:$0xf]  ;;  %336 = vst [vmem:[%s3742_s29 + $0x134] sm:$0xf] %v335_v13 }
  0x46   : > { %338 = vst [vmem:[%s3742_s29 + $0x138] sm:$0xf] %v337_v14  ;;  %340 = vst [vmem:[%s3742_s29 + $0x13c] sm:$0xf] %v339_v15  ;;  %v341_v16 = vld [vmem:[%s3735_s28 + $0x3c0] sm:$0xf] }
  0x47   : > { %v343_v17 = vld [vmem:[%s3735_s28 + $0x3cc] sm:$0xf]  ;;  %v345_v18 = vld [vmem:[%s3735_s28 + $0x3d8] sm:$0xf]  ;;  %342 = vst [vmem:[%s3742_s29 + $0x140] sm:$0xf] %v341_v16 }
  0x48   : > { %344 = vst [vmem:[%s3742_s29 + $0x144] sm:$0xf] %v343_v17  ;;  %346 = vst [vmem:[%s3742_s29 + $0x148] sm:$0xf] %v345_v18  ;;  %v347_v19 = vld [vmem:[%s3735_s28 + $0x3e4] sm:$0xf] }
  0x49   : > { %v349_v20 = vld [vmem:[%s3735_s28 + $0x3f0] sm:$0xf]  ;;  %v351_v21 = vld [vmem:[%s3735_s28 + $0x3fc] sm:$0xf]  ;;  %348 = vst [vmem:[%s3742_s29 + $0x14c] sm:$0xf] %v347_v19 }
  0x4a   : > { %350 = vst [vmem:[%s3742_s29 + $0x150] sm:$0xf] %v349_v20  ;;  %352 = vst [vmem:[%s3742_s29 + $0x154] sm:$0xf] %v351_v21  ;;  %v353_v22 = vld [vmem:[%s3735_s28 + $0x408] sm:$0xf] }
  0x4b   : > { %v355_v23 = vld [vmem:[%s3735_s28 + $0x414] sm:$0xf]  ;;  %v357_v24 = vld [vmem:[%s3735_s28 + $0x420] sm:$0xf]  ;;  %354 = vst [vmem:[%s3742_s29 + $0x158] sm:$0xf] %v353_v22 }
  0x4c   : > { %356 = vst [vmem:[%s3742_s29 + $0x15c] sm:$0xf] %v355_v23  ;;  %358 = vst [vmem:[%s3742_s29 + $0x160] sm:$0xf] %v357_v24  ;;  %v359_v25 = vld [vmem:[%s3735_s28 + $0x42c] sm:$0xf] }
  0x4d   : > { %v361_v26 = vld [vmem:[%s3735_s28 + $0x438] sm:$0xf]  ;;  %v363_v27 = vld [vmem:[%s3735_s28 + $0x444] sm:$0xf]  ;;  %360 = vst [vmem:[%s3742_s29 + $0x164] sm:$0xf] %v359_v25 }
  0x4e   : > { %362 = vst [vmem:[%s3742_s29 + $0x168] sm:$0xf] %v361_v26  ;;  %364 = vst [vmem:[%s3742_s29 + $0x16c] sm:$0xf] %v363_v27  ;;  %v365_v28 = vld [vmem:[%s3735_s28 + $0x450] sm:$0xf] }
  0x4f   : > { %v367_v29 = vld [vmem:[%s3735_s28 + $0x45c] sm:$0xf]  ;;  %v369_v30 = vld [vmem:[%s3735_s28 + $0x468] sm:$0xf]  ;;  %366 = vst [vmem:[%s3742_s29 + $0x170] sm:$0xf] %v365_v28 }
  0x50   : > { %368 = vst [vmem:[%s3742_s29 + $0x174] sm:$0xf] %v367_v29  ;;  %370 = vst [vmem:[%s3742_s29 + $0x178] sm:$0xf] %v369_v30  ;;  %v371_v31 = vld [vmem:[%s3735_s28 + $0x474] sm:$0xf] }
  0x51   : > { %v373_v32 = vld [vmem:[%s3735_s28 + $0x480] sm:$0xf]  ;;  %v375_v33 = vld [vmem:[%s3735_s28 + $0x48c] sm:$0xf]  ;;  %372 = vst [vmem:[%s3742_s29 + $0x17c] sm:$0xf] %v371_v31 }
  0x52   : > { %374 = vst [vmem:[%s3742_s29 + $0x180] sm:$0xf] %v373_v32  ;;  %376 = vst [vmem:[%s3742_s29 + $0x184] sm:$0xf] %v375_v33  ;;  %v377_v34 = vld [vmem:[%s3735_s28 + $0x498] sm:$0xf] }
  0x53   : > { %v379_v35 = vld [vmem:[%s3735_s28 + $0x4a4] sm:$0xf]  ;;  %v381_v36 = vld [vmem:[%s3735_s28 + $0x4b0] sm:$0xf]  ;;  %378 = vst [vmem:[%s3742_s29 + $0x188] sm:$0xf] %v377_v34 }
  0x54   : > { %380 = vst [vmem:[%s3742_s29 + $0x18c] sm:$0xf] %v379_v35  ;;  %382 = vst [vmem:[%s3742_s29 + $0x190] sm:$0xf] %v381_v36  ;;  %v383_v37 = vld [vmem:[%s3735_s28 + $0x4bc] sm:$0xf] }
  0x55   : > { %v385_v38 = vld [vmem:[%s3735_s28 + $0x4c8] sm:$0xf]  ;;  %v387_v39 = vld [vmem:[%s3735_s28 + $0x4d4] sm:$0xf]  ;;  %384 = vst [vmem:[%s3742_s29 + $0x194] sm:$0xf] %v383_v37 }
  0x56   : > { %386 = vst [vmem:[%s3742_s29 + $0x198] sm:$0xf] %v385_v38  ;;  %388 = vst [vmem:[%s3742_s29 + $0x19c] sm:$0xf] %v387_v39  ;;  %v389_v40 = vld [vmem:[%s3735_s28 + $0x4e0] sm:$0xf] }
  0x57   : > { %v391_v41 = vld [vmem:[%s3735_s28 + $0x4ec] sm:$0xf]  ;;  %v393_v42 = vld [vmem:[%s3735_s28 + $0x4f8] sm:$0xf]  ;;  %390 = vst [vmem:[%s3742_s29 + $0x1a0] sm:$0xf] %v389_v40 }
  0x58   : > { %392 = vst [vmem:[%s3742_s29 + $0x1a4] sm:$0xf] %v391_v41  ;;  %394 = vst [vmem:[%s3742_s29 + $0x1a8] sm:$0xf] %v393_v42  ;;  %v395_v43 = vld [vmem:[%s3735_s28 + $0x504] sm:$0xf] }
  0x59   : > { %v397_v44 = vld [vmem:[%s3735_s28 + $0x510] sm:$0xf]  ;;  %v399_v45 = vld [vmem:[%s3735_s28 + $0x51c] sm:$0xf]  ;;  %396 = vst [vmem:[%s3742_s29 + $0x1ac] sm:$0xf] %v395_v43 }
  0x5a   : > { %398 = vst [vmem:[%s3742_s29 + $0x1b0] sm:$0xf] %v397_v44  ;;  %400 = vst [vmem:[%s3742_s29 + $0x1b4] sm:$0xf] %v399_v45  ;;  %v401_v46 = vld [vmem:[%s3735_s28 + $0x528] sm:$0xf] }
  0x5b   : > { %v403_v47 = vld [vmem:[%s3735_s28 + $0x534] sm:$0xf]  ;;  %v405_v48 = vld [vmem:[%s3735_s28 + $0x540] sm:$0xf]  ;;  %402 = vst [vmem:[%s3742_s29 + $0x1b8] sm:$0xf] %v401_v46 }
  0x5c   : > { %404 = vst [vmem:[%s3742_s29 + $0x1bc] sm:$0xf] %v403_v47  ;;  %406 = vst [vmem:[%s3742_s29 + $0x1c0] sm:$0xf] %v405_v48  ;;  %v407_v49 = vld [vmem:[%s3735_s28 + $0x54c] sm:$0xf] }
  0x5d   : > { %v409_v50 = vld [vmem:[%s3735_s28 + $0x558] sm:$0xf]  ;;  %v411_v51 = vld [vmem:[%s3735_s28 + $0x564] sm:$0xf]  ;;  %408 = vst [vmem:[%s3742_s29 + $0x1c4] sm:$0xf] %v407_v49 }
  0x5e   : > { %410 = vst [vmem:[%s3742_s29 + $0x1c8] sm:$0xf] %v409_v50  ;;  %412 = vst [vmem:[%s3742_s29 + $0x1cc] sm:$0xf] %v411_v51  ;;  %v413_v52 = vld [vmem:[%s3735_s28 + $0x570] sm:$0xf] }
  0x5f   : > { %v415_v53 = vld [vmem:[%s3735_s28 + $0x57c] sm:$0xf]  ;;  %v417_v54 = vld [vmem:[%s3735_s28 + $0x588] sm:$0xf]  ;;  %414 = vst [vmem:[%s3742_s29 + $0x1d0] sm:$0xf] %v413_v52 }
  0x60   : > { %416 = vst [vmem:[%s3742_s29 + $0x1d4] sm:$0xf] %v415_v53  ;;  %418 = vst [vmem:[%s3742_s29 + $0x1d8] sm:$0xf] %v417_v54  ;;  %v419_v55 = vld [vmem:[%s3735_s28 + $0x594] sm:$0xf] }
  0x61   : > { %v421_v56 = vld [vmem:[%s3735_s28 + $0x5a0] sm:$0xf]  ;;  %v423_v57 = vld [vmem:[%s3735_s28 + $0x5ac] sm:$0xf]  ;;  %420 = vst [vmem:[%s3742_s29 + $0x1dc] sm:$0xf] %v419_v55 }
  0x62   : > { %422 = vst [vmem:[%s3742_s29 + $0x1e0] sm:$0xf] %v421_v56  ;;  %424 = vst [vmem:[%s3742_s29 + $0x1e4] sm:$0xf] %v423_v57  ;;  %v425_v58 = vld [vmem:[%s3735_s28 + $0x5b8] sm:$0xf] }
  0x63   : > { %v427_v59 = vld [vmem:[%s3735_s28 + $0x5c4] sm:$0xf]  ;;  %v429_v60 = vld [vmem:[%s3735_s28 + $0x5d0] sm:$0xf]  ;;  %426 = vst [vmem:[%s3742_s29 + $0x1e8] sm:$0xf] %v425_v58 }
  0x64   : > { %428 = vst [vmem:[%s3742_s29 + $0x1ec] sm:$0xf] %v427_v59  ;;  %430 = vst [vmem:[%s3742_s29 + $0x1f0] sm:$0xf] %v429_v60  ;;  %v431_v61 = vld [vmem:[%s3735_s28 + $0x5dc] sm:$0xf] }
  0x65   : > { %v433_v62 = vld [vmem:[%s3735_s28 + $0x5e8] sm:$0xf]  ;;  %v435_v63 = vld [vmem:[%s3735_s28 + $0x5f4] sm:$0xf]  ;;  %432 = vst [vmem:[%s3742_s29 + $0x1f4] sm:$0xf] %v431_v61 }
  0x66   : > { %434 = vst [vmem:[%s3742_s29 + $0x1f8] sm:$0xf] %v433_v62  ;;  %436 = vst [vmem:[%s3742_s29 + $0x1fc] sm:$0xf] %v435_v63  ;;  %v437_v0 = vld [vmem:[%s3735_s28 + $0x600] sm:$0xf] }
  0x67   : > { %v439_v1 = vld [vmem:[%s3735_s28 + $0x60c] sm:$0xf]  ;;  %v441_v2 = vld [vmem:[%s3735_s28 + $0x618] sm:$0xf]  ;;  %438 = vst [vmem:[%s3742_s29 + $0x200] sm:$0xf] %v437_v0 }
  0x68   : > { %440 = vst [vmem:[%s3742_s29 + $0x204] sm:$0xf] %v439_v1  ;;  %442 = vst [vmem:[%s3742_s29 + $0x208] sm:$0xf] %v441_v2  ;;  %v443_v3 = vld [vmem:[%s3735_s28 + $0x624] sm:$0xf] }
  0x69   : > { %v445_v4 = vld [vmem:[%s3735_s28 + $0x630] sm:$0xf]  ;;  %v447_v5 = vld [vmem:[%s3735_s28 + $0x63c] sm:$0xf]  ;;  %444 = vst [vmem:[%s3742_s29 + $0x20c] sm:$0xf] %v443_v3 }
  0x6a   : > { %446 = vst [vmem:[%s3742_s29 + $0x210] sm:$0xf] %v445_v4  ;;  %448 = vst [vmem:[%s3742_s29 + $0x214] sm:$0xf] %v447_v5  ;;  %v449_v6 = vld [vmem:[%s3735_s28 + $0x648] sm:$0xf] }
  0x6b   : > { %v451_v7 = vld [vmem:[%s3735_s28 + $0x654] sm:$0xf]  ;;  %v453_v8 = vld [vmem:[%s3735_s28 + $0x660] sm:$0xf]  ;;  %450 = vst [vmem:[%s3742_s29 + $0x218] sm:$0xf] %v449_v6 }
  0x6c   : > { %452 = vst [vmem:[%s3742_s29 + $0x21c] sm:$0xf] %v451_v7  ;;  %454 = vst [vmem:[%s3742_s29 + $0x220] sm:$0xf] %v453_v8  ;;  %v455_v9 = vld [vmem:[%s3735_s28 + $0x66c] sm:$0xf] }
  0x6d   : > { %v457_v10 = vld [vmem:[%s3735_s28 + $0x678] sm:$0xf]  ;;  %v459_v11 = vld [vmem:[%s3735_s28 + $0x684] sm:$0xf]  ;;  %456 = vst [vmem:[%s3742_s29 + $0x224] sm:$0xf] %v455_v9 }
  0x6e   : > { %458 = vst [vmem:[%s3742_s29 + $0x228] sm:$0xf] %v457_v10  ;;  %460 = vst [vmem:[%s3742_s29 + $0x22c] sm:$0xf] %v459_v11  ;;  %v461_v12 = vld [vmem:[%s3735_s28 + $0x690] sm:$0xf] }
  0x6f   : > { %v463_v13 = vld [vmem:[%s3735_s28 + $0x69c] sm:$0xf]  ;;  %v465_v14 = vld [vmem:[%s3735_s28 + $0x6a8] sm:$0xf]  ;;  %462 = vst [vmem:[%s3742_s29 + $0x230] sm:$0xf] %v461_v12 }
  0x70   : > { %464 = vst [vmem:[%s3742_s29 + $0x234] sm:$0xf] %v463_v13  ;;  %466 = vst [vmem:[%s3742_s29 + $0x238] sm:$0xf] %v465_v14  ;;  %v467_v15 = vld [vmem:[%s3735_s28 + $0x6b4] sm:$0xf] }
  0x71   : > { %v469_v16 = vld [vmem:[%s3735_s28 + $0x6c0] sm:$0xf]  ;;  %v471_v17 = vld [vmem:[%s3735_s28 + $0x6cc] sm:$0xf]  ;;  %468 = vst [vmem:[%s3742_s29 + $0x23c] sm:$0xf] %v467_v15 }
  0x72   : > { %470 = vst [vmem:[%s3742_s29 + $0x240] sm:$0xf] %v469_v16  ;;  %472 = vst [vmem:[%s3742_s29 + $0x244] sm:$0xf] %v471_v17  ;;  %v473_v18 = vld [vmem:[%s3735_s28 + $0x6d8] sm:$0xf] }
  0x73   : > { %v475_v19 = vld [vmem:[%s3735_s28 + $0x6e4] sm:$0xf]  ;;  %v477_v20 = vld [vmem:[%s3735_s28 + $0x6f0] sm:$0xf]  ;;  %474 = vst [vmem:[%s3742_s29 + $0x248] sm:$0xf] %v473_v18 }
  0x74   : > { %476 = vst [vmem:[%s3742_s29 + $0x24c] sm:$0xf] %v475_v19  ;;  %478 = vst [vmem:[%s3742_s29 + $0x250] sm:$0xf] %v477_v20  ;;  %v479_v21 = vld [vmem:[%s3735_s28 + $0x6fc] sm:$0xf] }
  0x75   : > { %v481_v22 = vld [vmem:[%s3735_s28 + $0x708] sm:$0xf]  ;;  %v483_v23 = vld [vmem:[%s3735_s28 + $0x714] sm:$0xf]  ;;  %480 = vst [vmem:[%s3742_s29 + $0x254] sm:$0xf] %v479_v21 }
  0x76   : > { %482 = vst [vmem:[%s3742_s29 + $0x258] sm:$0xf] %v481_v22  ;;  %484 = vst [vmem:[%s3742_s29 + $0x25c] sm:$0xf] %v483_v23  ;;  %v485_v24 = vld [vmem:[%s3735_s28 + $0x720] sm:$0xf] }
  0x77   : > { %v487_v25 = vld [vmem:[%s3735_s28 + $0x72c] sm:$0xf]  ;;  %v489_v26 = vld [vmem:[%s3735_s28 + $0x738] sm:$0xf]  ;;  %486 = vst [vmem:[%s3742_s29 + $0x260] sm:$0xf] %v485_v24 }
  0x78   : > { %488 = vst [vmem:[%s3742_s29 + $0x264] sm:$0xf] %v487_v25  ;;  %490 = vst [vmem:[%s3742_s29 + $0x268] sm:$0xf] %v489_v26  ;;  %v491_v27 = vld [vmem:[%s3735_s28 + $0x744] sm:$0xf] }
  0x79   : > { %v493_v28 = vld [vmem:[%s3735_s28 + $0x750] sm:$0xf]  ;;  %v495_v29 = vld [vmem:[%s3735_s28 + $0x75c] sm:$0xf]  ;;  %492 = vst [vmem:[%s3742_s29 + $0x26c] sm:$0xf] %v491_v27 }
  0x7a   : > { %494 = vst [vmem:[%s3742_s29 + $0x270] sm:$0xf] %v493_v28  ;;  %496 = vst [vmem:[%s3742_s29 + $0x274] sm:$0xf] %v495_v29  ;;  %v497_v30 = vld [vmem:[%s3735_s28 + $0x768] sm:$0xf] }
  0x7b   : > { %v499_v31 = vld [vmem:[%s3735_s28 + $0x774] sm:$0xf]  ;;  %v501_v32 = vld [vmem:[%s3735_s28 + $0x780] sm:$0xf]  ;;  %498 = vst [vmem:[%s3742_s29 + $0x278] sm:$0xf] %v497_v30 }
  0x7c   : > { %500 = vst [vmem:[%s3742_s29 + $0x27c] sm:$0xf] %v499_v31  ;;  %502 = vst [vmem:[%s3742_s29 + $0x280] sm:$0xf] %v501_v32  ;;  %v503_v33 = vld [vmem:[%s3735_s28 + $0x78c] sm:$0xf] }
  0x7d   : > { %v505_v34 = vld [vmem:[%s3735_s28 + $0x798] sm:$0xf]  ;;  %v507_v35 = vld [vmem:[%s3735_s28 + $0x7a4] sm:$0xf]  ;;  %504 = vst [vmem:[%s3742_s29 + $0x284] sm:$0xf] %v503_v33 }
  0x7e   : > { %506 = vst [vmem:[%s3742_s29 + $0x288] sm:$0xf] %v505_v34  ;;  %508 = vst [vmem:[%s3742_s29 + $0x28c] sm:$0xf] %v507_v35  ;;  %v509_v36 = vld [vmem:[%s3735_s28 + $0x7b0] sm:$0xf] }
  0x7f   : > { %v511_v37 = vld [vmem:[%s3735_s28 + $0x7bc] sm:$0xf]  ;;  %v513_v38 = vld [vmem:[%s3735_s28 + $0x7c8] sm:$0xf]  ;;  %510 = vst [vmem:[%s3742_s29 + $0x290] sm:$0xf] %v509_v36 }
  0x80   : > { %512 = vst [vmem:[%s3742_s29 + $0x294] sm:$0xf] %v511_v37  ;;  %514 = vst [vmem:[%s3742_s29 + $0x298] sm:$0xf] %v513_v38  ;;  %v515_v39 = vld [vmem:[%s3735_s28 + $0x7d4] sm:$0xf] }
  0x81   : > { %v517_v40 = vld [vmem:[%s3735_s28 + $0x7e0] sm:$0xf]  ;;  %v519_v41 = vld [vmem:[%s3735_s28 + $0x7ec] sm:$0xf]  ;;  %516 = vst [vmem:[%s3742_s29 + $0x29c] sm:$0xf] %v515_v39 }
  0x82   : > { %518 = vst [vmem:[%s3742_s29 + $0x2a0] sm:$0xf] %v517_v40  ;;  %520 = vst [vmem:[%s3742_s29 + $0x2a4] sm:$0xf] %v519_v41  ;;  %v521_v42 = vld [vmem:[%s3735_s28 + $0x7f8] sm:$0xf] }
  0x83   : > { %v523_v43 = vld [vmem:[%s3735_s28 + $0x804] sm:$0xf]  ;;  %v525_v44 = vld [vmem:[%s3735_s28 + $0x810] sm:$0xf]  ;;  %522 = vst [vmem:[%s3742_s29 + $0x2a8] sm:$0xf] %v521_v42 }
  0x84   : > { %524 = vst [vmem:[%s3742_s29 + $0x2ac] sm:$0xf] %v523_v43  ;;  %526 = vst [vmem:[%s3742_s29 + $0x2b0] sm:$0xf] %v525_v44  ;;  %v527_v45 = vld [vmem:[%s3735_s28 + $0x81c] sm:$0xf] }
  0x85   : > { %v529_v46 = vld [vmem:[%s3735_s28 + $0x828] sm:$0xf]  ;;  %v531_v47 = vld [vmem:[%s3735_s28 + $0x834] sm:$0xf]  ;;  %528 = vst [vmem:[%s3742_s29 + $0x2b4] sm:$0xf] %v527_v45 }
  0x86   : > { %530 = vst [vmem:[%s3742_s29 + $0x2b8] sm:$0xf] %v529_v46  ;;  %532 = vst [vmem:[%s3742_s29 + $0x2bc] sm:$0xf] %v531_v47  ;;  %v533_v48 = vld [vmem:[%s3735_s28 + $0x840] sm:$0xf] }
  0x87   : > { %v535_v49 = vld [vmem:[%s3735_s28 + $0x84c] sm:$0xf]  ;;  %v537_v50 = vld [vmem:[%s3735_s28 + $0x858] sm:$0xf]  ;;  %534 = vst [vmem:[%s3742_s29 + $0x2c0] sm:$0xf] %v533_v48 }
  0x88   : > { %536 = vst [vmem:[%s3742_s29 + $0x2c4] sm:$0xf] %v535_v49  ;;  %538 = vst [vmem:[%s3742_s29 + $0x2c8] sm:$0xf] %v537_v50  ;;  %v539_v51 = vld [vmem:[%s3735_s28 + $0x864] sm:$0xf] }
  0x89   : > { %v541_v52 = vld [vmem:[%s3735_s28 + $0x870] sm:$0xf]  ;;  %v543_v53 = vld [vmem:[%s3735_s28 + $0x87c] sm:$0xf]  ;;  %540 = vst [vmem:[%s3742_s29 + $0x2cc] sm:$0xf] %v539_v51 }
  0x8a   : > { %542 = vst [vmem:[%s3742_s29 + $0x2d0] sm:$0xf] %v541_v52  ;;  %544 = vst [vmem:[%s3742_s29 + $0x2d4] sm:$0xf] %v543_v53  ;;  %v545_v54 = vld [vmem:[%s3735_s28 + $0x888] sm:$0xf] }
  0x8b   : > { %v547_v55 = vld [vmem:[%s3735_s28 + $0x894] sm:$0xf]  ;;  %v549_v56 = vld [vmem:[%s3735_s28 + $0x8a0] sm:$0xf]  ;;  %546 = vst [vmem:[%s3742_s29 + $0x2d8] sm:$0xf] %v545_v54 }
  0x8c   : > { %548 = vst [vmem:[%s3742_s29 + $0x2dc] sm:$0xf] %v547_v55  ;;  %550 = vst [vmem:[%s3742_s29 + $0x2e0] sm:$0xf] %v549_v56  ;;  %v551_v57 = vld [vmem:[%s3735_s28 + $0x8ac] sm:$0xf] }
  0x8d   : > { %v553_v58 = vld [vmem:[%s3735_s28 + $0x8b8] sm:$0xf]  ;;  %v555_v59 = vld [vmem:[%s3735_s28 + $0x8c4] sm:$0xf]  ;;  %552 = vst [vmem:[%s3742_s29 + $0x2e4] sm:$0xf] %v551_v57 }
  0x8e   : > { %554 = vst [vmem:[%s3742_s29 + $0x2e8] sm:$0xf] %v553_v58  ;;  %556 = vst [vmem:[%s3742_s29 + $0x2ec] sm:$0xf] %v555_v59  ;;  %v557_v60 = vld [vmem:[%s3735_s28 + $0x8d0] sm:$0xf] }
  0x8f   : > { %v559_v61 = vld [vmem:[%s3735_s28 + $0x8dc] sm:$0xf]  ;;  %v561_v62 = vld [vmem:[%s3735_s28 + $0x8e8] sm:$0xf]  ;;  %558 = vst [vmem:[%s3742_s29 + $0x2f0] sm:$0xf] %v557_v60 }
  0x90   : > { %560 = vst [vmem:[%s3742_s29 + $0x2f4] sm:$0xf] %v559_v61  ;;  %562 = vst [vmem:[%s3742_s29 + $0x2f8] sm:$0xf] %v561_v62  ;;  %v563_v63 = vld [vmem:[%s3735_s28 + $0x8f4] sm:$0xf] }
  0x91   : > { %v565_v0 = vld [vmem:[%s3735_s28 + $0x900] sm:$0xf]  ;;  %v567_v1 = vld [vmem:[%s3735_s28 + $0x90c] sm:$0xf]  ;;  %564 = vst [vmem:[%s3742_s29 + $0x2fc] sm:$0xf] %v563_v63 }
  0x92   : > { %566 = vst [vmem:[%s3742_s29 + $0x300] sm:$0xf] %v565_v0  ;;  %568 = vst [vmem:[%s3742_s29 + $0x304] sm:$0xf] %v567_v1  ;;  %v569_v2 = vld [vmem:[%s3735_s28 + $0x918] sm:$0xf] }
  0x93   : > { %v571_v3 = vld [vmem:[%s3735_s28 + $0x924] sm:$0xf]  ;;  %v573_v4 = vld [vmem:[%s3735_s28 + $0x930] sm:$0xf]  ;;  %570 = vst [vmem:[%s3742_s29 + $0x308] sm:$0xf] %v569_v2 }
  0x94   : > { %572 = vst [vmem:[%s3742_s29 + $0x30c] sm:$0xf] %v571_v3  ;;  %574 = vst [vmem:[%s3742_s29 + $0x310] sm:$0xf] %v573_v4  ;;  %v575_v5 = vld [vmem:[%s3735_s28 + $0x93c] sm:$0xf] }
  0x95   : > { %v577_v6 = vld [vmem:[%s3735_s28 + $0x948] sm:$0xf]  ;;  %v579_v7 = vld [vmem:[%s3735_s28 + $0x954] sm:$0xf]  ;;  %576 = vst [vmem:[%s3742_s29 + $0x314] sm:$0xf] %v575_v5 }
  0x96   : > { %578 = vst [vmem:[%s3742_s29 + $0x318] sm:$0xf] %v577_v6  ;;  %580 = vst [vmem:[%s3742_s29 + $0x31c] sm:$0xf] %v579_v7  ;;  %v581_v8 = vld [vmem:[%s3735_s28 + $0x960] sm:$0xf] }
  0x97   : > { %v583_v9 = vld [vmem:[%s3735_s28 + $0x96c] sm:$0xf]  ;;  %v585_v10 = vld [vmem:[%s3735_s28 + $0x978] sm:$0xf]  ;;  %582 = vst [vmem:[%s3742_s29 + $0x320] sm:$0xf] %v581_v8 }
  0x98   : > { %584 = vst [vmem:[%s3742_s29 + $0x324] sm:$0xf] %v583_v9  ;;  %586 = vst [vmem:[%s3742_s29 + $0x328] sm:$0xf] %v585_v10  ;;  %v587_v11 = vld [vmem:[%s3735_s28 + $0x984] sm:$0xf] }
  0x99   : > { %v589_v12 = vld [vmem:[%s3735_s28 + $0x990] sm:$0xf]  ;;  %v591_v13 = vld [vmem:[%s3735_s28 + $0x99c] sm:$0xf]  ;;  %588 = vst [vmem:[%s3742_s29 + $0x32c] sm:$0xf] %v587_v11 }
  0x9a   : > { %590 = vst [vmem:[%s3742_s29 + $0x330] sm:$0xf] %v589_v12  ;;  %592 = vst [vmem:[%s3742_s29 + $0x334] sm:$0xf] %v591_v13  ;;  %v593_v14 = vld [vmem:[%s3735_s28 + $0x9a8] sm:$0xf] }
  0x9b   : > { %v595_v15 = vld [vmem:[%s3735_s28 + $0x9b4] sm:$0xf]  ;;  %v597_v16 = vld [vmem:[%s3735_s28 + $0x9c0] sm:$0xf]  ;;  %594 = vst [vmem:[%s3742_s29 + $0x338] sm:$0xf] %v593_v14 }
  0x9c   : > { %596 = vst [vmem:[%s3742_s29 + $0x33c] sm:$0xf] %v595_v15  ;;  %598 = vst [vmem:[%s3742_s29 + $0x340] sm:$0xf] %v597_v16  ;;  %v599_v17 = vld [vmem:[%s3735_s28 + $0x9cc] sm:$0xf] }
  0x9d   : > { %v601_v18 = vld [vmem:[%s3735_s28 + $0x9d8] sm:$0xf]  ;;  %v603_v19 = vld [vmem:[%s3735_s28 + $0x9e4] sm:$0xf]  ;;  %600 = vst [vmem:[%s3742_s29 + $0x344] sm:$0xf] %v599_v17 }
  0x9e   : > { %602 = vst [vmem:[%s3742_s29 + $0x348] sm:$0xf] %v601_v18  ;;  %604 = vst [vmem:[%s3742_s29 + $0x34c] sm:$0xf] %v603_v19  ;;  %v605_v20 = vld [vmem:[%s3735_s28 + $0x9f0] sm:$0xf] }
  0x9f   : > { %v607_v21 = vld [vmem:[%s3735_s28 + $0x9fc] sm:$0xf]  ;;  %v609_v22 = vld [vmem:[%s3735_s28 + $0xa08] sm:$0xf]  ;;  %606 = vst [vmem:[%s3742_s29 + $0x350] sm:$0xf] %v605_v20 }
  0xa0   : > { %608 = vst [vmem:[%s3742_s29 + $0x354] sm:$0xf] %v607_v21  ;;  %610 = vst [vmem:[%s3742_s29 + $0x358] sm:$0xf] %v609_v22  ;;  %v611_v23 = vld [vmem:[%s3735_s28 + $0xa14] sm:$0xf] }
  0xa1   : > { %v613_v24 = vld [vmem:[%s3735_s28 + $0xa20] sm:$0xf]  ;;  %v615_v25 = vld [vmem:[%s3735_s28 + $0xa2c] sm:$0xf]  ;;  %612 = vst [vmem:[%s3742_s29 + $0x35c] sm:$0xf] %v611_v23 }
  0xa2   : > { %614 = vst [vmem:[%s3742_s29 + $0x360] sm:$0xf] %v613_v24  ;;  %616 = vst [vmem:[%s3742_s29 + $0x364] sm:$0xf] %v615_v25  ;;  %v617_v26 = vld [vmem:[%s3735_s28 + $0xa38] sm:$0xf] }
  0xa3   : > { %v619_v27 = vld [vmem:[%s3735_s28 + $0xa44] sm:$0xf]  ;;  %v621_v28 = vld [vmem:[%s3735_s28 + $0xa50] sm:$0xf]  ;;  %618 = vst [vmem:[%s3742_s29 + $0x368] sm:$0xf] %v617_v26 }
  0xa4   : > { %620 = vst [vmem:[%s3742_s29 + $0x36c] sm:$0xf] %v619_v27  ;;  %622 = vst [vmem:[%s3742_s29 + $0x370] sm:$0xf] %v621_v28  ;;  %v623_v29 = vld [vmem:[%s3735_s28 + $0xa5c] sm:$0xf] }
  0xa5   : > { %v625_v30 = vld [vmem:[%s3735_s28 + $0xa68] sm:$0xf]  ;;  %v627_v31 = vld [vmem:[%s3735_s28 + $0xa74] sm:$0xf]  ;;  %624 = vst [vmem:[%s3742_s29 + $0x374] sm:$0xf] %v623_v29 }
  0xa6   : > { %626 = vst [vmem:[%s3742_s29 + $0x378] sm:$0xf] %v625_v30  ;;  %628 = vst [vmem:[%s3742_s29 + $0x37c] sm:$0xf] %v627_v31  ;;  %v629_v32 = vld [vmem:[%s3735_s28 + $0xa80] sm:$0xf] }
  0xa7   : > { %v631_v33 = vld [vmem:[%s3735_s28 + $0xa8c] sm:$0xf]  ;;  %v633_v34 = vld [vmem:[%s3735_s28 + $0xa98] sm:$0xf]  ;;  %630 = vst [vmem:[%s3742_s29 + $0x380] sm:$0xf] %v629_v32 }
  0xa8   : > { %632 = vst [vmem:[%s3742_s29 + $0x384] sm:$0xf] %v631_v33  ;;  %634 = vst [vmem:[%s3742_s29 + $0x388] sm:$0xf] %v633_v34  ;;  %v635_v35 = vld [vmem:[%s3735_s28 + $0xaa4] sm:$0xf] }
  0xa9   : > { %v637_v36 = vld [vmem:[%s3735_s28 + $0xab0] sm:$0xf]  ;;  %v639_v37 = vld [vmem:[%s3735_s28 + $0xabc] sm:$0xf]  ;;  %636 = vst [vmem:[%s3742_s29 + $0x38c] sm:$0xf] %v635_v35 }
  0xaa   : > { %638 = vst [vmem:[%s3742_s29 + $0x390] sm:$0xf] %v637_v36  ;;  %640 = vst [vmem:[%s3742_s29 + $0x394] sm:$0xf] %v639_v37  ;;  %v641_v38 = vld [vmem:[%s3735_s28 + $0xac8] sm:$0xf] }
  0xab   : > { %v643_v39 = vld [vmem:[%s3735_s28 + $0xad4] sm:$0xf]  ;;  %v645_v40 = vld [vmem:[%s3735_s28 + $0xae0] sm:$0xf]  ;;  %642 = vst [vmem:[%s3742_s29 + $0x398] sm:$0xf] %v641_v38 }
  0xac   : > { %644 = vst [vmem:[%s3742_s29 + $0x39c] sm:$0xf] %v643_v39  ;;  %646 = vst [vmem:[%s3742_s29 + $0x3a0] sm:$0xf] %v645_v40  ;;  %v647_v41 = vld [vmem:[%s3735_s28 + $0xaec] sm:$0xf] }
  0xad   : > { %v649_v42 = vld [vmem:[%s3735_s28 + $0xaf8] sm:$0xf]  ;;  %v651_v43 = vld [vmem:[%s3735_s28 + $0xb04] sm:$0xf]  ;;  %648 = vst [vmem:[%s3742_s29 + $0x3a4] sm:$0xf] %v647_v41 }
  0xae   : > { %650 = vst [vmem:[%s3742_s29 + $0x3a8] sm:$0xf] %v649_v42  ;;  %652 = vst [vmem:[%s3742_s29 + $0x3ac] sm:$0xf] %v651_v43  ;;  %v653_v44 = vld [vmem:[%s3735_s28 + $0xb10] sm:$0xf] }
  0xaf   : > { %v655_v45 = vld [vmem:[%s3735_s28 + $0xb1c] sm:$0xf]  ;;  %v657_v46 = vld [vmem:[%s3735_s28 + $0xb28] sm:$0xf]  ;;  %654 = vst [vmem:[%s3742_s29 + $0x3b0] sm:$0xf] %v653_v44 }
  0xb0   : > { %656 = vst [vmem:[%s3742_s29 + $0x3b4] sm:$0xf] %v655_v45  ;;  %658 = vst [vmem:[%s3742_s29 + $0x3b8] sm:$0xf] %v657_v46  ;;  %v659_v47 = vld [vmem:[%s3735_s28 + $0xb34] sm:$0xf] }
  0xb1   : > { %v661_v48 = vld [vmem:[%s3735_s28 + $0xb40] sm:$0xf]  ;;  %v663_v49 = vld [vmem:[%s3735_s28 + $0xb4c] sm:$0xf]  ;;  %660 = vst [vmem:[%s3742_s29 + $0x3bc] sm:$0xf] %v659_v47 }
  0xb2   : > { %662 = vst [vmem:[%s3742_s29 + $0x3c0] sm:$0xf] %v661_v48  ;;  %664 = vst [vmem:[%s3742_s29 + $0x3c4] sm:$0xf] %v663_v49  ;;  %v665_v50 = vld [vmem:[%s3735_s28 + $0xb58] sm:$0xf] }
  0xb3   : > { %v667_v51 = vld [vmem:[%s3735_s28 + $0xb64] sm:$0xf]  ;;  %v669_v52 = vld [vmem:[%s3735_s28 + $0xb70] sm:$0xf]  ;;  %666 = vst [vmem:[%s3742_s29 + $0x3c8] sm:$0xf] %v665_v50 }
  0xb4   : > { %668 = vst [vmem:[%s3742_s29 + $0x3cc] sm:$0xf] %v667_v51  ;;  %670 = vst [vmem:[%s3742_s29 + $0x3d0] sm:$0xf] %v669_v52  ;;  %v671_v53 = vld [vmem:[%s3735_s28 + $0xb7c] sm:$0xf] }
  0xb5   : > { %v673_v54 = vld [vmem:[%s3735_s28 + $0xb88] sm:$0xf]  ;;  %v675_v55 = vld [vmem:[%s3735_s28 + $0xb94] sm:$0xf]  ;;  %672 = vst [vmem:[%s3742_s29 + $0x3d4] sm:$0xf] %v671_v53 }
  0xb6   : > { %674 = vst [vmem:[%s3742_s29 + $0x3d8] sm:$0xf] %v673_v54  ;;  %676 = vst [vmem:[%s3742_s29 + $0x3dc] sm:$0xf] %v675_v55  ;;  %v677_v56 = vld [vmem:[%s3735_s28 + $0xba0] sm:$0xf] }
  0xb7   : > { %v679_v57 = vld [vmem:[%s3735_s28 + $0xbac] sm:$0xf]  ;;  %v681_v58 = vld [vmem:[%s3735_s28 + $0xbb8] sm:$0xf]  ;;  %678 = vst [vmem:[%s3742_s29 + $0x3e0] sm:$0xf] %v677_v56 }
  0xb8   : > { %680 = vst [vmem:[%s3742_s29 + $0x3e4] sm:$0xf] %v679_v57  ;;  %682 = vst [vmem:[%s3742_s29 + $0x3e8] sm:$0xf] %v681_v58  ;;  %v683_v59 = vld [vmem:[%s3735_s28 + $0xbc4] sm:$0xf] }
  0xb9   : > { %v685_v60 = vld [vmem:[%s3735_s28 + $0xbd0] sm:$0xf]  ;;  %v687_v61 = vld [vmem:[%s3735_s28 + $0xbdc] sm:$0xf]  ;;  %684 = vst [vmem:[%s3742_s29 + $0x3ec] sm:$0xf] %v683_v59 }
  0xba   : > { %686 = vst [vmem:[%s3742_s29 + $0x3f0] sm:$0xf] %v685_v60  ;;  %688 = vst [vmem:[%s3742_s29 + $0x3f4] sm:$0xf] %v687_v61  ;;  %v689_v62 = vld [vmem:[%s3735_s28 + $0xbe8] sm:$0xf] }
  0xbb   : > { %v691_v63 = vld [vmem:[%s3735_s28 + $0xbf4] sm:$0xf]  ;;  %v693_v0 = vld [vmem:[%s3735_s28 + $0xc00] sm:$0xf]  ;;  %690 = vst [vmem:[%s3742_s29 + $0x3f8] sm:$0xf] %v689_v62 }
  0xbc   : > { %692 = vst [vmem:[%s3742_s29 + $0x3fc] sm:$0xf] %v691_v63  ;;  %694 = vst [vmem:[%s3742_s29 + $0x400] sm:$0xf] %v693_v0  ;;  %v695_v1 = vld [vmem:[%s3735_s28 + $0xc0c] sm:$0xf] }
  0xbd   : > { %v697_v2 = vld [vmem:[%s3735_s28 + $0xc18] sm:$0xf]  ;;  %v699_v3 = vld [vmem:[%s3735_s28 + $0xc24] sm:$0xf]  ;;  %696 = vst [vmem:[%s3742_s29 + $0x404] sm:$0xf] %v695_v1 }
  0xbe   : > { %698 = vst [vmem:[%s3742_s29 + $0x408] sm:$0xf] %v697_v2  ;;  %700 = vst [vmem:[%s3742_s29 + $0x40c] sm:$0xf] %v699_v3  ;;  %v701_v4 = vld [vmem:[%s3735_s28 + $0xc30] sm:$0xf] }
  0xbf   : > { %v703_v5 = vld [vmem:[%s3735_s28 + $0xc3c] sm:$0xf]  ;;  %v705_v6 = vld [vmem:[%s3735_s28 + $0xc48] sm:$0xf]  ;;  %702 = vst [vmem:[%s3742_s29 + $0x410] sm:$0xf] %v701_v4 }
  0xc0   : > { %704 = vst [vmem:[%s3742_s29 + $0x414] sm:$0xf] %v703_v5  ;;  %706 = vst [vmem:[%s3742_s29 + $0x418] sm:$0xf] %v705_v6  ;;  %v707_v7 = vld [vmem:[%s3735_s28 + $0xc54] sm:$0xf] }
  0xc1   : > { %v709_v8 = vld [vmem:[%s3735_s28 + $0xc60] sm:$0xf]  ;;  %v711_v9 = vld [vmem:[%s3735_s28 + $0xc6c] sm:$0xf]  ;;  %708 = vst [vmem:[%s3742_s29 + $0x41c] sm:$0xf] %v707_v7 }
  0xc2   : > { %710 = vst [vmem:[%s3742_s29 + $0x420] sm:$0xf] %v709_v8  ;;  %712 = vst [vmem:[%s3742_s29 + $0x424] sm:$0xf] %v711_v9  ;;  %v713_v10 = vld [vmem:[%s3735_s28 + $0xc78] sm:$0xf] }
  0xc3   : > { %v715_v11 = vld [vmem:[%s3735_s28 + $0xc84] sm:$0xf]  ;;  %v717_v12 = vld [vmem:[%s3735_s28 + $0xc90] sm:$0xf]  ;;  %714 = vst [vmem:[%s3742_s29 + $0x428] sm:$0xf] %v713_v10 }
  0xc4   : > { %716 = vst [vmem:[%s3742_s29 + $0x42c] sm:$0xf] %v715_v11  ;;  %718 = vst [vmem:[%s3742_s29 + $0x430] sm:$0xf] %v717_v12  ;;  %v719_v13 = vld [vmem:[%s3735_s28 + $0xc9c] sm:$0xf] }
  0xc5   : > { %v721_v14 = vld [vmem:[%s3735_s28 + $0xca8] sm:$0xf]  ;;  %v723_v15 = vld [vmem:[%s3735_s28 + $0xcb4] sm:$0xf]  ;;  %720 = vst [vmem:[%s3742_s29 + $0x434] sm:$0xf] %v719_v13 }
  0xc6   : > { %722 = vst [vmem:[%s3742_s29 + $0x438] sm:$0xf] %v721_v14  ;;  %724 = vst [vmem:[%s3742_s29 + $0x43c] sm:$0xf] %v723_v15  ;;  %v725_v16 = vld [vmem:[%s3735_s28 + $0xcc0] sm:$0xf] }
  0xc7   : > { %v727_v17 = vld [vmem:[%s3735_s28 + $0xccc] sm:$0xf]  ;;  %v729_v18 = vld [vmem:[%s3735_s28 + $0xcd8] sm:$0xf]  ;;  %726 = vst [vmem:[%s3742_s29 + $0x440] sm:$0xf] %v725_v16 }
  0xc8   : > { %728 = vst [vmem:[%s3742_s29 + $0x444] sm:$0xf] %v727_v17  ;;  %730 = vst [vmem:[%s3742_s29 + $0x448] sm:$0xf] %v729_v18  ;;  %v731_v19 = vld [vmem:[%s3735_s28 + $0xce4] sm:$0xf] }
  0xc9   : > { %v733_v20 = vld [vmem:[%s3735_s28 + $0xcf0] sm:$0xf]  ;;  %v735_v21 = vld [vmem:[%s3735_s28 + $0xcfc] sm:$0xf]  ;;  %732 = vst [vmem:[%s3742_s29 + $0x44c] sm:$0xf] %v731_v19 }
  0xca   : > { %734 = vst [vmem:[%s3742_s29 + $0x450] sm:$0xf] %v733_v20  ;;  %736 = vst [vmem:[%s3742_s29 + $0x454] sm:$0xf] %v735_v21  ;;  %v737_v22 = vld [vmem:[%s3735_s28 + $0xd08] sm:$0xf] }
  0xcb   : > { %v739_v23 = vld [vmem:[%s3735_s28 + $0xd14] sm:$0xf]  ;;  %v741_v24 = vld [vmem:[%s3735_s28 + $0xd20] sm:$0xf]  ;;  %738 = vst [vmem:[%s3742_s29 + $0x458] sm:$0xf] %v737_v22 }
  0xcc   : > { %740 = vst [vmem:[%s3742_s29 + $0x45c] sm:$0xf] %v739_v23  ;;  %742 = vst [vmem:[%s3742_s29 + $0x460] sm:$0xf] %v741_v24  ;;  %v743_v25 = vld [vmem:[%s3735_s28 + $0xd2c] sm:$0xf] }
  0xcd   : > { %v745_v26 = vld [vmem:[%s3735_s28 + $0xd38] sm:$0xf]  ;;  %v747_v27 = vld [vmem:[%s3735_s28 + $0xd44] sm:$0xf]  ;;  %744 = vst [vmem:[%s3742_s29 + $0x464] sm:$0xf] %v743_v25 }
  0xce   : > { %746 = vst [vmem:[%s3742_s29 + $0x468] sm:$0xf] %v745_v26  ;;  %748 = vst [vmem:[%s3742_s29 + $0x46c] sm:$0xf] %v747_v27  ;;  %v749_v28 = vld [vmem:[%s3735_s28 + $0xd50] sm:$0xf] }
  0xcf   : > { %v751_v29 = vld [vmem:[%s3735_s28 + $0xd5c] sm:$0xf]  ;;  %v753_v30 = vld [vmem:[%s3735_s28 + $0xd68] sm:$0xf]  ;;  %750 = vst [vmem:[%s3742_s29 + $0x470] sm:$0xf] %v749_v28 }
  0xd0   : > { %752 = vst [vmem:[%s3742_s29 + $0x474] sm:$0xf] %v751_v29  ;;  %754 = vst [vmem:[%s3742_s29 + $0x478] sm:$0xf] %v753_v30  ;;  %v755_v31 = vld [vmem:[%s3735_s28 + $0xd74] sm:$0xf] }
  0xd1   : > { %756 = vst [vmem:[%s3742_s29 + $0x47c] sm:$0xf] %v755_v31 }
  0xd2 PF: > { %p3098_p5 = scmp.ge.s32.totalorder %s3674_s17, 1  ;;  %p1366_p6 = scmp.lt.s32.totalorder %s3674_s17, 4 }
  0xd4   : > { %p1367_p7 = pnand %p3098_p5, %p1366_p6 }
  0xd5   : > { %s1373_s30 = sand.u32 (!%p1367_p7), 1, %s3666_s15   ;;  %v4321_v32 = vld [vmem:[%s4550_s0] sm:$0xff] (!%p1367_p7)  ;;  %v4326_v33 = vld [vmem:[%s4550_s0 + $0x8] sm:$0xff] (!%p1367_p7)  ;;  %v4366_v1 = vld [vmem:[%s4550_s0 + $0x10] sm:$0xff] (!%p1367_p7)  ;;  %p1403_p8 = scmp.lt.s32.totalorder (!%p1367_p7), %s3093_s18, 2 }
  0xd6   : > { %1370 = sbr.rel (%p1367_p7) target bundleno = 604 (0x25c), region = 73  ;;  %v3101_v34 = vcombine.high (!%p1367_p7), %v4321_v32, %v4321_v32  ;;  %v3103_v35 = vcombine.high (!%p1367_p7), %v4326_v33, %v4326_v33  ;;  %v4373_v4 = vld [vmem:[%s4550_s0 + $0x18] sm:$0xff] (!%p1367_p7)  ;;  %v3100_v6 = vcombine.low (!%p1367_p7), %v4321_v32, %v4321_v32  ;;  %v3102_v7 = vcombine.low (!%p1367_p7), %v4326_v33, %v4326_v33 }
  0xd7   : > { %s3465_s9 = smul.u32 (!%p1367_p7), 1152, %s1373_s30  ;;  %v3105_v10 = vcombine.high (!%p1367_p7), %v4366_v1, %v4366_v1  ;;  %v3107_v13 = vcombine.high (!%p1367_p7), %v4373_v4, %v4373_v4 }
  0xd8   : > { %2670 = vmatprep.mubr.bf16.mxu0 (!%p1367_p7), %v3101_v34  ;;  %2710 = vmatprep.mubr.bf16.mxu1 (!%p1367_p7), %v3103_v35 }
  0xd9   : > { %s4332_s10 = scalar_lea.vmem (!%p1367_p7), [#allocation2], %s3465_s9 }
  0xda   : > { %v3490_v36 = vld [vmem:[%s4332_s10 + $0x40] sm:$0xff] (!%p1367_p7)   ;;  %v3494_v40 = vld [vmem:[%s4332_s10 + $0x48] sm:$0xff] (!%p1367_p7)   ;;  %v3498_v44 = vld [vmem:[%s4332_s10 + $0x50] sm:$0xff] (!%p1367_p7)  }
  0xdb   : > { %v3491_v37 = vld [vmem:[%s4332_s10 + $0xc0] sm:$0xff] (!%p1367_p7)   ;;  %3266 = vmatprep.subr.bf16.mxu0 (!%p1367_p7), %v3490_v36  ;;  %v3495_v41 = vld [vmem:[%s4332_s10 + $0xc8] sm:$0xff] (!%p1367_p7)   ;;  %v3499_v45 = vld [vmem:[%s4332_s10 + $0xd0] sm:$0xff] (!%p1367_p7)  }
  0xdc   : > { %v3492_v38 = vld [vmem:[%s4332_s10] sm:$0xff] (!%p1367_p7)   ;;  %3288 = vmatprep.subr.bf16.mxu1 (!%p1367_p7), %v3491_v37  ;;  %v3496_v42 = vld [vmem:[%s4332_s10 + $0x8] sm:$0xff] (!%p1367_p7)   ;;  %v3500_v46 = vld [vmem:[%s4332_s10 + $0x10] sm:$0xff] (!%p1367_p7)  }
  0xdd   : > { %v3493_v39 = vld [vmem:[%s4332_s10 + $0x80] sm:$0xff]   ;;  %3267 = vmatpush3.bf16.msra.mxu0 %v3492_v38  ;;  %v3497_v43 = vld [vmem:[%s4332_s10 + $0x88] sm:$0xff]   ;;  %v3501_v47 = vld [vmem:[%s4332_s10 + $0x90] sm:$0xff]   ;;  %s4559_s18 = smov (!%p1403_p8, %s3093_s18), 2 }
  0xde   : > { %3289 = vmatpush3.bf16.msra.mxu1 %v3493_v39  ;;  %3268 = vmatprep.subr.bf16.mxu0 %v3494_v40  ;;  %v3502_v48 = vld [vmem:[%s4332_s10 + $0x58] sm:$0xff]   ;;  %v3506_v52 = vld [vmem:[%s4332_s10 + $0x60] sm:$0xff]   ;;  %v3510_v56 = vld [vmem:[%s4332_s10 + $0x68] sm:$0xff]   ;;  %s1405_s6 = scalar_lea.vmem %s4552_s2, %s4559_s18  ;;  %s1408_s9 = scalar_lea.vmem %s4553_s3, %s4559_s18 }
  0xdf   : > { %3290 = vmatprep.subr.bf16.mxu1 %v3495_v41  ;;  %v3503_v49 = vld [vmem:[%s4332_s10 + $0xd8] sm:$0xff]   ;;  %v3507_v53 = vld [vmem:[%s4332_s10 + $0xe0] sm:$0xff]   ;;  %v3511_v57 = vld [vmem:[%s4332_s10 + $0xe8] sm:$0xff]  }
  0xe0   : > { %v3504_v50 = vld [vmem:[%s4332_s10 + $0x18] sm:$0xff]   ;;  %v3508_v54 = vld [vmem:[%s4332_s10 + $0x20] sm:$0xff]   ;;  %v3512_v58 = vld [vmem:[%s4332_s10 + $0x28] sm:$0xff]  }
  0xe1   : > { %3269 = vmatpush3.bf16.msra.mxu0 %v3496_v42  ;;  %v3505_v51 = vld [vmem:[%s4332_s10 + $0x98] sm:$0xff]   ;;  %v3509_v55 = vld [vmem:[%s4332_s10 + $0xa0] sm:$0xff]   ;;  %v3513_v59 = vld [vmem:[%s4332_s10 + $0xa8] sm:$0xff]  }
  0xe2   : > { %3291 = vmatpush3.bf16.msra.mxu1 %v3497_v43  ;;  %3270 = vmatprep.subr.bf16.mxu0 %v3498_v44  ;;  %v3514_v60 = vld [vmem:[%s4332_s10 + $0x70] sm:$0xff]   ;;  %v3518_v0 = vld [vmem:[%s4332_s10 + $0x78] sm:$0xff]   ;;  %v3526_v8 = vld [vmem:[%s4332_s10 + $0x140] sm:$0xff]   ;;  %v3104_v43 = vcombine.low %v4366_v1, %v4366_v1 }
  0xe3   : > { %3292 = vmatprep.subr.bf16.mxu1 %v3499_v45  ;;  %v3515_v61 = vld [vmem:[%s4332_s10 + $0xf0] sm:$0xff]   ;;  %v3519_v2 = vld [vmem:[%s4332_s10 + $0xf8] sm:$0xff]   ;;  %v3527_v9 = vld [vmem:[%s4332_s10 + $0x100] sm:$0xff]  }
  0xe4   : > { %v3516_v62 = vld [vmem:[%s4332_s10 + $0x30] sm:$0xff]   ;;  %v3520_v3 = vld [vmem:[%s4332_s10 + $0x38] sm:$0xff]   ;;  %v3528_v11 = vld [vmem:[%s4332_s10 + $0x1c0] sm:$0xff]  }
  0xe5   : > { %3271 = vmatpush3.bf16.msra.mxu0 %v3500_v46  ;;  %v3517_v63 = vld [vmem:[%s4332_s10 + $0xb0] sm:$0xff]   ;;  %v3521_v5 = vld [vmem:[%s4332_s10 + $0xb8] sm:$0xff]   ;;  %v3529_v12 = vld [vmem:[%s4332_s10 + $0x180] sm:$0xff]   ;;  %v3106_v46 = vcombine.low %v4373_v4, %v4373_v4 }
  0xe6   : > { %3293 = vmatpush3.bf16.msra.mxu1 %v3501_v47  ;;  %3272 = vmatprep.subr.bf16.mxu0 %v3502_v48  ;;  %v3530_v14 = vld [vmem:[%s4332_s10 + $0x148] sm:$0xff]   ;;  %v3534_v18 = vld [vmem:[%s4332_s10 + $0x150] sm:$0xff]   ;;  %v3538_v22 = vld [vmem:[%s4332_s10 + $0x158] sm:$0xff]  }
  0xe7   : > { %3294 = vmatprep.subr.bf16.mxu1 %v3503_v49  ;;  %v3531_v15 = vld [vmem:[%s4332_s10 + $0x108] sm:$0xff]   ;;  %v3535_v19 = vld [vmem:[%s4332_s10 + $0x110] sm:$0xff]   ;;  %v3539_v23 = vld [vmem:[%s4332_s10 + $0x118] sm:$0xff]  }
  0xe8   : > { %v3532_v16 = vld [vmem:[%s4332_s10 + $0x1c8] sm:$0xff]   ;;  %v3536_v20 = vld [vmem:[%s4332_s10 + $0x1d0] sm:$0xff]   ;;  %v3540_v24 = vld [vmem:[%s4332_s10 + $0x1d8] sm:$0xff]  }
  0xe9   : > { %3273 = vmatpush3.bf16.msra.mxu0 %v3504_v50  ;;  %v3533_v17 = vld [vmem:[%s4332_s10 + $0x188] sm:$0xff]   ;;  %v3537_v21 = vld [vmem:[%s4332_s10 + $0x190] sm:$0xff]   ;;  %v3541_v25 = vld [vmem:[%s4332_s10 + $0x198] sm:$0xff]  }
  0xea   : > { %3295 = vmatpush3.bf16.msra.mxu1 %v3505_v51  ;;  %3274 = vmatprep.subr.bf16.mxu0 %v3506_v52  ;;  %v3542_v26 = vld [vmem:[%s4332_s10 + $0x160] sm:$0xff]   ;;  %v3546_v30 = vld [vmem:[%s4332_s10 + $0x168] sm:$0xff]   ;;  %v3550_v34 = vld [vmem:[%s4332_s10 + $0x170] sm:$0xff]  }
  0xeb   : > { %3296 = vmatprep.subr.bf16.mxu1 %v3507_v53  ;;  %v3543_v27 = vld [vmem:[%s4332_s10 + $0x120] sm:$0xff]   ;;  %v3547_v31 = vld [vmem:[%s4332_s10 + $0x128] sm:$0xff]   ;;  %v3551_v35 = vld [vmem:[%s4332_s10 + $0x130] sm:$0xff]  }
  0xec   : > { %v3544_v28 = vld [vmem:[%s4332_s10 + $0x1e0] sm:$0xff]   ;;  %v3548_v32 = vld [vmem:[%s4332_s10 + $0x1e8] sm:$0xff]   ;;  %v3552_v36 = vld [vmem:[%s4332_s10 + $0x1f0] sm:$0xff]  }
  0xed   : > { %3275 = vmatpush3.bf16.msra.mxu0 %v3508_v54  ;;  %v3545_v29 = vld [vmem:[%s4332_s10 + $0x1a0] sm:$0xff]   ;;  %v3549_v33 = vld [vmem:[%s4332_s10 + $0x1a8] sm:$0xff]   ;;  %v3553_v37 = vld [vmem:[%s4332_s10 + $0x1b0] sm:$0xff]  }
  0xee   : > { %3297 = vmatpush3.bf16.msra.mxu1 %v3509_v55  ;;  %3276 = vmatprep.subr.bf16.mxu0 %v3510_v56  ;;  %v3554_v38 = vld [vmem:[%s4332_s10 + $0x178] sm:$0xff]   ;;  %v4416_v39 = vld [vmem:[%s4550_s0 + $0x20] sm:$0xff]  ;;  %v4423_v42 = vld [vmem:[%s4550_s0 + $0x28] sm:$0xff] }
  0xef   : > { %3298 = vmatprep.subr.bf16.mxu1 %v3511_v57  ;;  %v3555_v40 = vld [vmem:[%s4332_s10 + $0x138] sm:$0xff]   ;;  %v3560_v45 = vld [vmem:[%s4332_s10 + $0x240] sm:$0xff]   ;;  %v3109_v48 = vcombine.high %v4416_v39, %v4416_v39  ;;  %v3111_v51 = vcombine.high %v4423_v42, %v4423_v42  ;;  %v3566_v52 = vld [vmem:[%s4332_s10 + $0x248] sm:$0xff]  }
  0xf0   : > { %v3556_v41 = vld [vmem:[%s4332_s10 + $0x1f8] sm:$0xff]   ;;  %v3563_v47 = vld [vmem:[%s4332_s10 + $0x200] sm:$0xff]   ;;  %v3567_v53 = vld [vmem:[%s4332_s10 + $0x208] sm:$0xff]  }
  0xf1   : > { %3277 = vmatpush3.bf16.msra.mxu0 %v3512_v58  ;;  %v3559_v44 = vld [vmem:[%s4332_s10 + $0x1b8] sm:$0xff]   ;;  %v3564_v49 = vld [vmem:[%s4332_s10 + $0x2c0] sm:$0xff]   ;;  %v3568_v54 = vld [vmem:[%s4332_s10 + $0x2c8] sm:$0xff]  }
  0xf2   : > { %3299 = vmatpush3.bf16.msra.mxu1 %v3513_v59  ;;  %3278 = vmatprep.subr.bf16.mxu0 %v3514_v60  ;;  %v3565_v50 = vld [vmem:[%s4332_s10 + $0x280] sm:$0xff]   ;;  %v3569_v55 = vld [vmem:[%s4332_s10 + $0x288] sm:$0xff]   ;;  %v3570_v56 = vld [vmem:[%s4332_s10 + $0x250] sm:$0xff]  }
  0xf3   : > { %3300 = vmatprep.subr.bf16.mxu1 %v3515_v61  ;;  %v3571_v57 = vld [vmem:[%s4332_s10 + $0x210] sm:$0xff]   ;;  %v3574_v60 = vld [vmem:[%s4332_s10 + $0x258] sm:$0xff]   ;;  %v3579_v1 = vld [vmem:[%s4332_s10 + $0x220] sm:$0xff]  }
  0xf4   : > { %v3572_v58 = vld [vmem:[%s4332_s10 + $0x2d0] sm:$0xff]   ;;  %v3575_v61 = vld [vmem:[%s4332_s10 + $0x218] sm:$0xff]   ;;  %v3582_v4 = vld [vmem:[%s4332_s10 + $0x268] sm:$0xff]  }
  0xf5   : > { %3279 = vmatpush3.bf16.msra.mxu0 %v3516_v62  ;;  %v3573_v59 = vld [vmem:[%s4332_s10 + $0x290] sm:$0xff]   ;;  %v3576_v62 = vld [vmem:[%s4332_s10 + $0x2d8] sm:$0xff]  }
  0xf6   : > { %3301 = vmatpush3.bf16.msra.mxu1 %v3517_v63  ;;  %3280 = vmatprep.subr.bf16.mxu0 %v3518_v0  ;;  %v3577_v63 = vld [vmem:[%s4332_s10 + $0x298] sm:$0xff]   ;;  %v3578_v0 = vld [vmem:[%s4332_s10 + $0x260] sm:$0xff]  }
  0xf7   : > { %3302 = vmatprep.subr.bf16.mxu1 %v3519_v2  ;;  %v3580_v2 = vld [vmem:[%s4332_s10 + $0x2e0] sm:$0xff]  }
  0xf9   : > { %3281 = vmatpush3.bf16.msra.mxu0 %v3520_v3  ;;  %v3581_v3 = vld [vmem:[%s4332_s10 + $0x2a0] sm:$0xff]  }
  0xfa   : > { %3303 = vmatpush3.bf16.msra.mxu1 %v3521_v5  ;;  %3310 = vmatprep.subr.bf16.mxu0 %v3526_v8  ;;  %v3583_v5 = vld [vmem:[%s4332_s10 + $0x228] sm:$0xff]   ;;  %v3586_v8 = vld [vmem:[%s4332_s10 + $0x270] sm:$0xff]  }
  0xfb   : > { %3332 = vmatprep.subr.bf16.mxu1 %v3528_v11  ;;  %v3589_v11 = vld [vmem:[%s4332_s10 + $0x2b0] sm:$0xff]  }
  0xfc   : > { %2671 = vmatmul.mubr.bf16.vlgmr.msra.gmra.mrb[0].mxu0 %v3100_v6  ;;  %v3584_v6 = vld [vmem:[%s4332_s10 + $0x2e8] sm:$0xff]  }
  0xfd   : > { %2711 = vmatmul.mubr.bf16.vlgmr.msra.gmra.mrb[0].mxu1 %v3102_v7  ;;  %3311 = vmatpush3.bf16.msra.mxu0 %v3527_v9  ;;  %v3585_v7 = vld [vmem:[%s4332_s10 + $0x2a8] sm:$0xff]   ;;  %v3587_v9 = vld [vmem:[%s4332_s10 + $0x230] sm:$0xff]  }
  0xfe   : > { %2750 = vmatprep.mubr.bf16.mxu0 %v3105_v10  ;;  %3333 = vmatpush3.bf16.msra.mxu1 %v3529_v12  ;;  %v3588_v10 = vld [vmem:[%s4332_s10 + $0x2f0] sm:$0xff]   ;;  %v3590_v12 = vld [vmem:[%s4332_s10 + $0x278] sm:$0xff]  }
  0xff   : > { %3312 = vmatprep.subr.bf16.mxu0 %v3530_v14  ;;  %2790 = vmatprep.mubr.bf16.mxu1 %v3107_v13  ;;  %v3591_v13 = vld [vmem:[%s4332_s10 + $0x238] sm:$0xff]  }
 0x100   : > { %3334 = vmatprep.subr.bf16.mxu1 %v3532_v16  ;;  %v3592_v14 = vld [vmem:[%s4332_s10 + $0x2f8] sm:$0xff]  }
 0x101   : > { %3313 = vmatpush3.bf16.msra.mxu0 %v3531_v15  ;;  %v3108_v15 = vcombine.low %v4416_v39, %v4416_v39  ;;  %v3595_v16 = vld [vmem:[%s4332_s10 + $0x2b8] sm:$0xff]   ;;  %v3619_v39 = vld [vmem:[%s4332_s10 + $0x328] sm:$0xff]  }
 0x102   : > { %3335 = vmatpush3.bf16.msra.mxu1 %v3533_v17  ;;  %3314 = vmatprep.subr.bf16.mxu0 %v3534_v18  ;;  %v3596_v17 = vld [vmem:[%s4332_s10 + $0x340] sm:$0xff]   ;;  %v3110_v18 = vcombine.low %v4423_v42, %v4423_v42  ;;  %v3622_v42 = vld [vmem:[%s4332_s10 + $0x370] sm:$0xff]  }
 0x103   : > { %3336 = vmatprep.subr.bf16.mxu1 %v3536_v20  ;;  %v3600_v20 = vld [vmem:[%s4332_s10 + $0x3c0] sm:$0xff]  }
 0x105   : > { %3315 = vmatpush3.bf16.msra.mxu0 %v3535_v19  ;;  %v3599_v19 = vld [vmem:[%s4332_s10 + $0x300] sm:$0xff]  }
 0x106   : > { %3337 = vmatpush3.bf16.msra.mxu1 %v3537_v21  ;;  %3316 = vmatprep.subr.bf16.mxu0 %v3538_v22  ;;  %v3601_v21 = vld [vmem:[%s4332_s10 + $0x380] sm:$0xff]   ;;  %v3602_v22 = vld [vmem:[%s4332_s10 + $0x348] sm:$0xff]  }
 0x107   : > { %3338 = vmatprep.subr.bf16.mxu1 %v3540_v24  ;;  %v3604_v24 = vld [vmem:[%s4332_s10 + $0x3c8] sm:$0xff]  }
 0x109   : > { %3317 = vmatpush3.bf16.msra.mxu0 %v3539_v23  ;;  %v3603_v23 = vld [vmem:[%s4332_s10 + $0x308] sm:$0xff]  }
 0x10a   : > { %3339 = vmatpush3.bf16.msra.mxu1 %v3541_v25  ;;  %3318 = vmatprep.subr.bf16.mxu0 %v3542_v26  ;;  %v3605_v25 = vld [vmem:[%s4332_s10 + $0x388] sm:$0xff]   ;;  %v3606_v26 = vld [vmem:[%s4332_s10 + $0x350] sm:$0xff]  }
 0x10b   : > { %3340 = vmatprep.subr.bf16.mxu1 %v3544_v28  ;;  %v3608_v28 = vld [vmem:[%s4332_s10 + $0x3d0] sm:$0xff]  }
 0x10d   : > { %3319 = vmatpush3.bf16.msra.mxu0 %v3543_v27  ;;  %v3607_v27 = vld [vmem:[%s4332_s10 + $0x310] sm:$0xff]  }
 0x10e   : > { %3341 = vmatpush3.bf16.msra.mxu1 %v3545_v29  ;;  %3320 = vmatprep.subr.bf16.mxu0 %v3546_v30  ;;  %v3609_v29 = vld [vmem:[%s4332_s10 + $0x390] sm:$0xff]   ;;  %v3610_v30 = vld [vmem:[%s4332_s10 + $0x358] sm:$0xff]  }
 0x10f   : > { %3342 = vmatprep.subr.bf16.mxu1 %v3548_v32  ;;  %v3612_v32 = vld [vmem:[%s4332_s10 + $0x3d8] sm:$0xff]  }
 0x111   : > { %3321 = vmatpush3.bf16.msra.mxu0 %v3547_v31  ;;  %v3611_v31 = vld [vmem:[%s4332_s10 + $0x318] sm:$0xff]  }
 0x112   : > { %3343 = vmatpush3.bf16.msra.mxu1 %v3549_v33  ;;  %3322 = vmatprep.subr.bf16.mxu0 %v3550_v34  ;;  %v3613_v33 = vld [vmem:[%s4332_s10 + $0x398] sm:$0xff]   ;;  %v3614_v34 = vld [vmem:[%s4332_s10 + $0x360] sm:$0xff]  }
 0x113   : > { %3344 = vmatprep.subr.bf16.mxu1 %v3552_v36  ;;  %v3616_v36 = vld [vmem:[%s4332_s10 + $0x3e0] sm:$0xff]  }
 0x115   : > { %3323 = vmatpush3.bf16.msra.mxu0 %v3551_v35  ;;  %v3615_v35 = vld [vmem:[%s4332_s10 + $0x320] sm:$0xff]  }
 0x116   : > { %3345 = vmatpush3.bf16.msra.mxu1 %v3553_v37  ;;  %3324 = vmatprep.subr.bf16.mxu0 %v3554_v38  ;;  %v3617_v37 = vld [vmem:[%s4332_s10 + $0x3a0] sm:$0xff]   ;;  %v3618_v38 = vld [vmem:[%s4332_s10 + $0x368] sm:$0xff]  }
 0x117   : > { %3346 = vmatprep.subr.bf16.mxu1 %v3556_v41  ;;  %v3621_v41 = vld [vmem:[%s4332_s10 + $0x3a8] sm:$0xff]  }
 0x119   : > { %3325 = vmatpush3.bf16.msra.mxu0 %v3555_v40  ;;  %v3620_v40 = vld [vmem:[%s4332_s10 + $0x3e8] sm:$0xff]  }
 0x11a   : > { %3347 = vmatpush3.bf16.msra.mxu1 %v3559_v44  ;;  %3354 = vmatprep.subr.bf16.mxu0 %v3560_v45  ;;  %v3624_v44 = vld [vmem:[%s4332_s10 + $0x3f0] sm:$0xff]  }
 0x11b   : > { %3376 = vmatprep.subr.bf16.mxu1 %v3564_v49  ;;  %v3625_v45 = vld [vmem:[%s4332_s10 + $0x3b0] sm:$0xff]  }
 0x11c   : > { %2751 = vmatmul.mubr.bf16.vlgmr.msra.gmra.mrb[4].mxu0 %v3104_v43  ;;  %v3623_v43 = vld [vmem:[%s4332_s10 + $0x330] sm:$0xff]  }
 0x11d   : > { %3355 = vmatpush3.bf16.msra.mxu0 %v3563_v47  ;;  %2791 = vmatmul.mubr.bf16.vlgmr.msra.gmra.mrb[4].mxu1 %v3106_v46  ;;  %v3626_v46 = vld [vmem:[%s4332_s10 + $0x378] sm:$0xff]   ;;  %v1420_v49 = vld [vmem:[%s4550_s0 + $0x30] sm:$0xff] }
 0x11e   : > { %2830 = vmatprep.mubr.bf16.mxu0 %v3109_v48  ;;  %3377 = vmatpush3.bf16.msra.mxu1 %v3565_v50  ;;  %v3627_v47 = vld [vmem:[%s4332_s10 + $0x338] sm:$0xff]   ;;  %v3112_v50 = vcombine.low %v1420_v49, %v1420_v49 }
 0x11f   : > { %3356 = vmatprep.subr.bf16.mxu0 %v3566_v52  ;;  %2870 = vmatprep.mubr.bf16.mxu1 %v3111_v51  ;;  %v3628_v48 = vld [vmem:[%s4332_s10 + $0x3f8] sm:$0xff]   ;;  %v3113_v51 = vcombine.high %v1420_v49, %v1420_v49 }
 0x120   : > { %3378 = vmatprep.subr.bf16.mxu1 %v3568_v54  ;;  %v3631_v52 = vld [vmem:[%s4332_s10 + $0x3b8] sm:$0xff]  }
 0x121   : > { %3357 = vmatpush3.bf16.msra.mxu0 %v3567_v53  ;;  %v3632_v53 = vld [vmem:[%s4332_s10 + $0x440] sm:$0xff]   ;;  %v1421_v54 = vld [vmem:[%s4550_s0 + $0x38] sm:$0xff] }
 0x122   : > { %3379 = vmatpush3.bf16.msra.mxu1 %v3569_v55  ;;  %3358 = vmatprep.subr.bf16.mxu0 %v3570_v56  ;;  %v3114_v55 = vcombine.low %v1421_v54, %v1421_v54  ;;  %v3115_v56 = vcombine.high %v1421_v54, %v1421_v54 }
 0x123   : > { %3380 = vmatprep.subr.bf16.mxu1 %v3572_v58  ;;  %v3636_v58 = vld [vmem:[%s4332_s10 + $0x448] sm:$0xff]  }
 0x125   : > { %3359 = vmatpush3.bf16.msra.mxu0 %v3571_v57  ;;  %v3635_v57 = vld [vmem:[%s4332_s10 + $0x400] sm:$0xff]  }
 0x126   : > { %3381 = vmatpush3.bf16.msra.mxu1 %v3573_v59  ;;  %3360 = vmatprep.subr.bf16.mxu0 %v3574_v60  ;;  %v3637_v59 = vld [vmem:[%s4332_s10 + $0x408] sm:$0xff]   ;;  %v3638_v60 = vld [vmem:[%s4332_s10 + $0x450] sm:$0xff]  }
 0x127   : > { %3382 = vmatprep.subr.bf16.mxu1 %v3576_v62  ;;  %v3640_v62 = vld [vmem:[%s4332_s10 + $0x458] sm:$0xff]  }
 0x129   : > { %3361 = vmatpush3.bf16.msra.mxu0 %v3575_v61  ;;  %v3639_v61 = vld [vmem:[%s4332_s10 + $0x410] sm:$0xff]  }
 0x12a   : > { %3383 = vmatpush3.bf16.msra.mxu1 %v3577_v63  ;;  %3362 = vmatprep.subr.bf16.mxu0 %v3578_v0  ;;  %v3641_v63 = vld [vmem:[%s4332_s10 + $0x418] sm:$0xff]   ;;  %v3642_v0 = vld [vmem:[%s4332_s10 + $0x460] sm:$0xff]  }
 0x12b   : > { %3384 = vmatprep.subr.bf16.mxu1 %v3580_v2  ;;  %v1422_v2 = vld [vmem:[%s4550_s0 + $0x40] sm:$0xff] }
 0x12d   : > { %3363 = vmatpush3.bf16.msra.mxu0 %v3579_v1  ;;  %v3643_v1 = vld [vmem:[%s4332_s10 + $0x420] sm:$0xff]  }
 0x12e   : > { %3385 = vmatpush3.bf16.msra.mxu1 %v3581_v3  ;;  %3364 = vmatprep.subr.bf16.mxu0 %v3582_v4  ;;  %v3644_v3 = vld [vmem:[%s4332_s10 + $0x468] sm:$0xff]   ;;  %v3117_v4 = vcombine.high %v1422_v2, %v1422_v2 }
 0x12f   : > { %3386 = vmatprep.subr.bf16.mxu1 %v3584_v6  ;;  %v3646_v6 = vld [vmem:[%s4332_s10 + $0x470] sm:$0xff]  }
 0x131   : > { %3365 = vmatpush3.bf16.msra.mxu0 %v3583_v5  ;;  %v3645_v5 = vld [vmem:[%s4332_s10 + $0x428] sm:$0xff]  }
 0x132   : > { %3387 = vmatpush3.bf16.msra.mxu1 %v3585_v7  ;;  %3366 = vmatprep.subr.bf16.mxu0 %v3586_v8  ;;  %v3647_v7 = vld [vmem:[%s4332_s10 + $0x430] sm:$0xff]   ;;  %v3648_v8 = vld [vmem:[%s4332_s10 + $0x478] sm:$0xff]  }
 0x133   : > { %3388 = vmatprep.subr.bf16.mxu1 %v3588_v10  ;;  %v3116_v10 = vcombine.low %v1422_v2, %v1422_v2 }
 0x135   : > { %3367 = vmatpush3.bf16.msra.mxu0 %v3587_v9  ;;  %v3649_v9 = vld [vmem:[%s4332_s10 + $0x438] sm:$0xff]   ;;  %s3099_s10 = sshll.u32 %s4559_s18, 3 }
 0x136   : > { %3389 = vmatpush3.bf16.msra.mxu1 %v3589_v11  ;;  %3368 = vmatprep.subr.bf16.mxu0 %v3590_v12  ;;  %s1412_s12 = scalar_lea.vmem %s4554_s4, %s3099_s10 }
 0x137   : > { %3390 = vmatprep.subr.bf16.mxu1 %v3592_v14 }
 0x139   : > { %3369 = vmatpush3.bf16.msra.mxu0 %v3591_v13 }
 0x13a   : > { %3391 = vmatpush3.bf16.msra.mxu1 %v3595_v16  ;;  %3398 = vmatprep.subr.bf16.mxu0 %v3596_v17 }
 0x13b   : > { %3420 = vmatprep.subr.bf16.mxu1 %v3600_v20 }
 0x13c   : > { %2831 = vmatmul.mubr.bf16.vlgmr.msra.gmra.mrb[8].mxu0 %v3108_v15 }
 0x13d   : > { %3399 = vmatpush3.bf16.msra.mxu0 %v3599_v19  ;;  %2871 = vmatmul.mubr.bf16.vlgmr.msra.gmra.mrb[8].mxu1 %v3110_v18 }
 0x13e   : > { %3421 = vmatpush3.bf16.msra.mxu1 %v3601_v21  ;;  %3400 = vmatprep.subr.bf16.mxu0 %v3602_v22 }
 0x13f   : > { %3422 = vmatprep.subr.bf16.mxu1 %v3604_v24  ;;  %2910 = vmatprep.mubr.bf16.mxu0 %v3113_v51 }
 0x140   : > { %2950 = vmatprep.mubr.bf16.mxu1 %v3115_v56 }
 0x141   : > { %3401 = vmatpush3.bf16.msra.mxu0 %v3603_v23 }
 0x142   : > { %3423 = vmatpush3.bf16.msra.mxu1 %v3605_v25  ;;  %3402 = vmatprep.subr.bf16.mxu0 %v3606_v26 }
 0x143   : > { %3424 = vmatprep.subr.bf16.mxu1 %v3608_v28 }
 0x145   : > { %3403 = vmatpush3.bf16.msra.mxu0 %v3607_v27 }
 0x146   : > { %3425 = vmatpush3.bf16.msra.mxu1 %v3609_v29  ;;  %3404 = vmatprep.subr.bf16.mxu0 %v3610_v30 }
 0x147   : > { %3426 = vmatprep.subr.bf16.mxu1 %v3612_v32 }
 0x149   : > { %3405 = vmatpush3.bf16.msra.mxu0 %v3611_v31 }
 0x14a   : > { %3427 = vmatpush3.bf16.msra.mxu1 %v3613_v33  ;;  %3406 = vmatprep.subr.bf16.mxu0 %v3614_v34 }
 0x14b   : > { %3428 = vmatprep.subr.bf16.mxu1 %v3616_v36 }
 0x14d   : > { %3407 = vmatpush3.bf16.msra.mxu0 %v3615_v35 }
 0x14e   : > { %3429 = vmatpush3.bf16.msra.mxu1 %v3617_v37  ;;  %3408 = vmatprep.subr.bf16.mxu0 %v3618_v38 }
 0x14f   : > { %3430 = vmatprep.subr.bf16.mxu1 %v3620_v40 }
 0x151   : > { %3409 = vmatpush3.bf16.msra.mxu0 %v3619_v39 }
 0x152   : > { %3431 = vmatpush3.bf16.msra.mxu1 %v3621_v41  ;;  %3410 = vmatprep.subr.bf16.mxu0 %v3622_v42 }
 0x153   : > { %3432 = vmatprep.subr.bf16.mxu1 %v3624_v44 }
 0x155   : > { %3411 = vmatpush3.bf16.msra.mxu0 %v3623_v43 }
 0x156   : > { %3433 = vmatpush3.bf16.msra.mxu1 %v3625_v45  ;;  %3412 = vmatprep.subr.bf16.mxu0 %v3626_v46 }
 0x157   : > { %3434 = vmatprep.subr.bf16.mxu1 %v3628_v48 }
 0x159   : > { %3413 = vmatpush3.bf16.msra.mxu0 %v3627_v47 }
 0x15a   : > { %3435 = vmatpush3.bf16.msra.mxu1 %v3631_v52  ;;  %3442 = vmatprep.subr.bf16.mxu0 %v3632_v53 }
 0x15c   : > { %2911 = vmatmul.mubr.bf16.vlgmr.msra.gmra.mrb[12].mxu0 %v3112_v50 }
 0x15d   : > { %3443 = vmatpush3.bf16.msra.mxu0 %v3635_v57  ;;  %2951 = vmatmul.mubr.bf16.vlgmr.msra.gmra.mrb[12].mxu1 %v3114_v55 }
 0x15e   : > { %3444 = vmatprep.subr.bf16.mxu0 %v3636_v58  ;;  %2990 = vmatprep.mubr.bf16.mxu0 %v3117_v4 }
 0x161   : > { %3445 = vmatpush3.bf16.msra.mxu0 %v3637_v59 }
 0x162   : > { %3446 = vmatprep.subr.bf16.mxu0 %v3638_v60 }
 0x165   : > { %3447 = vmatpush3.bf16.msra.mxu0 %v3639_v61 }
 0x166   : > { %3448 = vmatprep.subr.bf16.mxu0 %v3640_v62  ;;  %v3262_v62 = vld [vmem:[%s1405_s6] ss:$0 sm:$0xff] }
 0x169   : > { %3449 = vmatpush3.bf16.msra.mxu0 %v3641_v63 }
 0x16a   : > { %3450 = vmatprep.subr.bf16.mxu0 %v3642_v0 }
 0x16d   : > { %3451 = vmatpush3.bf16.msra.mxu0 %v3643_v1  ;;  %v3263_v1 = vld [vmem:[%s1408_s9] ss:$0 sm:$0xff] }
 0x16e   : > { %3452 = vmatprep.subr.bf16.mxu0 %v3644_v3 }
 0x171   : > { %3453 = vmatpush3.bf16.msra.mxu0 %v3645_v5 }
 0x172   : > { %3454 = vmatprep.subr.bf16.mxu0 %v3646_v6 }
 0x175   : > { %3455 = vmatpush3.bf16.msra.mxu0 %v3647_v7 }
 0x176   : > { %3456 = vmatprep.subr.bf16.mxu0 %v3648_v8 }
 0x179   : > { %3457 = vmatpush3.bf16.msra.mxu0 %v3649_v9 }
 0x17c   : > { %2991 = vmatmul.mubr.bf16.vlgmr.msra.gmra.mrb[16].mxu0 %v3116_v10 }
 0x1cf   : > { %v3282_v11 = vpop.f32.mrb[0].mxu0 }
 0x1d0   : > { %v3304_v12 = vpop.f32.mrb[0].mxu1  ;;  %v3283_v13 = vpop.f32.mrb[1].mxu0 }
 0x1d1   : > { %v3284_v14 = vadd.f32 %v3283_v13, %v3282_v11  ;;  %v3305_v15 = vpop.f32.mrb[1].mxu1  ;;  %v3285_v16 = vpop.f32.mrb[2].mxu0 }
 0x1d2   : > { %v3306_v17 = vadd.f32 %v3305_v15, %v3304_v12  ;;  %v3286_v18 = vpop.f32.mrb[3].mxu0  ;;  %v3307_v19 = vpop.f32.mrb[2].mxu1 }
 0x1d3   : > { %v3308_v20 = vpop.f32.mrb[3].mxu1 }
 0x1d4   : > { %v2713_v21 = vadd.f32 %v3306_v17, %v3284_v14 }
 0x1ef   : > { %v3326_v22 = vpop.f32.mrb[4].mxu0 }
 0x1f0   : > { %v3327_v23 = vpop.f32.mrb[5].mxu0  ;;  %v3348_v26 = vpop.f32.mrb[4].mxu1 }
 0x1f1   : > { %v3328_v24 = vadd.f32 %v3327_v23, %v3326_v22  ;;  %v3329_v25 = vpop.f32.mrb[6].mxu0  ;;  %v3349_v28 = vpop.f32.mrb[5].mxu1 }
 0x1f2   : > { %v3330_v27 = vpop.f32.mrb[7].mxu0  ;;  %v3350_v30 = vadd.f32 %v3349_v28, %v3348_v26  ;;  %v3351_v31 = vpop.f32.mrb[6].mxu1 }
 0x1f3   : > { %v2753_v29 = vadd.f32 %v3328_v24, %v2713_v21  ;;  %v3352_v32 = vpop.f32.mrb[7].mxu1 }
 0x1f5   : > { %v2793_v33 = vadd.f32 %v3350_v30, %v2753_v29 }
 0x20f   : > { %v3370_v34 = vpop.f32.mrb[8].mxu0 }
 0x210   : > { %v3371_v35 = vpop.f32.mrb[9].mxu0  ;;  %v3392_v38 = vpop.f32.mrb[8].mxu1 }
 0x211   : > { %v3372_v36 = vadd.f32 %v3371_v35, %v3370_v34  ;;  %v3373_v37 = vpop.f32.mrb[10].mxu0  ;;  %v3393_v40 = vpop.f32.mrb[9].mxu1 }
 0x212   : > { %v3374_v39 = vpop.f32.mrb[11].mxu0  ;;  %v3394_v42 = vadd.f32 %v3393_v40, %v3392_v38  ;;  %v3395_v43 = vpop.f32.mrb[10].mxu1 }
 0x213   : > { %v2833_v41 = vadd.f32 %v3372_v36, %v2793_v33  ;;  %v3396_v44 = vpop.f32.mrb[11].mxu1 }
 0x215   : > { %v2873_v45 = vadd.f32 %v3394_v42, %v2833_v41 }
 0x22f   : > { %v3414_v46 = vpop.f32.mrb[12].mxu0 }
 0x230   : > { %v3415_v47 = vpop.f32.mrb[13].mxu0  ;;  %v3436_v50 = vpop.f32.mrb[12].mxu1 }
 0x231   : > { %v3416_v48 = vadd.f32 %v3415_v47, %v3414_v46  ;;  %v3417_v49 = vpop.f32.mrb[14].mxu0  ;;  %v3437_v52 = vpop.f32.mrb[13].mxu1 }
 0x232   : > { %v3418_v51 = vpop.f32.mrb[15].mxu0  ;;  %v3438_v54 = vadd.f32 %v3437_v52, %v3436_v50  ;;  %v3439_v55 = vpop.f32.mrb[14].mxu1 }
 0x233   : > { %v2913_v53 = vadd.f32 %v3416_v48, %v2873_v45  ;;  %v3440_v56 = vpop.f32.mrb[15].mxu1 }
 0x235   : > { %v2953_v57 = vadd.f32 %v3438_v54, %v2913_v53 }
 0x24f   : > { %v3458_v58 = vpop.f32.mrb[16].mxu0 }
 0x250   : > { %v3459_v59 = vpop.f32.mrb[17].mxu0 }
 0x251   : > { %v3460_v60 = vadd.f32 %v3459_v59, %v3458_v58  ;;  %v3461_v61 = vpop.f32.mrb[18].mxu0 }
 0x252   : > { %v3462_v63 = vpop.f32.mrb[19].mxu0 }
 0x253   : > { %v2993_v0 = vadd.f32 %v3460_v60, %v2953_v57 }
 0x255   : > { %v3005_v2 = vmul.f32 %v3262_v62, %v2993_v0 }
 0x257   : > { %v3013_v3 = vadd.f32 %v3263_v1, %v3005_v2 }
 0x259   : > { %v3014_v4 = vmax.f32 %v3013_v3, 0.0 }
 0x25b   : > { %3015 = vst [vmem:[%s1412_s12] sm:$0xff] %v3014_v4 }
 0x25c PF: > { %p11_p9 = scmp.ge.s32.totalorder %s3718_s19, 5   ;;  %s4555_s15 = smov %s3670_s16 }
 0x25d   : > { %s4556_s16 = smov %s3727_s22  ;;  %s4557_s17 = smov %s3718_s19 }
 0x25e   :  { %13 = sbr.rel (!%p11_p9) target bundleno = 2 (0x2), region = 118 }

// kernel: _lambda_.8
= control target key start
LH: loop header
LB: loop body
LE: loop exit
PB: predicated region body
PF: predicated region fallthrough
CT: control target
= control target key end

     0   :  { %s5373_s15 = smov 0   ;;  %s5375_s16 = smov 0   ;;  %s6597_s0 = inlined_call_operand.vmem [shape: bf16[8,3456], index: 0, kind: input, shape index: {}]   ;;  %s6598_s1 = inlined_call_operand.vmem [shape: bf16[3456,384], index: 1, kind: input, shape index: {}]   ;;  %s6599_s2 = inlined_call_operand.vmem [shape: f32[1,384], index: 2, kind: input, shape index: {}]   ;;  %s6600_s3 = inlined_call_operand.vmem [shape: f32[1,384], index: 3, kind: input, shape index: {}]   ;;  %s6601_s4 = inlined_call_operand.vmem [shape: f32[8,384], index: 4, kind: output, shape index: {}]  }
   0x1   :  { %s5377_s17 = smov 0  }
   0x2 LB: > { %s4482_s18 = sadd.s32 4294967295, %s5344_s17   ;;  %s5390_s19 = sadd.s32 1, %s5344_s17   ;;  %s5344_s17 = sphi %s5377_s17, %s6604_s17   ;;  %s5340_s16 = sphi %s5375_s16, %s6603_s16   ;;  %s5336_s15 = sphi %s5373_s15, %s6602_s15  }
   0x3   : > { %s39_s20 = ssub.s32 %s5344_s17, %s5390_s19  ;;  %s42_s21 = sadd.s32 1, %s5340_s16 }
   0x4   : > { %p40_p0 = scmp.eq.s32.totalorder %s39_s20, 0  ;;  %p49_p1 = scmp.ne.s32.totalorder %s5340_s16, %s5336_s15 }
   0x5   : > { %p50_p2 = scmp.eq.s32.totalorder %s5344_s17, 0  ;;  %p4485_p4 = scmp.ge.s32.totalorder %s5344_s17, 3 }
   0x6   : > { %s5399_s22 = scalar_select %p40_p0, %s5340_s16, %s42_s21  }
   0x7   : > { %p51_p3 = por %p50_p2, %p49_p1  ;;  %156 = sbr.rel (%p4485_p4) target bundleno = 306 (0x132), region = 20 }
   0xe   : > { %159 = sbr.rel (!%p51_p3) target bundleno = 306 (0x132), region = 24  ;;  %s161_s23 = sand.u32 (%p51_p3), 1, %s5340_s16  }
   0xf   : > { %s4486_s24 = sshll.u32 (%p51_p3), %s5344_s17, 2  ;;  %s5051_s25 = smul.u32 (%p51_p3), 1728, %s161_s23 }
  0x10   : > { %s5407_s28 = scalar_lea.vmem (%p51_p3), %s6598_s1, %s4486_s24 }
  0x11   : > { %v181_v0 = vld [vmem:[%s5407_s28] sm:$0xf] (%p51_p3)  ;;  %v183_v1 = vld [vmem:[%s5407_s28 + $0xc] sm:$0xf] (%p51_p3)  ;;  %v185_v2 = vld [vmem:[%s5407_s28 + $0x18] sm:$0xf] (%p51_p3) }
  0x12   : > { %v187_v3 = vld [vmem:[%s5407_s28 + $0x24] sm:$0xf] (%p51_p3)  ;;  %v189_v4 = vld [vmem:[%s5407_s28 + $0x30] sm:$0xf] (%p51_p3)  ;;  %s5414_s29 = scalar_lea.vmem (%p51_p3), [#allocation2], %s5051_s25 }
  0x13   : > { %182 = vst [vmem:[%s5414_s29] sm:$0xf] (%p51_p3), %v181_v0  ;;  %184 = vst [vmem:[%s5414_s29 + $0x4] sm:$0xf] (%p51_p3), %v183_v1  ;;  %v191_v5 = vld [vmem:[%s5407_s28 + $0x3c] sm:$0xf] (%p51_p3) }
  0x14   : > { %186 = vst [vmem:[%s5414_s29 + $0x8] sm:$0xf] (%p51_p3), %v185_v2  ;;  %188 = vst [vmem:[%s5414_s29 + $0xc] sm:$0xf] (%p51_p3), %v187_v3  ;;  %v193_v6 = vld [vmem:[%s5407_s28 + $0x48] sm:$0xf] (%p51_p3) }
  0x15   : > { %190 = vst [vmem:[%s5414_s29 + $0x10] sm:$0xf] %v189_v4  ;;  %v195_v7 = vld [vmem:[%s5407_s28 + $0x54] sm:$0xf]  ;;  %192 = vst [vmem:[%s5414_s29 + $0x14] sm:$0xf] %v191_v5 }
  0x16   : > { %194 = vst [vmem:[%s5414_s29 + $0x18] sm:$0xf] %v193_v6  ;;  %196 = vst [vmem:[%s5414_s29 + $0x1c] sm:$0xf] %v195_v7  ;;  %v197_v8 = vld [vmem:[%s5407_s28 + $0x60] sm:$0xf] }
  0x17   : > { %v199_v9 = vld [vmem:[%s5407_s28 + $0x6c] sm:$0xf]  ;;  %v201_v10 = vld [vmem:[%s5407_s28 + $0x78] sm:$0xf]  ;;  %198 = vst [vmem:[%s5414_s29 + $0x20] sm:$0xf] %v197_v8 }
  0x18   : > { %200 = vst [vmem:[%s5414_s29 + $0x24] sm:$0xf] %v199_v9  ;;  %202 = vst [vmem:[%s5414_s29 + $0x28] sm:$0xf] %v201_v10  ;;  %v203_v11 = vld [vmem:[%s5407_s28 + $0x84] sm:$0xf] }
  0x19   : > { %v205_v12 = vld [vmem:[%s5407_s28 + $0x90] sm:$0xf]  ;;  %v207_v13 = vld [vmem:[%s5407_s28 + $0x9c] sm:$0xf]  ;;  %204 = vst [vmem:[%s5414_s29 + $0x2c] sm:$0xf] %v203_v11 }
  0x1a   : > { %206 = vst [vmem:[%s5414_s29 + $0x30] sm:$0xf] %v205_v12  ;;  %208 = vst [vmem:[%s5414_s29 + $0x34] sm:$0xf] %v207_v13  ;;  %v209_v14 = vld [vmem:[%s5407_s28 + $0xa8] sm:$0xf] }
  0x1b   : > { %v211_v15 = vld [vmem:[%s5407_s28 + $0xb4] sm:$0xf]  ;;  %v213_v16 = vld [vmem:[%s5407_s28 + $0xc0] sm:$0xf]  ;;  %210 = vst [vmem:[%s5414_s29 + $0x38] sm:$0xf] %v209_v14 }
  0x1c   : > { %212 = vst [vmem:[%s5414_s29 + $0x3c] sm:$0xf] %v211_v15  ;;  %214 = vst [vmem:[%s5414_s29 + $0x40] sm:$0xf] %v213_v16  ;;  %v215_v17 = vld [vmem:[%s5407_s28 + $0xcc] sm:$0xf] }
  0x1d   : > { %v217_v18 = vld [vmem:[%s5407_s28 + $0xd8] sm:$0xf]  ;;  %v219_v19 = vld [vmem:[%s5407_s28 + $0xe4] sm:$0xf]  ;;  %216 = vst [vmem:[%s5414_s29 + $0x44] sm:$0xf] %v215_v17 }
  0x1e   : > { %218 = vst [vmem:[%s5414_s29 + $0x48] sm:$0xf] %v217_v18  ;;  %220 = vst [vmem:[%s5414_s29 + $0x4c] sm:$0xf] %v219_v19  ;;  %v221_v20 = vld [vmem:[%s5407_s28 + $0xf0] sm:$0xf] }
  0x1f   : > { %v223_v21 = vld [vmem:[%s5407_s28 + $0xfc] sm:$0xf]  ;;  %v225_v22 = vld [vmem:[%s5407_s28 + $0x108] sm:$0xf]  ;;  %222 = vst [vmem:[%s5414_s29 + $0x50] sm:$0xf] %v221_v20 }
  0x20   : > { %224 = vst [vmem:[%s5414_s29 + $0x54] sm:$0xf] %v223_v21  ;;  %226 = vst [vmem:[%s5414_s29 + $0x58] sm:$0xf] %v225_v22  ;;  %v227_v23 = vld [vmem:[%s5407_s28 + $0x114] sm:$0xf] }
  0x21   : > { %v229_v24 = vld [vmem:[%s5407_s28 + $0x120] sm:$0xf]  ;;  %v231_v25 = vld [vmem:[%s5407_s28 + $0x12c] sm:$0xf]  ;;  %228 = vst [vmem:[%s5414_s29 + $0x5c] sm:$0xf] %v227_v23 }
  0x22   : > { %230 = vst [vmem:[%s5414_s29 + $0x60] sm:$0xf] %v229_v24  ;;  %232 = vst [vmem:[%s5414_s29 + $0x64] sm:$0xf] %v231_v25  ;;  %v233_v26 = vld [vmem:[%s5407_s28 + $0x138] sm:$0xf] }
  0x23   : > { %v235_v27 = vld [vmem:[%s5407_s28 + $0x144] sm:$0xf]  ;;  %v237_v28 = vld [vmem:[%s5407_s28 + $0x150] sm:$0xf]  ;;  %234 = vst [vmem:[%s5414_s29 + $0x68] sm:$0xf] %v233_v26 }
  0x24   : > { %236 = vst [vmem:[%s5414_s29 + $0x6c] sm:$0xf] %v235_v27  ;;  %238 = vst [vmem:[%s5414_s29 + $0x70] sm:$0xf] %v237_v28  ;;  %v239_v29 = vld [vmem:[%s5407_s28 + $0x15c] sm:$0xf] }
  0x25   : > { %v241_v30 = vld [vmem:[%s5407_s28 + $0x168] sm:$0xf]  ;;  %v243_v31 = vld [vmem:[%s5407_s28 + $0x174] sm:$0xf]  ;;  %240 = vst [vmem:[%s5414_s29 + $0x74] sm:$0xf] %v239_v29 }
  0x26   : > { %242 = vst [vmem:[%s5414_s29 + $0x78] sm:$0xf] %v241_v30  ;;  %244 = vst [vmem:[%s5414_s29 + $0x7c] sm:$0xf] %v243_v31  ;;  %v245_v32 = vld [vmem:[%s5407_s28 + $0x180] sm:$0xf] }
  0x27   : > { %v247_v33 = vld [vmem:[%s5407_s28 + $0x18c] sm:$0xf]  ;;  %v249_v34 = vld [vmem:[%s5407_s28 + $0x198] sm:$0xf]  ;;  %246 = vst [vmem:[%s5414_s29 + $0x80] sm:$0xf] %v245_v32 }
  0x28   : > { %248 = vst [vmem:[%s5414_s29 + $0x84] sm:$0xf] %v247_v33  ;;  %250 = vst [vmem:[%s5414_s29 + $0x88] sm:$0xf] %v249_v34  ;;  %v251_v35 = vld [vmem:[%s5407_s28 + $0x1a4] sm:$0xf] }
  0x29   : > { %v253_v36 = vld [vmem:[%s5407_s28 + $0x1b0] sm:$0xf]  ;;  %v255_v37 = vld [vmem:[%s5407_s28 + $0x1bc] sm:$0xf]  ;;  %252 = vst [vmem:[%s5414_s29 + $0x8c] sm:$0xf] %v251_v35 }
  0x2a   : > { %254 = vst [vmem:[%s5414_s29 + $0x90] sm:$0xf] %v253_v36  ;;  %256 = vst [vmem:[%s5414_s29 + $0x94] sm:$0xf] %v255_v37  ;;  %v257_v38 = vld [vmem:[%s5407_s28 + $0x1c8] sm:$0xf] }
  0x2b   : > { %v259_v39 = vld [vmem:[%s5407_s28 + $0x1d4] sm:$0xf]  ;;  %v261_v40 = vld [vmem:[%s5407_s28 + $0x1e0] sm:$0xf]  ;;  %258 = vst [vmem:[%s5414_s29 + $0x98] sm:$0xf] %v257_v38 }
  0x2c   : > { %260 = vst [vmem:[%s5414_s29 + $0x9c] sm:$0xf] %v259_v39  ;;  %262 = vst [vmem:[%s5414_s29 + $0xa0] sm:$0xf] %v261_v40  ;;  %v263_v41 = vld [vmem:[%s5407_s28 + $0x1ec] sm:$0xf] }
  0x2d   : > { %v265_v42 = vld [vmem:[%s5407_s28 + $0x1f8] sm:$0xf]  ;;  %v267_v43 = vld [vmem:[%s5407_s28 + $0x204] sm:$0xf]  ;;  %264 = vst [vmem:[%s5414_s29 + $0xa4] sm:$0xf] %v263_v41 }
  0x2e   : > { %266 = vst [vmem:[%s5414_s29 + $0xa8] sm:$0xf] %v265_v42  ;;  %268 = vst [vmem:[%s5414_s29 + $0xac] sm:$0xf] %v267_v43  ;;  %v269_v44 = vld [vmem:[%s5407_s28 + $0x210] sm:$0xf] }
  0x2f   : > { %v271_v45 = vld [vmem:[%s5407_s28 + $0x21c] sm:$0xf]  ;;  %v273_v46 = vld [vmem:[%s5407_s28 + $0x228] sm:$0xf]  ;;  %270 = vst [vmem:[%s5414_s29 + $0xb0] sm:$0xf] %v269_v44 }
  0x30   : > { %272 = vst [vmem:[%s5414_s29 + $0xb4] sm:$0xf] %v271_v45  ;;  %274 = vst [vmem:[%s5414_s29 + $0xb8] sm:$0xf] %v273_v46  ;;  %v275_v47 = vld [vmem:[%s5407_s28 + $0x234] sm:$0xf] }
  0x31   : > { %v277_v48 = vld [vmem:[%s5407_s28 + $0x240] sm:$0xf]  ;;  %v279_v49 = vld [vmem:[%s5407_s28 + $0x24c] sm:$0xf]  ;;  %276 = vst [vmem:[%s5414_s29 + $0xbc] sm:$0xf] %v275_v47 }
  0x32   : > { %278 = vst [vmem:[%s5414_s29 + $0xc0] sm:$0xf] %v277_v48  ;;  %280 = vst [vmem:[%s5414_s29 + $0xc4] sm:$0xf] %v279_v49  ;;  %v281_v50 = vld [vmem:[%s5407_s28 + $0x258] sm:$0xf] }
  0x33   : > { %v283_v51 = vld [vmem:[%s5407_s28 + $0x264] sm:$0xf]  ;;  %v285_v52 = vld [vmem:[%s5407_s28 + $0x270] sm:$0xf]  ;;  %282 = vst [vmem:[%s5414_s29 + $0xc8] sm:$0xf] %v281_v50 }
  0x34   : > { %284 = vst [vmem:[%s5414_s29 + $0xcc] sm:$0xf] %v283_v51  ;;  %286 = vst [vmem:[%s5414_s29 + $0xd0] sm:$0xf] %v285_v52  ;;  %v287_v53 = vld [vmem:[%s5407_s28 + $0x27c] sm:$0xf] }
  0x35   : > { %v289_v54 = vld [vmem:[%s5407_s28 + $0x288] sm:$0xf]  ;;  %v291_v55 = vld [vmem:[%s5407_s28 + $0x294] sm:$0xf]  ;;  %288 = vst [vmem:[%s5414_s29 + $0xd4] sm:$0xf] %v287_v53 }
  0x36   : > { %290 = vst [vmem:[%s5414_s29 + $0xd8] sm:$0xf] %v289_v54  ;;  %292 = vst [vmem:[%s5414_s29 + $0xdc] sm:$0xf] %v291_v55  ;;  %v293_v56 = vld [vmem:[%s5407_s28 + $0x2a0] sm:$0xf] }
  0x37   : > { %v295_v57 = vld [vmem:[%s5407_s28 + $0x2ac] sm:$0xf]  ;;  %v297_v58 = vld [vmem:[%s5407_s28 + $0x2b8] sm:$0xf]  ;;  %294 = vst [vmem:[%s5414_s29 + $0xe0] sm:$0xf] %v293_v56 }
  0x38   : > { %296 = vst [vmem:[%s5414_s29 + $0xe4] sm:$0xf] %v295_v57  ;;  %298 = vst [vmem:[%s5414_s29 + $0xe8] sm:$0xf] %v297_v58  ;;  %v299_v59 = vld [vmem:[%s5407_s28 + $0x2c4] sm:$0xf] }
  0x39   : > { %v301_v60 = vld [vmem:[%s5407_s28 + $0x2d0] sm:$0xf]  ;;  %v303_v61 = vld [vmem:[%s5407_s28 + $0x2dc] sm:$0xf]  ;;  %300 = vst [vmem:[%s5414_s29 + $0xec] sm:$0xf] %v299_v59 }
  0x3a   : > { %302 = vst [vmem:[%s5414_s29 + $0xf0] sm:$0xf] %v301_v60  ;;  %304 = vst [vmem:[%s5414_s29 + $0xf4] sm:$0xf] %v303_v61  ;;  %v305_v62 = vld [vmem:[%s5407_s28 + $0x2e8] sm:$0xf] }
  0x3b   : > { %v307_v63 = vld [vmem:[%s5407_s28 + $0x2f4] sm:$0xf]  ;;  %v309_v0 = vld [vmem:[%s5407_s28 + $0x300] sm:$0xf]  ;;  %306 = vst [vmem:[%s5414_s29 + $0xf8] sm:$0xf] %v305_v62 }
  0x3c   : > { %308 = vst [vmem:[%s5414_s29 + $0xfc] sm:$0xf] %v307_v63  ;;  %310 = vst [vmem:[%s5414_s29 + $0x100] sm:$0xf] %v309_v0  ;;  %v311_v1 = vld [vmem:[%s5407_s28 + $0x30c] sm:$0xf] }
  0x3d   : > { %v313_v2 = vld [vmem:[%s5407_s28 + $0x318] sm:$0xf]  ;;  %v315_v3 = vld [vmem:[%s5407_s28 + $0x324] sm:$0xf]  ;;  %312 = vst [vmem:[%s5414_s29 + $0x104] sm:$0xf] %v311_v1 }
  0x3e   : > { %314 = vst [vmem:[%s5414_s29 + $0x108] sm:$0xf] %v313_v2  ;;  %316 = vst [vmem:[%s5414_s29 + $0x10c] sm:$0xf] %v315_v3  ;;  %v317_v4 = vld [vmem:[%s5407_s28 + $0x330] sm:$0xf] }
  0x3f   : > { %v319_v5 = vld [vmem:[%s5407_s28 + $0x33c] sm:$0xf]  ;;  %v321_v6 = vld [vmem:[%s5407_s28 + $0x348] sm:$0xf]  ;;  %318 = vst [vmem:[%s5414_s29 + $0x110] sm:$0xf] %v317_v4 }
  0x40   : > { %320 = vst [vmem:[%s5414_s29 + $0x114] sm:$0xf] %v319_v5  ;;  %322 = vst [vmem:[%s5414_s29 + $0x118] sm:$0xf] %v321_v6  ;;  %v323_v7 = vld [vmem:[%s5407_s28 + $0x354] sm:$0xf] }
  0x41   : > { %v325_v8 = vld [vmem:[%s5407_s28 + $0x360] sm:$0xf]  ;;  %v327_v9 = vld [vmem:[%s5407_s28 + $0x36c] sm:$0xf]  ;;  %324 = vst [vmem:[%s5414_s29 + $0x11c] sm:$0xf] %v323_v7 }
  0x42   : > { %326 = vst [vmem:[%s5414_s29 + $0x120] sm:$0xf] %v325_v8  ;;  %328 = vst [vmem:[%s5414_s29 + $0x124] sm:$0xf] %v327_v9  ;;  %v329_v10 = vld [vmem:[%s5407_s28 + $0x378] sm:$0xf] }
  0x43   : > { %v331_v11 = vld [vmem:[%s5407_s28 + $0x384] sm:$0xf]  ;;  %v333_v12 = vld [vmem:[%s5407_s28 + $0x390] sm:$0xf]  ;;  %330 = vst [vmem:[%s5414_s29 + $0x128] sm:$0xf] %v329_v10 }
  0x44   : > { %332 = vst [vmem:[%s5414_s29 + $0x12c] sm:$0xf] %v331_v11  ;;  %334 = vst [vmem:[%s5414_s29 + $0x130] sm:$0xf] %v333_v12  ;;  %v335_v13 = vld [vmem:[%s5407_s28 + $0x39c] sm:$0xf] }
  0x45   : > { %v337_v14 = vld [vmem:[%s5407_s28 + $0x3a8] sm:$0xf]  ;;  %v339_v15 = vld [vmem:[%s5407_s28 + $0x3b4] sm:$0xf]  ;;  %336 = vst [vmem:[%s5414_s29 + $0x134] sm:$0xf] %v335_v13 }
  0x46   : > { %338 = vst [vmem:[%s5414_s29 + $0x138] sm:$0xf] %v337_v14  ;;  %340 = vst [vmem:[%s5414_s29 + $0x13c] sm:$0xf] %v339_v15  ;;  %v341_v16 = vld [vmem:[%s5407_s28 + $0x3c0] sm:$0xf] }
  0x47   : > { %v343_v17 = vld [vmem:[%s5407_s28 + $0x3cc] sm:$0xf]  ;;  %v345_v18 = vld [vmem:[%s5407_s28 + $0x3d8] sm:$0xf]  ;;  %342 = vst [vmem:[%s5414_s29 + $0x140] sm:$0xf] %v341_v16 }
  0x48   : > { %344 = vst [vmem:[%s5414_s29 + $0x144] sm:$0xf] %v343_v17  ;;  %346 = vst [vmem:[%s5414_s29 + $0x148] sm:$0xf] %v345_v18  ;;  %v347_v19 = vld [vmem:[%s5407_s28 + $0x3e4] sm:$0xf] }
  0x49   : > { %v349_v20 = vld [vmem:[%s5407_s28 + $0x3f0] sm:$0xf]  ;;  %v351_v21 = vld [vmem:[%s5407_s28 + $0x3fc] sm:$0xf]  ;;  %348 = vst [vmem:[%s5414_s29 + $0x14c] sm:$0xf] %v347_v19 }
  0x4a   : > { %350 = vst [vmem:[%s5414_s29 + $0x150] sm:$0xf] %v349_v20  ;;  %352 = vst [vmem:[%s5414_s29 + $0x154] sm:$0xf] %v351_v21  ;;  %v353_v22 = vld [vmem:[%s5407_s28 + $0x408] sm:$0xf] }
  0x4b   : > { %v355_v23 = vld [vmem:[%s5407_s28 + $0x414] sm:$0xf]  ;;  %v357_v24 = vld [vmem:[%s5407_s28 + $0x420] sm:$0xf]  ;;  %354 = vst [vmem:[%s5414_s29 + $0x158] sm:$0xf] %v353_v22 }
  0x4c   : > { %356 = vst [vmem:[%s5414_s29 + $0x15c] sm:$0xf] %v355_v23  ;;  %358 = vst [vmem:[%s5414_s29 + $0x160] sm:$0xf] %v357_v24  ;;  %v359_v25 = vld [vmem:[%s5407_s28 + $0x42c] sm:$0xf] }
  0x4d   : > { %v361_v26 = vld [vmem:[%s5407_s28 + $0x438] sm:$0xf]  ;;  %v363_v27 = vld [vmem:[%s5407_s28 + $0x444] sm:$0xf]  ;;  %360 = vst [vmem:[%s5414_s29 + $0x164] sm:$0xf] %v359_v25 }
  0x4e   : > { %362 = vst [vmem:[%s5414_s29 + $0x168] sm:$0xf] %v361_v26  ;;  %364 = vst [vmem:[%s5414_s29 + $0x16c] sm:$0xf] %v363_v27  ;;  %v365_v28 = vld [vmem:[%s5407_s28 + $0x450] sm:$0xf] }
  0x4f   : > { %v367_v29 = vld [vmem:[%s5407_s28 + $0x45c] sm:$0xf]  ;;  %v369_v30 = vld [vmem:[%s5407_s28 + $0x468] sm:$0xf]  ;;  %366 = vst [vmem:[%s5414_s29 + $0x170] sm:$0xf] %v365_v28 }
  0x50   : > { %368 = vst [vmem:[%s5414_s29 + $0x174] sm:$0xf] %v367_v29  ;;  %370 = vst [vmem:[%s5414_s29 + $0x178] sm:$0xf] %v369_v30  ;;  %v371_v31 = vld [vmem:[%s5407_s28 + $0x474] sm:$0xf] }
  0x51   : > { %v373_v32 = vld [vmem:[%s5407_s28 + $0x480] sm:$0xf]  ;;  %v375_v33 = vld [vmem:[%s5407_s28 + $0x48c] sm:$0xf]  ;;  %372 = vst [vmem:[%s5414_s29 + $0x17c] sm:$0xf] %v371_v31 }
  0x52   : > { %374 = vst [vmem:[%s5414_s29 + $0x180] sm:$0xf] %v373_v32  ;;  %376 = vst [vmem:[%s5414_s29 + $0x184] sm:$0xf] %v375_v33  ;;  %v377_v34 = vld [vmem:[%s5407_s28 + $0x498] sm:$0xf] }
  0x53   : > { %v379_v35 = vld [vmem:[%s5407_s28 + $0x4a4] sm:$0xf]  ;;  %v381_v36 = vld [vmem:[%s5407_s28 + $0x4b0] sm:$0xf]  ;;  %378 = vst [vmem:[%s5414_s29 + $0x188] sm:$0xf] %v377_v34 }
  0x54   : > { %380 = vst [vmem:[%s5414_s29 + $0x18c] sm:$0xf] %v379_v35  ;;  %382 = vst [vmem:[%s5414_s29 + $0x190] sm:$0xf] %v381_v36  ;;  %v383_v37 = vld [vmem:[%s5407_s28 + $0x4bc] sm:$0xf] }
  0x55   : > { %v385_v38 = vld [vmem:[%s5407_s28 + $0x4c8] sm:$0xf]  ;;  %v387_v39 = vld [vmem:[%s5407_s28 + $0x4d4] sm:$0xf]  ;;  %384 = vst [vmem:[%s5414_s29 + $0x194] sm:$0xf] %v383_v37 }
  0x56   : > { %386 = vst [vmem:[%s5414_s29 + $0x198] sm:$0xf] %v385_v38  ;;  %388 = vst [vmem:[%s5414_s29 + $0x19c] sm:$0xf] %v387_v39  ;;  %v389_v40 = vld [vmem:[%s5407_s28 + $0x4e0] sm:$0xf] }
  0x57   : > { %v391_v41 = vld [vmem:[%s5407_s28 + $0x4ec] sm:$0xf]  ;;  %v393_v42 = vld [vmem:[%s5407_s28 + $0x4f8] sm:$0xf]  ;;  %390 = vst [vmem:[%s5414_s29 + $0x1a0] sm:$0xf] %v389_v40 }
  0x58   : > { %392 = vst [vmem:[%s5414_s29 + $0x1a4] sm:$0xf] %v391_v41  ;;  %394 = vst [vmem:[%s5414_s29 + $0x1a8] sm:$0xf] %v393_v42  ;;  %v395_v43 = vld [vmem:[%s5407_s28 + $0x504] sm:$0xf] }
  0x59   : > { %v397_v44 = vld [vmem:[%s5407_s28 + $0x510] sm:$0xf]  ;;  %v399_v45 = vld [vmem:[%s5407_s28 + $0x51c] sm:$0xf]  ;;  %396 = vst [vmem:[%s5414_s29 + $0x1ac] sm:$0xf] %v395_v43 }
  0x5a   : > { %398 = vst [vmem:[%s5414_s29 + $0x1b0] sm:$0xf] %v397_v44  ;;  %400 = vst [vmem:[%s5414_s29 + $0x1b4] sm:$0xf] %v399_v45  ;;  %v401_v46 = vld [vmem:[%s5407_s28 + $0x528] sm:$0xf] }
  0x5b   : > { %v403_v47 = vld [vmem:[%s5407_s28 + $0x534] sm:$0xf]  ;;  %v405_v48 = vld [vmem:[%s5407_s28 + $0x540] sm:$0xf]  ;;  %402 = vst [vmem:[%s5414_s29 + $0x1b8] sm:$0xf] %v401_v46 }
  0x5c   : > { %404 = vst [vmem:[%s5414_s29 + $0x1bc] sm:$0xf] %v403_v47  ;;  %406 = vst [vmem:[%s5414_s29 + $0x1c0] sm:$0xf] %v405_v48  ;;  %v407_v49 = vld [vmem:[%s5407_s28 + $0x54c] sm:$0xf] }
  0x5d   : > { %v409_v50 = vld [vmem:[%s5407_s28 + $0x558] sm:$0xf]  ;;  %v411_v51 = vld [vmem:[%s5407_s28 + $0x564] sm:$0xf]  ;;  %408 = vst [vmem:[%s5414_s29 + $0x1c4] sm:$0xf] %v407_v49 }
  0x5e   : > { %410 = vst [vmem:[%s5414_s29 + $0x1c8] sm:$0xf] %v409_v50  ;;  %412 = vst [vmem:[%s5414_s29 + $0x1cc] sm:$0xf] %v411_v51  ;;  %v413_v52 = vld [vmem:[%s5407_s28 + $0x570] sm:$0xf] }
  0x5f   : > { %v415_v53 = vld [vmem:[%s5407_s28 + $0x57c] sm:$0xf]  ;;  %v417_v54 = vld [vmem:[%s5407_s28 + $0x588] sm:$0xf]  ;;  %414 = vst [vmem:[%s5414_s29 + $0x1d0] sm:$0xf] %v413_v52 }
  0x60   : > { %416 = vst [vmem:[%s5414_s29 + $0x1d4] sm:$0xf] %v415_v53  ;;  %418 = vst [vmem:[%s5414_s29 + $0x1d8] sm:$0xf] %v417_v54  ;;  %v419_v55 = vld [vmem:[%s5407_s28 + $0x594] sm:$0xf] }
  0x61   : > { %v421_v56 = vld [vmem:[%s5407_s28 + $0x5a0] sm:$0xf]  ;;  %v423_v57 = vld [vmem:[%s5407_s28 + $0x5ac] sm:$0xf]  ;;  %420 = vst [vmem:[%s5414_s29 + $0x1dc] sm:$0xf] %v419_v55 }
  0x62   : > { %422 = vst [vmem:[%s5414_s29 + $0x1e0] sm:$0xf] %v421_v56  ;;  %424 = vst [vmem:[%s5414_s29 + $0x1e4] sm:$0xf] %v423_v57  ;;  %v425_v58 = vld [vmem:[%s5407_s28 + $0x5b8] sm:$0xf] }
  0x63   : > { %v427_v59 = vld [vmem:[%s5407_s28 + $0x5c4] sm:$0xf]  ;;  %v429_v60 = vld [vmem:[%s5407_s28 + $0x5d0] sm:$0xf]  ;;  %426 = vst [vmem:[%s5414_s29 + $0x1e8] sm:$0xf] %v425_v58 }
  0x64   : > { %428 = vst [vmem:[%s5414_s29 + $0x1ec] sm:$0xf] %v427_v59  ;;  %430 = vst [vmem:[%s5414_s29 + $0x1f0] sm:$0xf] %v429_v60  ;;  %v431_v61 = vld [vmem:[%s5407_s28 + $0x5dc] sm:$0xf] }
  0x65   : > { %v433_v62 = vld [vmem:[%s5407_s28 + $0x5e8] sm:$0xf]  ;;  %v435_v63 = vld [vmem:[%s5407_s28 + $0x5f4] sm:$0xf]  ;;  %432 = vst [vmem:[%s5414_s29 + $0x1f4] sm:$0xf] %v431_v61 }
  0x66   : > { %434 = vst [vmem:[%s5414_s29 + $0x1f8] sm:$0xf] %v433_v62  ;;  %436 = vst [vmem:[%s5414_s29 + $0x1fc] sm:$0xf] %v435_v63  ;;  %v437_v0 = vld [vmem:[%s5407_s28 + $0x600] sm:$0xf] }
  0x67   : > { %v439_v1 = vld [vmem:[%s5407_s28 + $0x60c] sm:$0xf]  ;;  %v441_v2 = vld [vmem:[%s5407_s28 + $0x618] sm:$0xf]  ;;  %438 = vst [vmem:[%s5414_s29 + $0x200] sm:$0xf] %v437_v0 }
  0x68   : > { %440 = vst [vmem:[%s5414_s29 + $0x204] sm:$0xf] %v439_v1  ;;  %442 = vst [vmem:[%s5414_s29 + $0x208] sm:$0xf] %v441_v2  ;;  %v443_v3 = vld [vmem:[%s5407_s28 + $0x624] sm:$0xf] }
  0x69   : > { %v445_v4 = vld [vmem:[%s5407_s28 + $0x630] sm:$0xf]  ;;  %v447_v5 = vld [vmem:[%s5407_s28 + $0x63c] sm:$0xf]  ;;  %444 = vst [vmem:[%s5414_s29 + $0x20c] sm:$0xf] %v443_v3 }
  0x6a   : > { %446 = vst [vmem:[%s5414_s29 + $0x210] sm:$0xf] %v445_v4  ;;  %448 = vst [vmem:[%s5414_s29 + $0x214] sm:$0xf] %v447_v5  ;;  %v449_v6 = vld [vmem:[%s5407_s28 + $0x648] sm:$0xf] }
  0x6b   : > { %v451_v7 = vld [vmem:[%s5407_s28 + $0x654] sm:$0xf]  ;;  %v453_v8 = vld [vmem:[%s5407_s28 + $0x660] sm:$0xf]  ;;  %450 = vst [vmem:[%s5414_s29 + $0x218] sm:$0xf] %v449_v6 }
  0x6c   : > { %452 = vst [vmem:[%s5414_s29 + $0x21c] sm:$0xf] %v451_v7  ;;  %454 = vst [vmem:[%s5414_s29 + $0x220] sm:$0xf] %v453_v8  ;;  %v455_v9 = vld [vmem:[%s5407_s28 + $0x66c] sm:$0xf] }
  0x6d   : > { %v457_v10 = vld [vmem:[%s5407_s28 + $0x678] sm:$0xf]  ;;  %v459_v11 = vld [vmem:[%s5407_s28 + $0x684] sm:$0xf]  ;;  %456 = vst [vmem:[%s5414_s29 + $0x224] sm:$0xf] %v455_v9 }
  0x6e   : > { %458 = vst [vmem:[%s5414_s29 + $0x228] sm:$0xf] %v457_v10  ;;  %460 = vst [vmem:[%s5414_s29 + $0x22c] sm:$0xf] %v459_v11  ;;  %v461_v12 = vld [vmem:[%s5407_s28 + $0x690] sm:$0xf] }
  0x6f   : > { %v463_v13 = vld [vmem:[%s5407_s28 + $0x69c] sm:$0xf]  ;;  %v465_v14 = vld [vmem:[%s5407_s28 + $0x6a8] sm:$0xf]  ;;  %462 = vst [vmem:[%s5414_s29 + $0x230] sm:$0xf] %v461_v12 }
  0x70   : > { %464 = vst [vmem:[%s5414_s29 + $0x234] sm:$0xf] %v463_v13  ;;  %466 = vst [vmem:[%s5414_s29 + $0x238] sm:$0xf] %v465_v14  ;;  %v467_v15 = vld [vmem:[%s5407_s28 + $0x6b4] sm:$0xf] }
  0x71   : > { %v469_v16 = vld [vmem:[%s5407_s28 + $0x6c0] sm:$0xf]  ;;  %v471_v17 = vld [vmem:[%s5407_s28 + $0x6cc] sm:$0xf]  ;;  %468 = vst [vmem:[%s5414_s29 + $0x23c] sm:$0xf] %v467_v15 }
  0x72   : > { %470 = vst [vmem:[%s5414_s29 + $0x240] sm:$0xf] %v469_v16  ;;  %472 = vst [vmem:[%s5414_s29 + $0x244] sm:$0xf] %v471_v17  ;;  %v473_v18 = vld [vmem:[%s5407_s28 + $0x6d8] sm:$0xf] }
  0x73   : > { %v475_v19 = vld [vmem:[%s5407_s28 + $0x6e4] sm:$0xf]  ;;  %v477_v20 = vld [vmem:[%s5407_s28 + $0x6f0] sm:$0xf]  ;;  %474 = vst [vmem:[%s5414_s29 + $0x248] sm:$0xf] %v473_v18 }
  0x74   : > { %476 = vst [vmem:[%s5414_s29 + $0x24c] sm:$0xf] %v475_v19  ;;  %478 = vst [vmem:[%s5414_s29 + $0x250] sm:$0xf] %v477_v20  ;;  %v479_v21 = vld [vmem:[%s5407_s28 + $0x6fc] sm:$0xf] }
  0x75   : > { %v481_v22 = vld [vmem:[%s5407_s28 + $0x708] sm:$0xf]  ;;  %v483_v23 = vld [vmem:[%s5407_s28 + $0x714] sm:$0xf]  ;;  %480 = vst [vmem:[%s5414_s29 + $0x254] sm:$0xf] %v479_v21 }
  0x76   : > { %482 = vst [vmem:[%s5414_s29 + $0x258] sm:$0xf] %v481_v22  ;;  %484 = vst [vmem:[%s5414_s29 + $0x25c] sm:$0xf] %v483_v23  ;;  %v485_v24 = vld [vmem:[%s5407_s28 + $0x720] sm:$0xf] }
  0x77   : > { %v487_v25 = vld [vmem:[%s5407_s28 + $0x72c] sm:$0xf]  ;;  %v489_v26 = vld [vmem:[%s5407_s28 + $0x738] sm:$0xf]  ;;  %486 = vst [vmem:[%s5414_s29 + $0x260] sm:$0xf] %v485_v24 }
  0x78   : > { %488 = vst [vmem:[%s5414_s29 + $0x264] sm:$0xf] %v487_v25  ;;  %490 = vst [vmem:[%s5414_s29 + $0x268] sm:$0xf] %v489_v26  ;;  %v491_v27 = vld [vmem:[%s5407_s28 + $0x744] sm:$0xf] }
  0x79   : > { %v493_v28 = vld [vmem:[%s5407_s28 + $0x750] sm:$0xf]  ;;  %v495_v29 = vld [vmem:[%s5407_s28 + $0x75c] sm:$0xf]  ;;  %492 = vst [vmem:[%s5414_s29 + $0x26c] sm:$0xf] %v491_v27 }
  0x7a   : > { %494 = vst [vmem:[%s5414_s29 + $0x270] sm:$0xf] %v493_v28  ;;  %496 = vst [vmem:[%s5414_s29 + $0x274] sm:$0xf] %v495_v29  ;;  %v497_v30 = vld [vmem:[%s5407_s28 + $0x768] sm:$0xf] }
  0x7b   : > { %v499_v31 = vld [vmem:[%s5407_s28 + $0x774] sm:$0xf]  ;;  %v501_v32 = vld [vmem:[%s5407_s28 + $0x780] sm:$0xf]  ;;  %498 = vst [vmem:[%s5414_s29 + $0x278] sm:$0xf] %v497_v30 }
  0x7c   : > { %500 = vst [vmem:[%s5414_s29 + $0x27c] sm:$0xf] %v499_v31  ;;  %502 = vst [vmem:[%s5414_s29 + $0x280] sm:$0xf] %v501_v32  ;;  %v503_v33 = vld [vmem:[%s5407_s28 + $0x78c] sm:$0xf] }
  0x7d   : > { %v505_v34 = vld [vmem:[%s5407_s28 + $0x798] sm:$0xf]  ;;  %v507_v35 = vld [vmem:[%s5407_s28 + $0x7a4] sm:$0xf]  ;;  %504 = vst [vmem:[%s5414_s29 + $0x284] sm:$0xf] %v503_v33 }
  0x7e   : > { %506 = vst [vmem:[%s5414_s29 + $0x288] sm:$0xf] %v505_v34  ;;  %508 = vst [vmem:[%s5414_s29 + $0x28c] sm:$0xf] %v507_v35  ;;  %v509_v36 = vld [vmem:[%s5407_s28 + $0x7b0] sm:$0xf] }
  0x7f   : > { %v511_v37 = vld [vmem:[%s5407_s28 + $0x7bc] sm:$0xf]  ;;  %v513_v38 = vld [vmem:[%s5407_s28 + $0x7c8] sm:$0xf]  ;;  %510 = vst [vmem:[%s5414_s29 + $0x290] sm:$0xf] %v509_v36 }
  0x80   : > { %512 = vst [vmem:[%s5414_s29 + $0x294] sm:$0xf] %v511_v37  ;;  %514 = vst [vmem:[%s5414_s29 + $0x298] sm:$0xf] %v513_v38  ;;  %v515_v39 = vld [vmem:[%s5407_s28 + $0x7d4] sm:$0xf] }
  0x81   : > { %v517_v40 = vld [vmem:[%s5407_s28 + $0x7e0] sm:$0xf]  ;;  %v519_v41 = vld [vmem:[%s5407_s28 + $0x7ec] sm:$0xf]  ;;  %516 = vst [vmem:[%s5414_s29 + $0x29c] sm:$0xf] %v515_v39 }
  0x82   : > { %518 = vst [vmem:[%s5414_s29 + $0x2a0] sm:$0xf] %v517_v40  ;;  %520 = vst [vmem:[%s5414_s29 + $0x2a4] sm:$0xf] %v519_v41  ;;  %v521_v42 = vld [vmem:[%s5407_s28 + $0x7f8] sm:$0xf] }
  0x83   : > { %v523_v43 = vld [vmem:[%s5407_s28 + $0x804] sm:$0xf]  ;;  %v525_v44 = vld [vmem:[%s5407_s28 + $0x810] sm:$0xf]  ;;  %522 = vst [vmem:[%s5414_s29 + $0x2a8] sm:$0xf] %v521_v42 }
  0x84   : > { %524 = vst [vmem:[%s5414_s29 + $0x2ac] sm:$0xf] %v523_v43  ;;  %526 = vst [vmem:[%s5414_s29 + $0x2b0] sm:$0xf] %v525_v44  ;;  %v527_v45 = vld [vmem:[%s5407_s28 + $0x81c] sm:$0xf] }
  0x85   : > { %v529_v46 = vld [vmem:[%s5407_s28 + $0x828] sm:$0xf]  ;;  %v531_v47 = vld [vmem:[%s5407_s28 + $0x834] sm:$0xf]  ;;  %528 = vst [vmem:[%s5414_s29 + $0x2b4] sm:$0xf] %v527_v45 }
  0x86   : > { %530 = vst [vmem:[%s5414_s29 + $0x2b8] sm:$0xf] %v529_v46  ;;  %532 = vst [vmem:[%s5414_s29 + $0x2bc] sm:$0xf] %v531_v47  ;;  %v533_v48 = vld [vmem:[%s5407_s28 + $0x840] sm:$0xf] }
  0x87   : > { %v535_v49 = vld [vmem:[%s5407_s28 + $0x84c] sm:$0xf]  ;;  %v537_v50 = vld [vmem:[%s5407_s28 + $0x858] sm:$0xf]  ;;  %534 = vst [vmem:[%s5414_s29 + $0x2c0] sm:$0xf] %v533_v48 }
  0x88   : > { %536 = vst [vmem:[%s5414_s29 + $0x2c4] sm:$0xf] %v535_v49  ;;  %538 = vst [vmem:[%s5414_s29 + $0x2c8] sm:$0xf] %v537_v50  ;;  %v539_v51 = vld [vmem:[%s5407_s28 + $0x864] sm:$0xf] }
  0x89   : > { %v541_v52 = vld [vmem:[%s5407_s28 + $0x870] sm:$0xf]  ;;  %v543_v53 = vld [vmem:[%s5407_s28 + $0x87c] sm:$0xf]  ;;  %540 = vst [vmem:[%s5414_s29 + $0x2cc] sm:$0xf] %v539_v51 }
  0x8a   : > { %542 = vst [vmem:[%s5414_s29 + $0x2d0] sm:$0xf] %v541_v52  ;;  %544 = vst [vmem:[%s5414_s29 + $0x2d4] sm:$0xf] %v543_v53  ;;  %v545_v54 = vld [vmem:[%s5407_s28 + $0x888] sm:$0xf] }
  0x8b   : > { %v547_v55 = vld [vmem:[%s5407_s28 + $0x894] sm:$0xf]  ;;  %v549_v56 = vld [vmem:[%s5407_s28 + $0x8a0] sm:$0xf]  ;;  %546 = vst [vmem:[%s5414_s29 + $0x2d8] sm:$0xf] %v545_v54 }
  0x8c   : > { %548 = vst [vmem:[%s5414_s29 + $0x2dc] sm:$0xf] %v547_v55  ;;  %550 = vst [vmem:[%s5414_s29 + $0x2e0] sm:$0xf] %v549_v56  ;;  %v551_v57 = vld [vmem:[%s5407_s28 + $0x8ac] sm:$0xf] }
  0x8d   : > { %v553_v58 = vld [vmem:[%s5407_s28 + $0x8b8] sm:$0xf]  ;;  %v555_v59 = vld [vmem:[%s5407_s28 + $0x8c4] sm:$0xf]  ;;  %552 = vst [vmem:[%s5414_s29 + $0x2e4] sm:$0xf] %v551_v57 }
  0x8e   : > { %554 = vst [vmem:[%s5414_s29 + $0x2e8] sm:$0xf] %v553_v58  ;;  %556 = vst [vmem:[%s5414_s29 + $0x2ec] sm:$0xf] %v555_v59  ;;  %v557_v60 = vld [vmem:[%s5407_s28 + $0x8d0] sm:$0xf] }
  0x8f   : > { %v559_v61 = vld [vmem:[%s5407_s28 + $0x8dc] sm:$0xf]  ;;  %v561_v62 = vld [vmem:[%s5407_s28 + $0x8e8] sm:$0xf]  ;;  %558 = vst [vmem:[%s5414_s29 + $0x2f0] sm:$0xf] %v557_v60 }
  0x90   : > { %560 = vst [vmem:[%s5414_s29 + $0x2f4] sm:$0xf] %v559_v61  ;;  %562 = vst [vmem:[%s5414_s29 + $0x2f8] sm:$0xf] %v561_v62  ;;  %v563_v63 = vld [vmem:[%s5407_s28 + $0x8f4] sm:$0xf] }
  0x91   : > { %v565_v0 = vld [vmem:[%s5407_s28 + $0x900] sm:$0xf]  ;;  %v567_v1 = vld [vmem:[%s5407_s28 + $0x90c] sm:$0xf]  ;;  %564 = vst [vmem:[%s5414_s29 + $0x2fc] sm:$0xf] %v563_v63 }
  0x92   : > { %566 = vst [vmem:[%s5414_s29 + $0x300] sm:$0xf] %v565_v0  ;;  %568 = vst [vmem:[%s5414_s29 + $0x304] sm:$0xf] %v567_v1  ;;  %v569_v2 = vld [vmem:[%s5407_s28 + $0x918] sm:$0xf] }
  0x93   : > { %v571_v3 = vld [vmem:[%s5407_s28 + $0x924] sm:$0xf]  ;;  %v573_v4 = vld [vmem:[%s5407_s28 + $0x930] sm:$0xf]  ;;  %570 = vst [vmem:[%s5414_s29 + $0x308] sm:$0xf] %v569_v2 }
  0x94   : > { %572 = vst [vmem:[%s5414_s29 + $0x30c] sm:$0xf] %v571_v3  ;;  %574 = vst [vmem:[%s5414_s29 + $0x310] sm:$0xf] %v573_v4  ;;  %v575_v5 = vld [vmem:[%s5407_s28 + $0x93c] sm:$0xf] }
  0x95   : > { %v577_v6 = vld [vmem:[%s5407_s28 + $0x948] sm:$0xf]  ;;  %v579_v7 = vld [vmem:[%s5407_s28 + $0x954] sm:$0xf]  ;;  %576 = vst [vmem:[%s5414_s29 + $0x314] sm:$0xf] %v575_v5 }
  0x96   : > { %578 = vst [vmem:[%s5414_s29 + $0x318] sm:$0xf] %v577_v6  ;;  %580 = vst [vmem:[%s5414_s29 + $0x31c] sm:$0xf] %v579_v7  ;;  %v581_v8 = vld [vmem:[%s5407_s28 + $0x960] sm:$0xf] }
  0x97   : > { %v583_v9 = vld [vmem:[%s5407_s28 + $0x96c] sm:$0xf]  ;;  %v585_v10 = vld [vmem:[%s5407_s28 + $0x978] sm:$0xf]  ;;  %582 = vst [vmem:[%s5414_s29 + $0x320] sm:$0xf] %v581_v8 }
  0x98   : > { %584 = vst [vmem:[%s5414_s29 + $0x324] sm:$0xf] %v583_v9  ;;  %586 = vst [vmem:[%s5414_s29 + $0x328] sm:$0xf] %v585_v10  ;;  %v587_v11 = vld [vmem:[%s5407_s28 + $0x984] sm:$0xf] }
  0x99   : > { %v589_v12 = vld [vmem:[%s5407_s28 + $0x990] sm:$0xf]  ;;  %v591_v13 = vld [vmem:[%s5407_s28 + $0x99c] sm:$0xf]  ;;  %588 = vst [vmem:[%s5414_s29 + $0x32c] sm:$0xf] %v587_v11 }
  0x9a   : > { %590 = vst [vmem:[%s5414_s29 + $0x330] sm:$0xf] %v589_v12  ;;  %592 = vst [vmem:[%s5414_s29 + $0x334] sm:$0xf] %v591_v13  ;;  %v593_v14 = vld [vmem:[%s5407_s28 + $0x9a8] sm:$0xf] }
  0x9b   : > { %v595_v15 = vld [vmem:[%s5407_s28 + $0x9b4] sm:$0xf]  ;;  %v597_v16 = vld [vmem:[%s5407_s28 + $0x9c0] sm:$0xf]  ;;  %594 = vst [vmem:[%s5414_s29 + $0x338] sm:$0xf] %v593_v14 }
  0x9c   : > { %596 = vst [vmem:[%s5414_s29 + $0x33c] sm:$0xf] %v595_v15  ;;  %598 = vst [vmem:[%s5414_s29 + $0x340] sm:$0xf] %v597_v16  ;;  %v599_v17 = vld [vmem:[%s5407_s28 + $0x9cc] sm:$0xf] }
  0x9d   : > { %v601_v18 = vld [vmem:[%s5407_s28 + $0x9d8] sm:$0xf]  ;;  %v603_v19 = vld [vmem:[%s5407_s28 + $0x9e4] sm:$0xf]  ;;  %600 = vst [vmem:[%s5414_s29 + $0x344] sm:$0xf] %v599_v17 }
  0x9e   : > { %602 = vst [vmem:[%s5414_s29 + $0x348] sm:$0xf] %v601_v18  ;;  %604 = vst [vmem:[%s5414_s29 + $0x34c] sm:$0xf] %v603_v19  ;;  %v605_v20 = vld [vmem:[%s5407_s28 + $0x9f0] sm:$0xf] }
  0x9f   : > { %v607_v21 = vld [vmem:[%s5407_s28 + $0x9fc] sm:$0xf]  ;;  %v609_v22 = vld [vmem:[%s5407_s28 + $0xa08] sm:$0xf]  ;;  %606 = vst [vmem:[%s5414_s29 + $0x350] sm:$0xf] %v605_v20 }
  0xa0   : > { %608 = vst [vmem:[%s5414_s29 + $0x354] sm:$0xf] %v607_v21  ;;  %610 = vst [vmem:[%s5414_s29 + $0x358] sm:$0xf] %v609_v22  ;;  %v611_v23 = vld [vmem:[%s5407_s28 + $0xa14] sm:$0xf] }
  0xa1   : > { %v613_v24 = vld [vmem:[%s5407_s28 + $0xa20] sm:$0xf]  ;;  %v615_v25 = vld [vmem:[%s5407_s28 + $0xa2c] sm:$0xf]  ;;  %612 = vst [vmem:[%s5414_s29 + $0x35c] sm:$0xf] %v611_v23 }
  0xa2   : > { %614 = vst [vmem:[%s5414_s29 + $0x360] sm:$0xf] %v613_v24  ;;  %616 = vst [vmem:[%s5414_s29 + $0x364] sm:$0xf] %v615_v25  ;;  %v617_v26 = vld [vmem:[%s5407_s28 + $0xa38] sm:$0xf] }
  0xa3   : > { %v619_v27 = vld [vmem:[%s5407_s28 + $0xa44] sm:$0xf]  ;;  %v621_v28 = vld [vmem:[%s5407_s28 + $0xa50] sm:$0xf]  ;;  %618 = vst [vmem:[%s5414_s29 + $0x368] sm:$0xf] %v617_v26 }
  0xa4   : > { %620 = vst [vmem:[%s5414_s29 + $0x36c] sm:$0xf] %v619_v27  ;;  %622 = vst [vmem:[%s5414_s29 + $0x370] sm:$0xf] %v621_v28  ;;  %v623_v29 = vld [vmem:[%s5407_s28 + $0xa5c] sm:$0xf] }
  0xa5   : > { %v625_v30 = vld [vmem:[%s5407_s28 + $0xa68] sm:$0xf]  ;;  %v627_v31 = vld [vmem:[%s5407_s28 + $0xa74] sm:$0xf]  ;;  %624 = vst [vmem:[%s5414_s29 + $0x374] sm:$0xf] %v623_v29 }
  0xa6   : > { %626 = vst [vmem:[%s5414_s29 + $0x378] sm:$0xf] %v625_v30  ;;  %628 = vst [vmem:[%s5414_s29 + $0x37c] sm:$0xf] %v627_v31  ;;  %v629_v32 = vld [vmem:[%s5407_s28 + $0xa80] sm:$0xf] }
  0xa7   : > { %v631_v33 = vld [vmem:[%s5407_s28 + $0xa8c] sm:$0xf]  ;;  %v633_v34 = vld [vmem:[%s5407_s28 + $0xa98] sm:$0xf]  ;;  %630 = vst [vmem:[%s5414_s29 + $0x380] sm:$0xf] %v629_v32 }
  0xa8   : > { %632 = vst [vmem:[%s5414_s29 + $0x384] sm:$0xf] %v631_v33  ;;  %634 = vst [vmem:[%s5414_s29 + $0x388] sm:$0xf] %v633_v34  ;;  %v635_v35 = vld [vmem:[%s5407_s28 + $0xaa4] sm:$0xf] }
  0xa9   : > { %v637_v36 = vld [vmem:[%s5407_s28 + $0xab0] sm:$0xf]  ;;  %v639_v37 = vld [vmem:[%s5407_s28 + $0xabc] sm:$0xf]  ;;  %636 = vst [vmem:[%s5414_s29 + $0x38c] sm:$0xf] %v635_v35 }
  0xaa   : > { %638 = vst [vmem:[%s5414_s29 + $0x390] sm:$0xf] %v637_v36  ;;  %640 = vst [vmem:[%s5414_s29 + $0x394] sm:$0xf] %v639_v37  ;;  %v641_v38 = vld [vmem:[%s5407_s28 + $0xac8] sm:$0xf] }
  0xab   : > { %v643_v39 = vld [vmem:[%s5407_s28 + $0xad4] sm:$0xf]  ;;  %v645_v40 = vld [vmem:[%s5407_s28 + $0xae0] sm:$0xf]  ;;  %642 = vst [vmem:[%s5414_s29 + $0x398] sm:$0xf] %v641_v38 }
  0xac   : > { %644 = vst [vmem:[%s5414_s29 + $0x39c] sm:$0xf] %v643_v39  ;;  %646 = vst [vmem:[%s5414_s29 + $0x3a0] sm:$0xf] %v645_v40  ;;  %v647_v41 = vld [vmem:[%s5407_s28 + $0xaec] sm:$0xf] }
  0xad   : > { %v649_v42 = vld [vmem:[%s5407_s28 + $0xaf8] sm:$0xf]  ;;  %v651_v43 = vld [vmem:[%s5407_s28 + $0xb04] sm:$0xf]  ;;  %648 = vst [vmem:[%s5414_s29 + $0x3a4] sm:$0xf] %v647_v41 }
  0xae   : > { %650 = vst [vmem:[%s5414_s29 + $0x3a8] sm:$0xf] %v649_v42  ;;  %652 = vst [vmem:[%s5414_s29 + $0x3ac] sm:$0xf] %v651_v43  ;;  %v653_v44 = vld [vmem:[%s5407_s28 + $0xb10] sm:$0xf] }
  0xaf   : > { %v655_v45 = vld [vmem:[%s5407_s28 + $0xb1c] sm:$0xf]  ;;  %v657_v46 = vld [vmem:[%s5407_s28 + $0xb28] sm:$0xf]  ;;  %654 = vst [vmem:[%s5414_s29 + $0x3b0] sm:$0xf] %v653_v44 }
  0xb0   : > { %656 = vst [vmem:[%s5414_s29 + $0x3b4] sm:$0xf] %v655_v45  ;;  %658 = vst [vmem:[%s5414_s29 + $0x3b8] sm:$0xf] %v657_v46  ;;  %v659_v47 = vld [vmem:[%s5407_s28 + $0xb34] sm:$0xf] }
  0xb1   : > { %v661_v48 = vld [vmem:[%s5407_s28 + $0xb40] sm:$0xf]  ;;  %v663_v49 = vld [vmem:[%s5407_s28 + $0xb4c] sm:$0xf]  ;;  %660 = vst [vmem:[%s5414_s29 + $0x3bc] sm:$0xf] %v659_v47 }
  0xb2   : > { %662 = vst [vmem:[%s5414_s29 + $0x3c0] sm:$0xf] %v661_v48  ;;  %664 = vst [vmem:[%s5414_s29 + $0x3c4] sm:$0xf] %v663_v49  ;;  %v665_v50 = vld [vmem:[%s5407_s28 + $0xb58] sm:$0xf] }
  0xb3   : > { %v667_v51 = vld [vmem:[%s5407_s28 + $0xb64] sm:$0xf]  ;;  %v669_v52 = vld [vmem:[%s5407_s28 + $0xb70] sm:$0xf]  ;;  %666 = vst [vmem:[%s5414_s29 + $0x3c8] sm:$0xf] %v665_v50 }
  0xb4   : > { %668 = vst [vmem:[%s5414_s29 + $0x3cc] sm:$0xf] %v667_v51  ;;  %670 = vst [vmem:[%s5414_s29 + $0x3d0] sm:$0xf] %v669_v52  ;;  %v671_v53 = vld [vmem:[%s5407_s28 + $0xb7c] sm:$0xf] }
  0xb5   : > { %v673_v54 = vld [vmem:[%s5407_s28 + $0xb88] sm:$0xf]  ;;  %v675_v55 = vld [vmem:[%s5407_s28 + $0xb94] sm:$0xf]  ;;  %672 = vst [vmem:[%s5414_s29 + $0x3d4] sm:$0xf] %v671_v53 }
  0xb6   : > { %674 = vst [vmem:[%s5414_s29 + $0x3d8] sm:$0xf] %v673_v54  ;;  %676 = vst [vmem:[%s5414_s29 + $0x3dc] sm:$0xf] %v675_v55  ;;  %v677_v56 = vld [vmem:[%s5407_s28 + $0xba0] sm:$0xf] }
  0xb7   : > { %v679_v57 = vld [vmem:[%s5407_s28 + $0xbac] sm:$0xf]  ;;  %v681_v58 = vld [vmem:[%s5407_s28 + $0xbb8] sm:$0xf]  ;;  %678 = vst [vmem:[%s5414_s29 + $0x3e0] sm:$0xf] %v677_v56 }
  0xb8   : > { %680 = vst [vmem:[%s5414_s29 + $0x3e4] sm:$0xf] %v679_v57  ;;  %682 = vst [vmem:[%s5414_s29 + $0x3e8] sm:$0xf] %v681_v58  ;;  %v683_v59 = vld [vmem:[%s5407_s28 + $0xbc4] sm:$0xf] }
  0xb9   : > { %v685_v60 = vld [vmem:[%s5407_s28 + $0xbd0] sm:$0xf]  ;;  %v687_v61 = vld [vmem:[%s5407_s28 + $0xbdc] sm:$0xf]  ;;  %684 = vst [vmem:[%s5414_s29 + $0x3ec] sm:$0xf] %v683_v59 }
  0xba   : > { %686 = vst [vmem:[%s5414_s29 + $0x3f0] sm:$0xf] %v685_v60  ;;  %688 = vst [vmem:[%s5414_s29 + $0x3f4] sm:$0xf] %v687_v61  ;;  %v689_v62 = vld [vmem:[%s5407_s28 + $0xbe8] sm:$0xf] }
  0xbb   : > { %v691_v63 = vld [vmem:[%s5407_s28 + $0xbf4] sm:$0xf]  ;;  %v693_v0 = vld [vmem:[%s5407_s28 + $0xc00] sm:$0xf]  ;;  %690 = vst [vmem:[%s5414_s29 + $0x3f8] sm:$0xf] %v689_v62 }
  0xbc   : > { %692 = vst [vmem:[%s5414_s29 + $0x3fc] sm:$0xf] %v691_v63  ;;  %694 = vst [vmem:[%s5414_s29 + $0x400] sm:$0xf] %v693_v0  ;;  %v695_v1 = vld [vmem:[%s5407_s28 + $0xc0c] sm:$0xf] }
  0xbd   : > { %v697_v2 = vld [vmem:[%s5407_s28 + $0xc18] sm:$0xf]  ;;  %v699_v3 = vld [vmem:[%s5407_s28 + $0xc24] sm:$0xf]  ;;  %696 = vst [vmem:[%s5414_s29 + $0x404] sm:$0xf] %v695_v1 }
  0xbe   : > { %698 = vst [vmem:[%s5414_s29 + $0x408] sm:$0xf] %v697_v2  ;;  %700 = vst [vmem:[%s5414_s29 + $0x40c] sm:$0xf] %v699_v3  ;;  %v701_v4 = vld [vmem:[%s5407_s28 + $0xc30] sm:$0xf] }
  0xbf   : > { %v703_v5 = vld [vmem:[%s5407_s28 + $0xc3c] sm:$0xf]  ;;  %v705_v6 = vld [vmem:[%s5407_s28 + $0xc48] sm:$0xf]  ;;  %702 = vst [vmem:[%s5414_s29 + $0x410] sm:$0xf] %v701_v4 }
  0xc0   : > { %704 = vst [vmem:[%s5414_s29 + $0x414] sm:$0xf] %v703_v5  ;;  %706 = vst [vmem:[%s5414_s29 + $0x418] sm:$0xf] %v705_v6  ;;  %v707_v7 = vld [vmem:[%s5407_s28 + $0xc54] sm:$0xf] }
  0xc1   : > { %v709_v8 = vld [vmem:[%s5407_s28 + $0xc60] sm:$0xf]  ;;  %v711_v9 = vld [vmem:[%s5407_s28 + $0xc6c] sm:$0xf]  ;;  %708 = vst [vmem:[%s5414_s29 + $0x41c] sm:$0xf] %v707_v7 }
  0xc2   : > { %710 = vst [vmem:[%s5414_s29 + $0x420] sm:$0xf] %v709_v8  ;;  %712 = vst [vmem:[%s5414_s29 + $0x424] sm:$0xf] %v711_v9  ;;  %v713_v10 = vld [vmem:[%s5407_s28 + $0xc78] sm:$0xf] }
  0xc3   : > { %v715_v11 = vld [vmem:[%s5407_s28 + $0xc84] sm:$0xf]  ;;  %v717_v12 = vld [vmem:[%s5407_s28 + $0xc90] sm:$0xf]  ;;  %714 = vst [vmem:[%s5414_s29 + $0x428] sm:$0xf] %v713_v10 }
  0xc4   : > { %716 = vst [vmem:[%s5414_s29 + $0x42c] sm:$0xf] %v715_v11  ;;  %718 = vst [vmem:[%s5414_s29 + $0x430] sm:$0xf] %v717_v12  ;;  %v719_v13 = vld [vmem:[%s5407_s28 + $0xc9c] sm:$0xf] }
  0xc5   : > { %v721_v14 = vld [vmem:[%s5407_s28 + $0xca8] sm:$0xf]  ;;  %v723_v15 = vld [vmem:[%s5407_s28 + $0xcb4] sm:$0xf]  ;;  %720 = vst [vmem:[%s5414_s29 + $0x434] sm:$0xf] %v719_v13 }
  0xc6   : > { %722 = vst [vmem:[%s5414_s29 + $0x438] sm:$0xf] %v721_v14  ;;  %724 = vst [vmem:[%s5414_s29 + $0x43c] sm:$0xf] %v723_v15  ;;  %v725_v16 = vld [vmem:[%s5407_s28 + $0xcc0] sm:$0xf] }
  0xc7   : > { %v727_v17 = vld [vmem:[%s5407_s28 + $0xccc] sm:$0xf]  ;;  %v729_v18 = vld [vmem:[%s5407_s28 + $0xcd8] sm:$0xf]  ;;  %726 = vst [vmem:[%s5414_s29 + $0x440] sm:$0xf] %v725_v16 }
  0xc8   : > { %728 = vst [vmem:[%s5414_s29 + $0x444] sm:$0xf] %v727_v17  ;;  %730 = vst [vmem:[%s5414_s29 + $0x448] sm:$0xf] %v729_v18  ;;  %v731_v19 = vld [vmem:[%s5407_s28 + $0xce4] sm:$0xf] }
  0xc9   : > { %v733_v20 = vld [vmem:[%s5407_s28 + $0xcf0] sm:$0xf]  ;;  %v735_v21 = vld [vmem:[%s5407_s28 + $0xcfc] sm:$0xf]  ;;  %732 = vst [vmem:[%s5414_s29 + $0x44c] sm:$0xf] %v731_v19 }
  0xca   : > { %734 = vst [vmem:[%s5414_s29 + $0x450] sm:$0xf] %v733_v20  ;;  %736 = vst [vmem:[%s5414_s29 + $0x454] sm:$0xf] %v735_v21  ;;  %v737_v22 = vld [vmem:[%s5407_s28 + $0xd08] sm:$0xf] }
  0xcb   : > { %v739_v23 = vld [vmem:[%s5407_s28 + $0xd14] sm:$0xf]  ;;  %v741_v24 = vld [vmem:[%s5407_s28 + $0xd20] sm:$0xf]  ;;  %738 = vst [vmem:[%s5414_s29 + $0x458] sm:$0xf] %v737_v22 }
  0xcc   : > { %740 = vst [vmem:[%s5414_s29 + $0x45c] sm:$0xf] %v739_v23  ;;  %742 = vst [vmem:[%s5414_s29 + $0x460] sm:$0xf] %v741_v24  ;;  %v743_v25 = vld [vmem:[%s5407_s28 + $0xd2c] sm:$0xf] }
  0xcd   : > { %v745_v26 = vld [vmem:[%s5407_s28 + $0xd38] sm:$0xf]  ;;  %v747_v27 = vld [vmem:[%s5407_s28 + $0xd44] sm:$0xf]  ;;  %744 = vst [vmem:[%s5414_s29 + $0x464] sm:$0xf] %v743_v25 }
  0xce   : > { %746 = vst [vmem:[%s5414_s29 + $0x468] sm:$0xf] %v745_v26  ;;  %748 = vst [vmem:[%s5414_s29 + $0x46c] sm:$0xf] %v747_v27  ;;  %v749_v28 = vld [vmem:[%s5407_s28 + $0xd50] sm:$0xf] }
  0xcf   : > { %v751_v29 = vld [vmem:[%s5407_s28 + $0xd5c] sm:$0xf]  ;;  %v753_v30 = vld [vmem:[%s5407_s28 + $0xd68] sm:$0xf]  ;;  %750 = vst [vmem:[%s5414_s29 + $0x470] sm:$0xf] %v749_v28 }
  0xd0   : > { %752 = vst [vmem:[%s5414_s29 + $0x474] sm:$0xf] %v751_v29  ;;  %754 = vst [vmem:[%s5414_s29 + $0x478] sm:$0xf] %v753_v30  ;;  %v755_v31 = vld [vmem:[%s5407_s28 + $0xd74] sm:$0xf] }
  0xd1   : > { %v757_v32 = vld [vmem:[%s5407_s28 + $0xd80] sm:$0xf]  ;;  %v759_v33 = vld [vmem:[%s5407_s28 + $0xd8c] sm:$0xf]  ;;  %756 = vst [vmem:[%s5414_s29 + $0x47c] sm:$0xf] %v755_v31 }
  0xd2   : > { %758 = vst [vmem:[%s5414_s29 + $0x480] sm:$0xf] %v757_v32  ;;  %760 = vst [vmem:[%s5414_s29 + $0x484] sm:$0xf] %v759_v33  ;;  %v761_v34 = vld [vmem:[%s5407_s28 + $0xd98] sm:$0xf] }
  0xd3   : > { %v763_v35 = vld [vmem:[%s5407_s28 + $0xda4] sm:$0xf]  ;;  %v765_v36 = vld [vmem:[%s5407_s28 + $0xdb0] sm:$0xf]  ;;  %762 = vst [vmem:[%s5414_s29 + $0x488] sm:$0xf] %v761_v34 }
  0xd4   : > { %764 = vst [vmem:[%s5414_s29 + $0x48c] sm:$0xf] %v763_v35  ;;  %766 = vst [vmem:[%s5414_s29 + $0x490] sm:$0xf] %v765_v36  ;;  %v767_v37 = vld [vmem:[%s5407_s28 + $0xdbc] sm:$0xf] }
  0xd5   : > { %v769_v38 = vld [vmem:[%s5407_s28 + $0xdc8] sm:$0xf]  ;;  %v771_v39 = vld [vmem:[%s5407_s28 + $0xdd4] sm:$0xf]  ;;  %768 = vst [vmem:[%s5414_s29 + $0x494] sm:$0xf] %v767_v37 }
  0xd6   : > { %770 = vst [vmem:[%s5414_s29 + $0x498] sm:$0xf] %v769_v38  ;;  %772 = vst [vmem:[%s5414_s29 + $0x49c] sm:$0xf] %v771_v39  ;;  %v773_v40 = vld [vmem:[%s5407_s28 + $0xde0] sm:$0xf] }
  0xd7   : > { %v775_v41 = vld [vmem:[%s5407_s28 + $0xdec] sm:$0xf]  ;;  %v777_v42 = vld [vmem:[%s5407_s28 + $0xdf8] sm:$0xf]  ;;  %774 = vst [vmem:[%s5414_s29 + $0x4a0] sm:$0xf] %v773_v40 }
  0xd8   : > { %776 = vst [vmem:[%s5414_s29 + $0x4a4] sm:$0xf] %v775_v41  ;;  %778 = vst [vmem:[%s5414_s29 + $0x4a8] sm:$0xf] %v777_v42  ;;  %v779_v43 = vld [vmem:[%s5407_s28 + $0xe04] sm:$0xf] }
  0xd9   : > { %v781_v44 = vld [vmem:[%s5407_s28 + $0xe10] sm:$0xf]  ;;  %v783_v45 = vld [vmem:[%s5407_s28 + $0xe1c] sm:$0xf]  ;;  %780 = vst [vmem:[%s5414_s29 + $0x4ac] sm:$0xf] %v779_v43 }
  0xda   : > { %782 = vst [vmem:[%s5414_s29 + $0x4b0] sm:$0xf] %v781_v44  ;;  %784 = vst [vmem:[%s5414_s29 + $0x4b4] sm:$0xf] %v783_v45  ;;  %v785_v46 = vld [vmem:[%s5407_s28 + $0xe28] sm:$0xf] }
  0xdb   : > { %v787_v47 = vld [vmem:[%s5407_s28 + $0xe34] sm:$0xf]  ;;  %v789_v48 = vld [vmem:[%s5407_s28 + $0xe40] sm:$0xf]  ;;  %786 = vst [vmem:[%s5414_s29 + $0x4b8] sm:$0xf] %v785_v46 }
  0xdc   : > { %788 = vst [vmem:[%s5414_s29 + $0x4bc] sm:$0xf] %v787_v47  ;;  %790 = vst [vmem:[%s5414_s29 + $0x4c0] sm:$0xf] %v789_v48  ;;  %v791_v49 = vld [vmem:[%s5407_s28 + $0xe4c] sm:$0xf] }
  0xdd   : > { %v793_v50 = vld [vmem:[%s5407_s28 + $0xe58] sm:$0xf]  ;;  %v795_v51 = vld [vmem:[%s5407_s28 + $0xe64] sm:$0xf]  ;;  %792 = vst [vmem:[%s5414_s29 + $0x4c4] sm:$0xf] %v791_v49 }
  0xde   : > { %794 = vst [vmem:[%s5414_s29 + $0x4c8] sm:$0xf] %v793_v50  ;;  %796 = vst [vmem:[%s5414_s29 + $0x4cc] sm:$0xf] %v795_v51  ;;  %v797_v52 = vld [vmem:[%s5407_s28 + $0xe70] sm:$0xf] }
  0xdf   : > { %v799_v53 = vld [vmem:[%s5407_s28 + $0xe7c] sm:$0xf]  ;;  %v801_v54 = vld [vmem:[%s5407_s28 + $0xe88] sm:$0xf]  ;;  %798 = vst [vmem:[%s5414_s29 + $0x4d0] sm:$0xf] %v797_v52 }
  0xe0   : > { %800 = vst [vmem:[%s5414_s29 + $0x4d4] sm:$0xf] %v799_v53  ;;  %802 = vst [vmem:[%s5414_s29 + $0x4d8] sm:$0xf] %v801_v54  ;;  %v803_v55 = vld [vmem:[%s5407_s28 + $0xe94] sm:$0xf] }
  0xe1   : > { %v805_v56 = vld [vmem:[%s5407_s28 + $0xea0] sm:$0xf]  ;;  %v807_v57 = vld [vmem:[%s5407_s28 + $0xeac] sm:$0xf]  ;;  %804 = vst [vmem:[%s5414_s29 + $0x4dc] sm:$0xf] %v803_v55 }
  0xe2   : > { %806 = vst [vmem:[%s5414_s29 + $0x4e0] sm:$0xf] %v805_v56  ;;  %808 = vst [vmem:[%s5414_s29 + $0x4e4] sm:$0xf] %v807_v57  ;;  %v809_v58 = vld [vmem:[%s5407_s28 + $0xeb8] sm:$0xf] }
  0xe3   : > { %v811_v59 = vld [vmem:[%s5407_s28 + $0xec4] sm:$0xf]  ;;  %v813_v60 = vld [vmem:[%s5407_s28 + $0xed0] sm:$0xf]  ;;  %810 = vst [vmem:[%s5414_s29 + $0x4e8] sm:$0xf] %v809_v58 }
  0xe4   : > { %812 = vst [vmem:[%s5414_s29 + $0x4ec] sm:$0xf] %v811_v59  ;;  %814 = vst [vmem:[%s5414_s29 + $0x4f0] sm:$0xf] %v813_v60  ;;  %v815_v61 = vld [vmem:[%s5407_s28 + $0xedc] sm:$0xf] }
  0xe5   : > { %v817_v62 = vld [vmem:[%s5407_s28 + $0xee8] sm:$0xf]  ;;  %v819_v63 = vld [vmem:[%s5407_s28 + $0xef4] sm:$0xf]  ;;  %816 = vst [vmem:[%s5414_s29 + $0x4f4] sm:$0xf] %v815_v61 }
  0xe6   : > { %818 = vst [vmem:[%s5414_s29 + $0x4f8] sm:$0xf] %v817_v62  ;;  %820 = vst [vmem:[%s5414_s29 + $0x4fc] sm:$0xf] %v819_v63  ;;  %v821_v0 = vld [vmem:[%s5407_s28 + $0xf00] sm:$0xf] }
  0xe7   : > { %v823_v1 = vld [vmem:[%s5407_s28 + $0xf0c] sm:$0xf]  ;;  %v825_v2 = vld [vmem:[%s5407_s28 + $0xf18] sm:$0xf]  ;;  %822 = vst [vmem:[%s5414_s29 + $0x500] sm:$0xf] %v821_v0 }
  0xe8   : > { %824 = vst [vmem:[%s5414_s29 + $0x504] sm:$0xf] %v823_v1  ;;  %826 = vst [vmem:[%s5414_s29 + $0x508] sm:$0xf] %v825_v2  ;;  %v827_v3 = vld [vmem:[%s5407_s28 + $0xf24] sm:$0xf] }
  0xe9   : > { %v829_v4 = vld [vmem:[%s5407_s28 + $0xf30] sm:$0xf]  ;;  %v831_v5 = vld [vmem:[%s5407_s28 + $0xf3c] sm:$0xf]  ;;  %828 = vst [vmem:[%s5414_s29 + $0x50c] sm:$0xf] %v827_v3 }
  0xea   : > { %830 = vst [vmem:[%s5414_s29 + $0x510] sm:$0xf] %v829_v4  ;;  %832 = vst [vmem:[%s5414_s29 + $0x514] sm:$0xf] %v831_v5  ;;  %v833_v6 = vld [vmem:[%s5407_s28 + $0xf48] sm:$0xf] }
  0xeb   : > { %v835_v7 = vld [vmem:[%s5407_s28 + $0xf54] sm:$0xf]  ;;  %v837_v8 = vld [vmem:[%s5407_s28 + $0xf60] sm:$0xf]  ;;  %834 = vst [vmem:[%s5414_s29 + $0x518] sm:$0xf] %v833_v6 }
  0xec   : > { %836 = vst [vmem:[%s5414_s29 + $0x51c] sm:$0xf] %v835_v7  ;;  %838 = vst [vmem:[%s5414_s29 + $0x520] sm:$0xf] %v837_v8  ;;  %v839_v9 = vld [vmem:[%s5407_s28 + $0xf6c] sm:$0xf] }
  0xed   : > { %v841_v10 = vld [vmem:[%s5407_s28 + $0xf78] sm:$0xf]  ;;  %v843_v11 = vld [vmem:[%s5407_s28 + $0xf84] sm:$0xf]  ;;  %840 = vst [vmem:[%s5414_s29 + $0x524] sm:$0xf] %v839_v9 }
  0xee   : > { %842 = vst [vmem:[%s5414_s29 + $0x528] sm:$0xf] %v841_v10  ;;  %844 = vst [vmem:[%s5414_s29 + $0x52c] sm:$0xf] %v843_v11  ;;  %v845_v12 = vld [vmem:[%s5407_s28 + $0xf90] sm:$0xf] }
  0xef   : > { %v847_v13 = vld [vmem:[%s5407_s28 + $0xf9c] sm:$0xf]  ;;  %v849_v14 = vld [vmem:[%s5407_s28 + $0xfa8] sm:$0xf]  ;;  %846 = vst [vmem:[%s5414_s29 + $0x530] sm:$0xf] %v845_v12 }
  0xf0   : > { %848 = vst [vmem:[%s5414_s29 + $0x534] sm:$0xf] %v847_v13  ;;  %850 = vst [vmem:[%s5414_s29 + $0x538] sm:$0xf] %v849_v14  ;;  %v851_v15 = vld [vmem:[%s5407_s28 + $0xfb4] sm:$0xf] }
  0xf1   : > { %v853_v16 = vld [vmem:[%s5407_s28 + $0xfc0] sm:$0xf]  ;;  %v855_v17 = vld [vmem:[%s5407_s28 + $0xfcc] sm:$0xf]  ;;  %852 = vst [vmem:[%s5414_s29 + $0x53c] sm:$0xf] %v851_v15 }
  0xf2   : > { %854 = vst [vmem:[%s5414_s29 + $0x540] sm:$0xf] %v853_v16  ;;  %856 = vst [vmem:[%s5414_s29 + $0x544] sm:$0xf] %v855_v17  ;;  %v857_v18 = vld [vmem:[%s5407_s28 + $0xfd8] sm:$0xf] }
  0xf3   : > { %v859_v19 = vld [vmem:[%s5407_s28 + $0xfe4] sm:$0xf]  ;;  %v861_v20 = vld [vmem:[%s5407_s28 + $0xff0] sm:$0xf]  ;;  %858 = vst [vmem:[%s5414_s29 + $0x548] sm:$0xf] %v857_v18 }
  0xf4   : > { %860 = vst [vmem:[%s5414_s29 + $0x54c] sm:$0xf] %v859_v19  ;;  %862 = vst [vmem:[%s5414_s29 + $0x550] sm:$0xf] %v861_v20  ;;  %v863_v21 = vld [vmem:[%s5407_s28 + $0xffc] sm:$0xf] }
  0xf5   : > { %v865_v22 = vld [vmem:[%s5407_s28 + $0x1008] sm:$0xf]  ;;  %v867_v23 = vld [vmem:[%s5407_s28 + $0x1014] sm:$0xf]  ;;  %864 = vst [vmem:[%s5414_s29 + $0x554] sm:$0xf] %v863_v21 }
  0xf6   : > { %866 = vst [vmem:[%s5414_s29 + $0x558] sm:$0xf] %v865_v22  ;;  %868 = vst [vmem:[%s5414_s29 + $0x55c] sm:$0xf] %v867_v23  ;;  %v869_v24 = vld [vmem:[%s5407_s28 + $0x1020] sm:$0xf] }
  0xf7   : > { %v871_v25 = vld [vmem:[%s5407_s28 + $0x102c] sm:$0xf]  ;;  %v873_v26 = vld [vmem:[%s5407_s28 + $0x1038] sm:$0xf]  ;;  %870 = vst [vmem:[%s5414_s29 + $0x560] sm:$0xf] %v869_v24 }
  0xf8   : > { %872 = vst [vmem:[%s5414_s29 + $0x564] sm:$0xf] %v871_v25  ;;  %874 = vst [vmem:[%s5414_s29 + $0x568] sm:$0xf] %v873_v26  ;;  %v875_v27 = vld [vmem:[%s5407_s28 + $0x1044] sm:$0xf] }
  0xf9   : > { %v877_v28 = vld [vmem:[%s5407_s28 + $0x1050] sm:$0xf]  ;;  %v879_v29 = vld [vmem:[%s5407_s28 + $0x105c] sm:$0xf]  ;;  %876 = vst [vmem:[%s5414_s29 + $0x56c] sm:$0xf] %v875_v27 }
  0xfa   : > { %878 = vst [vmem:[%s5414_s29 + $0x570] sm:$0xf] %v877_v28  ;;  %880 = vst [vmem:[%s5414_s29 + $0x574] sm:$0xf] %v879_v29  ;;  %v881_v30 = vld [vmem:[%s5407_s28 + $0x1068] sm:$0xf] }
  0xfb   : > { %v883_v31 = vld [vmem:[%s5407_s28 + $0x1074] sm:$0xf]  ;;  %v885_v32 = vld [vmem:[%s5407_s28 + $0x1080] sm:$0xf]  ;;  %882 = vst [vmem:[%s5414_s29 + $0x578] sm:$0xf] %v881_v30 }
  0xfc   : > { %884 = vst [vmem:[%s5414_s29 + $0x57c] sm:$0xf] %v883_v31  ;;  %886 = vst [vmem:[%s5414_s29 + $0x580] sm:$0xf] %v885_v32  ;;  %v887_v33 = vld [vmem:[%s5407_s28 + $0x108c] sm:$0xf] }
  0xfd   : > { %v889_v34 = vld [vmem:[%s5407_s28 + $0x1098] sm:$0xf]  ;;  %v891_v35 = vld [vmem:[%s5407_s28 + $0x10a4] sm:$0xf]  ;;  %888 = vst [vmem:[%s5414_s29 + $0x584] sm:$0xf] %v887_v33 }
  0xfe   : > { %890 = vst [vmem:[%s5414_s29 + $0x588] sm:$0xf] %v889_v34  ;;  %892 = vst [vmem:[%s5414_s29 + $0x58c] sm:$0xf] %v891_v35  ;;  %v893_v36 = vld [vmem:[%s5407_s28 + $0x10b0] sm:$0xf] }
  0xff   : > { %v895_v37 = vld [vmem:[%s5407_s28 + $0x10bc] sm:$0xf]  ;;  %v897_v38 = vld [vmem:[%s5407_s28 + $0x10c8] sm:$0xf]  ;;  %894 = vst [vmem:[%s5414_s29 + $0x590] sm:$0xf] %v893_v36 }
 0x100   : > { %896 = vst [vmem:[%s5414_s29 + $0x594] sm:$0xf] %v895_v37  ;;  %898 = vst [vmem:[%s5414_s29 + $0x598] sm:$0xf] %v897_v38  ;;  %v899_v39 = vld [vmem:[%s5407_s28 + $0x10d4] sm:$0xf] }
 0x101   : > { %v901_v40 = vld [vmem:[%s5407_s28 + $0x10e0] sm:$0xf]  ;;  %v903_v41 = vld [vmem:[%s5407_s28 + $0x10ec] sm:$0xf]  ;;  %900 = vst [vmem:[%s5414_s29 + $0x59c] sm:$0xf] %v899_v39 }
 0x102   : > { %902 = vst [vmem:[%s5414_s29 + $0x5a0] sm:$0xf] %v901_v40  ;;  %904 = vst [vmem:[%s5414_s29 + $0x5a4] sm:$0xf] %v903_v41  ;;  %v905_v42 = vld [vmem:[%s5407_s28 + $0x10f8] sm:$0xf] }
 0x103   : > { %v907_v43 = vld [vmem:[%s5407_s28 + $0x1104] sm:$0xf]  ;;  %v909_v44 = vld [vmem:[%s5407_s28 + $0x1110] sm:$0xf]  ;;  %906 = vst [vmem:[%s5414_s29 + $0x5a8] sm:$0xf] %v905_v42 }
 0x104   : > { %908 = vst [vmem:[%s5414_s29 + $0x5ac] sm:$0xf] %v907_v43  ;;  %910 = vst [vmem:[%s5414_s29 + $0x5b0] sm:$0xf] %v909_v44  ;;  %v911_v45 = vld [vmem:[%s5407_s28 + $0x111c] sm:$0xf] }
 0x105   : > { %v913_v46 = vld [vmem:[%s5407_s28 + $0x1128] sm:$0xf]  ;;  %v915_v47 = vld [vmem:[%s5407_s28 + $0x1134] sm:$0xf]  ;;  %912 = vst [vmem:[%s5414_s29 + $0x5b4] sm:$0xf] %v911_v45 }
 0x106   : > { %914 = vst [vmem:[%s5414_s29 + $0x5b8] sm:$0xf] %v913_v46  ;;  %916 = vst [vmem:[%s5414_s29 + $0x5bc] sm:$0xf] %v915_v47  ;;  %v917_v48 = vld [vmem:[%s5407_s28 + $0x1140] sm:$0xf] }
 0x107   : > { %v919_v49 = vld [vmem:[%s5407_s28 + $0x114c] sm:$0xf]  ;;  %v921_v50 = vld [vmem:[%s5407_s28 + $0x1158] sm:$0xf]  ;;  %918 = vst [vmem:[%s5414_s29 + $0x5c0] sm:$0xf] %v917_v48 }
 0x108   : > { %920 = vst [vmem:[%s5414_s29 + $0x5c4] sm:$0xf] %v919_v49  ;;  %922 = vst [vmem:[%s5414_s29 + $0x5c8] sm:$0xf] %v921_v50  ;;  %v923_v51 = vld [vmem:[%s5407_s28 + $0x1164] sm:$0xf] }
 0x109   : > { %v925_v52 = vld [vmem:[%s5407_s28 + $0x1170] sm:$0xf]  ;;  %v927_v53 = vld [vmem:[%s5407_s28 + $0x117c] sm:$0xf]  ;;  %924 = vst [vmem:[%s5414_s29 + $0x5cc] sm:$0xf] %v923_v51 }
 0x10a   : > { %926 = vst [vmem:[%s5414_s29 + $0x5d0] sm:$0xf] %v925_v52  ;;  %928 = vst [vmem:[%s5414_s29 + $0x5d4] sm:$0xf] %v927_v53  ;;  %v929_v54 = vld [vmem:[%s5407_s28 + $0x1188] sm:$0xf] }
 0x10b   : > { %v931_v55 = vld [vmem:[%s5407_s28 + $0x1194] sm:$0xf]  ;;  %v933_v56 = vld [vmem:[%s5407_s28 + $0x11a0] sm:$0xf]  ;;  %930 = vst [vmem:[%s5414_s29 + $0x5d8] sm:$0xf] %v929_v54 }
 0x10c   : > { %932 = vst [vmem:[%s5414_s29 + $0x5dc] sm:$0xf] %v931_v55  ;;  %934 = vst [vmem:[%s5414_s29 + $0x5e0] sm:$0xf] %v933_v56  ;;  %v935_v57 = vld [vmem:[%s5407_s28 + $0x11ac] sm:$0xf] }
 0x10d   : > { %v937_v58 = vld [vmem:[%s5407_s28 + $0x11b8] sm:$0xf]  ;;  %v939_v59 = vld [vmem:[%s5407_s28 + $0x11c4] sm:$0xf]  ;;  %936 = vst [vmem:[%s5414_s29 + $0x5e4] sm:$0xf] %v935_v57 }
 0x10e   : > { %938 = vst [vmem:[%s5414_s29 + $0x5e8] sm:$0xf] %v937_v58  ;;  %940 = vst [vmem:[%s5414_s29 + $0x5ec] sm:$0xf] %v939_v59  ;;  %v941_v60 = vld [vmem:[%s5407_s28 + $0x11d0] sm:$0xf] }
 0x10f   : > { %v943_v61 = vld [vmem:[%s5407_s28 + $0x11dc] sm:$0xf]  ;;  %v945_v62 = vld [vmem:[%s5407_s28 + $0x11e8] sm:$0xf]  ;;  %942 = vst [vmem:[%s5414_s29 + $0x5f0] sm:$0xf] %v941_v60 }
 0x110   : > { %944 = vst [vmem:[%s5414_s29 + $0x5f4] sm:$0xf] %v943_v61  ;;  %946 = vst [vmem:[%s5414_s29 + $0x5f8] sm:$0xf] %v945_v62  ;;  %v947_v63 = vld [vmem:[%s5407_s28 + $0x11f4] sm:$0xf] }
 0x111   : > { %v949_v0 = vld [vmem:[%s5407_s28 + $0x1200] sm:$0xf]  ;;  %v951_v1 = vld [vmem:[%s5407_s28 + $0x120c] sm:$0xf]  ;;  %948 = vst [vmem:[%s5414_s29 + $0x5fc] sm:$0xf] %v947_v63 }
 0x112   : > { %950 = vst [vmem:[%s5414_s29 + $0x600] sm:$0xf] %v949_v0  ;;  %952 = vst [vmem:[%s5414_s29 + $0x604] sm:$0xf] %v951_v1  ;;  %v953_v2 = vld [vmem:[%s5407_s28 + $0x1218] sm:$0xf] }
 0x113   : > { %v955_v3 = vld [vmem:[%s5407_s28 + $0x1224] sm:$0xf]  ;;  %v957_v4 = vld [vmem:[%s5407_s28 + $0x1230] sm:$0xf]  ;;  %954 = vst [vmem:[%s5414_s29 + $0x608] sm:$0xf] %v953_v2 }
 0x114   : > { %956 = vst [vmem:[%s5414_s29 + $0x60c] sm:$0xf] %v955_v3  ;;  %958 = vst [vmem:[%s5414_s29 + $0x610] sm:$0xf] %v957_v4  ;;  %v959_v5 = vld [vmem:[%s5407_s28 + $0x123c] sm:$0xf] }
 0x115   : > { %v961_v6 = vld [vmem:[%s5407_s28 + $0x1248] sm:$0xf]  ;;  %v963_v7 = vld [vmem:[%s5407_s28 + $0x1254] sm:$0xf]  ;;  %960 = vst [vmem:[%s5414_s29 + $0x614] sm:$0xf] %v959_v5 }
 0x116   : > { %962 = vst [vmem:[%s5414_s29 + $0x618] sm:$0xf] %v961_v6  ;;  %964 = vst [vmem:[%s5414_s29 + $0x61c] sm:$0xf] %v963_v7  ;;  %v965_v8 = vld [vmem:[%s5407_s28 + $0x1260] sm:$0xf] }
 0x117   : > { %v967_v9 = vld [vmem:[%s5407_s28 + $0x126c] sm:$0xf]  ;;  %v969_v10 = vld [vmem:[%s5407_s28 + $0x1278] sm:$0xf]  ;;  %966 = vst [vmem:[%s5414_s29 + $0x620] sm:$0xf] %v965_v8 }
 0x118   : > { %968 = vst [vmem:[%s5414_s29 + $0x624] sm:$0xf] %v967_v9  ;;  %970 = vst [vmem:[%s5414_s29 + $0x628] sm:$0xf] %v969_v10  ;;  %v971_v11 = vld [vmem:[%s5407_s28 + $0x1284] sm:$0xf] }
 0x119   : > { %v973_v12 = vld [vmem:[%s5407_s28 + $0x1290] sm:$0xf]  ;;  %v975_v13 = vld [vmem:[%s5407_s28 + $0x129c] sm:$0xf]  ;;  %972 = vst [vmem:[%s5414_s29 + $0x62c] sm:$0xf] %v971_v11 }
 0x11a   : > { %974 = vst [vmem:[%s5414_s29 + $0x630] sm:$0xf] %v973_v12  ;;  %976 = vst [vmem:[%s5414_s29 + $0x634] sm:$0xf] %v975_v13  ;;  %v977_v14 = vld [vmem:[%s5407_s28 + $0x12a8] sm:$0xf] }
 0x11b   : > { %v979_v15 = vld [vmem:[%s5407_s28 + $0x12b4] sm:$0xf]  ;;  %v981_v16 = vld [vmem:[%s5407_s28 + $0x12c0] sm:$0xf]  ;;  %978 = vst [vmem:[%s5414_s29 + $0x638] sm:$0xf] %v977_v14 }
 0x11c   : > { %980 = vst [vmem:[%s5414_s29 + $0x63c] sm:$0xf] %v979_v15  ;;  %982 = vst [vmem:[%s5414_s29 + $0x640] sm:$0xf] %v981_v16  ;;  %v983_v17 = vld [vmem:[%s5407_s28 + $0x12cc] sm:$0xf] }
 0x11d   : > { %v985_v18 = vld [vmem:[%s5407_s28 + $0x12d8] sm:$0xf]  ;;  %v987_v19 = vld [vmem:[%s5407_s28 + $0x12e4] sm:$0xf]  ;;  %984 = vst [vmem:[%s5414_s29 + $0x644] sm:$0xf] %v983_v17 }
 0x11e   : > { %986 = vst [vmem:[%s5414_s29 + $0x648] sm:$0xf] %v985_v18  ;;  %988 = vst [vmem:[%s5414_s29 + $0x64c] sm:$0xf] %v987_v19  ;;  %v989_v20 = vld [vmem:[%s5407_s28 + $0x12f0] sm:$0xf] }
 0x11f   : > { %v991_v21 = vld [vmem:[%s5407_s28 + $0x12fc] sm:$0xf]  ;;  %v993_v22 = vld [vmem:[%s5407_s28 + $0x1308] sm:$0xf]  ;;  %990 = vst [vmem:[%s5414_s29 + $0x650] sm:$0xf] %v989_v20 }
 0x120   : > { %992 = vst [vmem:[%s5414_s29 + $0x654] sm:$0xf] %v991_v21  ;;  %994 = vst [vmem:[%s5414_s29 + $0x658] sm:$0xf] %v993_v22  ;;  %v995_v23 = vld [vmem:[%s5407_s28 + $0x1314] sm:$0xf] }
 0x121   : > { %v997_v24 = vld [vmem:[%s5407_s28 + $0x1320] sm:$0xf]  ;;  %v999_v25 = vld [vmem:[%s5407_s28 + $0x132c] sm:$0xf]  ;;  %996 = vst [vmem:[%s5414_s29 + $0x65c] sm:$0xf] %v995_v23 }
 0x122   : > { %998 = vst [vmem:[%s5414_s29 + $0x660] sm:$0xf] %v997_v24  ;;  %1000 = vst [vmem:[%s5414_s29 + $0x664] sm:$0xf] %v999_v25  ;;  %v1001_v26 = vld [vmem:[%s5407_s28 + $0x1338] sm:$0xf] }
 0x123   : > { %v1003_v27 = vld [vmem:[%s5407_s28 + $0x1344] sm:$0xf]  ;;  %v1005_v28 = vld [vmem:[%s5407_s28 + $0x1350] sm:$0xf]  ;;  %1002 = vst [vmem:[%s5414_s29 + $0x668] sm:$0xf] %v1001_v26 }
 0x124   : > { %1004 = vst [vmem:[%s5414_s29 + $0x66c] sm:$0xf] %v1003_v27  ;;  %1006 = vst [vmem:[%s5414_s29 + $0x670] sm:$0xf] %v1005_v28  ;;  %v1007_v29 = vld [vmem:[%s5407_s28 + $0x135c] sm:$0xf] }
 0x125   : > { %v1009_v30 = vld [vmem:[%s5407_s28 + $0x1368] sm:$0xf]  ;;  %v1011_v31 = vld [vmem:[%s5407_s28 + $0x1374] sm:$0xf]  ;;  %1008 = vst [vmem:[%s5414_s29 + $0x674] sm:$0xf] %v1007_v29 }
 0x126   : > { %1010 = vst [vmem:[%s5414_s29 + $0x678] sm:$0xf] %v1009_v30  ;;  %1012 = vst [vmem:[%s5414_s29 + $0x67c] sm:$0xf] %v1011_v31  ;;  %v1013_v32 = vld [vmem:[%s5407_s28 + $0x1380] sm:$0xf] }
 0x127   : > { %v1015_v33 = vld [vmem:[%s5407_s28 + $0x138c] sm:$0xf]  ;;  %v1017_v34 = vld [vmem:[%s5407_s28 + $0x1398] sm:$0xf]  ;;  %1014 = vst [vmem:[%s5414_s29 + $0x680] sm:$0xf] %v1013_v32 }
 0x128   : > { %1016 = vst [vmem:[%s5414_s29 + $0x684] sm:$0xf] %v1015_v33  ;;  %1018 = vst [vmem:[%s5414_s29 + $0x688] sm:$0xf] %v1017_v34  ;;  %v1019_v35 = vld [vmem:[%s5407_s28 + $0x13a4] sm:$0xf] }
 0x129   : > { %v1021_v36 = vld [vmem:[%s5407_s28 + $0x13b0] sm:$0xf]  ;;  %v1023_v37 = vld [vmem:[%s5407_s28 + $0x13bc] sm:$0xf]  ;;  %1020 = vst [vmem:[%s5414_s29 + $0x68c] sm:$0xf] %v1019_v35 }
 0x12a   : > { %1022 = vst [vmem:[%s5414_s29 + $0x690] sm:$0xf] %v1021_v36  ;;  %1024 = vst [vmem:[%s5414_s29 + $0x694] sm:$0xf] %v1023_v37  ;;  %v1025_v38 = vld [vmem:[%s5407_s28 + $0x13c8] sm:$0xf] }
 0x12b   : > { %v1027_v39 = vld [vmem:[%s5407_s28 + $0x13d4] sm:$0xf]  ;;  %v1029_v40 = vld [vmem:[%s5407_s28 + $0x13e0] sm:$0xf]  ;;  %1026 = vst [vmem:[%s5414_s29 + $0x698] sm:$0xf] %v1025_v38 }
 0x12c   : > { %1028 = vst [vmem:[%s5414_s29 + $0x69c] sm:$0xf] %v1027_v39  ;;  %1030 = vst [vmem:[%s5414_s29 + $0x6a0] sm:$0xf] %v1029_v40  ;;  %v1031_v41 = vld [vmem:[%s5407_s28 + $0x13ec] sm:$0xf] }
 0x12d   : > { %v1033_v42 = vld [vmem:[%s5407_s28 + $0x13f8] sm:$0xf]  ;;  %v1035_v43 = vld [vmem:[%s5407_s28 + $0x1404] sm:$0xf]  ;;  %1032 = vst [vmem:[%s5414_s29 + $0x6a4] sm:$0xf] %v1031_v41 }
 0x12e   : > { %1034 = vst [vmem:[%s5414_s29 + $0x6a8] sm:$0xf] %v1033_v42  ;;  %1036 = vst [vmem:[%s5414_s29 + $0x6ac] sm:$0xf] %v1035_v43  ;;  %v1037_v44 = vld [vmem:[%s5407_s28 + $0x1410] sm:$0xf] }
 0x12f   : > { %v1039_v45 = vld [vmem:[%s5407_s28 + $0x141c] sm:$0xf]  ;;  %v1041_v46 = vld [vmem:[%s5407_s28 + $0x1428] sm:$0xf]  ;;  %1038 = vst [vmem:[%s5414_s29 + $0x6b0] sm:$0xf] %v1037_v44 }
 0x130   : > { %1040 = vst [vmem:[%s5414_s29 + $0x6b4] sm:$0xf] %v1039_v45  ;;  %1042 = vst [vmem:[%s5414_s29 + $0x6b8] sm:$0xf] %v1041_v46  ;;  %v1043_v47 = vld [vmem:[%s5407_s28 + $0x1434] sm:$0xf] }
 0x131   : > { %1044 = vst [vmem:[%s5414_s29 + $0x6bc] sm:$0xf] %v1043_v47 }
 0x132 PF: > { %p4487_p5 = scmp.ge.s32.totalorder %s5344_s17, 1  ;;  %p1942_p6 = scmp.lt.s32.totalorder %s5344_s17, 4 }
 0x134   : > { %p1943_p7 = pnand %p4487_p5, %p1942_p6 }
 0x135   : > { %s1949_s30 = sand.u32 (!%p1943_p7), 1, %s5336_s15   ;;  %v6281_v48 = vld [vmem:[%s6597_s0] sm:$0xff] (!%p1943_p7)  ;;  %v6286_v49 = vld [vmem:[%s6597_s0 + $0x8] sm:$0xff] (!%p1943_p7)  ;;  %v6326_v17 = vld [vmem:[%s6597_s0 + $0x10] sm:$0xff] (!%p1943_p7)  ;;  %vm5347_vm0 = vmmov (!%p1943_p7), 0   ;;  %p1979_p8 = scmp.lt.s32.totalorder (!%p1943_p7), %s4482_s18, 2 }
 0x136   : > { %1946 = sbr.rel (%p1943_p7) target bundleno = 766 (0x2fe), region = 73  ;;  %v4490_v50 = vcombine.high (!%p1943_p7), %v6281_v48, %v6281_v48  ;;  %v4492_v51 = vcombine.high (!%p1943_p7), %v6286_v49, %v6286_v49  ;;  %v6333_v20 = vld [vmem:[%s6597_s0 + $0x18] sm:$0xff] (!%p1943_p7)  ;;  %v4489_v22 = vcombine.low (!%p1943_p7), %v6281_v48, %v6281_v48  ;;  %v4491_v23 = vcombine.low (!%p1943_p7), %v6286_v49, %v6286_v49 }
 0x137   : > { %s5052_s9 = smul.u32 (!%p1943_p7), 1728, %s1949_s30  ;;  %v4494_v26 = vcombine.high (!%p1943_p7), %v6326_v17, %v6326_v17  ;;  %v4496_v29 = vcombine.high (!%p1943_p7), %v6333_v20, %v6333_v20 }
 0x138   : > { %3859 = vmatprep.mubr.bf16.mxu0 (!%p1943_p7), %v4490_v50  ;;  %3899 = vmatprep.mubr.bf16.mxu1 (!%p1943_p7), %v4492_v51 }
 0x139   : > { %s6292_s10 = scalar_lea.vmem (!%p1943_p7), [#allocation2], %s5052_s9 }
 0x13a   : > { %v5079_v52 = vld [vmem:[%s6292_s10 + $0x40] sm:$0xff] (!%p1943_p7)   ;;  %v5083_v56 = vld [vmem:[%s6292_s10 + $0x48] sm:$0xff] (!%p1943_p7)   ;;  %v5087_v60 = vld [vmem:[%s6292_s10 + $0x50] sm:$0xff] (!%p1943_p7)  }
 0x13b   : > { %v5080_v53 = vld [vmem:[%s6292_s10 + $0xc0] sm:$0xff] (!%p1943_p7)   ;;  %4736 = vmatprep.subr.bf16.mxu0 (!%p1943_p7), %v5079_v52  ;;  %v5084_v57 = vld [vmem:[%s6292_s10 + $0xc8] sm:$0xff] (!%p1943_p7)   ;;  %v5088_v61 = vld [vmem:[%s6292_s10 + $0xd0] sm:$0xff] (!%p1943_p7)  }
 0x13c   : > { %v5081_v54 = vld [vmem:[%s6292_s10] sm:$0xff] (!%p1943_p7)   ;;  %4758 = vmatprep.subr.bf16.mxu1 (!%p1943_p7), %v5080_v53  ;;  %v5085_v58 = vld [vmem:[%s6292_s10 + $0x8] sm:$0xff] (!%p1943_p7)   ;;  %v5089_v62 = vld [vmem:[%s6292_s10 + $0x10] sm:$0xff] (!%p1943_p7)  }
 0x13d   : > { %v5082_v55 = vld [vmem:[%s6292_s10 + $0x80] sm:$0xff]   ;;  %4737 = vmatpush3.bf16.msra.mxu0 %v5081_v54  ;;  %v5086_v59 = vld [vmem:[%s6292_s10 + $0x88] sm:$0xff]   ;;  %v5090_v63 = vld [vmem:[%s6292_s10 + $0x90] sm:$0xff]   ;;  %s6606_s18 = smov (!%p1979_p8, %s4482_s18), 2 }
 0x13e   : > { %4759 = vmatpush3.bf16.msra.mxu1 %v5082_v55  ;;  %4738 = vmatprep.subr.bf16.mxu0 %v5083_v56  ;;  %v5091_v0 = vld [vmem:[%s6292_s10 + $0x58] sm:$0xff]   ;;  %v5095_v4 = vld [vmem:[%s6292_s10 + $0x60] sm:$0xff]   ;;  %v5099_v8 = vld [vmem:[%s6292_s10 + $0x68] sm:$0xff]   ;;  %s1981_s20 = scalar_lea.vmem %s6599_s2, %s6606_s18  ;;  %s1984_s24 = scalar_lea.vmem %s6600_s3, %s6606_s18 }
 0x13f   : > { %4760 = vmatprep.subr.bf16.mxu1 %v5084_v57  ;;  %v5092_v1 = vld [vmem:[%s6292_s10 + $0xd8] sm:$0xff]   ;;  %v5096_v5 = vld [vmem:[%s6292_s10 + $0xe0] sm:$0xff]   ;;  %v5100_v9 = vld [vmem:[%s6292_s10 + $0xe8] sm:$0xff]   ;;  %s4488_s17 = sshll.u32 %s6606_s18, 3 }
 0x140   : > { %v5093_v2 = vld [vmem:[%s6292_s10 + $0x18] sm:$0xff]   ;;  %v5097_v6 = vld [vmem:[%s6292_s10 + $0x20] sm:$0xff]   ;;  %v5101_v10 = vld [vmem:[%s6292_s10 + $0x28] sm:$0xff]   ;;  %s1988_s27 = scalar_lea.vmem %s6601_s4, %s4488_s17 }
 0x141   : > { %4739 = vmatpush3.bf16.msra.mxu0 %v5085_v58  ;;  %v5094_v3 = vld [vmem:[%s6292_s10 + $0x98] sm:$0xff]   ;;  %v5098_v7 = vld [vmem:[%s6292_s10 + $0xa0] sm:$0xff]   ;;  %v5102_v11 = vld [vmem:[%s6292_s10 + $0xa8] sm:$0xff]  }
 0x142   : > { %4761 = vmatpush3.bf16.msra.mxu1 %v5086_v59  ;;  %4740 = vmatprep.subr.bf16.mxu0 %v5087_v60  ;;  %v5103_v12 = vld [vmem:[%s6292_s10 + $0x70] sm:$0xff]   ;;  %v5107_v16 = vld [vmem:[%s6292_s10 + $0x78] sm:$0xff]   ;;  %v5115_v24 = vld [vmem:[%s6292_s10 + $0x140] sm:$0xff]   ;;  %v4493_v59 = vcombine.low %v6326_v17, %v6326_v17 }
 0x143   : > { %4762 = vmatprep.subr.bf16.mxu1 %v5088_v61  ;;  %v5104_v13 = vld [vmem:[%s6292_s10 + $0xf0] sm:$0xff]   ;;  %v5108_v18 = vld [vmem:[%s6292_s10 + $0xf8] sm:$0xff]   ;;  %v5116_v25 = vld [vmem:[%s6292_s10 + $0x100] sm:$0xff]  }
 0x144   : > { %v5105_v14 = vld [vmem:[%s6292_s10 + $0x30] sm:$0xff]   ;;  %v5109_v19 = vld [vmem:[%s6292_s10 + $0x38] sm:$0xff]   ;;  %v5117_v27 = vld [vmem:[%s6292_s10 + $0x1c0] sm:$0xff]  }
 0x145   : > { %4741 = vmatpush3.bf16.msra.mxu0 %v5089_v62  ;;  %v5106_v15 = vld [vmem:[%s6292_s10 + $0xb0] sm:$0xff]   ;;  %v5110_v21 = vld [vmem:[%s6292_s10 + $0xb8] sm:$0xff]   ;;  %v5118_v28 = vld [vmem:[%s6292_s10 + $0x180] sm:$0xff]   ;;  %v4495_v62 = vcombine.low %v6333_v20, %v6333_v20 }
 0x146   : > { %4763 = vmatpush3.bf16.msra.mxu1 %v5090_v63  ;;  %4742 = vmatprep.subr.bf16.mxu0 %v5091_v0  ;;  %v5119_v30 = vld [vmem:[%s6292_s10 + $0x148] sm:$0xff]   ;;  %v5123_v34 = vld [vmem:[%s6292_s10 + $0x150] sm:$0xff]   ;;  %v5127_v38 = vld [vmem:[%s6292_s10 + $0x158] sm:$0xff]  }
 0x147   : > { %4764 = vmatprep.subr.bf16.mxu1 %v5092_v1  ;;  %v5120_v31 = vld [vmem:[%s6292_s10 + $0x108] sm:$0xff]   ;;  %v5124_v35 = vld [vmem:[%s6292_s10 + $0x110] sm:$0xff]   ;;  %v5128_v39 = vld [vmem:[%s6292_s10 + $0x118] sm:$0xff]  }
 0x148   : > { %v5121_v32 = vld [vmem:[%s6292_s10 + $0x1c8] sm:$0xff]   ;;  %v5125_v36 = vld [vmem:[%s6292_s10 + $0x1d0] sm:$0xff]   ;;  %v5129_v40 = vld [vmem:[%s6292_s10 + $0x1d8] sm:$0xff]  }
 0x149   : > { %4743 = vmatpush3.bf16.msra.mxu0 %v5093_v2  ;;  %v5122_v33 = vld [vmem:[%s6292_s10 + $0x188] sm:$0xff]   ;;  %v5126_v37 = vld [vmem:[%s6292_s10 + $0x190] sm:$0xff]   ;;  %v5130_v41 = vld [vmem:[%s6292_s10 + $0x198] sm:$0xff]  }
 0x14a   : > { %4765 = vmatpush3.bf16.msra.mxu1 %v5094_v3  ;;  %4744 = vmatprep.subr.bf16.mxu0 %v5095_v4  ;;  %v5131_v42 = vld [vmem:[%s6292_s10 + $0x160] sm:$0xff]   ;;  %v5135_v46 = vld [vmem:[%s6292_s10 + $0x168] sm:$0xff]   ;;  %v5139_v50 = vld [vmem:[%s6292_s10 + $0x170] sm:$0xff]  }
 0x14b   : > { %4766 = vmatprep.subr.bf16.mxu1 %v5096_v5  ;;  %v5132_v43 = vld [vmem:[%s6292_s10 + $0x120] sm:$0xff]   ;;  %v5136_v47 = vld [vmem:[%s6292_s10 + $0x128] sm:$0xff]   ;;  %v5140_v51 = vld [vmem:[%s6292_s10 + $0x130] sm:$0xff]  }
 0x14c   : > { %v5133_v44 = vld [vmem:[%s6292_s10 + $0x1e0] sm:$0xff]   ;;  %v5137_v48 = vld [vmem:[%s6292_s10 + $0x1e8] sm:$0xff]   ;;  %v5141_v52 = vld [vmem:[%s6292_s10 + $0x1f0] sm:$0xff]  }
 0x14d   : > { %4745 = vmatpush3.bf16.msra.mxu0 %v5097_v6  ;;  %v5134_v45 = vld [vmem:[%s6292_s10 + $0x1a0] sm:$0xff]   ;;  %v5138_v49 = vld [vmem:[%s6292_s10 + $0x1a8] sm:$0xff]   ;;  %v5142_v53 = vld [vmem:[%s6292_s10 + $0x1b0] sm:$0xff]  }
 0x14e   : > { %4767 = vmatpush3.bf16.msra.mxu1 %v5098_v7  ;;  %4746 = vmatprep.subr.bf16.mxu0 %v5099_v8  ;;  %v5143_v54 = vld [vmem:[%s6292_s10 + $0x178] sm:$0xff]   ;;  %v6376_v55 = vld [vmem:[%s6597_s0 + $0x20] sm:$0xff]  ;;  %v6383_v58 = vld [vmem:[%s6597_s0 + $0x28] sm:$0xff] }
 0x14f   : > { %4768 = vmatprep.subr.bf16.mxu1 %v5100_v9  ;;  %v5144_v56 = vld [vmem:[%s6292_s10 + $0x138] sm:$0xff]   ;;  %v5149_v61 = vld [vmem:[%s6292_s10 + $0x240] sm:$0xff]   ;;  %v4498_v0 = vcombine.high %v6376_v55, %v6376_v55  ;;  %v4500_v3 = vcombine.high %v6383_v58, %v6383_v58  ;;  %v5155_v4 = vld [vmem:[%s6292_s10 + $0x248] sm:$0xff]  }
 0x150   : > { %v5145_v57 = vld [vmem:[%s6292_s10 + $0x1f8] sm:$0xff]   ;;  %v5152_v63 = vld [vmem:[%s6292_s10 + $0x200] sm:$0xff]   ;;  %v5156_v5 = vld [vmem:[%s6292_s10 + $0x208] sm:$0xff]  }
 0x151   : > { %4747 = vmatpush3.bf16.msra.mxu0 %v5101_v10  ;;  %v5148_v60 = vld [vmem:[%s6292_s10 + $0x1b8] sm:$0xff]   ;;  %v5153_v1 = vld [vmem:[%s6292_s10 + $0x2c0] sm:$0xff]   ;;  %v5157_v6 = vld [vmem:[%s6292_s10 + $0x2c8] sm:$0xff]  }
 0x152   : > { %4769 = vmatpush3.bf16.msra.mxu1 %v5102_v11  ;;  %4748 = vmatprep.subr.bf16.mxu0 %v5103_v12  ;;  %v5154_v2 = vld [vmem:[%s6292_s10 + $0x280] sm:$0xff]   ;;  %v5158_v7 = vld [vmem:[%s6292_s10 + $0x288] sm:$0xff]   ;;  %v5159_v8 = vld [vmem:[%s6292_s10 + $0x250] sm:$0xff]  }
 0x153   : > { %4770 = vmatprep.subr.bf16.mxu1 %v5104_v13  ;;  %v5160_v9 = vld [vmem:[%s6292_s10 + $0x210] sm:$0xff]   ;;  %v5163_v12 = vld [vmem:[%s6292_s10 + $0x258] sm:$0xff]   ;;  %v5168_v17 = vld [vmem:[%s6292_s10 + $0x220] sm:$0xff]  }
 0x154   : > { %v5161_v10 = vld [vmem:[%s6292_s10 + $0x2d0] sm:$0xff]   ;;  %v5164_v13 = vld [vmem:[%s6292_s10 + $0x218] sm:$0xff]   ;;  %v5171_v20 = vld [vmem:[%s6292_s10 + $0x268] sm:$0xff]  }
 0x155   : > { %4749 = vmatpush3.bf16.msra.mxu0 %v5105_v14  ;;  %v5162_v11 = vld [vmem:[%s6292_s10 + $0x290] sm:$0xff]   ;;  %v5165_v14 = vld [vmem:[%s6292_s10 + $0x2d8] sm:$0xff]  }
 0x156   : > { %4771 = vmatpush3.bf16.msra.mxu1 %v5106_v15  ;;  %4750 = vmatprep.subr.bf16.mxu0 %v5107_v16  ;;  %v5166_v15 = vld [vmem:[%s6292_s10 + $0x298] sm:$0xff]   ;;  %v5167_v16 = vld [vmem:[%s6292_s10 + $0x260] sm:$0xff]  }
 0x157   : > { %4772 = vmatprep.subr.bf16.mxu1 %v5108_v18  ;;  %v5169_v18 = vld [vmem:[%s6292_s10 + $0x2e0] sm:$0xff]  }
 0x159   : > { %4751 = vmatpush3.bf16.msra.mxu0 %v5109_v19  ;;  %v5170_v19 = vld [vmem:[%s6292_s10 + $0x2a0] sm:$0xff]  }
 0x15a   : > { %4773 = vmatpush3.bf16.msra.mxu1 %v5110_v21  ;;  %4780 = vmatprep.subr.bf16.mxu0 %v5115_v24  ;;  %v5172_v21 = vld [vmem:[%s6292_s10 + $0x228] sm:$0xff]   ;;  %v5175_v24 = vld [vmem:[%s6292_s10 + $0x270] sm:$0xff]  }
 0x15b   : > { %4802 = vmatprep.subr.bf16.mxu1 %v5117_v27  ;;  %v5178_v27 = vld [vmem:[%s6292_s10 + $0x2b0] sm:$0xff]  }
 0x15c   : > { %3860 = vmatmul.mubr.bf16.vlgmr.msra.gmra.mrb[0].mxu0 %v4489_v22  ;;  %v5173_v22 = vld [vmem:[%s6292_s10 + $0x2e8] sm:$0xff]  }
 0x15d   : > { %3900 = vmatmul.mubr.bf16.vlgmr.msra.gmra.mrb[0].mxu1 %v4491_v23  ;;  %4781 = vmatpush3.bf16.msra.mxu0 %v5116_v25  ;;  %v5174_v23 = vld [vmem:[%s6292_s10 + $0x2a8] sm:$0xff]   ;;  %v5176_v25 = vld [vmem:[%s6292_s10 + $0x230] sm:$0xff]  }
 0x15e   : > { %3939 = vmatprep.mubr.bf16.mxu0 %v4494_v26  ;;  %4803 = vmatpush3.bf16.msra.mxu1 %v5118_v28  ;;  %v5177_v26 = vld [vmem:[%s6292_s10 + $0x2f0] sm:$0xff]   ;;  %v5179_v28 = vld [vmem:[%s6292_s10 + $0x278] sm:$0xff]  }
 0x15f   : > { %4782 = vmatprep.subr.bf16.mxu0 %v5119_v30  ;;  %3979 = vmatprep.mubr.bf16.mxu1 %v4496_v29  ;;  %v5180_v29 = vld [vmem:[%s6292_s10 + $0x238] sm:$0xff]  }
 0x160   : > { %4804 = vmatprep.subr.bf16.mxu1 %v5121_v32  ;;  %v5181_v30 = vld [vmem:[%s6292_s10 + $0x2f8] sm:$0xff]  }
 0x161   : > { %4783 = vmatpush3.bf16.msra.mxu0 %v5120_v31  ;;  %v4497_v31 = vcombine.low %v6376_v55, %v6376_v55  ;;  %v5184_v32 = vld [vmem:[%s6292_s10 + $0x2b8] sm:$0xff]   ;;  %v5208_v55 = vld [vmem:[%s6292_s10 + $0x328] sm:$0xff]  }
 0x162   : > { %4805 = vmatpush3.bf16.msra.mxu1 %v5122_v33  ;;  %4784 = vmatprep.subr.bf16.mxu0 %v5123_v34  ;;  %v5185_v33 = vld [vmem:[%s6292_s10 + $0x340] sm:$0xff]   ;;  %v4499_v34 = vcombine.low %v6383_v58, %v6383_v58  ;;  %v5211_v58 = vld [vmem:[%s6292_s10 + $0x370] sm:$0xff]  }
 0x163   : > { %4806 = vmatprep.subr.bf16.mxu1 %v5125_v36  ;;  %v5189_v36 = vld [vmem:[%s6292_s10 + $0x3c0] sm:$0xff]  }
 0x165   : > { %4785 = vmatpush3.bf16.msra.mxu0 %v5124_v35  ;;  %v5188_v35 = vld [vmem:[%s6292_s10 + $0x300] sm:$0xff]  }
 0x166   : > { %4807 = vmatpush3.bf16.msra.mxu1 %v5126_v37  ;;  %4786 = vmatprep.subr.bf16.mxu0 %v5127_v38  ;;  %v5190_v37 = vld [vmem:[%s6292_s10 + $0x380] sm:$0xff]   ;;  %v5191_v38 = vld [vmem:[%s6292_s10 + $0x348] sm:$0xff]  }
 0x167   : > { %4808 = vmatprep.subr.bf16.mxu1 %v5129_v40  ;;  %v5193_v40 = vld [vmem:[%s6292_s10 + $0x3c8] sm:$0xff]  }
 0x169   : > { %4787 = vmatpush3.bf16.msra.mxu0 %v5128_v39  ;;  %v5192_v39 = vld [vmem:[%s6292_s10 + $0x308] sm:$0xff]  }
 0x16a   : > { %4809 = vmatpush3.bf16.msra.mxu1 %v5130_v41  ;;  %4788 = vmatprep.subr.bf16.mxu0 %v5131_v42  ;;  %v5194_v41 = vld [vmem:[%s6292_s10 + $0x388] sm:$0xff]   ;;  %v5195_v42 = vld [vmem:[%s6292_s10 + $0x350] sm:$0xff]  }
 0x16b   : > { %4810 = vmatprep.subr.bf16.mxu1 %v5133_v44  ;;  %v5197_v44 = vld [vmem:[%s6292_s10 + $0x3d0] sm:$0xff]  }
 0x16d   : > { %4789 = vmatpush3.bf16.msra.mxu0 %v5132_v43  ;;  %v5196_v43 = vld [vmem:[%s6292_s10 + $0x310] sm:$0xff]  }
 0x16e   : > { %4811 = vmatpush3.bf16.msra.mxu1 %v5134_v45  ;;  %4790 = vmatprep.subr.bf16.mxu0 %v5135_v46  ;;  %v5198_v45 = vld [vmem:[%s6292_s10 + $0x390] sm:$0xff]   ;;  %v5199_v46 = vld [vmem:[%s6292_s10 + $0x358] sm:$0xff]  }
 0x16f   : > { %4812 = vmatprep.subr.bf16.mxu1 %v5137_v48  ;;  %v5201_v48 = vld [vmem:[%s6292_s10 + $0x3d8] sm:$0xff]  }
 0x171   : > { %4791 = vmatpush3.bf16.msra.mxu0 %v5136_v47  ;;  %v5200_v47 = vld [vmem:[%s6292_s10 + $0x318] sm:$0xff]  }
 0x172   : > { %4813 = vmatpush3.bf16.msra.mxu1 %v5138_v49  ;;  %4792 = vmatprep.subr.bf16.mxu0 %v5139_v50  ;;  %v5202_v49 = vld [vmem:[%s6292_s10 + $0x398] sm:$0xff]   ;;  %v5203_v50 = vld [vmem:[%s6292_s10 + $0x360] sm:$0xff]  }
 0x173   : > { %4814 = vmatprep.subr.bf16.mxu1 %v5141_v52  ;;  %v5205_v52 = vld [vmem:[%s6292_s10 + $0x3e0] sm:$0xff]  }
 0x175   : > { %4793 = vmatpush3.bf16.msra.mxu0 %v5140_v51  ;;  %v5204_v51 = vld [vmem:[%s6292_s10 + $0x320] sm:$0xff]  }
 0x176   : > { %4815 = vmatpush3.bf16.msra.mxu1 %v5142_v53  ;;  %4794 = vmatprep.subr.bf16.mxu0 %v5143_v54  ;;  %v5206_v53 = vld [vmem:[%s6292_s10 + $0x3a0] sm:$0xff]   ;;  %v5207_v54 = vld [vmem:[%s6292_s10 + $0x368] sm:$0xff]  }
 0x177   : > { %4816 = vmatprep.subr.bf16.mxu1 %v5145_v57  ;;  %v5210_v57 = vld [vmem:[%s6292_s10 + $0x3a8] sm:$0xff]  }
 0x179   : > { %4795 = vmatpush3.bf16.msra.mxu0 %v5144_v56  ;;  %v5209_v56 = vld [vmem:[%s6292_s10 + $0x3e8] sm:$0xff]  }
 0x17a   : > { %4817 = vmatpush3.bf16.msra.mxu1 %v5148_v60  ;;  %4824 = vmatprep.subr.bf16.mxu0 %v5149_v61  ;;  %v5213_v60 = vld [vmem:[%s6292_s10 + $0x3f0] sm:$0xff]  }
 0x17b   : > { %4846 = vmatprep.subr.bf16.mxu1 %v5153_v1  ;;  %v5214_v61 = vld [vmem:[%s6292_s10 + $0x3b0] sm:$0xff]  }
 0x17c   : > { %3940 = vmatmul.mubr.bf16.vlgmr.msra.gmra.mrb[4].mxu0 %v4493_v59  ;;  %v5212_v59 = vld [vmem:[%s6292_s10 + $0x330] sm:$0xff]  }
 0x17d   : > { %4825 = vmatpush3.bf16.msra.mxu0 %v5152_v63  ;;  %3980 = vmatmul.mubr.bf16.vlgmr.msra.gmra.mrb[4].mxu1 %v4495_v62  ;;  %v5215_v62 = vld [vmem:[%s6292_s10 + $0x378] sm:$0xff]   ;;  %v1996_v1 = vld [vmem:[%s6597_s0 + $0x30] sm:$0xff] }
 0x17e   : > { %4019 = vmatprep.mubr.bf16.mxu0 %v4498_v0  ;;  %4847 = vmatpush3.bf16.msra.mxu1 %v5154_v2  ;;  %v5216_v63 = vld [vmem:[%s6292_s10 + $0x338] sm:$0xff]   ;;  %v4501_v2 = vcombine.low %v1996_v1, %v1996_v1 }
 0x17f   : > { %4826 = vmatprep.subr.bf16.mxu0 %v5155_v4  ;;  %4059 = vmatprep.mubr.bf16.mxu1 %v4500_v3  ;;  %v5217_v0 = vld [vmem:[%s6292_s10 + $0x3f8] sm:$0xff]   ;;  %v4502_v3 = vcombine.high %v1996_v1, %v1996_v1  ;;  %v5278_v1 = vld [vmem:[%s6292_s10 + $0x5a0] sm:$0xff]  }
 0x180   : > { %4848 = vmatprep.subr.bf16.mxu1 %v5157_v6  ;;  %v5220_v4 = vld [vmem:[%s6292_s10 + $0x3b8] sm:$0xff]  }
 0x181   : > { %4827 = vmatpush3.bf16.msra.mxu0 %v5156_v5  ;;  %v5221_v5 = vld [vmem:[%s6292_s10 + $0x440] sm:$0xff]   ;;  %v1997_v6 = vld [vmem:[%s6597_s0 + $0x38] sm:$0xff] }
 0x182   : > { %4849 = vmatpush3.bf16.msra.mxu1 %v5158_v7  ;;  %4828 = vmatprep.subr.bf16.mxu0 %v5159_v8  ;;  %v4503_v7 = vcombine.low %v1997_v6, %v1997_v6  ;;  %v4504_v8 = vcombine.high %v1997_v6, %v1997_v6  ;;  %v5283_v6 = vld [vmem:[%s6292_s10 + $0x570] sm:$0xff]  }
 0x183   : > { %4850 = vmatprep.subr.bf16.mxu1 %v5161_v10  ;;  %v5225_v10 = vld [vmem:[%s6292_s10 + $0x4c0] sm:$0xff]  }
 0x185   : > { %4829 = vmatpush3.bf16.msra.mxu0 %v5160_v9  ;;  %v5224_v9 = vld [vmem:[%s6292_s10 + $0x400] sm:$0xff]  }
 0x186   : > { %4851 = vmatpush3.bf16.msra.mxu1 %v5162_v11  ;;  %4830 = vmatprep.subr.bf16.mxu0 %v5163_v12  ;;  %v5226_v11 = vld [vmem:[%s6292_s10 + $0x480] sm:$0xff]   ;;  %v5227_v12 = vld [vmem:[%s6292_s10 + $0x448] sm:$0xff]  }
 0x187   : > { %4852 = vmatprep.subr.bf16.mxu1 %v5165_v14  ;;  %v5229_v14 = vld [vmem:[%s6292_s10 + $0x4c8] sm:$0xff]  }
 0x189   : > { %4831 = vmatpush3.bf16.msra.mxu0 %v5164_v13  ;;  %v5228_v13 = vld [vmem:[%s6292_s10 + $0x408] sm:$0xff]  }
 0x18a   : > { %4853 = vmatpush3.bf16.msra.mxu1 %v5166_v15  ;;  %4832 = vmatprep.subr.bf16.mxu0 %v5167_v16  ;;  %v5230_v15 = vld [vmem:[%s6292_s10 + $0x488] sm:$0xff]   ;;  %v5231_v16 = vld [vmem:[%s6292_s10 + $0x450] sm:$0xff]  }
 0x18b   : > { %4854 = vmatprep.subr.bf16.mxu1 %v5169_v18  ;;  %v5233_v18 = vld [vmem:[%s6292_s10 + $0x4d0] sm:$0xff]  }
 0x18d   : > { %4833 = vmatpush3.bf16.msra.mxu0 %v5168_v17  ;;  %v5232_v17 = vld [vmem:[%s6292_s10 + $0x410] sm:$0xff]  }
 0x18e   : > { %4855 = vmatpush3.bf16.msra.mxu1 %v5170_v19  ;;  %4834 = vmatprep.subr.bf16.mxu0 %v5171_v20  ;;  %v5234_v19 = vld [vmem:[%s6292_s10 + $0x490] sm:$0xff]   ;;  %v5235_v20 = vld [vmem:[%s6292_s10 + $0x458] sm:$0xff]  }
 0x18f   : > { %4856 = vmatprep.subr.bf16.mxu1 %v5173_v22  ;;  %v5237_v22 = vld [vmem:[%s6292_s10 + $0x4d8] sm:$0xff]  }
 0x191   : > { %4835 = vmatpush3.bf16.msra.mxu0 %v5172_v21  ;;  %v5236_v21 = vld [vmem:[%s6292_s10 + $0x418] sm:$0xff]  }
 0x192   : > { %4857 = vmatpush3.bf16.msra.mxu1 %v5174_v23  ;;  %4836 = vmatprep.subr.bf16.mxu0 %v5175_v24  ;;  %v5238_v23 = vld [vmem:[%s6292_s10 + $0x498] sm:$0xff]   ;;  %v5239_v24 = vld [vmem:[%s6292_s10 + $0x460] sm:$0xff]  }
 0x193   : > { %4858 = vmatprep.subr.bf16.mxu1 %v5177_v26  ;;  %v5241_v26 = vld [vmem:[%s6292_s10 + $0x4e0] sm:$0xff]  }
 0x195   : > { %4837 = vmatpush3.bf16.msra.mxu0 %v5176_v25  ;;  %v5240_v25 = vld [vmem:[%s6292_s10 + $0x420] sm:$0xff]  }
 0x196   : > { %4859 = vmatpush3.bf16.msra.mxu1 %v5178_v27  ;;  %4838 = vmatprep.subr.bf16.mxu0 %v5179_v28  ;;  %v5242_v27 = vld [vmem:[%s6292_s10 + $0x4a0] sm:$0xff]   ;;  %v5243_v28 = vld [vmem:[%s6292_s10 + $0x468] sm:$0xff]  }
 0x197   : > { %4860 = vmatprep.subr.bf16.mxu1 %v5181_v30  ;;  %v5245_v30 = vld [vmem:[%s6292_s10 + $0x4e8] sm:$0xff]  }
 0x199   : > { %4839 = vmatpush3.bf16.msra.mxu0 %v5180_v29  ;;  %v5244_v29 = vld [vmem:[%s6292_s10 + $0x428] sm:$0xff]  }
 0x19a   : > { %4861 = vmatpush3.bf16.msra.mxu1 %v5184_v32  ;;  %4868 = vmatprep.subr.bf16.mxu0 %v5185_v33  ;;  %v5247_v32 = vld [vmem:[%s6292_s10 + $0x470] sm:$0xff]  }
 0x19b   : > { %4890 = vmatprep.subr.bf16.mxu1 %v5189_v36  ;;  %v5248_v33 = vld [vmem:[%s6292_s10 + $0x430] sm:$0xff]   ;;  %v5251_v36 = vld [vmem:[%s6292_s10 + $0x478] sm:$0xff]  }
 0x19c   : > { %4020 = vmatmul.mubr.bf16.vlgmr.msra.gmra.mrb[8].mxu0 %v4497_v31  ;;  %v5246_v31 = vld [vmem:[%s6292_s10 + $0x4a8] sm:$0xff]  }
 0x19d   : > { %4869 = vmatpush3.bf16.msra.mxu0 %v5188_v35  ;;  %4060 = vmatmul.mubr.bf16.vlgmr.msra.gmra.mrb[8].mxu1 %v4499_v34  ;;  %v5249_v34 = vld [vmem:[%s6292_s10 + $0x4f0] sm:$0xff]  }
 0x19e   : > { %4891 = vmatpush3.bf16.msra.mxu1 %v5190_v37  ;;  %4870 = vmatprep.subr.bf16.mxu0 %v5191_v38  ;;  %v5250_v35 = vld [vmem:[%s6292_s10 + $0x4b0] sm:$0xff]   ;;  %v5252_v37 = vld [vmem:[%s6292_s10 + $0x438] sm:$0xff]  }
 0x19f   : > { %4892 = vmatprep.subr.bf16.mxu1 %v5193_v40  ;;  %4099 = vmatprep.mubr.bf16.mxu0 %v4502_v3  ;;  %v5253_v38 = vld [vmem:[%s6292_s10 + $0x4f8] sm:$0xff]   ;;  %v5280_v3 = vld [vmem:[%s6292_s10 + $0x528] sm:$0xff]  }
 0x1a0   : > { %4139 = vmatprep.mubr.bf16.mxu1 %v4504_v8  ;;  %v5285_v8 = vld [vmem:[%s6292_s10 + $0x5f0] sm:$0xff]  }
 0x1a1   : > { %4871 = vmatpush3.bf16.msra.mxu0 %v5192_v39  ;;  %v1998_v39 = vld [vmem:[%s6597_s0 + $0x40] sm:$0xff] }
 0x1a2   : > { %4893 = vmatpush3.bf16.msra.mxu1 %v5194_v41  ;;  %4872 = vmatprep.subr.bf16.mxu0 %v5195_v42  ;;  %v4505_v40 = vcombine.low %v1998_v39, %v1998_v39  ;;  %v4506_v41 = vcombine.high %v1998_v39, %v1998_v39  ;;  %v5256_v42 = vld [vmem:[%s6292_s10 + $0x4b8] sm:$0xff]   ;;  %v5312_v39 = vld [vmem:[%s6292_s10 + $0x6a8] sm:$0xff]  }
 0x1a3   : > { %4894 = vmatprep.subr.bf16.mxu1 %v5197_v44  ;;  %v1999_v44 = vld [vmem:[%s6597_s0 + $0x48] sm:$0xff] }
 0x1a5   : > { %4873 = vmatpush3.bf16.msra.mxu0 %v5196_v43  ;;  %v5257_v43 = vld [vmem:[%s6292_s10 + $0x540] sm:$0xff]  }
 0x1a6   : > { %4895 = vmatpush3.bf16.msra.mxu1 %v5198_v45  ;;  %4874 = vmatprep.subr.bf16.mxu0 %v5199_v46  ;;  %v4507_v45 = vcombine.low %v1999_v44, %v1999_v44  ;;  %v4508_v46 = vcombine.high %v1999_v44, %v1999_v44  ;;  %v5315_v44 = vld [vmem:[%s6292_s10 + $0x6b0] sm:$0xff]  }
 0x1a7   : > { %4896 = vmatprep.subr.bf16.mxu1 %v5201_v48  ;;  %v5261_v48 = vld [vmem:[%s6292_s10 + $0x5c0] sm:$0xff]  }
 0x1a9   : > { %4875 = vmatpush3.bf16.msra.mxu0 %v5200_v47  ;;  %v5260_v47 = vld [vmem:[%s6292_s10 + $0x500] sm:$0xff]  }
 0x1aa   : > { %4897 = vmatpush3.bf16.msra.mxu1 %v5202_v49  ;;  %4876 = vmatprep.subr.bf16.mxu0 %v5203_v50  ;;  %v5262_v49 = vld [vmem:[%s6292_s10 + $0x580] sm:$0xff]   ;;  %v5263_v50 = vld [vmem:[%s6292_s10 + $0x548] sm:$0xff]  }
 0x1ab   : > { %4898 = vmatprep.subr.bf16.mxu1 %v5205_v52  ;;  %v5265_v52 = vld [vmem:[%s6292_s10 + $0x5c8] sm:$0xff]  }
 0x1ad   : > { %4877 = vmatpush3.bf16.msra.mxu0 %v5204_v51  ;;  %v5264_v51 = vld [vmem:[%s6292_s10 + $0x508] sm:$0xff]  }
 0x1ae   : > { %4899 = vmatpush3.bf16.msra.mxu1 %v5206_v53  ;;  %4878 = vmatprep.subr.bf16.mxu0 %v5207_v54  ;;  %v5266_v53 = vld [vmem:[%s6292_s10 + $0x588] sm:$0xff]   ;;  %v5267_v54 = vld [vmem:[%s6292_s10 + $0x550] sm:$0xff]  }
 0x1af   : > { %4900 = vmatprep.subr.bf16.mxu1 %v5209_v56  ;;  %v5269_v56 = vld [vmem:[%s6292_s10 + $0x5d0] sm:$0xff]  }
 0x1b1   : > { %4879 = vmatpush3.bf16.msra.mxu0 %v5208_v55  ;;  %v5268_v55 = vld [vmem:[%s6292_s10 + $0x510] sm:$0xff]  }
 0x1b2   : > { %4901 = vmatpush3.bf16.msra.mxu1 %v5210_v57  ;;  %4880 = vmatprep.subr.bf16.mxu0 %v5211_v58  ;;  %v5270_v57 = vld [vmem:[%s6292_s10 + $0x590] sm:$0xff]   ;;  %v5271_v58 = vld [vmem:[%s6292_s10 + $0x558] sm:$0xff]  }
 0x1b3   : > { %4902 = vmatprep.subr.bf16.mxu1 %v5213_v60  ;;  %v5273_v60 = vld [vmem:[%s6292_s10 + $0x5d8] sm:$0xff]  }
 0x1b5   : > { %4881 = vmatpush3.bf16.msra.mxu0 %v5212_v59  ;;  %v5272_v59 = vld [vmem:[%s6292_s10 + $0x518] sm:$0xff]  }
 0x1b6   : > { %4903 = vmatpush3.bf16.msra.mxu1 %v5214_v61  ;;  %4882 = vmatprep.subr.bf16.mxu0 %v5215_v62  ;;  %v5274_v61 = vld [vmem:[%s6292_s10 + $0x598] sm:$0xff]   ;;  %v5275_v62 = vld [vmem:[%s6292_s10 + $0x560] sm:$0xff]  }
 0x1b7   : > { %4904 = vmatprep.subr.bf16.mxu1 %v5217_v0  ;;  %v5277_v0 = vld [vmem:[%s6292_s10 + $0x5e0] sm:$0xff]  }
 0x1b9   : > { %4883 = vmatpush3.bf16.msra.mxu0 %v5216_v63  ;;  %v5276_v63 = vld [vmem:[%s6292_s10 + $0x520] sm:$0xff]  }
 0x1ba   : > { %4905 = vmatpush3.bf16.msra.mxu1 %v5220_v4  ;;  %4912 = vmatprep.subr.bf16.mxu0 %v5221_v5  ;;  %v5281_v4 = vld [vmem:[%s6292_s10 + $0x5e8] sm:$0xff]  }
 0x1bb   : > { %4934 = vmatprep.subr.bf16.mxu1 %v5225_v10  ;;  %v5282_v5 = vld [vmem:[%s6292_s10 + $0x5a8] sm:$0xff]   ;;  %v5287_v10 = vld [vmem:[%s6292_s10 + $0x578] sm:$0xff]  }
 0x1bc   : > { %4100 = vmatmul.mubr.bf16.vlgmr.msra.gmra.mrb[12].mxu0 %v4501_v2  ;;  %v5279_v2 = vld [vmem:[%s6292_s10 + $0x568] sm:$0xff]  }
 0x1bd   : > { %4913 = vmatpush3.bf16.msra.mxu0 %v5224_v9  ;;  %4140 = vmatmul.mubr.bf16.vlgmr.msra.gmra.mrb[12].mxu1 %v4503_v7  ;;  %v5284_v7 = vld [vmem:[%s6292_s10 + $0x530] sm:$0xff]  }
 0x1be   : > { %4935 = vmatpush3.bf16.msra.mxu1 %v5226_v11  ;;  %4914 = vmatprep.subr.bf16.mxu0 %v5227_v12  ;;  %v5286_v9 = vld [vmem:[%s6292_s10 + $0x5b0] sm:$0xff]   ;;  %v5288_v11 = vld [vmem:[%s6292_s10 + $0x538] sm:$0xff]  }
 0x1bf   : > { %4936 = vmatprep.subr.bf16.mxu1 %v5229_v14  ;;  %4179 = vmatprep.mubr.bf16.mxu0 %v4506_v41  ;;  %v5289_v12 = vld [vmem:[%s6292_s10 + $0x5f8] sm:$0xff]   ;;  %v2002_v41 = vld [vmem:[%s6597_s0 + $0x60] sm:$0xff] }
 0x1c0   : > { %4219 = vmatprep.mubr.bf16.mxu1 %v4508_v46  ;;  %v5320_v46 = vld [vmem:[%s6292_s10 + $0x6b8] sm:$0xff]  }
 0x1c1   : > { %4915 = vmatpush3.bf16.msra.mxu0 %v5228_v13  ;;  %v2000_v13 = vld [vmem:[%s6597_s0 + $0x50] sm:$0xff] }
 0x1c2   : > { %4937 = vmatpush3.bf16.msra.mxu1 %v5230_v15  ;;  %4916 = vmatprep.subr.bf16.mxu0 %v5231_v16  ;;  %v4509_v14 = vcombine.low %v2000_v13, %v2000_v13  ;;  %v4510_v15 = vcombine.high %v2000_v13, %v2000_v13  ;;  %v5292_v16 = vld [vmem:[%s6292_s10 + $0x5b8] sm:$0xff]  }
 0x1c3   : > { %4938 = vmatprep.subr.bf16.mxu1 %v5233_v18  ;;  %v2001_v18 = vld [vmem:[%s6597_s0 + $0x58] sm:$0xff] }
 0x1c5   : > { %4917 = vmatpush3.bf16.msra.mxu0 %v5232_v17  ;;  %v5293_v17 = vld [vmem:[%s6292_s10 + $0x640] sm:$0xff]  }
 0x1c6   : > { %4939 = vmatpush3.bf16.msra.mxu1 %v5234_v19  ;;  %4918 = vmatprep.subr.bf16.mxu0 %v5235_v20  ;;  %v4511_v19 = vcombine.low %v2001_v18, %v2001_v18  ;;  %v4512_v20 = vcombine.high %v2001_v18, %v2001_v18 }
 0x1c7   : > { %4940 = vmatprep.subr.bf16.mxu1 %v5237_v22  ;;  %v5297_v22 = vld [vmem:[%s6292_s10 + $0x680] sm:$0xff]  }
 0x1c9   : > { %4919 = vmatpush3.bf16.msra.mxu0 %v5236_v21  ;;  %v5296_v21 = vld [vmem:[%s6292_s10 + $0x600] sm:$0xff]  }
 0x1ca   : > { %4941 = vmatpush3.bf16.msra.mxu1 %v5238_v23  ;;  %4920 = vmatprep.subr.bf16.mxu0 %v5239_v24  ;;  %v5298_v23 = vld [vmem:[%s6292_s10 + $0x648] sm:$0xff]   ;;  %v5346_v24 = vmov 0.0  }
 0x1cb   : > { %4942 = vmatprep.subr.bf16.mxu1 %v5241_v26  ;;  %v5300_v26 = vld [vmem:[%s6292_s10 + $0x688] sm:$0xff]  }
 0x1cd   : > { %4921 = vmatpush3.bf16.msra.mxu0 %v5240_v25  ;;  %v5299_v25 = vld [vmem:[%s6292_s10 + $0x608] sm:$0xff]  }
 0x1ce   : > { %4943 = vmatpush3.bf16.msra.mxu1 %v5242_v27  ;;  %4922 = vmatprep.subr.bf16.mxu0 %v5243_v28  ;;  %v5301_v27 = vld [vmem:[%s6292_s10 + $0x650] sm:$0xff]  }
 0x1cf   : > { %4944 = vmatprep.subr.bf16.mxu1 %v5245_v30  ;;  %v5302_v28 = vld [vmem:[%s6292_s10 + $0x610] sm:$0xff]   ;;  %v5304_v30 = vld [vmem:[%s6292_s10 + $0x658] sm:$0xff]  }
 0x1d1   : > { %4923 = vmatpush3.bf16.msra.mxu0 %v5244_v29  ;;  %v5303_v29 = vld [vmem:[%s6292_s10 + $0x690] sm:$0xff]  }
 0x1d2   : > { %4945 = vmatpush3.bf16.msra.mxu1 %v5246_v31  ;;  %4924 = vmatprep.subr.bf16.mxu0 %v5247_v32  ;;  %v5305_v31 = vld [vmem:[%s6292_s10 + $0x618] sm:$0xff]   ;;  %v5307_v32 = vld [vmem:[%s6292_s10 + $0x660] sm:$0xff]  }
 0x1d3   : > { %4946 = vmatprep.subr.bf16.mxu1 %v5249_v34  ;;  %v5308_v34 = vld [vmem:[%s6292_s10 + $0x620] sm:$0xff]  }
 0x1d5   : > { %4925 = vmatpush3.bf16.msra.mxu0 %v5248_v33  ;;  %v5306_v33 = vld [vmem:[%s6292_s10 + $0x698] sm:$0xff]  }
 0x1d6   : > { %4947 = vmatpush3.bf16.msra.mxu1 %v5250_v35  ;;  %4926 = vmatprep.subr.bf16.mxu0 %v5251_v36  ;;  %v5310_v35 = vld [vmem:[%s6292_s10 + $0x668] sm:$0xff]   ;;  %v5309_v36 = vld [vmem:[%s6292_s10 + $0x6a0] sm:$0xff]  }
 0x1d7   : > { %4948 = vmatprep.subr.bf16.mxu1 %v5253_v38  ;;  %v5313_v38 = vld [vmem:[%s6292_s10 + $0x670] sm:$0xff]  }
 0x1d9   : > { %4927 = vmatpush3.bf16.msra.mxu0 %v5252_v37  ;;  %v5311_v37 = vld [vmem:[%s6292_s10 + $0x628] sm:$0xff]  }
 0x1da   : > { %4949 = vmatpush3.bf16.msra.mxu1 %v5256_v42  ;;  %4956 = vmatprep.subr.bf16.mxu0 %v5257_v43  ;;  %v5316_v42 = vld [vmem:[%s6292_s10 + $0x678] sm:$0xff]   ;;  %v4514_v43 = vcombine.high %v2002_v41, %v2002_v41 }
 0x1db   : > { %4978 = vmatprep.subr.bf16.mxu1 %v5261_v48  ;;  %v5321_v48 = vld [vmem:[%s6597_s0 + $0x68] ss:$0 sps:$4 sm:$0xff]  }
 0x1dc   : > { %4180 = vmatmul.mubr.bf16.vlgmr.msra.gmra.mrb[16].mxu0 %v4505_v40  ;;  %v5314_v40 = vld [vmem:[%s6292_s10 + $0x630] sm:$0xff]  }
 0x1dd   : > { %4957 = vmatpush3.bf16.msra.mxu0 %v5260_v47  ;;  %4220 = vmatmul.mubr.bf16.vlgmr.msra.gmra.mrb[16].mxu1 %v4507_v45  ;;  %v5317_v45 = vld [vmem:[%s6292_s10 + $0x638] sm:$0xff]   ;;  %v4513_v47 = vcombine.low %v2002_v41, %v2002_v41 }
 0x1de   : > { %4979 = vmatpush3.bf16.msra.mxu1 %v5262_v49  ;;  %4958 = vmatprep.subr.bf16.mxu0 %v5263_v50 }
 0x1df   : > { %4980 = vmatprep.subr.bf16.mxu1 %v5265_v52  ;;  %4259 = vmatprep.mubr.bf16.mxu0 %v4510_v15 }
 0x1e0   : > { %4299 = vmatprep.mubr.bf16.mxu1 %v4512_v20 }
 0x1e1   : > { %4959 = vmatpush3.bf16.msra.mxu0 %v5264_v51 }
 0x1e2   : > { %4981 = vmatpush3.bf16.msra.mxu1 %v5266_v53  ;;  %4960 = vmatprep.subr.bf16.mxu0 %v5267_v54 }
 0x1e3   : > { %4982 = vmatprep.subr.bf16.mxu1 %v5269_v56 }
 0x1e5   : > { %4961 = vmatpush3.bf16.msra.mxu0 %v5268_v55 }
 0x1e6   : > { %4983 = vmatpush3.bf16.msra.mxu1 %v5270_v57  ;;  %4962 = vmatprep.subr.bf16.mxu0 %v5271_v58 }
 0x1e7   : > { %4984 = vmatprep.subr.bf16.mxu1 %v5273_v60 }
 0x1e9   : > { %4963 = vmatpush3.bf16.msra.mxu0 %v5272_v59 }
 0x1ea   : > { %4985 = vmatpush3.bf16.msra.mxu1 %v5274_v61  ;;  %4964 = vmatprep.subr.bf16.mxu0 %v5275_v62 }
 0x1eb   : > { %4986 = vmatprep.subr.bf16.mxu1 %v5277_v0 }
 0x1ed   : > { %4965 = vmatpush3.bf16.msra.mxu0 %v5276_v63 }
 0x1ee   : > { %4987 = vmatpush3.bf16.msra.mxu1 %v5278_v1  ;;  %4966 = vmatprep.subr.bf16.mxu0 %v5279_v2 }
 0x1ef   : > { %4988 = vmatprep.subr.bf16.mxu1 %v5281_v4 }
 0x1f1   : > { %4967 = vmatpush3.bf16.msra.mxu0 %v5280_v3 }
 0x1f2   : > { %4989 = vmatpush3.bf16.msra.mxu1 %v5282_v5  ;;  %4968 = vmatprep.subr.bf16.mxu0 %v5283_v6 }
 0x1f3   : > { %4990 = vmatprep.subr.bf16.mxu1 %v5285_v8 }
 0x1f5   : > { %4969 = vmatpush3.bf16.msra.mxu0 %v5284_v7 }
 0x1f6   : > { %4991 = vmatpush3.bf16.msra.mxu1 %v5286_v9  ;;  %4970 = vmatprep.subr.bf16.mxu0 %v5287_v10 }
 0x1f7   : > { %4992 = vmatprep.subr.bf16.mxu1 %v5289_v12 }
 0x1f9   : > { %4971 = vmatpush3.bf16.msra.mxu0 %v5288_v11 }
 0x1fa   : > { %4993 = vmatpush3.bf16.msra.mxu1 %v5292_v16  ;;  %5000 = vmatprep.subr.bf16.mxu0 %v5293_v17 }
 0x1fb   : > { %5031 = vmatprep.subr.bf16.mxu1 %v5346_v24 }
 0x1fc   : > { %4260 = vmatmul.mubr.bf16.vlgmr.msra.gmra.mrb[20].mxu0 %v4509_v14 }
 0x1fd   : > { %5001 = vmatpush3.bf16.msra.mxu0 %v5296_v21  ;;  %4300 = vmatmul.mubr.bf16.vlgmr.msra.gmra.mrb[20].mxu1 %v4511_v19 }
 0x1fe   : > { %5032 = vmatpush3.bf16.msra.mxu1 %v5297_v22  ;;  %5002 = vmatprep.subr.bf16.mxu0 %v5298_v23 }
 0x1ff   : > { %5033 = vmatprep.subr.bf16.mxu1 %v5346_v24  ;;  %5047 = vmatprep.mubr.msk.bf16.mxu1 %vm5347_vm0, %v5346_v24 }
 0x200   : > { %4339 = vmatprep.mubr.bf16.mxu0 %v4514_v43 }
 0x201   : > { %5003 = vmatpush3.bf16.msra.mxu0 %v5299_v25 }
 0x202   : > { %5004 = vmatprep.subr.bf16.mxu0 %v5301_v27  ;;  %5034 = vmatpush3.bf16.msra.mxu1 %v5300_v26 }
 0x203   : > { %5035 = vmatprep.subr.bf16.mxu1 %v5346_v24 }
 0x205   : > { %5005 = vmatpush3.bf16.msra.mxu0 %v5302_v28 }
 0x206   : > { %5006 = vmatprep.subr.bf16.mxu0 %v5304_v30  ;;  %5036 = vmatpush3.bf16.msra.mxu1 %v5303_v29 }
 0x207   : > { %5037 = vmatprep.subr.bf16.mxu1 %v5346_v24 }
 0x209   : > { %5007 = vmatpush3.bf16.msra.mxu0 %v5305_v31 }
 0x20a   : > { %5008 = vmatprep.subr.bf16.mxu0 %v5307_v32  ;;  %5038 = vmatpush3.bf16.msra.mxu1 %v5306_v33 }
 0x20b   : > { %5039 = vmatprep.subr.bf16.mxu1 %v5346_v24 }
 0x20d   : > { %5009 = vmatpush3.bf16.msra.mxu0 %v5308_v34 }
 0x20e   : > { %5010 = vmatprep.subr.bf16.mxu0 %v5310_v35  ;;  %5040 = vmatpush3.bf16.msra.mxu1 %v5309_v36 }
 0x20f   : > { %5041 = vmatprep.subr.bf16.mxu1 %v5346_v24 }
 0x211   : > { %5011 = vmatpush3.bf16.msra.mxu0 %v5311_v37 }
 0x212   : > { %5012 = vmatprep.subr.bf16.mxu0 %v5313_v38  ;;  %5042 = vmatpush3.bf16.msra.mxu1 %v5312_v39 }
 0x213   : > { %5043 = vmatprep.subr.bf16.mxu1 %v5346_v24 }
 0x215   : > { %5013 = vmatpush3.bf16.msra.mxu0 %v5314_v40 }
 0x216   : > { %5014 = vmatprep.subr.bf16.mxu0 %v5316_v42  ;;  %5044 = vmatpush3.bf16.msra.mxu1 %v5315_v44 }
 0x217   : > { %5045 = vmatprep.subr.bf16.mxu1 %v5346_v24 }
 0x219   : > { %5015 = vmatpush3.bf16.msra.mxu0 %v5317_v45 }
 0x21a   : > { %5046 = vmatpush3.bf16.msra.mxu1 %v5320_v46 }
 0x21c   : > { %4340 = vmatmul.mubr.bf16.vlgmr.msra.gmra.mrb[24].mxu0 %v4513_v47 }
 0x21d   : > { %5048 = vmatmul.mubr.bf16.vlgmr.msra.gmra.mrb[24].mxu1 %v5321_v48 }
 0x22f   : > { %v4752_v49 = vpop.f32.mrb[0].mxu0 }
 0x230   : > { %v4774_v50 = vpop.f32.mrb[0].mxu1  ;;  %v4753_v51 = vpop.f32.mrb[1].mxu0 }
 0x231   : > { %v4754_v52 = vadd.f32 %v4753_v51, %v4752_v49  ;;  %v4775_v53 = vpop.f32.mrb[1].mxu1  ;;  %v4755_v54 = vpop.f32.mrb[2].mxu0 }
 0x232   : > { %v4776_v55 = vadd.f32 %v4775_v53, %v4774_v50  ;;  %v4756_v56 = vpop.f32.mrb[3].mxu0  ;;  %v4777_v57 = vpop.f32.mrb[2].mxu1 }
 0x233   : > { %v4778_v58 = vpop.f32.mrb[3].mxu1 }
 0x234   : > { %v3902_v59 = vadd.f32 %v4776_v55, %v4754_v52 }
 0x24f   : > { %v4796_v60 = vpop.f32.mrb[4].mxu0 }
 0x250   : > { %v4797_v61 = vpop.f32.mrb[5].mxu0  ;;  %v4818_v0 = vpop.f32.mrb[4].mxu1 }
 0x251   : > { %v4798_v62 = vadd.f32 %v4797_v61, %v4796_v60  ;;  %v4799_v63 = vpop.f32.mrb[6].mxu0  ;;  %v4819_v2 = vpop.f32.mrb[5].mxu1 }
 0x252   : > { %v4800_v1 = vpop.f32.mrb[7].mxu0  ;;  %v4820_v4 = vadd.f32 %v4819_v2, %v4818_v0  ;;  %v4821_v5 = vpop.f32.mrb[6].mxu1 }
 0x253   : > { %v3942_v3 = vadd.f32 %v4798_v62, %v3902_v59  ;;  %v4822_v6 = vpop.f32.mrb[7].mxu1  ;;  %v4732_v1 = vld [vmem:[%s1981_s20] ss:$0 sm:$0xff] }
 0x255   : > { %v3982_v7 = vadd.f32 %v4820_v4, %v3942_v3  ;;  %v4733_v4 = vld [vmem:[%s1984_s24] ss:$0 sm:$0xff] }
 0x26f   : > { %v4840_v8 = vpop.f32.mrb[8].mxu0 }
 0x270   : > { %v4841_v9 = vpop.f32.mrb[9].mxu0  ;;  %v4862_v12 = vpop.f32.mrb[8].mxu1 }
 0x271   : > { %v4842_v10 = vadd.f32 %v4841_v9, %v4840_v8  ;;  %v4843_v11 = vpop.f32.mrb[10].mxu0  ;;  %v4863_v14 = vpop.f32.mrb[9].mxu1 }
 0x272   : > { %v4844_v13 = vpop.f32.mrb[11].mxu0  ;;  %v4864_v16 = vadd.f32 %v4863_v14, %v4862_v12  ;;  %v4865_v17 = vpop.f32.mrb[10].mxu1 }
 0x273   : > { %v4022_v15 = vadd.f32 %v4842_v10, %v3982_v7  ;;  %v4866_v18 = vpop.f32.mrb[11].mxu1 }
 0x275   : > { %v4062_v19 = vadd.f32 %v4864_v16, %v4022_v15 }
 0x28f   : > { %v4884_v20 = vpop.f32.mrb[12].mxu0 }
 0x290   : > { %v4885_v21 = vpop.f32.mrb[13].mxu0  ;;  %v4906_v24 = vpop.f32.mrb[12].mxu1 }
 0x291   : > { %v4886_v22 = vadd.f32 %v4885_v21, %v4884_v20  ;;  %v4887_v23 = vpop.f32.mrb[14].mxu0  ;;  %v4907_v26 = vpop.f32.mrb[13].mxu1 }
 0x292   : > { %v4888_v25 = vpop.f32.mrb[15].mxu0  ;;  %v4908_v28 = vadd.f32 %v4907_v26, %v4906_v24  ;;  %v4909_v29 = vpop.f32.mrb[14].mxu1 }
 0x293   : > { %v4102_v27 = vadd.f32 %v4886_v22, %v4062_v19  ;;  %v4910_v30 = vpop.f32.mrb[15].mxu1 }
 0x295   : > { %v4142_v31 = vadd.f32 %v4908_v28, %v4102_v27 }
 0x2af   : > { %v4928_v32 = vpop.f32.mrb[16].mxu0 }
 0x2b0   : > { %v4929_v33 = vpop.f32.mrb[17].mxu0  ;;  %v4950_v36 = vpop.f32.mrb[16].mxu1 }
 0x2b1   : > { %v4930_v34 = vadd.f32 %v4929_v33, %v4928_v32  ;;  %v4931_v35 = vpop.f32.mrb[18].mxu0  ;;  %v4951_v39 = vpop.f32.mrb[17].mxu1 }
 0x2b2   : > { %v4932_v37 = vpop.f32.mrb[19].mxu0  ;;  %v4952_v40 = vadd.f32 %v4951_v39, %v4950_v36  ;;  %v4953_v41 = vpop.f32.mrb[18].mxu1 }
 0x2b3   : > { %v4182_v38 = vadd.f32 %v4930_v34, %v4142_v31  ;;  %v4954_v42 = vpop.f32.mrb[19].mxu1 }
 0x2b5   : > { %v4222_v43 = vadd.f32 %v4952_v40, %v4182_v38 }
 0x2cf   : > { %v4972_v44 = vpop.f32.mrb[20].mxu0 }
 0x2d0   : > { %v4973_v45 = vpop.f32.mrb[21].mxu0  ;;  %v4994_v48 = vpop.f32.mrb[20].mxu1 }
 0x2d1   : > { %v4974_v46 = vadd.f32 %v4973_v45, %v4972_v44  ;;  %v4975_v47 = vpop.f32.mrb[22].mxu0  ;;  %v4995_v50 = vpop.f32.mrb[21].mxu1 }
 0x2d2   : > { %v4976_v49 = vpop.f32.mrb[23].mxu0  ;;  %v4996_v52 = vadd.f32 %v4995_v50, %v4994_v48  ;;  %v4997_v53 = vpop.f32.mrb[22].mxu1 }
 0x2d3   : > { %v4262_v51 = vadd.f32 %v4974_v46, %v4222_v43  ;;  %v4998_v54 = vpop.f32.mrb[23].mxu1 }
 0x2d5   : > { %v4302_v55 = vadd.f32 %v4996_v52, %v4262_v51 }
 0x2ef   : > { %v5016_v56 = vpop.f32.mrb[24].mxu0 }
 0x2f0   : > { %v5017_v57 = vpop.f32.mrb[25].mxu0  ;;  %v4381_v60 = vpop.f32.mrb[24].mxu1 }
 0x2f1   : > { %v5018_v58 = vadd.f32 %v5017_v57, %v5016_v56  ;;  %v5019_v59 = vpop.f32.mrb[26].mxu0  ;;  %v5049_v62 = vpop.f32.mrb[25].mxu1 }
 0x2f2   : > { %v5020_v61 = vpop.f32.mrb[27].mxu0  ;;  %v4384_v0 = vpop.f32.mrb[26].mxu1 }
 0x2f3   : > { %v4342_v63 = vadd.f32 %v5018_v58, %v4302_v55  ;;  %v5050_v2 = vpop.f32.mrb[27].mxu1 }
 0x2f5   : > { %v4382_v3 = vadd.f32 %v4381_v60, %v4342_v63 }
 0x2f7   : > { %v4394_v5 = vmul.f32 %v4732_v1, %v4382_v3 }
 0x2f9   : > { %v4402_v6 = vadd.f32 %v4733_v4, %v4394_v5 }
 0x2fb   : > { %v4403_v7 = vmax.f32 %v4402_v6, 0.0 }
 0x2fd   : > { %4404 = vst [vmem:[%s1988_s27] sm:$0xff] %v4403_v7 }
 0x2fe PF: > { %p11_p9 = scmp.ge.s32.totalorder %s5390_s19, 5   ;;  %s6602_s15 = smov %s5340_s16 }
 0x2ff   : > { %s6603_s16 = smov %s5399_s22  ;;  %s6604_s17 = smov %s5390_s19 }
 0x300   :  { %13 = sbr.rel (!%p11_p9) target bundleno = 2 (0x2), region = 118 }

// kernel: _lambda_.9
= control target key start
LH: loop header
LB: loop body
LE: loop exit
PB: predicated region body
PF: predicated region fallthrough
CT: control target
= control target key end

     0   :  { %s5372_s15 = smov 0   ;;  %s5374_s16 = smov 0   ;;  %s6596_s0 = inlined_call_operand.vmem [shape: bf16[8,3456], index: 0, kind: input, shape index: {}]   ;;  %s6597_s1 = inlined_call_operand.vmem [shape: bf16[3456,256], index: 1, kind: input, shape index: {}]   ;;  %s6598_s2 = inlined_call_operand.vmem [shape: f32[1,256], index: 2, kind: input, shape index: {}]   ;;  %s6599_s3 = inlined_call_operand.vmem [shape: f32[1,256], index: 3, kind: input, shape index: {}]   ;;  %s6600_s4 = inlined_call_operand.vmem [shape: f32[8,256], index: 4, kind: output, shape index: {}]  }
   0x1   :  { %s5376_s17 = smov 0  }
   0x2 LB: > { %s4481_s18 = sadd.s32 4294967295, %s5343_s17   ;;  %s5389_s19 = sadd.s32 1, %s5343_s17   ;;  %s5343_s17 = sphi %s5376_s17, %s6603_s17   ;;  %s5339_s16 = sphi %s5374_s16, %s6602_s16   ;;  %s5335_s15 = sphi %s5372_s15, %s6601_s15  }
   0x3   : > { %s39_s20 = ssub.s32 %s5343_s17, %s5389_s19  ;;  %s42_s21 = sadd.s32 1, %s5339_s16 }
   0x4   : > { %p40_p0 = scmp.eq.s32.totalorder %s39_s20, 0  ;;  %p49_p1 = scmp.ne.s32.totalorder %s5339_s16, %s5335_s15 }
   0x5   : > { %p50_p2 = scmp.eq.s32.totalorder %s5343_s17, 0  ;;  %p4484_p4 = scmp.ge.s32.totalorder %s5343_s17, 2 }
   0x6   : > { %s5398_s22 = scalar_select %p40_p0, %s5339_s16, %s42_s21  }
   0x7   : > { %p51_p3 = por %p50_p2, %p49_p1  ;;  %156 = sbr.rel (%p4484_p4) target bundleno = 306 (0x132), region = 20 }
   0xe   : > { %159 = sbr.rel (!%p51_p3) target bundleno = 306 (0x132), region = 24  ;;  %s161_s23 = sand.u32 (%p51_p3), 1, %s5339_s16  }
   0xf   : > { %s4485_s24 = sshll.u32 (%p51_p3), %s5343_s17, 2  ;;  %s5050_s25 = smul.u32 (%p51_p3), 1728, %s161_s23 }
  0x10   : > { %s5406_s28 = scalar_lea.vmem (%p51_p3), %s6597_s1, %s4485_s24 }
  0x11   : > { %v181_v0 = vld [vmem:[%s5406_s28] sm:$0xf] (%p51_p3)  ;;  %v183_v1 = vld [vmem:[%s5406_s28 + $0x8] sm:$0xf] (%p51_p3)  ;;  %v185_v2 = vld [vmem:[%s5406_s28 + $0x10] sm:$0xf] (%p51_p3) }
  0x12   : > { %v187_v3 = vld [vmem:[%s5406_s28 + $0x18] sm:$0xf] (%p51_p3)  ;;  %v189_v4 = vld [vmem:[%s5406_s28 + $0x20] sm:$0xf] (%p51_p3)  ;;  %s5413_s29 = scalar_lea.vmem (%p51_p3), [#allocation2], %s5050_s25 }
  0x13   : > { %182 = vst [vmem:[%s5413_s29] sm:$0xf] (%p51_p3), %v181_v0  ;;  %184 = vst [vmem:[%s5413_s29 + $0x4] sm:$0xf] (%p51_p3), %v183_v1  ;;  %v191_v5 = vld [vmem:[%s5406_s28 + $0x28] sm:$0xf] (%p51_p3) }
  0x14   : > { %186 = vst [vmem:[%s5413_s29 + $0x8] sm:$0xf] (%p51_p3), %v185_v2  ;;  %188 = vst [vmem:[%s5413_s29 + $0xc] sm:$0xf] (%p51_p3), %v187_v3  ;;  %v193_v6 = vld [vmem:[%s5406_s28 + $0x30] sm:$0xf] (%p51_p3) }
  0x15   : > { %190 = vst [vmem:[%s5413_s29 + $0x10] sm:$0xf] %v189_v4  ;;  %v195_v7 = vld [vmem:[%s5406_s28 + $0x38] sm:$0xf]  ;;  %192 = vst [vmem:[%s5413_s29 + $0x14] sm:$0xf] %v191_v5 }
  0x16   : > { %194 = vst [vmem:[%s5413_s29 + $0x18] sm:$0xf] %v193_v6  ;;  %196 = vst [vmem:[%s5413_s29 + $0x1c] sm:$0xf] %v195_v7  ;;  %v197_v8 = vld [vmem:[%s5406_s28 + $0x40] sm:$0xf] }
  0x17   : > { %v199_v9 = vld [vmem:[%s5406_s28 + $0x48] sm:$0xf]  ;;  %v201_v10 = vld [vmem:[%s5406_s28 + $0x50] sm:$0xf]  ;;  %198 = vst [vmem:[%s5413_s29 + $0x20] sm:$0xf] %v197_v8 }
  0x18   : > { %200 = vst [vmem:[%s5413_s29 + $0x24] sm:$0xf] %v199_v9  ;;  %202 = vst [vmem:[%s5413_s29 + $0x28] sm:$0xf] %v201_v10  ;;  %v203_v11 = vld [vmem:[%s5406_s28 + $0x58] sm:$0xf] }
  0x19   : > { %v205_v12 = vld [vmem:[%s5406_s28 + $0x60] sm:$0xf]  ;;  %v207_v13 = vld [vmem:[%s5406_s28 + $0x68] sm:$0xf]  ;;  %204 = vst [vmem:[%s5413_s29 + $0x2c] sm:$0xf] %v203_v11 }
  0x1a   : > { %206 = vst [vmem:[%s5413_s29 + $0x30] sm:$0xf] %v205_v12  ;;  %208 = vst [vmem:[%s5413_s29 + $0x34] sm:$0xf] %v207_v13  ;;  %v209_v14 = vld [vmem:[%s5406_s28 + $0x70] sm:$0xf] }
  0x1b   : > { %v211_v15 = vld [vmem:[%s5406_s28 + $0x78] sm:$0xf]  ;;  %v213_v16 = vld [vmem:[%s5406_s28 + $0x80] sm:$0xf]  ;;  %210 = vst [vmem:[%s5413_s29 + $0x38] sm:$0xf] %v209_v14 }
  0x1c   : > { %212 = vst [vmem:[%s5413_s29 + $0x3c] sm:$0xf] %v211_v15  ;;  %214 = vst [vmem:[%s5413_s29 + $0x40] sm:$0xf] %v213_v16  ;;  %v215_v17 = vld [vmem:[%s5406_s28 + $0x88] sm:$0xf] }
  0x1d   : > { %v217_v18 = vld [vmem:[%s5406_s28 + $0x90] sm:$0xf]  ;;  %v219_v19 = vld [vmem:[%s5406_s28 + $0x98] sm:$0xf]  ;;  %216 = vst [vmem:[%s5413_s29 + $0x44] sm:$0xf] %v215_v17 }
  0x1e   : > { %218 = vst [vmem:[%s5413_s29 + $0x48] sm:$0xf] %v217_v18  ;;  %220 = vst [vmem:[%s5413_s29 + $0x4c] sm:$0xf] %v219_v19  ;;  %v221_v20 = vld [vmem:[%s5406_s28 + $0xa0] sm:$0xf] }
  0x1f   : > { %v223_v21 = vld [vmem:[%s5406_s28 + $0xa8] sm:$0xf]  ;;  %v225_v22 = vld [vmem:[%s5406_s28 + $0xb0] sm:$0xf]  ;;  %222 = vst [vmem:[%s5413_s29 + $0x50] sm:$0xf] %v221_v20 }
  0x20   : > { %224 = vst [vmem:[%s5413_s29 + $0x54] sm:$0xf] %v223_v21  ;;  %226 = vst [vmem:[%s5413_s29 + $0x58] sm:$0xf] %v225_v22  ;;  %v227_v23 = vld [vmem:[%s5406_s28 + $0xb8] sm:$0xf] }
  0x21   : > { %v229_v24 = vld [vmem:[%s5406_s28 + $0xc0] sm:$0xf]  ;;  %v231_v25 = vld [vmem:[%s5406_s28 + $0xc8] sm:$0xf]  ;;  %228 = vst [vmem:[%s5413_s29 + $0x5c] sm:$0xf] %v227_v23 }
  0x22   : > { %230 = vst [vmem:[%s5413_s29 + $0x60] sm:$0xf] %v229_v24  ;;  %232 = vst [vmem:[%s5413_s29 + $0x64] sm:$0xf] %v231_v25  ;;  %v233_v26 = vld [vmem:[%s5406_s28 + $0xd0] sm:$0xf] }
  0x23   : > { %v235_v27 = vld [vmem:[%s5406_s28 + $0xd8] sm:$0xf]  ;;  %v237_v28 = vld [vmem:[%s5406_s28 + $0xe0] sm:$0xf]  ;;  %234 = vst [vmem:[%s5413_s29 + $0x68] sm:$0xf] %v233_v26 }
  0x24   : > { %236 = vst [vmem:[%s5413_s29 + $0x6c] sm:$0xf] %v235_v27  ;;  %238 = vst [vmem:[%s5413_s29 + $0x70] sm:$0xf] %v237_v28  ;;  %v239_v29 = vld [vmem:[%s5406_s28 + $0xe8] sm:$0xf] }
  0x25   : > { %v241_v30 = vld [vmem:[%s5406_s28 + $0xf0] sm:$0xf]  ;;  %v243_v31 = vld [vmem:[%s5406_s28 + $0xf8] sm:$0xf]  ;;  %240 = vst [vmem:[%s5413_s29 + $0x74] sm:$0xf] %v239_v29 }
  0x26   : > { %242 = vst [vmem:[%s5413_s29 + $0x78] sm:$0xf] %v241_v30  ;;  %244 = vst [vmem:[%s5413_s29 + $0x7c] sm:$0xf] %v243_v31  ;;  %v245_v32 = vld [vmem:[%s5406_s28 + $0x100] sm:$0xf] }
  0x27   : > { %v247_v33 = vld [vmem:[%s5406_s28 + $0x108] sm:$0xf]  ;;  %v249_v34 = vld [vmem:[%s5406_s28 + $0x110] sm:$0xf]  ;;  %246 = vst [vmem:[%s5413_s29 + $0x80] sm:$0xf] %v245_v32 }
  0x28   : > { %248 = vst [vmem:[%s5413_s29 + $0x84] sm:$0xf] %v247_v33  ;;  %250 = vst [vmem:[%s5413_s29 + $0x88] sm:$0xf] %v249_v34  ;;  %v251_v35 = vld [vmem:[%s5406_s28 + $0x118] sm:$0xf] }
  0x29   : > { %v253_v36 = vld [vmem:[%s5406_s28 + $0x120] sm:$0xf]  ;;  %v255_v37 = vld [vmem:[%s5406_s28 + $0x128] sm:$0xf]  ;;  %252 = vst [vmem:[%s5413_s29 + $0x8c] sm:$0xf] %v251_v35 }
  0x2a   : > { %254 = vst [vmem:[%s5413_s29 + $0x90] sm:$0xf] %v253_v36  ;;  %256 = vst [vmem:[%s5413_s29 + $0x94] sm:$0xf] %v255_v37  ;;  %v257_v38 = vld [vmem:[%s5406_s28 + $0x130] sm:$0xf] }
  0x2b   : > { %v259_v39 = vld [vmem:[%s5406_s28 + $0x138] sm:$0xf]  ;;  %v261_v40 = vld [vmem:[%s5406_s28 + $0x140] sm:$0xf]  ;;  %258 = vst [vmem:[%s5413_s29 + $0x98] sm:$0xf] %v257_v38 }
  0x2c   : > { %260 = vst [vmem:[%s5413_s29 + $0x9c] sm:$0xf] %v259_v39  ;;  %262 = vst [vmem:[%s5413_s29 + $0xa0] sm:$0xf] %v261_v40  ;;  %v263_v41 = vld [vmem:[%s5406_s28 + $0x148] sm:$0xf] }
  0x2d   : > { %v265_v42 = vld [vmem:[%s5406_s28 + $0x150] sm:$0xf]  ;;  %v267_v43 = vld [vmem:[%s5406_s28 + $0x158] sm:$0xf]  ;;  %264 = vst [vmem:[%s5413_s29 + $0xa4] sm:$0xf] %v263_v41 }
  0x2e   : > { %266 = vst [vmem:[%s5413_s29 + $0xa8] sm:$0xf] %v265_v42  ;;  %268 = vst [vmem:[%s5413_s29 + $0xac] sm:$0xf] %v267_v43  ;;  %v269_v44 = vld [vmem:[%s5406_s28 + $0x160] sm:$0xf] }
  0x2f   : > { %v271_v45 = vld [vmem:[%s5406_s28 + $0x168] sm:$0xf]  ;;  %v273_v46 = vld [vmem:[%s5406_s28 + $0x170] sm:$0xf]  ;;  %270 = vst [vmem:[%s5413_s29 + $0xb0] sm:$0xf] %v269_v44 }
  0x30   : > { %272 = vst [vmem:[%s5413_s29 + $0xb4] sm:$0xf] %v271_v45  ;;  %274 = vst [vmem:[%s5413_s29 + $0xb8] sm:$0xf] %v273_v46  ;;  %v275_v47 = vld [vmem:[%s5406_s28 + $0x178] sm:$0xf] }
  0x31   : > { %v277_v48 = vld [vmem:[%s5406_s28 + $0x180] sm:$0xf]  ;;  %v279_v49 = vld [vmem:[%s5406_s28 + $0x188] sm:$0xf]  ;;  %276 = vst [vmem:[%s5413_s29 + $0xbc] sm:$0xf] %v275_v47 }
  0x32   : > { %278 = vst [vmem:[%s5413_s29 + $0xc0] sm:$0xf] %v277_v48  ;;  %280 = vst [vmem:[%s5413_s29 + $0xc4] sm:$0xf] %v279_v49  ;;  %v281_v50 = vld [vmem:[%s5406_s28 + $0x190] sm:$0xf] }
  0x33   : > { %v283_v51 = vld [vmem:[%s5406_s28 + $0x198] sm:$0xf]  ;;  %v285_v52 = vld [vmem:[%s5406_s28 + $0x1a0] sm:$0xf]  ;;  %282 = vst [vmem:[%s5413_s29 + $0xc8] sm:$0xf] %v281_v50 }
  0x34   : > { %284 = vst [vmem:[%s5413_s29 + $0xcc] sm:$0xf] %v283_v51  ;;  %286 = vst [vmem:[%s5413_s29 + $0xd0] sm:$0xf] %v285_v52  ;;  %v287_v53 = vld [vmem:[%s5406_s28 + $0x1a8] sm:$0xf] }
  0x35   : > { %v289_v54 = vld [vmem:[%s5406_s28 + $0x1b0] sm:$0xf]  ;;  %v291_v55 = vld [vmem:[%s5406_s28 + $0x1b8] sm:$0xf]  ;;  %288 = vst [vmem:[%s5413_s29 + $0xd4] sm:$0xf] %v287_v53 }
  0x36   : > { %290 = vst [vmem:[%s5413_s29 + $0xd8] sm:$0xf] %v289_v54  ;;  %292 = vst [vmem:[%s5413_s29 + $0xdc] sm:$0xf] %v291_v55  ;;  %v293_v56 = vld [vmem:[%s5406_s28 + $0x1c0] sm:$0xf] }
  0x37   : > { %v295_v57 = vld [vmem:[%s5406_s28 + $0x1c8] sm:$0xf]  ;;  %v297_v58 = vld [vmem:[%s5406_s28 + $0x1d0] sm:$0xf]  ;;  %294 = vst [vmem:[%s5413_s29 + $0xe0] sm:$0xf] %v293_v56 }
  0x38   : > { %296 = vst [vmem:[%s5413_s29 + $0xe4] sm:$0xf] %v295_v57  ;;  %298 = vst [vmem:[%s5413_s29 + $0xe8] sm:$0xf] %v297_v58  ;;  %v299_v59 = vld [vmem:[%s5406_s28 + $0x1d8] sm:$0xf] }
  0x39   : > { %v301_v60 = vld [vmem:[%s5406_s28 + $0x1e0] sm:$0xf]  ;;  %v303_v61 = vld [vmem:[%s5406_s28 + $0x1e8] sm:$0xf]  ;;  %300 = vst [vmem:[%s5413_s29 + $0xec] sm:$0xf] %v299_v59 }
  0x3a   : > { %302 = vst [vmem:[%s5413_s29 + $0xf0] sm:$0xf] %v301_v60  ;;  %304 = vst [vmem:[%s5413_s29 + $0xf4] sm:$0xf] %v303_v61  ;;  %v305_v62 = vld [vmem:[%s5406_s28 + $0x1f0] sm:$0xf] }
  0x3b   : > { %v307_v63 = vld [vmem:[%s5406_s28 + $0x1f8] sm:$0xf]  ;;  %v309_v0 = vld [vmem:[%s5406_s28 + $0x200] sm:$0xf]  ;;  %306 = vst [vmem:[%s5413_s29 + $0xf8] sm:$0xf] %v305_v62 }
  0x3c   : > { %308 = vst [vmem:[%s5413_s29 + $0xfc] sm:$0xf] %v307_v63  ;;  %310 = vst [vmem:[%s5413_s29 + $0x100] sm:$0xf] %v309_v0  ;;  %v311_v1 = vld [vmem:[%s5406_s28 + $0x208] sm:$0xf] }
  0x3d   : > { %v313_v2 = vld [vmem:[%s5406_s28 + $0x210] sm:$0xf]  ;;  %v315_v3 = vld [vmem:[%s5406_s28 + $0x218] sm:$0xf]  ;;  %312 = vst [vmem:[%s5413_s29 + $0x104] sm:$0xf] %v311_v1 }
  0x3e   : > { %314 = vst [vmem:[%s5413_s29 + $0x108] sm:$0xf] %v313_v2  ;;  %316 = vst [vmem:[%s5413_s29 + $0x10c] sm:$0xf] %v315_v3  ;;  %v317_v4 = vld [vmem:[%s5406_s28 + $0x220] sm:$0xf] }
  0x3f   : > { %v319_v5 = vld [vmem:[%s5406_s28 + $0x228] sm:$0xf]  ;;  %v321_v6 = vld [vmem:[%s5406_s28 + $0x230] sm:$0xf]  ;;  %318 = vst [vmem:[%s5413_s29 + $0x110] sm:$0xf] %v317_v4 }
  0x40   : > { %320 = vst [vmem:[%s5413_s29 + $0x114] sm:$0xf] %v319_v5  ;;  %322 = vst [vmem:[%s5413_s29 + $0x118] sm:$0xf] %v321_v6  ;;  %v323_v7 = vld [vmem:[%s5406_s28 + $0x238] sm:$0xf] }
  0x41   : > { %v325_v8 = vld [vmem:[%s5406_s28 + $0x240] sm:$0xf]  ;;  %v327_v9 = vld [vmem:[%s5406_s28 + $0x248] sm:$0xf]  ;;  %324 = vst [vmem:[%s5413_s29 + $0x11c] sm:$0xf] %v323_v7 }
  0x42   : > { %326 = vst [vmem:[%s5413_s29 + $0x120] sm:$0xf] %v325_v8  ;;  %328 = vst [vmem:[%s5413_s29 + $0x124] sm:$0xf] %v327_v9  ;;  %v329_v10 = vld [vmem:[%s5406_s28 + $0x250] sm:$0xf] }
  0x43   : > { %v331_v11 = vld [vmem:[%s5406_s28 + $0x258] sm:$0xf]  ;;  %v333_v12 = vld [vmem:[%s5406_s28 + $0x260] sm:$0xf]  ;;  %330 = vst [vmem:[%s5413_s29 + $0x128] sm:$0xf] %v329_v10 }
  0x44   : > { %332 = vst [vmem:[%s5413_s29 + $0x12c] sm:$0xf] %v331_v11  ;;  %334 = vst [vmem:[%s5413_s29 + $0x130] sm:$0xf] %v333_v12  ;;  %v335_v13 = vld [vmem:[%s5406_s28 + $0x268] sm:$0xf] }
  0x45   : > { %v337_v14 = vld [vmem:[%s5406_s28 + $0x270] sm:$0xf]  ;;  %v339_v15 = vld [vmem:[%s5406_s28 + $0x278] sm:$0xf]  ;;  %336 = vst [vmem:[%s5413_s29 + $0x134] sm:$0xf] %v335_v13 }
  0x46   : > { %338 = vst [vmem:[%s5413_s29 + $0x138] sm:$0xf] %v337_v14  ;;  %340 = vst [vmem:[%s5413_s29 + $0x13c] sm:$0xf] %v339_v15  ;;  %v341_v16 = vld [vmem:[%s5406_s28 + $0x280] sm:$0xf] }
  0x47   : > { %v343_v17 = vld [vmem:[%s5406_s28 + $0x288] sm:$0xf]  ;;  %v345_v18 = vld [vmem:[%s5406_s28 + $0x290] sm:$0xf]  ;;  %342 = vst [vmem:[%s5413_s29 + $0x140] sm:$0xf] %v341_v16 }
  0x48   : > { %344 = vst [vmem:[%s5413_s29 + $0x144] sm:$0xf] %v343_v17  ;;  %346 = vst [vmem:[%s5413_s29 + $0x148] sm:$0xf] %v345_v18  ;;  %v347_v19 = vld [vmem:[%s5406_s28 + $0x298] sm:$0xf] }
  0x49   : > { %v349_v20 = vld [vmem:[%s5406_s28 + $0x2a0] sm:$0xf]  ;;  %v351_v21 = vld [vmem:[%s5406_s28 + $0x2a8] sm:$0xf]  ;;  %348 = vst [vmem:[%s5413_s29 + $0x14c] sm:$0xf] %v347_v19 }
  0x4a   : > { %350 = vst [vmem:[%s5413_s29 + $0x150] sm:$0xf] %v349_v20  ;;  %352 = vst [vmem:[%s5413_s29 + $0x154] sm:$0xf] %v351_v21  ;;  %v353_v22 = vld [vmem:[%s5406_s28 + $0x2b0] sm:$0xf] }
  0x4b   : > { %v355_v23 = vld [vmem:[%s5406_s28 + $0x2b8] sm:$0xf]  ;;  %v357_v24 = vld [vmem:[%s5406_s28 + $0x2c0] sm:$0xf]  ;;  %354 = vst [vmem:[%s5413_s29 + $0x158] sm:$0xf] %v353_v22 }
  0x4c   : > { %356 = vst [vmem:[%s5413_s29 + $0x15c] sm:$0xf] %v355_v23  ;;  %358 = vst [vmem:[%s5413_s29 + $0x160] sm:$0xf] %v357_v24  ;;  %v359_v25 = vld [vmem:[%s5406_s28 + $0x2c8] sm:$0xf] }
  0x4d   : > { %v361_v26 = vld [vmem:[%s5406_s28 + $0x2d0] sm:$0xf]  ;;  %v363_v27 = vld [vmem:[%s5406_s28 + $0x2d8] sm:$0xf]  ;;  %360 = vst [vmem:[%s5413_s29 + $0x164] sm:$0xf] %v359_v25 }
  0x4e   : > { %362 = vst [vmem:[%s5413_s29 + $0x168] sm:$0xf] %v361_v26  ;;  %364 = vst [vmem:[%s5413_s29 + $0x16c] sm:$0xf] %v363_v27  ;;  %v365_v28 = vld [vmem:[%s5406_s28 + $0x2e0] sm:$0xf] }
  0x4f   : > { %v367_v29 = vld [vmem:[%s5406_s28 + $0x2e8] sm:$0xf]  ;;  %v369_v30 = vld [vmem:[%s5406_s28 + $0x2f0] sm:$0xf]  ;;  %366 = vst [vmem:[%s5413_s29 + $0x170] sm:$0xf] %v365_v28 }
  0x50   : > { %368 = vst [vmem:[%s5413_s29 + $0x174] sm:$0xf] %v367_v29  ;;  %370 = vst [vmem:[%s5413_s29 + $0x178] sm:$0xf] %v369_v30  ;;  %v371_v31 = vld [vmem:[%s5406_s28 + $0x2f8] sm:$0xf] }
  0x51   : > { %v373_v32 = vld [vmem:[%s5406_s28 + $0x300] sm:$0xf]  ;;  %v375_v33 = vld [vmem:[%s5406_s28 + $0x308] sm:$0xf]  ;;  %372 = vst [vmem:[%s5413_s29 + $0x17c] sm:$0xf] %v371_v31 }
  0x52   : > { %374 = vst [vmem:[%s5413_s29 + $0x180] sm:$0xf] %v373_v32  ;;  %376 = vst [vmem:[%s5413_s29 + $0x184] sm:$0xf] %v375_v33  ;;  %v377_v34 = vld [vmem:[%s5406_s28 + $0x310] sm:$0xf] }
  0x53   : > { %v379_v35 = vld [vmem:[%s5406_s28 + $0x318] sm:$0xf]  ;;  %v381_v36 = vld [vmem:[%s5406_s28 + $0x320] sm:$0xf]  ;;  %378 = vst [vmem:[%s5413_s29 + $0x188] sm:$0xf] %v377_v34 }
  0x54   : > { %380 = vst [vmem:[%s5413_s29 + $0x18c] sm:$0xf] %v379_v35  ;;  %382 = vst [vmem:[%s5413_s29 + $0x190] sm:$0xf] %v381_v36  ;;  %v383_v37 = vld [vmem:[%s5406_s28 + $0x328] sm:$0xf] }
  0x55   : > { %v385_v38 = vld [vmem:[%s5406_s28 + $0x330] sm:$0xf]  ;;  %v387_v39 = vld [vmem:[%s5406_s28 + $0x338] sm:$0xf]  ;;  %384 = vst [vmem:[%s5413_s29 + $0x194] sm:$0xf] %v383_v37 }
  0x56   : > { %386 = vst [vmem:[%s5413_s29 + $0x198] sm:$0xf] %v385_v38  ;;  %388 = vst [vmem:[%s5413_s29 + $0x19c] sm:$0xf] %v387_v39  ;;  %v389_v40 = vld [vmem:[%s5406_s28 + $0x340] sm:$0xf] }
  0x57   : > { %v391_v41 = vld [vmem:[%s5406_s28 + $0x348] sm:$0xf]  ;;  %v393_v42 = vld [vmem:[%s5406_s28 + $0x350] sm:$0xf]  ;;  %390 = vst [vmem:[%s5413_s29 + $0x1a0] sm:$0xf] %v389_v40 }
  0x58   : > { %392 = vst [vmem:[%s5413_s29 + $0x1a4] sm:$0xf] %v391_v41  ;;  %394 = vst [vmem:[%s5413_s29 + $0x1a8] sm:$0xf] %v393_v42  ;;  %v395_v43 = vld [vmem:[%s5406_s28 + $0x358] sm:$0xf] }
  0x59   : > { %v397_v44 = vld [vmem:[%s5406_s28 + $0x360] sm:$0xf]  ;;  %v399_v45 = vld [vmem:[%s5406_s28 + $0x368] sm:$0xf]  ;;  %396 = vst [vmem:[%s5413_s29 + $0x1ac] sm:$0xf] %v395_v43 }
  0x5a   : > { %398 = vst [vmem:[%s5413_s29 + $0x1b0] sm:$0xf] %v397_v44  ;;  %400 = vst [vmem:[%s5413_s29 + $0x1b4] sm:$0xf] %v399_v45  ;;  %v401_v46 = vld [vmem:[%s5406_s28 + $0x370] sm:$0xf] }
  0x5b   : > { %v403_v47 = vld [vmem:[%s5406_s28 + $0x378] sm:$0xf]  ;;  %v405_v48 = vld [vmem:[%s5406_s28 + $0x380] sm:$0xf]  ;;  %402 = vst [vmem:[%s5413_s29 + $0x1b8] sm:$0xf] %v401_v46 }
  0x5c   : > { %404 = vst [vmem:[%s5413_s29 + $0x1bc] sm:$0xf] %v403_v47  ;;  %406 = vst [vmem:[%s5413_s29 + $0x1c0] sm:$0xf] %v405_v48  ;;  %v407_v49 = vld [vmem:[%s5406_s28 + $0x388] sm:$0xf] }
  0x5d   : > { %v409_v50 = vld [vmem:[%s5406_s28 + $0x390] sm:$0xf]  ;;  %v411_v51 = vld [vmem:[%s5406_s28 + $0x398] sm:$0xf]  ;;  %408 = vst [vmem:[%s5413_s29 + $0x1c4] sm:$0xf] %v407_v49 }
  0x5e   : > { %410 = vst [vmem:[%s5413_s29 + $0x1c8] sm:$0xf] %v409_v50  ;;  %412 = vst [vmem:[%s5413_s29 + $0x1cc] sm:$0xf] %v411_v51  ;;  %v413_v52 = vld [vmem:[%s5406_s28 + $0x3a0] sm:$0xf] }
  0x5f   : > { %v415_v53 = vld [vmem:[%s5406_s28 + $0x3a8] sm:$0xf]  ;;  %v417_v54 = vld [vmem:[%s5406_s28 + $0x3b0] sm:$0xf]  ;;  %414 = vst [vmem:[%s5413_s29 + $0x1d0] sm:$0xf] %v413_v52 }
  0x60   : > { %416 = vst [vmem:[%s5413_s29 + $0x1d4] sm:$0xf] %v415_v53  ;;  %418 = vst [vmem:[%s5413_s29 + $0x1d8] sm:$0xf] %v417_v54  ;;  %v419_v55 = vld [vmem:[%s5406_s28 + $0x3b8] sm:$0xf] }
  0x61   : > { %v421_v56 = vld [vmem:[%s5406_s28 + $0x3c0] sm:$0xf]  ;;  %v423_v57 = vld [vmem:[%s5406_s28 + $0x3c8] sm:$0xf]  ;;  %420 = vst [vmem:[%s5413_s29 + $0x1dc] sm:$0xf] %v419_v55 }
  0x62   : > { %422 = vst [vmem:[%s5413_s29 + $0x1e0] sm:$0xf] %v421_v56  ;;  %424 = vst [vmem:[%s5413_s29 + $0x1e4] sm:$0xf] %v423_v57  ;;  %v425_v58 = vld [vmem:[%s5406_s28 + $0x3d0] sm:$0xf] }
  0x63   : > { %v427_v59 = vld [vmem:[%s5406_s28 + $0x3d8] sm:$0xf]  ;;  %v429_v60 = vld [vmem:[%s5406_s28 + $0x3e0] sm:$0xf]  ;;  %426 = vst [vmem:[%s5413_s29 + $0x1e8] sm:$0xf] %v425_v58 }
  0x64   : > { %428 = vst [vmem:[%s5413_s29 + $0x1ec] sm:$0xf] %v427_v59  ;;  %430 = vst [vmem:[%s5413_s29 + $0x1f0] sm:$0xf] %v429_v60  ;;  %v431_v61 = vld [vmem:[%s5406_s28 + $0x3e8] sm:$0xf] }
  0x65   : > { %v433_v62 = vld [vmem:[%s5406_s28 + $0x3f0] sm:$0xf]  ;;  %v435_v63 = vld [vmem:[%s5406_s28 + $0x3f8] sm:$0xf]  ;;  %432 = vst [vmem:[%s5413_s29 + $0x1f4] sm:$0xf] %v431_v61 }
  0x66   : > { %434 = vst [vmem:[%s5413_s29 + $0x1f8] sm:$0xf] %v433_v62  ;;  %436 = vst [vmem:[%s5413_s29 + $0x1fc] sm:$0xf] %v435_v63  ;;  %v437_v0 = vld [vmem:[%s5406_s28 + $0x400] sm:$0xf] }
  0x67   : > { %v439_v1 = vld [vmem:[%s5406_s28 + $0x408] sm:$0xf]  ;;  %v441_v2 = vld [vmem:[%s5406_s28 + $0x410] sm:$0xf]  ;;  %438 = vst [vmem:[%s5413_s29 + $0x200] sm:$0xf] %v437_v0 }
  0x68   : > { %440 = vst [vmem:[%s5413_s29 + $0x204] sm:$0xf] %v439_v1  ;;  %442 = vst [vmem:[%s5413_s29 + $0x208] sm:$0xf] %v441_v2  ;;  %v443_v3 = vld [vmem:[%s5406_s28 + $0x418] sm:$0xf] }
  0x69   : > { %v445_v4 = vld [vmem:[%s5406_s28 + $0x420] sm:$0xf]  ;;  %v447_v5 = vld [vmem:[%s5406_s28 + $0x428] sm:$0xf]  ;;  %444 = vst [vmem:[%s5413_s29 + $0x20c] sm:$0xf] %v443_v3 }
  0x6a   : > { %446 = vst [vmem:[%s5413_s29 + $0x210] sm:$0xf] %v445_v4  ;;  %448 = vst [vmem:[%s5413_s29 + $0x214] sm:$0xf] %v447_v5  ;;  %v449_v6 = vld [vmem:[%s5406_s28 + $0x430] sm:$0xf] }
  0x6b   : > { %v451_v7 = vld [vmem:[%s5406_s28 + $0x438] sm:$0xf]  ;;  %v453_v8 = vld [vmem:[%s5406_s28 + $0x440] sm:$0xf]  ;;  %450 = vst [vmem:[%s5413_s29 + $0x218] sm:$0xf] %v449_v6 }
  0x6c   : > { %452 = vst [vmem:[%s5413_s29 + $0x21c] sm:$0xf] %v451_v7  ;;  %454 = vst [vmem:[%s5413_s29 + $0x220] sm:$0xf] %v453_v8  ;;  %v455_v9 = vld [vmem:[%s5406_s28 + $0x448] sm:$0xf] }
  0x6d   : > { %v457_v10 = vld [vmem:[%s5406_s28 + $0x450] sm:$0xf]  ;;  %v459_v11 = vld [vmem:[%s5406_s28 + $0x458] sm:$0xf]  ;;  %456 = vst [vmem:[%s5413_s29 + $0x224] sm:$0xf] %v455_v9 }
  0x6e   : > { %458 = vst [vmem:[%s5413_s29 + $0x228] sm:$0xf] %v457_v10  ;;  %460 = vst [vmem:[%s5413_s29 + $0x22c] sm:$0xf] %v459_v11  ;;  %v461_v12 = vld [vmem:[%s5406_s28 + $0x460] sm:$0xf] }
  0x6f   : > { %v463_v13 = vld [vmem:[%s5406_s28 + $0x468] sm:$0xf]  ;;  %v465_v14 = vld [vmem:[%s5406_s28 + $0x470] sm:$0xf]  ;;  %462 = vst [vmem:[%s5413_s29 + $0x230] sm:$0xf] %v461_v12 }
  0x70   : > { %464 = vst [vmem:[%s5413_s29 + $0x234] sm:$0xf] %v463_v13  ;;  %466 = vst [vmem:[%s5413_s29 + $0x238] sm:$0xf] %v465_v14  ;;  %v467_v15 = vld [vmem:[%s5406_s28 + $0x478] sm:$0xf] }
  0x71   : > { %v469_v16 = vld [vmem:[%s5406_s28 + $0x480] sm:$0xf]  ;;  %v471_v17 = vld [vmem:[%s5406_s28 + $0x488] sm:$0xf]  ;;  %468 = vst [vmem:[%s5413_s29 + $0x23c] sm:$0xf] %v467_v15 }
  0x72   : > { %470 = vst [vmem:[%s5413_s29 + $0x240] sm:$0xf] %v469_v16  ;;  %472 = vst [vmem:[%s5413_s29 + $0x244] sm:$0xf] %v471_v17  ;;  %v473_v18 = vld [vmem:[%s5406_s28 + $0x490] sm:$0xf] }
  0x73   : > { %v475_v19 = vld [vmem:[%s5406_s28 + $0x498] sm:$0xf]  ;;  %v477_v20 = vld [vmem:[%s5406_s28 + $0x4a0] sm:$0xf]  ;;  %474 = vst [vmem:[%s5413_s29 + $0x248] sm:$0xf] %v473_v18 }
  0x74   : > { %476 = vst [vmem:[%s5413_s29 + $0x24c] sm:$0xf] %v475_v19  ;;  %478 = vst [vmem:[%s5413_s29 + $0x250] sm:$0xf] %v477_v20  ;;  %v479_v21 = vld [vmem:[%s5406_s28 + $0x4a8] sm:$0xf] }
  0x75   : > { %v481_v22 = vld [vmem:[%s5406_s28 + $0x4b0] sm:$0xf]  ;;  %v483_v23 = vld [vmem:[%s5406_s28 + $0x4b8] sm:$0xf]  ;;  %480 = vst [vmem:[%s5413_s29 + $0x254] sm:$0xf] %v479_v21 }
  0x76   : > { %482 = vst [vmem:[%s5413_s29 + $0x258] sm:$0xf] %v481_v22  ;;  %484 = vst [vmem:[%s5413_s29 + $0x25c] sm:$0xf] %v483_v23  ;;  %v485_v24 = vld [vmem:[%s5406_s28 + $0x4c0] sm:$0xf] }
  0x77   : > { %v487_v25 = vld [vmem:[%s5406_s28 + $0x4c8] sm:$0xf]  ;;  %v489_v26 = vld [vmem:[%s5406_s28 + $0x4d0] sm:$0xf]  ;;  %486 = vst [vmem:[%s5413_s29 + $0x260] sm:$0xf] %v485_v24 }
  0x78   : > { %488 = vst [vmem:[%s5413_s29 + $0x264] sm:$0xf] %v487_v25  ;;  %490 = vst [vmem:[%s5413_s29 + $0x268] sm:$0xf] %v489_v26  ;;  %v491_v27 = vld [vmem:[%s5406_s28 + $0x4d8] sm:$0xf] }
  0x79   : > { %v493_v28 = vld [vmem:[%s5406_s28 + $0x4e0] sm:$0xf]  ;;  %v495_v29 = vld [vmem:[%s5406_s28 + $0x4e8] sm:$0xf]  ;;  %492 = vst [vmem:[%s5413_s29 + $0x26c] sm:$0xf] %v491_v27 }
  0x7a   : > { %494 = vst [vmem:[%s5413_s29 + $0x270] sm:$0xf] %v493_v28  ;;  %496 = vst [vmem:[%s5413_s29 + $0x274] sm:$0xf] %v495_v29  ;;  %v497_v30 = vld [vmem:[%s5406_s28 + $0x4f0] sm:$0xf] }
  0x7b   : > { %v499_v31 = vld [vmem:[%s5406_s28 + $0x4f8] sm:$0xf]  ;;  %v501_v32 = vld [vmem:[%s5406_s28 + $0x500] sm:$0xf]  ;;  %498 = vst [vmem:[%s5413_s29 + $0x278] sm:$0xf] %v497_v30 }
  0x7c   : > { %500 = vst [vmem:[%s5413_s29 + $0x27c] sm:$0xf] %v499_v31  ;;  %502 = vst [vmem:[%s5413_s29 + $0x280] sm:$0xf] %v501_v32  ;;  %v503_v33 = vld [vmem:[%s5406_s28 + $0x508] sm:$0xf] }
  0x7d   : > { %v505_v34 = vld [vmem:[%s5406_s28 + $0x510] sm:$0xf]  ;;  %v507_v35 = vld [vmem:[%s5406_s28 + $0x518] sm:$0xf]  ;;  %504 = vst [vmem:[%s5413_s29 + $0x284] sm:$0xf] %v503_v33 }
  0x7e   : > { %506 = vst [vmem:[%s5413_s29 + $0x288] sm:$0xf] %v505_v34  ;;  %508 = vst [vmem:[%s5413_s29 + $0x28c] sm:$0xf] %v507_v35  ;;  %v509_v36 = vld [vmem:[%s5406_s28 + $0x520] sm:$0xf] }
  0x7f   : > { %v511_v37 = vld [vmem:[%s5406_s28 + $0x528] sm:$0xf]  ;;  %v513_v38 = vld [vmem:[%s5406_s28 + $0x530] sm:$0xf]  ;;  %510 = vst [vmem:[%s5413_s29 + $0x290] sm:$0xf] %v509_v36 }
  0x80   : > { %512 = vst [vmem:[%s5413_s29 + $0x294] sm:$0xf] %v511_v37  ;;  %514 = vst [vmem:[%s5413_s29 + $0x298] sm:$0xf] %v513_v38  ;;  %v515_v39 = vld [vmem:[%s5406_s28 + $0x538] sm:$0xf] }
  0x81   : > { %v517_v40 = vld [vmem:[%s5406_s28 + $0x540] sm:$0xf]  ;;  %v519_v41 = vld [vmem:[%s5406_s28 + $0x548] sm:$0xf]  ;;  %516 = vst [vmem:[%s5413_s29 + $0x29c] sm:$0xf] %v515_v39 }
  0x82   : > { %518 = vst [vmem:[%s5413_s29 + $0x2a0] sm:$0xf] %v517_v40  ;;  %520 = vst [vmem:[%s5413_s29 + $0x2a4] sm:$0xf] %v519_v41  ;;  %v521_v42 = vld [vmem:[%s5406_s28 + $0x550] sm:$0xf] }
  0x83   : > { %v523_v43 = vld [vmem:[%s5406_s28 + $0x558] sm:$0xf]  ;;  %v525_v44 = vld [vmem:[%s5406_s28 + $0x560] sm:$0xf]  ;;  %522 = vst [vmem:[%s5413_s29 + $0x2a8] sm:$0xf] %v521_v42 }
  0x84   : > { %524 = vst [vmem:[%s5413_s29 + $0x2ac] sm:$0xf] %v523_v43  ;;  %526 = vst [vmem:[%s5413_s29 + $0x2b0] sm:$0xf] %v525_v44  ;;  %v527_v45 = vld [vmem:[%s5406_s28 + $0x568] sm:$0xf] }
  0x85   : > { %v529_v46 = vld [vmem:[%s5406_s28 + $0x570] sm:$0xf]  ;;  %v531_v47 = vld [vmem:[%s5406_s28 + $0x578] sm:$0xf]  ;;  %528 = vst [vmem:[%s5413_s29 + $0x2b4] sm:$0xf] %v527_v45 }
  0x86   : > { %530 = vst [vmem:[%s5413_s29 + $0x2b8] sm:$0xf] %v529_v46  ;;  %532 = vst [vmem:[%s5413_s29 + $0x2bc] sm:$0xf] %v531_v47  ;;  %v533_v48 = vld [vmem:[%s5406_s28 + $0x580] sm:$0xf] }
  0x87   : > { %v535_v49 = vld [vmem:[%s5406_s28 + $0x588] sm:$0xf]  ;;  %v537_v50 = vld [vmem:[%s5406_s28 + $0x590] sm:$0xf]  ;;  %534 = vst [vmem:[%s5413_s29 + $0x2c0] sm:$0xf] %v533_v48 }
  0x88   : > { %536 = vst [vmem:[%s5413_s29 + $0x2c4] sm:$0xf] %v535_v49  ;;  %538 = vst [vmem:[%s5413_s29 + $0x2c8] sm:$0xf] %v537_v50  ;;  %v539_v51 = vld [vmem:[%s5406_s28 + $0x598] sm:$0xf] }
  0x89   : > { %v541_v52 = vld [vmem:[%s5406_s28 + $0x5a0] sm:$0xf]  ;;  %v543_v53 = vld [vmem:[%s5406_s28 + $0x5a8] sm:$0xf]  ;;  %540 = vst [vmem:[%s5413_s29 + $0x2cc] sm:$0xf] %v539_v51 }
  0x8a   : > { %542 = vst [vmem:[%s5413_s29 + $0x2d0] sm:$0xf] %v541_v52  ;;  %544 = vst [vmem:[%s5413_s29 + $0x2d4] sm:$0xf] %v543_v53  ;;  %v545_v54 = vld [vmem:[%s5406_s28 + $0x5b0] sm:$0xf] }
  0x8b   : > { %v547_v55 = vld [vmem:[%s5406_s28 + $0x5b8] sm:$0xf]  ;;  %v549_v56 = vld [vmem:[%s5406_s28 + $0x5c0] sm:$0xf]  ;;  %546 = vst [vmem:[%s5413_s29 + $0x2d8] sm:$0xf] %v545_v54 }
  0x8c   : > { %548 = vst [vmem:[%s5413_s29 + $0x2dc] sm:$0xf] %v547_v55  ;;  %550 = vst [vmem:[%s5413_s29 + $0x2e0] sm:$0xf] %v549_v56  ;;  %v551_v57 = vld [vmem:[%s5406_s28 + $0x5c8] sm:$0xf] }
  0x8d   : > { %v553_v58 = vld [vmem:[%s5406_s28 + $0x5d0] sm:$0xf]  ;;  %v555_v59 = vld [vmem:[%s5406_s28 + $0x5d8] sm:$0xf]  ;;  %552 = vst [vmem:[%s5413_s29 + $0x2e4] sm:$0xf] %v551_v57 }
  0x8e   : > { %554 = vst [vmem:[%s5413_s29 + $0x2e8] sm:$0xf] %v553_v58  ;;  %556 = vst [vmem:[%s5413_s29 + $0x2ec] sm:$0xf] %v555_v59  ;;  %v557_v60 = vld [vmem:[%s5406_s28 + $0x5e0] sm:$0xf] }
  0x8f   : > { %v559_v61 = vld [vmem:[%s5406_s28 + $0x5e8] sm:$0xf]  ;;  %v561_v62 = vld [vmem:[%s5406_s28 + $0x5f0] sm:$0xf]  ;;  %558 = vst [vmem:[%s5413_s29 + $0x2f0] sm:$0xf] %v557_v60 }
  0x90   : > { %560 = vst [vmem:[%s5413_s29 + $0x2f4] sm:$0xf] %v559_v61  ;;  %562 = vst [vmem:[%s5413_s29 + $0x2f8] sm:$0xf] %v561_v62  ;;  %v563_v63 = vld [vmem:[%s5406_s28 + $0x5f8] sm:$0xf] }
  0x91   : > { %v565_v0 = vld [vmem:[%s5406_s28 + $0x600] sm:$0xf]  ;;  %v567_v1 = vld [vmem:[%s5406_s28 + $0x608] sm:$0xf]  ;;  %564 = vst [vmem:[%s5413_s29 + $0x2fc] sm:$0xf] %v563_v63 }
  0x92   : > { %566 = vst [vmem:[%s5413_s29 + $0x300] sm:$0xf] %v565_v0  ;;  %568 = vst [vmem:[%s5413_s29 + $0x304] sm:$0xf] %v567_v1  ;;  %v569_v2 = vld [vmem:[%s5406_s28 + $0x610] sm:$0xf] }
  0x93   : > { %v571_v3 = vld [vmem:[%s5406_s28 + $0x618] sm:$0xf]  ;;  %v573_v4 = vld [vmem:[%s5406_s28 + $0x620] sm:$0xf]  ;;  %570 = vst [vmem:[%s5413_s29 + $0x308] sm:$0xf] %v569_v2 }
  0x94   : > { %572 = vst [vmem:[%s5413_s29 + $0x30c] sm:$0xf] %v571_v3  ;;  %574 = vst [vmem:[%s5413_s29 + $0x310] sm:$0xf] %v573_v4  ;;  %v575_v5 = vld [vmem:[%s5406_s28 + $0x628] sm:$0xf] }
  0x95   : > { %v577_v6 = vld [vmem:[%s5406_s28 + $0x630] sm:$0xf]  ;;  %v579_v7 = vld [vmem:[%s5406_s28 + $0x638] sm:$0xf]  ;;  %576 = vst [vmem:[%s5413_s29 + $0x314] sm:$0xf] %v575_v5 }
  0x96   : > { %578 = vst [vmem:[%s5413_s29 + $0x318] sm:$0xf] %v577_v6  ;;  %580 = vst [vmem:[%s5413_s29 + $0x31c] sm:$0xf] %v579_v7  ;;  %v581_v8 = vld [vmem:[%s5406_s28 + $0x640] sm:$0xf] }
  0x97   : > { %v583_v9 = vld [vmem:[%s5406_s28 + $0x648] sm:$0xf]  ;;  %v585_v10 = vld [vmem:[%s5406_s28 + $0x650] sm:$0xf]  ;;  %582 = vst [vmem:[%s5413_s29 + $0x320] sm:$0xf] %v581_v8 }
  0x98   : > { %584 = vst [vmem:[%s5413_s29 + $0x324] sm:$0xf] %v583_v9  ;;  %586 = vst [vmem:[%s5413_s29 + $0x328] sm:$0xf] %v585_v10  ;;  %v587_v11 = vld [vmem:[%s5406_s28 + $0x658] sm:$0xf] }
  0x99   : > { %v589_v12 = vld [vmem:[%s5406_s28 + $0x660] sm:$0xf]  ;;  %v591_v13 = vld [vmem:[%s5406_s28 + $0x668] sm:$0xf]  ;;  %588 = vst [vmem:[%s5413_s29 + $0x32c] sm:$0xf] %v587_v11 }
  0x9a   : > { %590 = vst [vmem:[%s5413_s29 + $0x330] sm:$0xf] %v589_v12  ;;  %592 = vst [vmem:[%s5413_s29 + $0x334] sm:$0xf] %v591_v13  ;;  %v593_v14 = vld [vmem:[%s5406_s28 + $0x670] sm:$0xf] }
  0x9b   : > { %v595_v15 = vld [vmem:[%s5406_s28 + $0x678] sm:$0xf]  ;;  %v597_v16 = vld [vmem:[%s5406_s28 + $0x680] sm:$0xf]  ;;  %594 = vst [vmem:[%s5413_s29 + $0x338] sm:$0xf] %v593_v14 }
  0x9c   : > { %596 = vst [vmem:[%s5413_s29 + $0x33c] sm:$0xf] %v595_v15  ;;  %598 = vst [vmem:[%s5413_s29 + $0x340] sm:$0xf] %v597_v16  ;;  %v599_v17 = vld [vmem:[%s5406_s28 + $0x688] sm:$0xf] }
  0x9d   : > { %v601_v18 = vld [vmem:[%s5406_s28 + $0x690] sm:$0xf]  ;;  %v603_v19 = vld [vmem:[%s5406_s28 + $0x698] sm:$0xf]  ;;  %600 = vst [vmem:[%s5413_s29 + $0x344] sm:$0xf] %v599_v17 }
  0x9e   : > { %602 = vst [vmem:[%s5413_s29 + $0x348] sm:$0xf] %v601_v18  ;;  %604 = vst [vmem:[%s5413_s29 + $0x34c] sm:$0xf] %v603_v19  ;;  %v605_v20 = vld [vmem:[%s5406_s28 + $0x6a0] sm:$0xf] }
  0x9f   : > { %v607_v21 = vld [vmem:[%s5406_s28 + $0x6a8] sm:$0xf]  ;;  %v609_v22 = vld [vmem:[%s5406_s28 + $0x6b0] sm:$0xf]  ;;  %606 = vst [vmem:[%s5413_s29 + $0x350] sm:$0xf] %v605_v20 }
  0xa0   : > { %608 = vst [vmem:[%s5413_s29 + $0x354] sm:$0xf] %v607_v21  ;;  %610 = vst [vmem:[%s5413_s29 + $0x358] sm:$0xf] %v609_v22  ;;  %v611_v23 = vld [vmem:[%s5406_s28 + $0x6b8] sm:$0xf] }
  0xa1   : > { %v613_v24 = vld [vmem:[%s5406_s28 + $0x6c0] sm:$0xf]  ;;  %v615_v25 = vld [vmem:[%s5406_s28 + $0x6c8] sm:$0xf]  ;;  %612 = vst [vmem:[%s5413_s29 + $0x35c] sm:$0xf] %v611_v23 }
  0xa2   : > { %614 = vst [vmem:[%s5413_s29 + $0x360] sm:$0xf] %v613_v24  ;;  %616 = vst [vmem:[%s5413_s29 + $0x364] sm:$0xf] %v615_v25  ;;  %v617_v26 = vld [vmem:[%s5406_s28 + $0x6d0] sm:$0xf] }
  0xa3   : > { %v619_v27 = vld [vmem:[%s5406_s28 + $0x6d8] sm:$0xf]  ;;  %v621_v28 = vld [vmem:[%s5406_s28 + $0x6e0] sm:$0xf]  ;;  %618 = vst [vmem:[%s5413_s29 + $0x368] sm:$0xf] %v617_v26 }
  0xa4   : > { %620 = vst [vmem:[%s5413_s29 + $0x36c] sm:$0xf] %v619_v27  ;;  %622 = vst [vmem:[%s5413_s29 + $0x370] sm:$0xf] %v621_v28  ;;  %v623_v29 = vld [vmem:[%s5406_s28 + $0x6e8] sm:$0xf] }
  0xa5   : > { %v625_v30 = vld [vmem:[%s5406_s28 + $0x6f0] sm:$0xf]  ;;  %v627_v31 = vld [vmem:[%s5406_s28 + $0x6f8] sm:$0xf]  ;;  %624 = vst [vmem:[%s5413_s29 + $0x374] sm:$0xf] %v623_v29 }
  0xa6   : > { %626 = vst [vmem:[%s5413_s29 + $0x378] sm:$0xf] %v625_v30  ;;  %628 = vst [vmem:[%s5413_s29 + $0x37c] sm:$0xf] %v627_v31  ;;  %v629_v32 = vld [vmem:[%s5406_s28 + $0x700] sm:$0xf] }
  0xa7   : > { %v631_v33 = vld [vmem:[%s5406_s28 + $0x708] sm:$0xf]  ;;  %v633_v34 = vld [vmem:[%s5406_s28 + $0x710] sm:$0xf]  ;;  %630 = vst [vmem:[%s5413_s29 + $0x380] sm:$0xf] %v629_v32 }
  0xa8   : > { %632 = vst [vmem:[%s5413_s29 + $0x384] sm:$0xf] %v631_v33  ;;  %634 = vst [vmem:[%s5413_s29 + $0x388] sm:$0xf] %v633_v34  ;;  %v635_v35 = vld [vmem:[%s5406_s28 + $0x718] sm:$0xf] }
  0xa9   : > { %v637_v36 = vld [vmem:[%s5406_s28 + $0x720] sm:$0xf]  ;;  %v639_v37 = vld [vmem:[%s5406_s28 + $0x728] sm:$0xf]  ;;  %636 = vst [vmem:[%s5413_s29 + $0x38c] sm:$0xf] %v635_v35 }
  0xaa   : > { %638 = vst [vmem:[%s5413_s29 + $0x390] sm:$0xf] %v637_v36  ;;  %640 = vst [vmem:[%s5413_s29 + $0x394] sm:$0xf] %v639_v37  ;;  %v641_v38 = vld [vmem:[%s5406_s28 + $0x730] sm:$0xf] }
  0xab   : > { %v643_v39 = vld [vmem:[%s5406_s28 + $0x738] sm:$0xf]  ;;  %v645_v40 = vld [vmem:[%s5406_s28 + $0x740] sm:$0xf]  ;;  %642 = vst [vmem:[%s5413_s29 + $0x398] sm:$0xf] %v641_v38 }
  0xac   : > { %644 = vst [vmem:[%s5413_s29 + $0x39c] sm:$0xf] %v643_v39  ;;  %646 = vst [vmem:[%s5413_s29 + $0x3a0] sm:$0xf] %v645_v40  ;;  %v647_v41 = vld [vmem:[%s5406_s28 + $0x748] sm:$0xf] }
  0xad   : > { %v649_v42 = vld [vmem:[%s5406_s28 + $0x750] sm:$0xf]  ;;  %v651_v43 = vld [vmem:[%s5406_s28 + $0x758] sm:$0xf]  ;;  %648 = vst [vmem:[%s5413_s29 + $0x3a4] sm:$0xf] %v647_v41 }
  0xae   : > { %650 = vst [vmem:[%s5413_s29 + $0x3a8] sm:$0xf] %v649_v42  ;;  %652 = vst [vmem:[%s5413_s29 + $0x3ac] sm:$0xf] %v651_v43  ;;  %v653_v44 = vld [vmem:[%s5406_s28 + $0x760] sm:$0xf] }
  0xaf   : > { %v655_v45 = vld [vmem:[%s5406_s28 + $0x768] sm:$0xf]  ;;  %v657_v46 = vld [vmem:[%s5406_s28 + $0x770] sm:$0xf]  ;;  %654 = vst [vmem:[%s5413_s29 + $0x3b0] sm:$0xf] %v653_v44 }
  0xb0   : > { %656 = vst [vmem:[%s5413_s29 + $0x3b4] sm:$0xf] %v655_v45  ;;  %658 = vst [vmem:[%s5413_s29 + $0x3b8] sm:$0xf] %v657_v46  ;;  %v659_v47 = vld [vmem:[%s5406_s28 + $0x778] sm:$0xf] }
  0xb1   : > { %v661_v48 = vld [vmem:[%s5406_s28 + $0x780] sm:$0xf]  ;;  %v663_v49 = vld [vmem:[%s5406_s28 + $0x788] sm:$0xf]  ;;  %660 = vst [vmem:[%s5413_s29 + $0x3bc] sm:$0xf] %v659_v47 }
  0xb2   : > { %662 = vst [vmem:[%s5413_s29 + $0x3c0] sm:$0xf] %v661_v48  ;;  %664 = vst [vmem:[%s5413_s29 + $0x3c4] sm:$0xf] %v663_v49  ;;  %v665_v50 = vld [vmem:[%s5406_s28 + $0x790] sm:$0xf] }
  0xb3   : > { %v667_v51 = vld [vmem:[%s5406_s28 + $0x798] sm:$0xf]  ;;  %v669_v52 = vld [vmem:[%s5406_s28 + $0x7a0] sm:$0xf]  ;;  %666 = vst [vmem:[%s5413_s29 + $0x3c8] sm:$0xf] %v665_v50 }
  0xb4   : > { %668 = vst [vmem:[%s5413_s29 + $0x3cc] sm:$0xf] %v667_v51  ;;  %670 = vst [vmem:[%s5413_s29 + $0x3d0] sm:$0xf] %v669_v52  ;;  %v671_v53 = vld [vmem:[%s5406_s28 + $0x7a8] sm:$0xf] }
  0xb5   : > { %v673_v54 = vld [vmem:[%s5406_s28 + $0x7b0] sm:$0xf]  ;;  %v675_v55 = vld [vmem:[%s5406_s28 + $0x7b8] sm:$0xf]  ;;  %672 = vst [vmem:[%s5413_s29 + $0x3d4] sm:$0xf] %v671_v53 }
  0xb6   : > { %674 = vst [vmem:[%s5413_s29 + $0x3d8] sm:$0xf] %v673_v54  ;;  %676 = vst [vmem:[%s5413_s29 + $0x3dc] sm:$0xf] %v675_v55  ;;  %v677_v56 = vld [vmem:[%s5406_s28 + $0x7c0] sm:$0xf] }
  0xb7   : > { %v679_v57 = vld [vmem:[%s5406_s28 + $0x7c8] sm:$0xf]  ;;  %v681_v58 = vld [vmem:[%s5406_s28 + $0x7d0] sm:$0xf]  ;;  %678 = vst [vmem:[%s5413_s29 + $0x3e0] sm:$0xf] %v677_v56 }
  0xb8   : > { %680 = vst [vmem:[%s5413_s29 + $0x3e4] sm:$0xf] %v679_v57  ;;  %682 = vst [vmem:[%s5413_s29 + $0x3e8] sm:$0xf] %v681_v58  ;;  %v683_v59 = vld [vmem:[%s5406_s28 + $0x7d8] sm:$0xf] }
  0xb9   : > { %v685_v60 = vld [vmem:[%s5406_s28 + $0x7e0] sm:$0xf]  ;;  %v687_v61 = vld [vmem:[%s5406_s28 + $0x7e8] sm:$0xf]  ;;  %684 = vst [vmem:[%s5413_s29 + $0x3ec] sm:$0xf] %v683_v59 }
  0xba   : > { %686 = vst [vmem:[%s5413_s29 + $0x3f0] sm:$0xf] %v685_v60  ;;  %688 = vst [vmem:[%s5413_s29 + $0x3f4] sm:$0xf] %v687_v61  ;;  %v689_v62 = vld [vmem:[%s5406_s28 + $0x7f0] sm:$0xf] }
  0xbb   : > { %v691_v63 = vld [vmem:[%s5406_s28 + $0x7f8] sm:$0xf]  ;;  %v693_v0 = vld [vmem:[%s5406_s28 + $0x800] sm:$0xf]  ;;  %690 = vst [vmem:[%s5413_s29 + $0x3f8] sm:$0xf] %v689_v62 }
  0xbc   : > { %692 = vst [vmem:[%s5413_s29 + $0x3fc] sm:$0xf] %v691_v63  ;;  %694 = vst [vmem:[%s5413_s29 + $0x400] sm:$0xf] %v693_v0  ;;  %v695_v1 = vld [vmem:[%s5406_s28 + $0x808] sm:$0xf] }
  0xbd   : > { %v697_v2 = vld [vmem:[%s5406_s28 + $0x810] sm:$0xf]  ;;  %v699_v3 = vld [vmem:[%s5406_s28 + $0x818] sm:$0xf]  ;;  %696 = vst [vmem:[%s5413_s29 + $0x404] sm:$0xf] %v695_v1 }
  0xbe   : > { %698 = vst [vmem:[%s5413_s29 + $0x408] sm:$0xf] %v697_v2  ;;  %700 = vst [vmem:[%s5413_s29 + $0x40c] sm:$0xf] %v699_v3  ;;  %v701_v4 = vld [vmem:[%s5406_s28 + $0x820] sm:$0xf] }
  0xbf   : > { %v703_v5 = vld [vmem:[%s5406_s28 + $0x828] sm:$0xf]  ;;  %v705_v6 = vld [vmem:[%s5406_s28 + $0x830] sm:$0xf]  ;;  %702 = vst [vmem:[%s5413_s29 + $0x410] sm:$0xf] %v701_v4 }
  0xc0   : > { %704 = vst [vmem:[%s5413_s29 + $0x414] sm:$0xf] %v703_v5  ;;  %706 = vst [vmem:[%s5413_s29 + $0x418] sm:$0xf] %v705_v6  ;;  %v707_v7 = vld [vmem:[%s5406_s28 + $0x838] sm:$0xf] }
  0xc1   : > { %v709_v8 = vld [vmem:[%s5406_s28 + $0x840] sm:$0xf]  ;;  %v711_v9 = vld [vmem:[%s5406_s28 + $0x848] sm:$0xf]  ;;  %708 = vst [vmem:[%s5413_s29 + $0x41c] sm:$0xf] %v707_v7 }
  0xc2   : > { %710 = vst [vmem:[%s5413_s29 + $0x420] sm:$0xf] %v709_v8  ;;  %712 = vst [vmem:[%s5413_s29 + $0x424] sm:$0xf] %v711_v9  ;;  %v713_v10 = vld [vmem:[%s5406_s28 + $0x850] sm:$0xf] }
  0xc3   : > { %v715_v11 = vld [vmem:[%s5406_s28 + $0x858] sm:$0xf]  ;;  %v717_v12 = vld [vmem:[%s5406_s28 + $0x860] sm:$0xf]  ;;  %714 = vst [vmem:[%s5413_s29 + $0x428] sm:$0xf] %v713_v10 }
  0xc4   : > { %716 = vst [vmem:[%s5413_s29 + $0x42c] sm:$0xf] %v715_v11  ;;  %718 = vst [vmem:[%s5413_s29 + $0x430] sm:$0xf] %v717_v12  ;;  %v719_v13 = vld [vmem:[%s5406_s28 + $0x868] sm:$0xf] }
  0xc5   : > { %v721_v14 = vld [vmem:[%s5406_s28 + $0x870] sm:$0xf]  ;;  %v723_v15 = vld [vmem:[%s5406_s28 + $0x878] sm:$0xf]  ;;  %720 = vst [vmem:[%s5413_s29 + $0x434] sm:$0xf] %v719_v13 }
  0xc6   : > { %722 = vst [vmem:[%s5413_s29 + $0x438] sm:$0xf] %v721_v14  ;;  %724 = vst [vmem:[%s5413_s29 + $0x43c] sm:$0xf] %v723_v15  ;;  %v725_v16 = vld [vmem:[%s5406_s28 + $0x880] sm:$0xf] }
  0xc7   : > { %v727_v17 = vld [vmem:[%s5406_s28 + $0x888] sm:$0xf]  ;;  %v729_v18 = vld [vmem:[%s5406_s28 + $0x890] sm:$0xf]  ;;  %726 = vst [vmem:[%s5413_s29 + $0x440] sm:$0xf] %v725_v16 }
  0xc8   : > { %728 = vst [vmem:[%s5413_s29 + $0x444] sm:$0xf] %v727_v17  ;;  %730 = vst [vmem:[%s5413_s29 + $0x448] sm:$0xf] %v729_v18  ;;  %v731_v19 = vld [vmem:[%s5406_s28 + $0x898] sm:$0xf] }
  0xc9   : > { %v733_v20 = vld [vmem:[%s5406_s28 + $0x8a0] sm:$0xf]  ;;  %v735_v21 = vld [vmem:[%s5406_s28 + $0x8a8] sm:$0xf]  ;;  %732 = vst [vmem:[%s5413_s29 + $0x44c] sm:$0xf] %v731_v19 }
  0xca   : > { %734 = vst [vmem:[%s5413_s29 + $0x450] sm:$0xf] %v733_v20  ;;  %736 = vst [vmem:[%s5413_s29 + $0x454] sm:$0xf] %v735_v21  ;;  %v737_v22 = vld [vmem:[%s5406_s28 + $0x8b0] sm:$0xf] }
  0xcb   : > { %v739_v23 = vld [vmem:[%s5406_s28 + $0x8b8] sm:$0xf]  ;;  %v741_v24 = vld [vmem:[%s5406_s28 + $0x8c0] sm:$0xf]  ;;  %738 = vst [vmem:[%s5413_s29 + $0x458] sm:$0xf] %v737_v22 }
  0xcc   : > { %740 = vst [vmem:[%s5413_s29 + $0x45c] sm:$0xf] %v739_v23  ;;  %742 = vst [vmem:[%s5413_s29 + $0x460] sm:$0xf] %v741_v24  ;;  %v743_v25 = vld [vmem:[%s5406_s28 + $0x8c8] sm:$0xf] }
  0xcd   : > { %v745_v26 = vld [vmem:[%s5406_s28 + $0x8d0] sm:$0xf]  ;;  %v747_v27 = vld [vmem:[%s5406_s28 + $0x8d8] sm:$0xf]  ;;  %744 = vst [vmem:[%s5413_s29 + $0x464] sm:$0xf] %v743_v25 }
  0xce   : > { %746 = vst [vmem:[%s5413_s29 + $0x468] sm:$0xf] %v745_v26  ;;  %748 = vst [vmem:[%s5413_s29 + $0x46c] sm:$0xf] %v747_v27  ;;  %v749_v28 = vld [vmem:[%s5406_s28 + $0x8e0] sm:$0xf] }
  0xcf   : > { %v751_v29 = vld [vmem:[%s5406_s28 + $0x8e8] sm:$0xf]  ;;  %v753_v30 = vld [vmem:[%s5406_s28 + $0x8f0] sm:$0xf]  ;;  %750 = vst [vmem:[%s5413_s29 + $0x470] sm:$0xf] %v749_v28 }
  0xd0   : > { %752 = vst [vmem:[%s5413_s29 + $0x474] sm:$0xf] %v751_v29  ;;  %754 = vst [vmem:[%s5413_s29 + $0x478] sm:$0xf] %v753_v30  ;;  %v755_v31 = vld [vmem:[%s5406_s28 + $0x8f8] sm:$0xf] }
  0xd1   : > { %v757_v32 = vld [vmem:[%s5406_s28 + $0x900] sm:$0xf]  ;;  %v759_v33 = vld [vmem:[%s5406_s28 + $0x908] sm:$0xf]  ;;  %756 = vst [vmem:[%s5413_s29 + $0x47c] sm:$0xf] %v755_v31 }
  0xd2   : > { %758 = vst [vmem:[%s5413_s29 + $0x480] sm:$0xf] %v757_v32  ;;  %760 = vst [vmem:[%s5413_s29 + $0x484] sm:$0xf] %v759_v33  ;;  %v761_v34 = vld [vmem:[%s5406_s28 + $0x910] sm:$0xf] }
  0xd3   : > { %v763_v35 = vld [vmem:[%s5406_s28 + $0x918] sm:$0xf]  ;;  %v765_v36 = vld [vmem:[%s5406_s28 + $0x920] sm:$0xf]  ;;  %762 = vst [vmem:[%s5413_s29 + $0x488] sm:$0xf] %v761_v34 }
  0xd4   : > { %764 = vst [vmem:[%s5413_s29 + $0x48c] sm:$0xf] %v763_v35  ;;  %766 = vst [vmem:[%s5413_s29 + $0x490] sm:$0xf] %v765_v36  ;;  %v767_v37 = vld [vmem:[%s5406_s28 + $0x928] sm:$0xf] }
  0xd5   : > { %v769_v38 = vld [vmem:[%s5406_s28 + $0x930] sm:$0xf]  ;;  %v771_v39 = vld [vmem:[%s5406_s28 + $0x938] sm:$0xf]  ;;  %768 = vst [vmem:[%s5413_s29 + $0x494] sm:$0xf] %v767_v37 }
  0xd6   : > { %770 = vst [vmem:[%s5413_s29 + $0x498] sm:$0xf] %v769_v38  ;;  %772 = vst [vmem:[%s5413_s29 + $0x49c] sm:$0xf] %v771_v39  ;;  %v773_v40 = vld [vmem:[%s5406_s28 + $0x940] sm:$0xf] }
  0xd7   : > { %v775_v41 = vld [vmem:[%s5406_s28 + $0x948] sm:$0xf]  ;;  %v777_v42 = vld [vmem:[%s5406_s28 + $0x950] sm:$0xf]  ;;  %774 = vst [vmem:[%s5413_s29 + $0x4a0] sm:$0xf] %v773_v40 }
  0xd8   : > { %776 = vst [vmem:[%s5413_s29 + $0x4a4] sm:$0xf] %v775_v41  ;;  %778 = vst [vmem:[%s5413_s29 + $0x4a8] sm:$0xf] %v777_v42  ;;  %v779_v43 = vld [vmem:[%s5406_s28 + $0x958] sm:$0xf] }
  0xd9   : > { %v781_v44 = vld [vmem:[%s5406_s28 + $0x960] sm:$0xf]  ;;  %v783_v45 = vld [vmem:[%s5406_s28 + $0x968] sm:$0xf]  ;;  %780 = vst [vmem:[%s5413_s29 + $0x4ac] sm:$0xf] %v779_v43 }
  0xda   : > { %782 = vst [vmem:[%s5413_s29 + $0x4b0] sm:$0xf] %v781_v44  ;;  %784 = vst [vmem:[%s5413_s29 + $0x4b4] sm:$0xf] %v783_v45  ;;  %v785_v46 = vld [vmem:[%s5406_s28 + $0x970] sm:$0xf] }
  0xdb   : > { %v787_v47 = vld [vmem:[%s5406_s28 + $0x978] sm:$0xf]  ;;  %v789_v48 = vld [vmem:[%s5406_s28 + $0x980] sm:$0xf]  ;;  %786 = vst [vmem:[%s5413_s29 + $0x4b8] sm:$0xf] %v785_v46 }
  0xdc   : > { %788 = vst [vmem:[%s5413_s29 + $0x4bc] sm:$0xf] %v787_v47  ;;  %790 = vst [vmem:[%s5413_s29 + $0x4c0] sm:$0xf] %v789_v48  ;;  %v791_v49 = vld [vmem:[%s5406_s28 + $0x988] sm:$0xf] }
  0xdd   : > { %v793_v50 = vld [vmem:[%s5406_s28 + $0x990] sm:$0xf]  ;;  %v795_v51 = vld [vmem:[%s5406_s28 + $0x998] sm:$0xf]  ;;  %792 = vst [vmem:[%s5413_s29 + $0x4c4] sm:$0xf] %v791_v49 }
  0xde   : > { %794 = vst [vmem:[%s5413_s29 + $0x4c8] sm:$0xf] %v793_v50  ;;  %796 = vst [vmem:[%s5413_s29 + $0x4cc] sm:$0xf] %v795_v51  ;;  %v797_v52 = vld [vmem:[%s5406_s28 + $0x9a0] sm:$0xf] }
  0xdf   : > { %v799_v53 = vld [vmem:[%s5406_s28 + $0x9a8] sm:$0xf]  ;;  %v801_v54 = vld [vmem:[%s5406_s28 + $0x9b0] sm:$0xf]  ;;  %798 = vst [vmem:[%s5413_s29 + $0x4d0] sm:$0xf] %v797_v52 }
  0xe0   : > { %800 = vst [vmem:[%s5413_s29 + $0x4d4] sm:$0xf] %v799_v53  ;;  %802 = vst [vmem:[%s5413_s29 + $0x4d8] sm:$0xf] %v801_v54  ;;  %v803_v55 = vld [vmem:[%s5406_s28 + $0x9b8] sm:$0xf] }
  0xe1   : > { %v805_v56 = vld [vmem:[%s5406_s28 + $0x9c0] sm:$0xf]  ;;  %v807_v57 = vld [vmem:[%s5406_s28 + $0x9c8] sm:$0xf]  ;;  %804 = vst [vmem:[%s5413_s29 + $0x4dc] sm:$0xf] %v803_v55 }
  0xe2   : > { %806 = vst [vmem:[%s5413_s29 + $0x4e0] sm:$0xf] %v805_v56  ;;  %808 = vst [vmem:[%s5413_s29 + $0x4e4] sm:$0xf] %v807_v57  ;;  %v809_v58 = vld [vmem:[%s5406_s28 + $0x9d0] sm:$0xf] }
  0xe3   : > { %v811_v59 = vld [vmem:[%s5406_s28 + $0x9d8] sm:$0xf]  ;;  %v813_v60 = vld [vmem:[%s5406_s28 + $0x9e0] sm:$0xf]  ;;  %810 = vst [vmem:[%s5413_s29 + $0x4e8] sm:$0xf] %v809_v58 }
  0xe4   : > { %812 = vst [vmem:[%s5413_s29 + $0x4ec] sm:$0xf] %v811_v59  ;;  %814 = vst [vmem:[%s5413_s29 + $0x4f0] sm:$0xf] %v813_v60  ;;  %v815_v61 = vld [vmem:[%s5406_s28 + $0x9e8] sm:$0xf] }
  0xe5   : > { %v817_v62 = vld [vmem:[%s5406_s28 + $0x9f0] sm:$0xf]  ;;  %v819_v63 = vld [vmem:[%s5406_s28 + $0x9f8] sm:$0xf]  ;;  %816 = vst [vmem:[%s5413_s29 + $0x4f4] sm:$0xf] %v815_v61 }
  0xe6   : > { %818 = vst [vmem:[%s5413_s29 + $0x4f8] sm:$0xf] %v817_v62  ;;  %820 = vst [vmem:[%s5413_s29 + $0x4fc] sm:$0xf] %v819_v63  ;;  %v821_v0 = vld [vmem:[%s5406_s28 + $0xa00] sm:$0xf] }
  0xe7   : > { %v823_v1 = vld [vmem:[%s5406_s28 + $0xa08] sm:$0xf]  ;;  %v825_v2 = vld [vmem:[%s5406_s28 + $0xa10] sm:$0xf]  ;;  %822 = vst [vmem:[%s5413_s29 + $0x500] sm:$0xf] %v821_v0 }
  0xe8   : > { %824 = vst [vmem:[%s5413_s29 + $0x504] sm:$0xf] %v823_v1  ;;  %826 = vst [vmem:[%s5413_s29 + $0x508] sm:$0xf] %v825_v2  ;;  %v827_v3 = vld [vmem:[%s5406_s28 + $0xa18] sm:$0xf] }
  0xe9   : > { %v829_v4 = vld [vmem:[%s5406_s28 + $0xa20] sm:$0xf]  ;;  %v831_v5 = vld [vmem:[%s5406_s28 + $0xa28] sm:$0xf]  ;;  %828 = vst [vmem:[%s5413_s29 + $0x50c] sm:$0xf] %v827_v3 }
  0xea   : > { %830 = vst [vmem:[%s5413_s29 + $0x510] sm:$0xf] %v829_v4  ;;  %832 = vst [vmem:[%s5413_s29 + $0x514] sm:$0xf] %v831_v5  ;;  %v833_v6 = vld [vmem:[%s5406_s28 + $0xa30] sm:$0xf] }
  0xeb   : > { %v835_v7 = vld [vmem:[%s5406_s28 + $0xa38] sm:$0xf]  ;;  %v837_v8 = vld [vmem:[%s5406_s28 + $0xa40] sm:$0xf]  ;;  %834 = vst [vmem:[%s5413_s29 + $0x518] sm:$0xf] %v833_v6 }
  0xec   : > { %836 = vst [vmem:[%s5413_s29 + $0x51c] sm:$0xf] %v835_v7  ;;  %838 = vst [vmem:[%s5413_s29 + $0x520] sm:$0xf] %v837_v8  ;;  %v839_v9 = vld [vmem:[%s5406_s28 + $0xa48] sm:$0xf] }
  0xed   : > { %v841_v10 = vld [vmem:[%s5406_s28 + $0xa50] sm:$0xf]  ;;  %v843_v11 = vld [vmem:[%s5406_s28 + $0xa58] sm:$0xf]  ;;  %840 = vst [vmem:[%s5413_s29 + $0x524] sm:$0xf] %v839_v9 }
  0xee   : > { %842 = vst [vmem:[%s5413_s29 + $0x528] sm:$0xf] %v841_v10  ;;  %844 = vst [vmem:[%s5413_s29 + $0x52c] sm:$0xf] %v843_v11  ;;  %v845_v12 = vld [vmem:[%s5406_s28 + $0xa60] sm:$0xf] }
  0xef   : > { %v847_v13 = vld [vmem:[%s5406_s28 + $0xa68] sm:$0xf]  ;;  %v849_v14 = vld [vmem:[%s5406_s28 + $0xa70] sm:$0xf]  ;;  %846 = vst [vmem:[%s5413_s29 + $0x530] sm:$0xf] %v845_v12 }
  0xf0   : > { %848 = vst [vmem:[%s5413_s29 + $0x534] sm:$0xf] %v847_v13  ;;  %850 = vst [vmem:[%s5413_s29 + $0x538] sm:$0xf] %v849_v14  ;;  %v851_v15 = vld [vmem:[%s5406_s28 + $0xa78] sm:$0xf] }
  0xf1   : > { %v853_v16 = vld [vmem:[%s5406_s28 + $0xa80] sm:$0xf]  ;;  %v855_v17 = vld [vmem:[%s5406_s28 + $0xa88] sm:$0xf]  ;;  %852 = vst [vmem:[%s5413_s29 + $0x53c] sm:$0xf] %v851_v15 }
  0xf2   : > { %854 = vst [vmem:[%s5413_s29 + $0x540] sm:$0xf] %v853_v16  ;;  %856 = vst [vmem:[%s5413_s29 + $0x544] sm:$0xf] %v855_v17  ;;  %v857_v18 = vld [vmem:[%s5406_s28 + $0xa90] sm:$0xf] }
  0xf3   : > { %v859_v19 = vld [vmem:[%s5406_s28 + $0xa98] sm:$0xf]  ;;  %v861_v20 = vld [vmem:[%s5406_s28 + $0xaa0] sm:$0xf]  ;;  %858 = vst [vmem:[%s5413_s29 + $0x548] sm:$0xf] %v857_v18 }
  0xf4   : > { %860 = vst [vmem:[%s5413_s29 + $0x54c] sm:$0xf] %v859_v19  ;;  %862 = vst [vmem:[%s5413_s29 + $0x550] sm:$0xf] %v861_v20  ;;  %v863_v21 = vld [vmem:[%s5406_s28 + $0xaa8] sm:$0xf] }
  0xf5   : > { %v865_v22 = vld [vmem:[%s5406_s28 + $0xab0] sm:$0xf]  ;;  %v867_v23 = vld [vmem:[%s5406_s28 + $0xab8] sm:$0xf]  ;;  %864 = vst [vmem:[%s5413_s29 + $0x554] sm:$0xf] %v863_v21 }
  0xf6   : > { %866 = vst [vmem:[%s5413_s29 + $0x558] sm:$0xf] %v865_v22  ;;  %868 = vst [vmem:[%s5413_s29 + $0x55c] sm:$0xf] %v867_v23  ;;  %v869_v24 = vld [vmem:[%s5406_s28 + $0xac0] sm:$0xf] }
  0xf7   : > { %v871_v25 = vld [vmem:[%s5406_s28 + $0xac8] sm:$0xf]  ;;  %v873_v26 = vld [vmem:[%s5406_s28 + $0xad0] sm:$0xf]  ;;  %870 = vst [vmem:[%s5413_s29 + $0x560] sm:$0xf] %v869_v24 }
  0xf8   : > { %872 = vst [vmem:[%s5413_s29 + $0x564] sm:$0xf] %v871_v25  ;;  %874 = vst [vmem:[%s5413_s29 + $0x568] sm:$0xf] %v873_v26  ;;  %v875_v27 = vld [vmem:[%s5406_s28 + $0xad8] sm:$0xf] }
  0xf9   : > { %v877_v28 = vld [vmem:[%s5406_s28 + $0xae0] sm:$0xf]  ;;  %v879_v29 = vld [vmem:[%s5406_s28 + $0xae8] sm:$0xf]  ;;  %876 = vst [vmem:[%s5413_s29 + $0x56c] sm:$0xf] %v875_v27 }
  0xfa   : > { %878 = vst [vmem:[%s5413_s29 + $0x570] sm:$0xf] %v877_v28  ;;  %880 = vst [vmem:[%s5413_s29 + $0x574] sm:$0xf] %v879_v29  ;;  %v881_v30 = vld [vmem:[%s5406_s28 + $0xaf0] sm:$0xf] }
  0xfb   : > { %v883_v31 = vld [vmem:[%s5406_s28 + $0xaf8] sm:$0xf]  ;;  %v885_v32 = vld [vmem:[%s5406_s28 + $0xb00] sm:$0xf]  ;;  %882 = vst [vmem:[%s5413_s29 + $0x578] sm:$0xf] %v881_v30 }
  0xfc   : > { %884 = vst [vmem:[%s5413_s29 + $0x57c] sm:$0xf] %v883_v31  ;;  %886 = vst [vmem:[%s5413_s29 + $0x580] sm:$0xf] %v885_v32  ;;  %v887_v33 = vld [vmem:[%s5406_s28 + $0xb08] sm:$0xf] }
  0xfd   : > { %v889_v34 = vld [vmem:[%s5406_s28 + $0xb10] sm:$0xf]  ;;  %v891_v35 = vld [vmem:[%s5406_s28 + $0xb18] sm:$0xf]  ;;  %888 = vst [vmem:[%s5413_s29 + $0x584] sm:$0xf] %v887_v33 }
  0xfe   : > { %890 = vst [vmem:[%s5413_s29 + $0x588] sm:$0xf] %v889_v34  ;;  %892 = vst [vmem:[%s5413_s29 + $0x58c] sm:$0xf] %v891_v35  ;;  %v893_v36 = vld [vmem:[%s5406_s28 + $0xb20] sm:$0xf] }
  0xff   : > { %v895_v37 = vld [vmem:[%s5406_s28 + $0xb28] sm:$0xf]  ;;  %v897_v38 = vld [vmem:[%s5406_s28 + $0xb30] sm:$0xf]  ;;  %894 = vst [vmem:[%s5413_s29 + $0x590] sm:$0xf] %v893_v36 }
 0x100   : > { %896 = vst [vmem:[%s5413_s29 + $0x594] sm:$0xf] %v895_v37  ;;  %898 = vst [vmem:[%s5413_s29 + $0x598] sm:$0xf] %v897_v38  ;;  %v899_v39 = vld [vmem:[%s5406_s28 + $0xb38] sm:$0xf] }
 0x101   : > { %v901_v40 = vld [vmem:[%s5406_s28 + $0xb40] sm:$0xf]  ;;  %v903_v41 = vld [vmem:[%s5406_s28 + $0xb48] sm:$0xf]  ;;  %900 = vst [vmem:[%s5413_s29 + $0x59c] sm:$0xf] %v899_v39 }
 0x102   : > { %902 = vst [vmem:[%s5413_s29 + $0x5a0] sm:$0xf] %v901_v40  ;;  %904 = vst [vmem:[%s5413_s29 + $0x5a4] sm:$0xf] %v903_v41  ;;  %v905_v42 = vld [vmem:[%s5406_s28 + $0xb50] sm:$0xf] }
 0x103   : > { %v907_v43 = vld [vmem:[%s5406_s28 + $0xb58] sm:$0xf]  ;;  %v909_v44 = vld [vmem:[%s5406_s28 + $0xb60] sm:$0xf]  ;;  %906 = vst [vmem:[%s5413_s29 + $0x5a8] sm:$0xf] %v905_v42 }
 0x104   : > { %908 = vst [vmem:[%s5413_s29 + $0x5ac] sm:$0xf] %v907_v43  ;;  %910 = vst [vmem:[%s5413_s29 + $0x5b0] sm:$0xf] %v909_v44  ;;  %v911_v45 = vld [vmem:[%s5406_s28 + $0xb68] sm:$0xf] }
 0x105   : > { %v913_v46 = vld [vmem:[%s5406_s28 + $0xb70] sm:$0xf]  ;;  %v915_v47 = vld [vmem:[%s5406_s28 + $0xb78] sm:$0xf]  ;;  %912 = vst [vmem:[%s5413_s29 + $0x5b4] sm:$0xf] %v911_v45 }
 0x106   : > { %914 = vst [vmem:[%s5413_s29 + $0x5b8] sm:$0xf] %v913_v46  ;;  %916 = vst [vmem:[%s5413_s29 + $0x5bc] sm:$0xf] %v915_v47  ;;  %v917_v48 = vld [vmem:[%s5406_s28 + $0xb80] sm:$0xf] }
 0x107   : > { %v919_v49 = vld [vmem:[%s5406_s28 + $0xb88] sm:$0xf]  ;;  %v921_v50 = vld [vmem:[%s5406_s28 + $0xb90] sm:$0xf]  ;;  %918 = vst [vmem:[%s5413_s29 + $0x5c0] sm:$0xf] %v917_v48 }
 0x108   : > { %920 = vst [vmem:[%s5413_s29 + $0x5c4] sm:$0xf] %v919_v49  ;;  %922 = vst [vmem:[%s5413_s29 + $0x5c8] sm:$0xf] %v921_v50  ;;  %v923_v51 = vld [vmem:[%s5406_s28 + $0xb98] sm:$0xf] }
 0x109   : > { %v925_v52 = vld [vmem:[%s5406_s28 + $0xba0] sm:$0xf]  ;;  %v927_v53 = vld [vmem:[%s5406_s28 + $0xba8] sm:$0xf]  ;;  %924 = vst [vmem:[%s5413_s29 + $0x5cc] sm:$0xf] %v923_v51 }
 0x10a   : > { %926 = vst [vmem:[%s5413_s29 + $0x5d0] sm:$0xf] %v925_v52  ;;  %928 = vst [vmem:[%s5413_s29 + $0x5d4] sm:$0xf] %v927_v53  ;;  %v929_v54 = vld [vmem:[%s5406_s28 + $0xbb0] sm:$0xf] }
 0x10b   : > { %v931_v55 = vld [vmem:[%s5406_s28 + $0xbb8] sm:$0xf]  ;;  %v933_v56 = vld [vmem:[%s5406_s28 + $0xbc0] sm:$0xf]  ;;  %930 = vst [vmem:[%s5413_s29 + $0x5d8] sm:$0xf] %v929_v54 }
 0x10c   : > { %932 = vst [vmem:[%s5413_s29 + $0x5dc] sm:$0xf] %v931_v55  ;;  %934 = vst [vmem:[%s5413_s29 + $0x5e0] sm:$0xf] %v933_v56  ;;  %v935_v57 = vld [vmem:[%s5406_s28 + $0xbc8] sm:$0xf] }
 0x10d   : > { %v937_v58 = vld [vmem:[%s5406_s28 + $0xbd0] sm:$0xf]  ;;  %v939_v59 = vld [vmem:[%s5406_s28 + $0xbd8] sm:$0xf]  ;;  %936 = vst [vmem:[%s5413_s29 + $0x5e4] sm:$0xf] %v935_v57 }
 0x10e   : > { %938 = vst [vmem:[%s5413_s29 + $0x5e8] sm:$0xf] %v937_v58  ;;  %940 = vst [vmem:[%s5413_s29 + $0x5ec] sm:$0xf] %v939_v59  ;;  %v941_v60 = vld [vmem:[%s5406_s28 + $0xbe0] sm:$0xf] }
 0x10f   : > { %v943_v61 = vld [vmem:[%s5406_s28 + $0xbe8] sm:$0xf]  ;;  %v945_v62 = vld [vmem:[%s5406_s28 + $0xbf0] sm:$0xf]  ;;  %942 = vst [vmem:[%s5413_s29 + $0x5f0] sm:$0xf] %v941_v60 }
 0x110   : > { %944 = vst [vmem:[%s5413_s29 + $0x5f4] sm:$0xf] %v943_v61  ;;  %946 = vst [vmem:[%s5413_s29 + $0x5f8] sm:$0xf] %v945_v62  ;;  %v947_v63 = vld [vmem:[%s5406_s28 + $0xbf8] sm:$0xf] }
 0x111   : > { %v949_v0 = vld [vmem:[%s5406_s28 + $0xc00] sm:$0xf]  ;;  %v951_v1 = vld [vmem:[%s5406_s28 + $0xc08] sm:$0xf]  ;;  %948 = vst [vmem:[%s5413_s29 + $0x5fc] sm:$0xf] %v947_v63 }
 0x112   : > { %950 = vst [vmem:[%s5413_s29 + $0x600] sm:$0xf] %v949_v0  ;;  %952 = vst [vmem:[%s5413_s29 + $0x604] sm:$0xf] %v951_v1  ;;  %v953_v2 = vld [vmem:[%s5406_s28 + $0xc10] sm:$0xf] }
 0x113   : > { %v955_v3 = vld [vmem:[%s5406_s28 + $0xc18] sm:$0xf]  ;;  %v957_v4 = vld [vmem:[%s5406_s28 + $0xc20] sm:$0xf]  ;;  %954 = vst [vmem:[%s5413_s29 + $0x608] sm:$0xf] %v953_v2 }
 0x114   : > { %956 = vst [vmem:[%s5413_s29 + $0x60c] sm:$0xf] %v955_v3  ;;  %958 = vst [vmem:[%s5413_s29 + $0x610] sm:$0xf] %v957_v4  ;;  %v959_v5 = vld [vmem:[%s5406_s28 + $0xc28] sm:$0xf] }
 0x115   : > { %v961_v6 = vld [vmem:[%s5406_s28 + $0xc30] sm:$0xf]  ;;  %v963_v7 = vld [vmem:[%s5406_s28 + $0xc38] sm:$0xf]  ;;  %960 = vst [vmem:[%s5413_s29 + $0x614] sm:$0xf] %v959_v5 }
 0x116   : > { %962 = vst [vmem:[%s5413_s29 + $0x618] sm:$0xf] %v961_v6  ;;  %964 = vst [vmem:[%s5413_s29 + $0x61c] sm:$0xf] %v963_v7  ;;  %v965_v8 = vld [vmem:[%s5406_s28 + $0xc40] sm:$0xf] }
 0x117   : > { %v967_v9 = vld [vmem:[%s5406_s28 + $0xc48] sm:$0xf]  ;;  %v969_v10 = vld [vmem:[%s5406_s28 + $0xc50] sm:$0xf]  ;;  %966 = vst [vmem:[%s5413_s29 + $0x620] sm:$0xf] %v965_v8 }
 0x118   : > { %968 = vst [vmem:[%s5413_s29 + $0x624] sm:$0xf] %v967_v9  ;;  %970 = vst [vmem:[%s5413_s29 + $0x628] sm:$0xf] %v969_v10  ;;  %v971_v11 = vld [vmem:[%s5406_s28 + $0xc58] sm:$0xf] }
 0x119   : > { %v973_v12 = vld [vmem:[%s5406_s28 + $0xc60] sm:$0xf]  ;;  %v975_v13 = vld [vmem:[%s5406_s28 + $0xc68] sm:$0xf]  ;;  %972 = vst [vmem:[%s5413_s29 + $0x62c] sm:$0xf] %v971_v11 }
 0x11a   : > { %974 = vst [vmem:[%s5413_s29 + $0x630] sm:$0xf] %v973_v12  ;;  %976 = vst [vmem:[%s5413_s29 + $0x634] sm:$0xf] %v975_v13  ;;  %v977_v14 = vld [vmem:[%s5406_s28 + $0xc70] sm:$0xf] }
 0x11b   : > { %v979_v15 = vld [vmem:[%s5406_s28 + $0xc78] sm:$0xf]  ;;  %v981_v16 = vld [vmem:[%s5406_s28 + $0xc80] sm:$0xf]  ;;  %978 = vst [vmem:[%s5413_s29 + $0x638] sm:$0xf] %v977_v14 }
 0x11c   : > { %980 = vst [vmem:[%s5413_s29 + $0x63c] sm:$0xf] %v979_v15  ;;  %982 = vst [vmem:[%s5413_s29 + $0x640] sm:$0xf] %v981_v16  ;;  %v983_v17 = vld [vmem:[%s5406_s28 + $0xc88] sm:$0xf] }
 0x11d   : > { %v985_v18 = vld [vmem:[%s5406_s28 + $0xc90] sm:$0xf]  ;;  %v987_v19 = vld [vmem:[%s5406_s28 + $0xc98] sm:$0xf]  ;;  %984 = vst [vmem:[%s5413_s29 + $0x644] sm:$0xf] %v983_v17 }
 0x11e   : > { %986 = vst [vmem:[%s5413_s29 + $0x648] sm:$0xf] %v985_v18  ;;  %988 = vst [vmem:[%s5413_s29 + $0x64c] sm:$0xf] %v987_v19  ;;  %v989_v20 = vld [vmem:[%s5406_s28 + $0xca0] sm:$0xf] }
 0x11f   : > { %v991_v21 = vld [vmem:[%s5406_s28 + $0xca8] sm:$0xf]  ;;  %v993_v22 = vld [vmem:[%s5406_s28 + $0xcb0] sm:$0xf]  ;;  %990 = vst [vmem:[%s5413_s29 + $0x650] sm:$0xf] %v989_v20 }
 0x120   : > { %992 = vst [vmem:[%s5413_s29 + $0x654] sm:$0xf] %v991_v21  ;;  %994 = vst [vmem:[%s5413_s29 + $0x658] sm:$0xf] %v993_v22  ;;  %v995_v23 = vld [vmem:[%s5406_s28 + $0xcb8] sm:$0xf] }
 0x121   : > { %v997_v24 = vld [vmem:[%s5406_s28 + $0xcc0] sm:$0xf]  ;;  %v999_v25 = vld [vmem:[%s5406_s28 + $0xcc8] sm:$0xf]  ;;  %996 = vst [vmem:[%s5413_s29 + $0x65c] sm:$0xf] %v995_v23 }
 0x122   : > { %998 = vst [vmem:[%s5413_s29 + $0x660] sm:$0xf] %v997_v24  ;;  %1000 = vst [vmem:[%s5413_s29 + $0x664] sm:$0xf] %v999_v25  ;;  %v1001_v26 = vld [vmem:[%s5406_s28 + $0xcd0] sm:$0xf] }
 0x123   : > { %v1003_v27 = vld [vmem:[%s5406_s28 + $0xcd8] sm:$0xf]  ;;  %v1005_v28 = vld [vmem:[%s5406_s28 + $0xce0] sm:$0xf]  ;;  %1002 = vst [vmem:[%s5413_s29 + $0x668] sm:$0xf] %v1001_v26 }
 0x124   : > { %1004 = vst [vmem:[%s5413_s29 + $0x66c] sm:$0xf] %v1003_v27  ;;  %1006 = vst [vmem:[%s5413_s29 + $0x670] sm:$0xf] %v1005_v28  ;;  %v1007_v29 = vld [vmem:[%s5406_s28 + $0xce8] sm:$0xf] }
 0x125   : > { %v1009_v30 = vld [vmem:[%s5406_s28 + $0xcf0] sm:$0xf]  ;;  %v1011_v31 = vld [vmem:[%s5406_s28 + $0xcf8] sm:$0xf]  ;;  %1008 = vst [vmem:[%s5413_s29 + $0x674] sm:$0xf] %v1007_v29 }
 0x126   : > { %1010 = vst [vmem:[%s5413_s29 + $0x678] sm:$0xf] %v1009_v30  ;;  %1012 = vst [vmem:[%s5413_s29 + $0x67c] sm:$0xf] %v1011_v31  ;;  %v1013_v32 = vld [vmem:[%s5406_s28 + $0xd00] sm:$0xf] }
 0x127   : > { %v1015_v33 = vld [vmem:[%s5406_s28 + $0xd08] sm:$0xf]  ;;  %v1017_v34 = vld [vmem:[%s5406_s28 + $0xd10] sm:$0xf]  ;;  %1014 = vst [vmem:[%s5413_s29 + $0x680] sm:$0xf] %v1013_v32 }
 0x128   : > { %1016 = vst [vmem:[%s5413_s29 + $0x684] sm:$0xf] %v1015_v33  ;;  %1018 = vst [vmem:[%s5413_s29 + $0x688] sm:$0xf] %v1017_v34  ;;  %v1019_v35 = vld [vmem:[%s5406_s28 + $0xd18] sm:$0xf] }
 0x129   : > { %v1021_v36 = vld [vmem:[%s5406_s28 + $0xd20] sm:$0xf]  ;;  %v1023_v37 = vld [vmem:[%s5406_s28 + $0xd28] sm:$0xf]  ;;  %1020 = vst [vmem:[%s5413_s29 + $0x68c] sm:$0xf] %v1019_v35 }
 0x12a   : > { %1022 = vst [vmem:[%s5413_s29 + $0x690] sm:$0xf] %v1021_v36  ;;  %1024 = vst [vmem:[%s5413_s29 + $0x694] sm:$0xf] %v1023_v37  ;;  %v1025_v38 = vld [vmem:[%s5406_s28 + $0xd30] sm:$0xf] }
 0x12b   : > { %v1027_v39 = vld [vmem:[%s5406_s28 + $0xd38] sm:$0xf]  ;;  %v1029_v40 = vld [vmem:[%s5406_s28 + $0xd40] sm:$0xf]  ;;  %1026 = vst [vmem:[%s5413_s29 + $0x698] sm:$0xf] %v1025_v38 }
 0x12c   : > { %1028 = vst [vmem:[%s5413_s29 + $0x69c] sm:$0xf] %v1027_v39  ;;  %1030 = vst [vmem:[%s5413_s29 + $0x6a0] sm:$0xf] %v1029_v40  ;;  %v1031_v41 = vld [vmem:[%s5406_s28 + $0xd48] sm:$0xf] }
 0x12d   : > { %v1033_v42 = vld [vmem:[%s5406_s28 + $0xd50] sm:$0xf]  ;;  %v1035_v43 = vld [vmem:[%s5406_s28 + $0xd58] sm:$0xf]  ;;  %1032 = vst [vmem:[%s5413_s29 + $0x6a4] sm:$0xf] %v1031_v41 }
 0x12e   : > { %1034 = vst [vmem:[%s5413_s29 + $0x6a8] sm:$0xf] %v1033_v42  ;;  %1036 = vst [vmem:[%s5413_s29 + $0x6ac] sm:$0xf] %v1035_v43  ;;  %v1037_v44 = vld [vmem:[%s5406_s28 + $0xd60] sm:$0xf] }
 0x12f   : > { %v1039_v45 = vld [vmem:[%s5406_s28 + $0xd68] sm:$0xf]  ;;  %v1041_v46 = vld [vmem:[%s5406_s28 + $0xd70] sm:$0xf]  ;;  %1038 = vst [vmem:[%s5413_s29 + $0x6b0] sm:$0xf] %v1037_v44 }
 0x130   : > { %1040 = vst [vmem:[%s5413_s29 + $0x6b4] sm:$0xf] %v1039_v45  ;;  %1042 = vst [vmem:[%s5413_s29 + $0x6b8] sm:$0xf] %v1041_v46  ;;  %v1043_v47 = vld [vmem:[%s5406_s28 + $0xd78] sm:$0xf] }
 0x131   : > { %1044 = vst [vmem:[%s5413_s29 + $0x6bc] sm:$0xf] %v1043_v47 }
 0x132 PF: > { %p4486_p5 = scmp.ge.s32.totalorder %s5343_s17, 1  ;;  %p1942_p6 = scmp.lt.s32.totalorder %s5343_s17, 3 }
 0x134   : > { %p1943_p7 = pnand %p4486_p5, %p1942_p6 }
 0x135   : > { %s1949_s30 = sand.u32 (!%p1943_p7), 1, %s5335_s15   ;;  %v6280_v48 = vld [vmem:[%s6596_s0] sm:$0xff] (!%p1943_p7)  ;;  %v6285_v49 = vld [vmem:[%s6596_s0 + $0x8] sm:$0xff] (!%p1943_p7)  ;;  %v6325_v17 = vld [vmem:[%s6596_s0 + $0x10] sm:$0xff] (!%p1943_p7)  ;;  %vm5346_vm0 = vmmov (!%p1943_p7), 0   ;;  %p1979_p8 = scmp.lt.s32.totalorder (!%p1943_p7), %s4481_s18, 1 }
 0x136   : > { %1946 = sbr.rel (%p1943_p7) target bundleno = 764 (0x2fc), region = 73  ;;  %v4489_v50 = vcombine.high (!%p1943_p7), %v6280_v48, %v6280_v48  ;;  %v4491_v51 = vcombine.high (!%p1943_p7), %v6285_v49, %v6285_v49  ;;  %v6332_v20 = vld [vmem:[%s6596_s0 + $0x18] sm:$0xff] (!%p1943_p7)  ;;  %v4488_v22 = vcombine.low (!%p1943_p7), %v6280_v48, %v6280_v48  ;;  %v4490_v23 = vcombine.low (!%p1943_p7), %v6285_v49, %v6285_v49 }
 0x137   : > { %s5051_s9 = smul.u32 (!%p1943_p7), 1728, %s1949_s30  ;;  %v4493_v26 = vcombine.high (!%p1943_p7), %v6325_v17, %v6325_v17  ;;  %v4495_v29 = vcombine.high (!%p1943_p7), %v6332_v20, %v6332_v20 }
 0x138   : > { %3859 = vmatprep.mubr.bf16.mxu0 (!%p1943_p7), %v4489_v50  ;;  %3899 = vmatprep.mubr.bf16.mxu1 (!%p1943_p7), %v4491_v51 }
 0x139   : > { %s6291_s10 = scalar_lea.vmem (!%p1943_p7), [#allocation2], %s5051_s9 }
 0x13a   : > { %v5078_v52 = vld [vmem:[%s6291_s10 + $0x40] sm:$0xff] (!%p1943_p7)   ;;  %v5082_v56 = vld [vmem:[%s6291_s10 + $0x48] sm:$0xff] (!%p1943_p7)   ;;  %v5086_v60 = vld [vmem:[%s6291_s10 + $0x50] sm:$0xff] (!%p1943_p7)  }
 0x13b   : > { %v5079_v53 = vld [vmem:[%s6291_s10 + $0xc0] sm:$0xff] (!%p1943_p7)   ;;  %4735 = vmatprep.subr.bf16.mxu0 (!%p1943_p7), %v5078_v52  ;;  %v5083_v57 = vld [vmem:[%s6291_s10 + $0xc8] sm:$0xff] (!%p1943_p7)   ;;  %v5087_v61 = vld [vmem:[%s6291_s10 + $0xd0] sm:$0xff] (!%p1943_p7)  }
 0x13c   : > { %v5080_v54 = vld [vmem:[%s6291_s10] sm:$0xff] (!%p1943_p7)   ;;  %4757 = vmatprep.subr.bf16.mxu1 (!%p1943_p7), %v5079_v53  ;;  %v5084_v58 = vld [vmem:[%s6291_s10 + $0x8] sm:$0xff] (!%p1943_p7)   ;;  %v5088_v62 = vld [vmem:[%s6291_s10 + $0x10] sm:$0xff] (!%p1943_p7)  }
 0x13d   : > { %v5081_v55 = vld [vmem:[%s6291_s10 + $0x80] sm:$0xff]   ;;  %4736 = vmatpush3.bf16.msra.mxu0 %v5080_v54  ;;  %v5085_v59 = vld [vmem:[%s6291_s10 + $0x88] sm:$0xff]   ;;  %v5089_v63 = vld [vmem:[%s6291_s10 + $0x90] sm:$0xff]   ;;  %s6605_s18 = smov (!%p1979_p8, %s4481_s18), 1 }
 0x13e   : > { %4758 = vmatpush3.bf16.msra.mxu1 %v5081_v55  ;;  %4737 = vmatprep.subr.bf16.mxu0 %v5082_v56  ;;  %v5090_v0 = vld [vmem:[%s6291_s10 + $0x58] sm:$0xff]   ;;  %v5094_v4 = vld [vmem:[%s6291_s10 + $0x60] sm:$0xff]   ;;  %v5098_v8 = vld [vmem:[%s6291_s10 + $0x68] sm:$0xff]   ;;  %s1981_s20 = scalar_lea.vmem %s6598_s2, %s6605_s18  ;;  %s1984_s24 = scalar_lea.vmem %s6599_s3, %s6605_s18 }
 0x13f   : > { %4759 = vmatprep.subr.bf16.mxu1 %v5083_v57  ;;  %v5091_v1 = vld [vmem:[%s6291_s10 + $0xd8] sm:$0xff]   ;;  %v5095_v5 = vld [vmem:[%s6291_s10 + $0xe0] sm:$0xff]   ;;  %v5099_v9 = vld [vmem:[%s6291_s10 + $0xe8] sm:$0xff]   ;;  %s4487_s17 = sshll.u32 %s6605_s18, 3 }
 0x140   : > { %v5092_v2 = vld [vmem:[%s6291_s10 + $0x18] sm:$0xff]   ;;  %v5096_v6 = vld [vmem:[%s6291_s10 + $0x20] sm:$0xff]   ;;  %v5100_v10 = vld [vmem:[%s6291_s10 + $0x28] sm:$0xff]   ;;  %s1988_s27 = scalar_lea.vmem %s6600_s4, %s4487_s17 }
 0x141   : > { %4738 = vmatpush3.bf16.msra.mxu0 %v5084_v58  ;;  %v5093_v3 = vld [vmem:[%s6291_s10 + $0x98] sm:$0xff]   ;;  %v5097_v7 = vld [vmem:[%s6291_s10 + $0xa0] sm:$0xff]   ;;  %v5101_v11 = vld [vmem:[%s6291_s10 + $0xa8] sm:$0xff]  }
 0x142   : > { %4760 = vmatpush3.bf16.msra.mxu1 %v5085_v59  ;;  %4739 = vmatprep.subr.bf16.mxu0 %v5086_v60  ;;  %v5102_v12 = vld [vmem:[%s6291_s10 + $0x70] sm:$0xff]   ;;  %v5106_v16 = vld [vmem:[%s6291_s10 + $0x78] sm:$0xff]   ;;  %v5114_v24 = vld [vmem:[%s6291_s10 + $0x140] sm:$0xff]   ;;  %v4492_v59 = vcombine.low %v6325_v17, %v6325_v17 }
 0x143   : > { %4761 = vmatprep.subr.bf16.mxu1 %v5087_v61  ;;  %v5103_v13 = vld [vmem:[%s6291_s10 + $0xf0] sm:$0xff]   ;;  %v5107_v18 = vld [vmem:[%s6291_s10 + $0xf8] sm:$0xff]   ;;  %v5115_v25 = vld [vmem:[%s6291_s10 + $0x100] sm:$0xff]  }
 0x144   : > { %v5104_v14 = vld [vmem:[%s6291_s10 + $0x30] sm:$0xff]   ;;  %v5108_v19 = vld [vmem:[%s6291_s10 + $0x38] sm:$0xff]   ;;  %v5116_v27 = vld [vmem:[%s6291_s10 + $0x1c0] sm:$0xff]  }
 0x145   : > { %4740 = vmatpush3.bf16.msra.mxu0 %v5088_v62  ;;  %v5105_v15 = vld [vmem:[%s6291_s10 + $0xb0] sm:$0xff]   ;;  %v5109_v21 = vld [vmem:[%s6291_s10 + $0xb8] sm:$0xff]   ;;  %v5117_v28 = vld [vmem:[%s6291_s10 + $0x180] sm:$0xff]   ;;  %v4494_v62 = vcombine.low %v6332_v20, %v6332_v20 }
 0x146   : > { %4762 = vmatpush3.bf16.msra.mxu1 %v5089_v63  ;;  %4741 = vmatprep.subr.bf16.mxu0 %v5090_v0  ;;  %v5118_v30 = vld [vmem:[%s6291_s10 + $0x148] sm:$0xff]   ;;  %v5122_v34 = vld [vmem:[%s6291_s10 + $0x150] sm:$0xff]   ;;  %v5126_v38 = vld [vmem:[%s6291_s10 + $0x158] sm:$0xff]  }
 0x147   : > { %4763 = vmatprep.subr.bf16.mxu1 %v5091_v1  ;;  %v5119_v31 = vld [vmem:[%s6291_s10 + $0x108] sm:$0xff]   ;;  %v5123_v35 = vld [vmem:[%s6291_s10 + $0x110] sm:$0xff]   ;;  %v5127_v39 = vld [vmem:[%s6291_s10 + $0x118] sm:$0xff]  }
 0x148   : > { %v5120_v32 = vld [vmem:[%s6291_s10 + $0x1c8] sm:$0xff]   ;;  %v5124_v36 = vld [vmem:[%s6291_s10 + $0x1d0] sm:$0xff]   ;;  %v5128_v40 = vld [vmem:[%s6291_s10 + $0x1d8] sm:$0xff]  }
 0x149   : > { %4742 = vmatpush3.bf16.msra.mxu0 %v5092_v2  ;;  %v5121_v33 = vld [vmem:[%s6291_s10 + $0x188] sm:$0xff]   ;;  %v5125_v37 = vld [vmem:[%s6291_s10 + $0x190] sm:$0xff]   ;;  %v5129_v41 = vld [vmem:[%s6291_s10 + $0x198] sm:$0xff]  }
 0x14a   : > { %4764 = vmatpush3.bf16.msra.mxu1 %v5093_v3  ;;  %4743 = vmatprep.subr.bf16.mxu0 %v5094_v4  ;;  %v5130_v42 = vld [vmem:[%s6291_s10 + $0x160] sm:$0xff]   ;;  %v5134_v46 = vld [vmem:[%s6291_s10 + $0x168] sm:$0xff]   ;;  %v5138_v50 = vld [vmem:[%s6291_s10 + $0x170] sm:$0xff]  }
 0x14b   : > { %4765 = vmatprep.subr.bf16.mxu1 %v5095_v5  ;;  %v5131_v43 = vld [vmem:[%s6291_s10 + $0x120] sm:$0xff]   ;;  %v5135_v47 = vld [vmem:[%s6291_s10 + $0x128] sm:$0xff]   ;;  %v5139_v51 = vld [vmem:[%s6291_s10 + $0x130] sm:$0xff]  }
 0x14c   : > { %v5132_v44 = vld [vmem:[%s6291_s10 + $0x1e0] sm:$0xff]   ;;  %v5136_v48 = vld [vmem:[%s6291_s10 + $0x1e8] sm:$0xff]   ;;  %v5140_v52 = vld [vmem:[%s6291_s10 + $0x1f0] sm:$0xff]  }
 0x14d   : > { %4744 = vmatpush3.bf16.msra.mxu0 %v5096_v6  ;;  %v5133_v45 = vld [vmem:[%s6291_s10 + $0x1a0] sm:$0xff]   ;;  %v5137_v49 = vld [vmem:[%s6291_s10 + $0x1a8] sm:$0xff]   ;;  %v5141_v53 = vld [vmem:[%s6291_s10 + $0x1b0] sm:$0xff]  }
 0x14e   : > { %4766 = vmatpush3.bf16.msra.mxu1 %v5097_v7  ;;  %4745 = vmatprep.subr.bf16.mxu0 %v5098_v8  ;;  %v5142_v54 = vld [vmem:[%s6291_s10 + $0x178] sm:$0xff]   ;;  %v6375_v55 = vld [vmem:[%s6596_s0 + $0x20] sm:$0xff]  ;;  %v6382_v58 = vld [vmem:[%s6596_s0 + $0x28] sm:$0xff] }
 0x14f   : > { %4767 = vmatprep.subr.bf16.mxu1 %v5099_v9  ;;  %v5143_v56 = vld [vmem:[%s6291_s10 + $0x138] sm:$0xff]   ;;  %v5148_v61 = vld [vmem:[%s6291_s10 + $0x240] sm:$0xff]   ;;  %v4497_v0 = vcombine.high %v6375_v55, %v6375_v55  ;;  %v4499_v3 = vcombine.high %v6382_v58, %v6382_v58  ;;  %v5154_v4 = vld [vmem:[%s6291_s10 + $0x248] sm:$0xff]  }
 0x150   : > { %v5144_v57 = vld [vmem:[%s6291_s10 + $0x1f8] sm:$0xff]   ;;  %v5151_v63 = vld [vmem:[%s6291_s10 + $0x200] sm:$0xff]   ;;  %v5155_v5 = vld [vmem:[%s6291_s10 + $0x208] sm:$0xff]  }
 0x151   : > { %4746 = vmatpush3.bf16.msra.mxu0 %v5100_v10  ;;  %v5147_v60 = vld [vmem:[%s6291_s10 + $0x1b8] sm:$0xff]   ;;  %v5152_v1 = vld [vmem:[%s6291_s10 + $0x2c0] sm:$0xff]   ;;  %v5156_v6 = vld [vmem:[%s6291_s10 + $0x2c8] sm:$0xff]  }
 0x152   : > { %4768 = vmatpush3.bf16.msra.mxu1 %v5101_v11  ;;  %4747 = vmatprep.subr.bf16.mxu0 %v5102_v12  ;;  %v5153_v2 = vld [vmem:[%s6291_s10 + $0x280] sm:$0xff]   ;;  %v5157_v7 = vld [vmem:[%s6291_s10 + $0x288] sm:$0xff]   ;;  %v5158_v8 = vld [vmem:[%s6291_s10 + $0x250] sm:$0xff]  }
 0x153   : > { %4769 = vmatprep.subr.bf16.mxu1 %v5103_v13  ;;  %v5159_v9 = vld [vmem:[%s6291_s10 + $0x210] sm:$0xff]   ;;  %v5162_v12 = vld [vmem:[%s6291_s10 + $0x258] sm:$0xff]   ;;  %v5167_v17 = vld [vmem:[%s6291_s10 + $0x220] sm:$0xff]  }
 0x154   : > { %v5160_v10 = vld [vmem:[%s6291_s10 + $0x2d0] sm:$0xff]   ;;  %v5163_v13 = vld [vmem:[%s6291_s10 + $0x218] sm:$0xff]   ;;  %v5170_v20 = vld [vmem:[%s6291_s10 + $0x268] sm:$0xff]  }
 0x155   : > { %4748 = vmatpush3.bf16.msra.mxu0 %v5104_v14  ;;  %v5161_v11 = vld [vmem:[%s6291_s10 + $0x290] sm:$0xff]   ;;  %v5164_v14 = vld [vmem:[%s6291_s10 + $0x2d8] sm:$0xff]  }
 0x156   : > { %4770 = vmatpush3.bf16.msra.mxu1 %v5105_v15  ;;  %4749 = vmatprep.subr.bf16.mxu0 %v5106_v16  ;;  %v5165_v15 = vld [vmem:[%s6291_s10 + $0x298] sm:$0xff]   ;;  %v5166_v16 = vld [vmem:[%s6291_s10 + $0x260] sm:$0xff]  }
 0x157   : > { %4771 = vmatprep.subr.bf16.mxu1 %v5107_v18  ;;  %v5168_v18 = vld [vmem:[%s6291_s10 + $0x2e0] sm:$0xff]  }
 0x159   : > { %4750 = vmatpush3.bf16.msra.mxu0 %v5108_v19  ;;  %v5169_v19 = vld [vmem:[%s6291_s10 + $0x2a0] sm:$0xff]  }
 0x15a   : > { %4772 = vmatpush3.bf16.msra.mxu1 %v5109_v21  ;;  %4779 = vmatprep.subr.bf16.mxu0 %v5114_v24  ;;  %v5171_v21 = vld [vmem:[%s6291_s10 + $0x228] sm:$0xff]   ;;  %v5174_v24 = vld [vmem:[%s6291_s10 + $0x270] sm:$0xff]  }
 0x15b   : > { %4801 = vmatprep.subr.bf16.mxu1 %v5116_v27  ;;  %v5177_v27 = vld [vmem:[%s6291_s10 + $0x2b0] sm:$0xff]  }
 0x15c   : > { %3860 = vmatmul.mubr.bf16.vlgmr.msra.gmra.mrb[0].mxu0 %v4488_v22  ;;  %v5172_v22 = vld [vmem:[%s6291_s10 + $0x2e8] sm:$0xff]  }
 0x15d   : > { %3900 = vmatmul.mubr.bf16.vlgmr.msra.gmra.mrb[0].mxu1 %v4490_v23  ;;  %4780 = vmatpush3.bf16.msra.mxu0 %v5115_v25  ;;  %v5173_v23 = vld [vmem:[%s6291_s10 + $0x2a8] sm:$0xff]   ;;  %v5175_v25 = vld [vmem:[%s6291_s10 + $0x230] sm:$0xff]  }
 0x15e   : > { %3939 = vmatprep.mubr.bf16.mxu0 %v4493_v26  ;;  %4802 = vmatpush3.bf16.msra.mxu1 %v5117_v28  ;;  %v5176_v26 = vld [vmem:[%s6291_s10 + $0x2f0] sm:$0xff]   ;;  %v5178_v28 = vld [vmem:[%s6291_s10 + $0x278] sm:$0xff]  }
 0x15f   : > { %4781 = vmatprep.subr.bf16.mxu0 %v5118_v30  ;;  %3979 = vmatprep.mubr.bf16.mxu1 %v4495_v29  ;;  %v5179_v29 = vld [vmem:[%s6291_s10 + $0x238] sm:$0xff]  }
 0x160   : > { %4803 = vmatprep.subr.bf16.mxu1 %v5120_v32  ;;  %v5180_v30 = vld [vmem:[%s6291_s10 + $0x2f8] sm:$0xff]  }
 0x161   : > { %4782 = vmatpush3.bf16.msra.mxu0 %v5119_v31  ;;  %v4496_v31 = vcombine.low %v6375_v55, %v6375_v55  ;;  %v5183_v32 = vld [vmem:[%s6291_s10 + $0x2b8] sm:$0xff]   ;;  %v5207_v55 = vld [vmem:[%s6291_s10 + $0x328] sm:$0xff]  }
 0x162   : > { %4804 = vmatpush3.bf16.msra.mxu1 %v5121_v33  ;;  %4783 = vmatprep.subr.bf16.mxu0 %v5122_v34  ;;  %v5184_v33 = vld [vmem:[%s6291_s10 + $0x340] sm:$0xff]   ;;  %v4498_v34 = vcombine.low %v6382_v58, %v6382_v58  ;;  %v5210_v58 = vld [vmem:[%s6291_s10 + $0x370] sm:$0xff]  }
 0x163   : > { %4805 = vmatprep.subr.bf16.mxu1 %v5124_v36  ;;  %v5188_v36 = vld [vmem:[%s6291_s10 + $0x3c0] sm:$0xff]  }
 0x165   : > { %4784 = vmatpush3.bf16.msra.mxu0 %v5123_v35  ;;  %v5187_v35 = vld [vmem:[%s6291_s10 + $0x300] sm:$0xff]  }
 0x166   : > { %4806 = vmatpush3.bf16.msra.mxu1 %v5125_v37  ;;  %4785 = vmatprep.subr.bf16.mxu0 %v5126_v38  ;;  %v5189_v37 = vld [vmem:[%s6291_s10 + $0x380] sm:$0xff]   ;;  %v5190_v38 = vld [vmem:[%s6291_s10 + $0x348] sm:$0xff]  }
 0x167   : > { %4807 = vmatprep.subr.bf16.mxu1 %v5128_v40  ;;  %v5192_v40 = vld [vmem:[%s6291_s10 + $0x3c8] sm:$0xff]  }
 0x169   : > { %4786 = vmatpush3.bf16.msra.mxu0 %v5127_v39  ;;  %v5191_v39 = vld [vmem:[%s6291_s10 + $0x308] sm:$0xff]  }
 0x16a   : > { %4808 = vmatpush3.bf16.msra.mxu1 %v5129_v41  ;;  %4787 = vmatprep.subr.bf16.mxu0 %v5130_v42  ;;  %v5193_v41 = vld [vmem:[%s6291_s10 + $0x388] sm:$0xff]   ;;  %v5194_v42 = vld [vmem:[%s6291_s10 + $0x350] sm:$0xff]  }
 0x16b   : > { %4809 = vmatprep.subr.bf16.mxu1 %v5132_v44  ;;  %v5196_v44 = vld [vmem:[%s6291_s10 + $0x3d0] sm:$0xff]  }
 0x16d   : > { %4788 = vmatpush3.bf16.msra.mxu0 %v5131_v43  ;;  %v5195_v43 = vld [vmem:[%s6291_s10 + $0x310] sm:$0xff]  }
 0x16e   : > { %4810 = vmatpush3.bf16.msra.mxu1 %v5133_v45  ;;  %4789 = vmatprep.subr.bf16.mxu0 %v5134_v46  ;;  %v5197_v45 = vld [vmem:[%s6291_s10 + $0x390] sm:$0xff]   ;;  %v5198_v46 = vld [vmem:[%s6291_s10 + $0x358] sm:$0xff]  }
 0x16f   : > { %4811 = vmatprep.subr.bf16.mxu1 %v5136_v48  ;;  %v5200_v48 = vld [vmem:[%s6291_s10 + $0x3d8] sm:$0xff]  }
 0x171   : > { %4790 = vmatpush3.bf16.msra.mxu0 %v5135_v47  ;;  %v5199_v47 = vld [vmem:[%s6291_s10 + $0x318] sm:$0xff]  }
 0x172   : > { %4812 = vmatpush3.bf16.msra.mxu1 %v5137_v49  ;;  %4791 = vmatprep.subr.bf16.mxu0 %v5138_v50  ;;  %v5201_v49 = vld [vmem:[%s6291_s10 + $0x398] sm:$0xff]   ;;  %v5202_v50 = vld [vmem:[%s6291_s10 + $0x360] sm:$0xff]  }
 0x173   : > { %4813 = vmatprep.subr.bf16.mxu1 %v5140_v52  ;;  %v5204_v52 = vld [vmem:[%s6291_s10 + $0x3e0] sm:$0xff]  }
 0x175   : > { %4792 = vmatpush3.bf16.msra.mxu0 %v5139_v51  ;;  %v5203_v51 = vld [vmem:[%s6291_s10 + $0x320] sm:$0xff]  }
 0x176   : > { %4814 = vmatpush3.bf16.msra.mxu1 %v5141_v53  ;;  %4793 = vmatprep.subr.bf16.mxu0 %v5142_v54  ;;  %v5205_v53 = vld [vmem:[%s6291_s10 + $0x3a0] sm:$0xff]   ;;  %v5206_v54 = vld [vmem:[%s6291_s10 + $0x368] sm:$0xff]  }
 0x177   : > { %4815 = vmatprep.subr.bf16.mxu1 %v5144_v57  ;;  %v5209_v57 = vld [vmem:[%s6291_s10 + $0x3a8] sm:$0xff]  }
 0x179   : > { %4794 = vmatpush3.bf16.msra.mxu0 %v5143_v56  ;;  %v5208_v56 = vld [vmem:[%s6291_s10 + $0x3e8] sm:$0xff]  }
 0x17a   : > { %4816 = vmatpush3.bf16.msra.mxu1 %v5147_v60  ;;  %4823 = vmatprep.subr.bf16.mxu0 %v5148_v61  ;;  %v5212_v60 = vld [vmem:[%s6291_s10 + $0x3f0] sm:$0xff]  }
 0x17b   : > { %4845 = vmatprep.subr.bf16.mxu1 %v5152_v1  ;;  %v5213_v61 = vld [vmem:[%s6291_s10 + $0x3b0] sm:$0xff]  }
 0x17c   : > { %3940 = vmatmul.mubr.bf16.vlgmr.msra.gmra.mrb[4].mxu0 %v4492_v59  ;;  %v5211_v59 = vld [vmem:[%s6291_s10 + $0x330] sm:$0xff]  }
 0x17d   : > { %4824 = vmatpush3.bf16.msra.mxu0 %v5151_v63  ;;  %3980 = vmatmul.mubr.bf16.vlgmr.msra.gmra.mrb[4].mxu1 %v4494_v62  ;;  %v5214_v62 = vld [vmem:[%s6291_s10 + $0x378] sm:$0xff]   ;;  %v1996_v1 = vld [vmem:[%s6596_s0 + $0x30] sm:$0xff] }
 0x17e   : > { %4019 = vmatprep.mubr.bf16.mxu0 %v4497_v0  ;;  %4846 = vmatpush3.bf16.msra.mxu1 %v5153_v2  ;;  %v5215_v63 = vld [vmem:[%s6291_s10 + $0x338] sm:$0xff]   ;;  %v4500_v2 = vcombine.low %v1996_v1, %v1996_v1 }
 0x17f   : > { %4825 = vmatprep.subr.bf16.mxu0 %v5154_v4  ;;  %4059 = vmatprep.mubr.bf16.mxu1 %v4499_v3  ;;  %v5216_v0 = vld [vmem:[%s6291_s10 + $0x3f8] sm:$0xff]   ;;  %v4501_v3 = vcombine.high %v1996_v1, %v1996_v1  ;;  %v5277_v1 = vld [vmem:[%s6291_s10 + $0x5a0] sm:$0xff]  }
 0x180   : > { %4847 = vmatprep.subr.bf16.mxu1 %v5156_v6  ;;  %v5219_v4 = vld [vmem:[%s6291_s10 + $0x3b8] sm:$0xff]  }
 0x181   : > { %4826 = vmatpush3.bf16.msra.mxu0 %v5155_v5  ;;  %v5220_v5 = vld [vmem:[%s6291_s10 + $0x440] sm:$0xff]   ;;  %v1997_v6 = vld [vmem:[%s6596_s0 + $0x38] sm:$0xff] }
 0x182   : > { %4848 = vmatpush3.bf16.msra.mxu1 %v5157_v7  ;;  %4827 = vmatprep.subr.bf16.mxu0 %v5158_v8  ;;  %v4502_v7 = vcombine.low %v1997_v6, %v1997_v6  ;;  %v4503_v8 = vcombine.high %v1997_v6, %v1997_v6  ;;  %v5282_v6 = vld [vmem:[%s6291_s10 + $0x570] sm:$0xff]  }
 0x183   : > { %4849 = vmatprep.subr.bf16.mxu1 %v5160_v10  ;;  %v5224_v10 = vld [vmem:[%s6291_s10 + $0x4c0] sm:$0xff]  }
 0x185   : > { %4828 = vmatpush3.bf16.msra.mxu0 %v5159_v9  ;;  %v5223_v9 = vld [vmem:[%s6291_s10 + $0x400] sm:$0xff]  }
 0x186   : > { %4850 = vmatpush3.bf16.msra.mxu1 %v5161_v11  ;;  %4829 = vmatprep.subr.bf16.mxu0 %v5162_v12  ;;  %v5225_v11 = vld [vmem:[%s6291_s10 + $0x480] sm:$0xff]   ;;  %v5226_v12 = vld [vmem:[%s6291_s10 + $0x448] sm:$0xff]  }
 0x187   : > { %4851 = vmatprep.subr.bf16.mxu1 %v5164_v14  ;;  %v5228_v14 = vld [vmem:[%s6291_s10 + $0x4c8] sm:$0xff]  }
 0x189   : > { %4830 = vmatpush3.bf16.msra.mxu0 %v5163_v13  ;;  %v5227_v13 = vld [vmem:[%s6291_s10 + $0x408] sm:$0xff]  }
 0x18a   : > { %4852 = vmatpush3.bf16.msra.mxu1 %v5165_v15  ;;  %4831 = vmatprep.subr.bf16.mxu0 %v5166_v16  ;;  %v5229_v15 = vld [vmem:[%s6291_s10 + $0x488] sm:$0xff]   ;;  %v5230_v16 = vld [vmem:[%s6291_s10 + $0x450] sm:$0xff]  }
 0x18b   : > { %4853 = vmatprep.subr.bf16.mxu1 %v5168_v18  ;;  %v5232_v18 = vld [vmem:[%s6291_s10 + $0x4d0] sm:$0xff]  }
 0x18d   : > { %4832 = vmatpush3.bf16.msra.mxu0 %v5167_v17  ;;  %v5231_v17 = vld [vmem:[%s6291_s10 + $0x410] sm:$0xff]  }
 0x18e   : > { %4854 = vmatpush3.bf16.msra.mxu1 %v5169_v19  ;;  %4833 = vmatprep.subr.bf16.mxu0 %v5170_v20  ;;  %v5233_v19 = vld [vmem:[%s6291_s10 + $0x490] sm:$0xff]   ;;  %v5234_v20 = vld [vmem:[%s6291_s10 + $0x458] sm:$0xff]  }
 0x18f   : > { %4855 = vmatprep.subr.bf16.mxu1 %v5172_v22  ;;  %v5236_v22 = vld [vmem:[%s6291_s10 + $0x4d8] sm:$0xff]  }
 0x191   : > { %4834 = vmatpush3.bf16.msra.mxu0 %v5171_v21  ;;  %v5235_v21 = vld [vmem:[%s6291_s10 + $0x418] sm:$0xff]  }
 0x192   : > { %4856 = vmatpush3.bf16.msra.mxu1 %v5173_v23  ;;  %4835 = vmatprep.subr.bf16.mxu0 %v5174_v24  ;;  %v5237_v23 = vld [vmem:[%s6291_s10 + $0x498] sm:$0xff]   ;;  %v5238_v24 = vld [vmem:[%s6291_s10 + $0x460] sm:$0xff]  }
 0x193   : > { %4857 = vmatprep.subr.bf16.mxu1 %v5176_v26  ;;  %v5240_v26 = vld [vmem:[%s6291_s10 + $0x4e0] sm:$0xff]  }
 0x195   : > { %4836 = vmatpush3.bf16.msra.mxu0 %v5175_v25  ;;  %v5239_v25 = vld [vmem:[%s6291_s10 + $0x420] sm:$0xff]  }
 0x196   : > { %4858 = vmatpush3.bf16.msra.mxu1 %v5177_v27  ;;  %4837 = vmatprep.subr.bf16.mxu0 %v5178_v28  ;;  %v5241_v27 = vld [vmem:[%s6291_s10 + $0x4a0] sm:$0xff]   ;;  %v5242_v28 = vld [vmem:[%s6291_s10 + $0x468] sm:$0xff]  }
 0x197   : > { %4859 = vmatprep.subr.bf16.mxu1 %v5180_v30  ;;  %v5244_v30 = vld [vmem:[%s6291_s10 + $0x4e8] sm:$0xff]  }
 0x199   : > { %4838 = vmatpush3.bf16.msra.mxu0 %v5179_v29  ;;  %v5243_v29 = vld [vmem:[%s6291_s10 + $0x428] sm:$0xff]  }
 0x19a   : > { %4860 = vmatpush3.bf16.msra.mxu1 %v5183_v32  ;;  %4867 = vmatprep.subr.bf16.mxu0 %v5184_v33  ;;  %v5246_v32 = vld [vmem:[%s6291_s10 + $0x470] sm:$0xff]  }
 0x19b   : > { %4889 = vmatprep.subr.bf16.mxu1 %v5188_v36  ;;  %v5247_v33 = vld [vmem:[%s6291_s10 + $0x430] sm:$0xff]   ;;  %v5250_v36 = vld [vmem:[%s6291_s10 + $0x478] sm:$0xff]  }
 0x19c   : > { %4020 = vmatmul.mubr.bf16.vlgmr.msra.gmra.mrb[8].mxu0 %v4496_v31  ;;  %v5245_v31 = vld [vmem:[%s6291_s10 + $0x4a8] sm:$0xff]  }
 0x19d   : > { %4868 = vmatpush3.bf16.msra.mxu0 %v5187_v35  ;;  %4060 = vmatmul.mubr.bf16.vlgmr.msra.gmra.mrb[8].mxu1 %v4498_v34  ;;  %v5248_v34 = vld [vmem:[%s6291_s10 + $0x4f0] sm:$0xff]  }
 0x19e   : > { %4890 = vmatpush3.bf16.msra.mxu1 %v5189_v37  ;;  %4869 = vmatprep.subr.bf16.mxu0 %v5190_v38  ;;  %v5249_v35 = vld [vmem:[%s6291_s10 + $0x4b0] sm:$0xff]   ;;  %v5251_v37 = vld [vmem:[%s6291_s10 + $0x438] sm:$0xff]  }
 0x19f   : > { %4891 = vmatprep.subr.bf16.mxu1 %v5192_v40  ;;  %4099 = vmatprep.mubr.bf16.mxu0 %v4501_v3  ;;  %v5252_v38 = vld [vmem:[%s6291_s10 + $0x4f8] sm:$0xff]   ;;  %v5279_v3 = vld [vmem:[%s6291_s10 + $0x528] sm:$0xff]  }
 0x1a0   : > { %4139 = vmatprep.mubr.bf16.mxu1 %v4503_v8  ;;  %v5284_v8 = vld [vmem:[%s6291_s10 + $0x5f0] sm:$0xff]  }
 0x1a1   : > { %4870 = vmatpush3.bf16.msra.mxu0 %v5191_v39  ;;  %v1998_v39 = vld [vmem:[%s6596_s0 + $0x40] sm:$0xff] }
 0x1a2   : > { %4892 = vmatpush3.bf16.msra.mxu1 %v5193_v41  ;;  %4871 = vmatprep.subr.bf16.mxu0 %v5194_v42  ;;  %v4504_v40 = vcombine.low %v1998_v39, %v1998_v39  ;;  %v4505_v41 = vcombine.high %v1998_v39, %v1998_v39  ;;  %v5255_v42 = vld [vmem:[%s6291_s10 + $0x4b8] sm:$0xff]   ;;  %v5311_v39 = vld [vmem:[%s6291_s10 + $0x6a8] sm:$0xff]  }
 0x1a3   : > { %4893 = vmatprep.subr.bf16.mxu1 %v5196_v44  ;;  %v1999_v44 = vld [vmem:[%s6596_s0 + $0x48] sm:$0xff] }
 0x1a5   : > { %4872 = vmatpush3.bf16.msra.mxu0 %v5195_v43  ;;  %v5256_v43 = vld [vmem:[%s6291_s10 + $0x540] sm:$0xff]  }
 0x1a6   : > { %4894 = vmatpush3.bf16.msra.mxu1 %v5197_v45  ;;  %4873 = vmatprep.subr.bf16.mxu0 %v5198_v46  ;;  %v4506_v45 = vcombine.low %v1999_v44, %v1999_v44  ;;  %v4507_v46 = vcombine.high %v1999_v44, %v1999_v44  ;;  %v5314_v44 = vld [vmem:[%s6291_s10 + $0x6b0] sm:$0xff]  }
 0x1a7   : > { %4895 = vmatprep.subr.bf16.mxu1 %v5200_v48  ;;  %v5260_v48 = vld [vmem:[%s6291_s10 + $0x5c0] sm:$0xff]  }
 0x1a9   : > { %4874 = vmatpush3.bf16.msra.mxu0 %v5199_v47  ;;  %v5259_v47 = vld [vmem:[%s6291_s10 + $0x500] sm:$0xff]  }
 0x1aa   : > { %4896 = vmatpush3.bf16.msra.mxu1 %v5201_v49  ;;  %4875 = vmatprep.subr.bf16.mxu0 %v5202_v50  ;;  %v5261_v49 = vld [vmem:[%s6291_s10 + $0x580] sm:$0xff]   ;;  %v5262_v50 = vld [vmem:[%s6291_s10 + $0x548] sm:$0xff]  }
 0x1ab   : > { %4897 = vmatprep.subr.bf16.mxu1 %v5204_v52  ;;  %v5264_v52 = vld [vmem:[%s6291_s10 + $0x5c8] sm:$0xff]  }
 0x1ad   : > { %4876 = vmatpush3.bf16.msra.mxu0 %v5203_v51  ;;  %v5263_v51 = vld [vmem:[%s6291_s10 + $0x508] sm:$0xff]  }
 0x1ae   : > { %4898 = vmatpush3.bf16.msra.mxu1 %v5205_v53  ;;  %4877 = vmatprep.subr.bf16.mxu0 %v5206_v54  ;;  %v5265_v53 = vld [vmem:[%s6291_s10 + $0x588] sm:$0xff]   ;;  %v5266_v54 = vld [vmem:[%s6291_s10 + $0x550] sm:$0xff]  }
 0x1af   : > { %4899 = vmatprep.subr.bf16.mxu1 %v5208_v56  ;;  %v5268_v56 = vld [vmem:[%s6291_s10 + $0x5d0] sm:$0xff]  }
 0x1b1   : > { %4878 = vmatpush3.bf16.msra.mxu0 %v5207_v55  ;;  %v5267_v55 = vld [vmem:[%s6291_s10 + $0x510] sm:$0xff]  }
 0x1b2   : > { %4900 = vmatpush3.bf16.msra.mxu1 %v5209_v57  ;;  %4879 = vmatprep.subr.bf16.mxu0 %v5210_v58  ;;  %v5269_v57 = vld [vmem:[%s6291_s10 + $0x590] sm:$0xff]   ;;  %v5270_v58 = vld [vmem:[%s6291_s10 + $0x558] sm:$0xff]  }
 0x1b3   : > { %4901 = vmatprep.subr.bf16.mxu1 %v5212_v60  ;;  %v5272_v60 = vld [vmem:[%s6291_s10 + $0x5d8] sm:$0xff]  }
 0x1b5   : > { %4880 = vmatpush3.bf16.msra.mxu0 %v5211_v59  ;;  %v5271_v59 = vld [vmem:[%s6291_s10 + $0x518] sm:$0xff]  }
 0x1b6   : > { %4902 = vmatpush3.bf16.msra.mxu1 %v5213_v61  ;;  %4881 = vmatprep.subr.bf16.mxu0 %v5214_v62  ;;  %v5273_v61 = vld [vmem:[%s6291_s10 + $0x598] sm:$0xff]   ;;  %v5274_v62 = vld [vmem:[%s6291_s10 + $0x560] sm:$0xff]  }
 0x1b7   : > { %4903 = vmatprep.subr.bf16.mxu1 %v5216_v0  ;;  %v5276_v0 = vld [vmem:[%s6291_s10 + $0x5e0] sm:$0xff]  }
 0x1b9   : > { %4882 = vmatpush3.bf16.msra.mxu0 %v5215_v63  ;;  %v5275_v63 = vld [vmem:[%s6291_s10 + $0x520] sm:$0xff]  }
 0x1ba   : > { %4904 = vmatpush3.bf16.msra.mxu1 %v5219_v4  ;;  %4911 = vmatprep.subr.bf16.mxu0 %v5220_v5  ;;  %v5280_v4 = vld [vmem:[%s6291_s10 + $0x5e8] sm:$0xff]  }
 0x1bb   : > { %4933 = vmatprep.subr.bf16.mxu1 %v5224_v10  ;;  %v5281_v5 = vld [vmem:[%s6291_s10 + $0x5a8] sm:$0xff]   ;;  %v5286_v10 = vld [vmem:[%s6291_s10 + $0x578] sm:$0xff]  }
 0x1bc   : > { %4100 = vmatmul.mubr.bf16.vlgmr.msra.gmra.mrb[12].mxu0 %v4500_v2  ;;  %v5278_v2 = vld [vmem:[%s6291_s10 + $0x568] sm:$0xff]  }
 0x1bd   : > { %4912 = vmatpush3.bf16.msra.mxu0 %v5223_v9  ;;  %4140 = vmatmul.mubr.bf16.vlgmr.msra.gmra.mrb[12].mxu1 %v4502_v7  ;;  %v5283_v7 = vld [vmem:[%s6291_s10 + $0x530] sm:$0xff]  }
 0x1be   : > { %4934 = vmatpush3.bf16.msra.mxu1 %v5225_v11  ;;  %4913 = vmatprep.subr.bf16.mxu0 %v5226_v12  ;;  %v5285_v9 = vld [vmem:[%s6291_s10 + $0x5b0] sm:$0xff]   ;;  %v5287_v11 = vld [vmem:[%s6291_s10 + $0x538] sm:$0xff]  }
 0x1bf   : > { %4935 = vmatprep.subr.bf16.mxu1 %v5228_v14  ;;  %4179 = vmatprep.mubr.bf16.mxu0 %v4505_v41  ;;  %v5288_v12 = vld [vmem:[%s6291_s10 + $0x5f8] sm:$0xff]   ;;  %v2002_v41 = vld [vmem:[%s6596_s0 + $0x60] sm:$0xff] }
 0x1c0   : > { %4219 = vmatprep.mubr.bf16.mxu1 %v4507_v46  ;;  %v5319_v46 = vld [vmem:[%s6291_s10 + $0x6b8] sm:$0xff]  }
 0x1c1   : > { %4914 = vmatpush3.bf16.msra.mxu0 %v5227_v13  ;;  %v2000_v13 = vld [vmem:[%s6596_s0 + $0x50] sm:$0xff] }
 0x1c2   : > { %4936 = vmatpush3.bf16.msra.mxu1 %v5229_v15  ;;  %4915 = vmatprep.subr.bf16.mxu0 %v5230_v16  ;;  %v4508_v14 = vcombine.low %v2000_v13, %v2000_v13  ;;  %v4509_v15 = vcombine.high %v2000_v13, %v2000_v13  ;;  %v5291_v16 = vld [vmem:[%s6291_s10 + $0x5b8] sm:$0xff]  }
 0x1c3   : > { %4937 = vmatprep.subr.bf16.mxu1 %v5232_v18  ;;  %v2001_v18 = vld [vmem:[%s6596_s0 + $0x58] sm:$0xff] }
 0x1c5   : > { %4916 = vmatpush3.bf16.msra.mxu0 %v5231_v17  ;;  %v5292_v17 = vld [vmem:[%s6291_s10 + $0x640] sm:$0xff]  }
 0x1c6   : > { %4938 = vmatpush3.bf16.msra.mxu1 %v5233_v19  ;;  %4917 = vmatprep.subr.bf16.mxu0 %v5234_v20  ;;  %v4510_v19 = vcombine.low %v2001_v18, %v2001_v18  ;;  %v4511_v20 = vcombine.high %v2001_v18, %v2001_v18 }
 0x1c7   : > { %4939 = vmatprep.subr.bf16.mxu1 %v5236_v22  ;;  %v5296_v22 = vld [vmem:[%s6291_s10 + $0x680] sm:$0xff]  }
 0x1c9   : > { %4918 = vmatpush3.bf16.msra.mxu0 %v5235_v21  ;;  %v5295_v21 = vld [vmem:[%s6291_s10 + $0x600] sm:$0xff]  }
 0x1ca   : > { %4940 = vmatpush3.bf16.msra.mxu1 %v5237_v23  ;;  %4919 = vmatprep.subr.bf16.mxu0 %v5238_v24  ;;  %v5297_v23 = vld [vmem:[%s6291_s10 + $0x648] sm:$0xff]   ;;  %v5345_v24 = vmov 0.0  }
 0x1cb   : > { %4941 = vmatprep.subr.bf16.mxu1 %v5240_v26  ;;  %v5299_v26 = vld [vmem:[%s6291_s10 + $0x688] sm:$0xff]  }
 0x1cd   : > { %4920 = vmatpush3.bf16.msra.mxu0 %v5239_v25  ;;  %v5298_v25 = vld [vmem:[%s6291_s10 + $0x608] sm:$0xff]  }
 0x1ce   : > { %4942 = vmatpush3.bf16.msra.mxu1 %v5241_v27  ;;  %4921 = vmatprep.subr.bf16.mxu0 %v5242_v28  ;;  %v5300_v27 = vld [vmem:[%s6291_s10 + $0x650] sm:$0xff]  }
 0x1cf   : > { %4943 = vmatprep.subr.bf16.mxu1 %v5244_v30  ;;  %v5301_v28 = vld [vmem:[%s6291_s10 + $0x610] sm:$0xff]   ;;  %v5303_v30 = vld [vmem:[%s6291_s10 + $0x658] sm:$0xff]  }
 0x1d1   : > { %4922 = vmatpush3.bf16.msra.mxu0 %v5243_v29  ;;  %v5302_v29 = vld [vmem:[%s6291_s10 + $0x690] sm:$0xff]  }
 0x1d2   : > { %4944 = vmatpush3.bf16.msra.mxu1 %v5245_v31  ;;  %4923 = vmatprep.subr.bf16.mxu0 %v5246_v32  ;;  %v5304_v31 = vld [vmem:[%s6291_s10 + $0x618] sm:$0xff]   ;;  %v5306_v32 = vld [vmem:[%s6291_s10 + $0x660] sm:$0xff]  }
 0x1d3   : > { %4945 = vmatprep.subr.bf16.mxu1 %v5248_v34  ;;  %v5307_v34 = vld [vmem:[%s6291_s10 + $0x620] sm:$0xff]  }
 0x1d5   : > { %4924 = vmatpush3.bf16.msra.mxu0 %v5247_v33  ;;  %v5305_v33 = vld [vmem:[%s6291_s10 + $0x698] sm:$0xff]  }
 0x1d6   : > { %4946 = vmatpush3.bf16.msra.mxu1 %v5249_v35  ;;  %4925 = vmatprep.subr.bf16.mxu0 %v5250_v36  ;;  %v5309_v35 = vld [vmem:[%s6291_s10 + $0x668] sm:$0xff]   ;;  %v5308_v36 = vld [vmem:[%s6291_s10 + $0x6a0] sm:$0xff]  }
 0x1d7   : > { %4947 = vmatprep.subr.bf16.mxu1 %v5252_v38  ;;  %v5312_v38 = vld [vmem:[%s6291_s10 + $0x670] sm:$0xff]  }
 0x1d9   : > { %4926 = vmatpush3.bf16.msra.mxu0 %v5251_v37  ;;  %v5310_v37 = vld [vmem:[%s6291_s10 + $0x628] sm:$0xff]  }
 0x1da   : > { %4948 = vmatpush3.bf16.msra.mxu1 %v5255_v42  ;;  %4955 = vmatprep.subr.bf16.mxu0 %v5256_v43  ;;  %v5315_v42 = vld [vmem:[%s6291_s10 + $0x678] sm:$0xff]   ;;  %v4513_v43 = vcombine.high %v2002_v41, %v2002_v41 }
 0x1db   : > { %4977 = vmatprep.subr.bf16.mxu1 %v5260_v48  ;;  %v5320_v48 = vld [vmem:[%s6596_s0 + $0x68] ss:$0 sps:$4 sm:$0xff]  }
 0x1dc   : > { %4180 = vmatmul.mubr.bf16.vlgmr.msra.gmra.mrb[16].mxu0 %v4504_v40  ;;  %v5313_v40 = vld [vmem:[%s6291_s10 + $0x630] sm:$0xff]  }
 0x1dd   : > { %4956 = vmatpush3.bf16.msra.mxu0 %v5259_v47  ;;  %4220 = vmatmul.mubr.bf16.vlgmr.msra.gmra.mrb[16].mxu1 %v4506_v45  ;;  %v5316_v45 = vld [vmem:[%s6291_s10 + $0x638] sm:$0xff]   ;;  %v4512_v47 = vcombine.low %v2002_v41, %v2002_v41 }
 0x1de   : > { %4978 = vmatpush3.bf16.msra.mxu1 %v5261_v49  ;;  %4957 = vmatprep.subr.bf16.mxu0 %v5262_v50 }
 0x1df   : > { %4979 = vmatprep.subr.bf16.mxu1 %v5264_v52  ;;  %4259 = vmatprep.mubr.bf16.mxu0 %v4509_v15 }
 0x1e0   : > { %4299 = vmatprep.mubr.bf16.mxu1 %v4511_v20 }
 0x1e1   : > { %4958 = vmatpush3.bf16.msra.mxu0 %v5263_v51 }
 0x1e2   : > { %4980 = vmatpush3.bf16.msra.mxu1 %v5265_v53  ;;  %4959 = vmatprep.subr.bf16.mxu0 %v5266_v54 }
 0x1e3   : > { %4981 = vmatprep.subr.bf16.mxu1 %v5268_v56 }
 0x1e5   : > { %4960 = vmatpush3.bf16.msra.mxu0 %v5267_v55 }
 0x1e6   : > { %4982 = vmatpush3.bf16.msra.mxu1 %v5269_v57  ;;  %4961 = vmatprep.subr.bf16.mxu0 %v5270_v58 }
 0x1e7   : > { %4983 = vmatprep.subr.bf16.mxu1 %v5272_v60 }
 0x1e9   : > { %4962 = vmatpush3.bf16.msra.mxu0 %v5271_v59 }
 0x1ea   : > { %4984 = vmatpush3.bf16.msra.mxu1 %v5273_v61  ;;  %4963 = vmatprep.subr.bf16.mxu0 %v5274_v62 }
 0x1eb   : > { %4985 = vmatprep.subr.bf16.mxu1 %v5276_v0 }
 0x1ed   : > { %4964 = vmatpush3.bf16.msra.mxu0 %v5275_v63 }
 0x1ee   : > { %4986 = vmatpush3.bf16.msra.mxu1 %v5277_v1  ;;  %4965 = vmatprep.subr.bf16.mxu0 %v5278_v2 }
 0x1ef   : > { %4987 = vmatprep.subr.bf16.mxu1 %v5280_v4 }
 0x1f1   : > { %4966 = vmatpush3.bf16.msra.mxu0 %v5279_v3 }
 0x1f2   : > { %4988 = vmatpush3.bf16.msra.mxu1 %v5281_v5  ;;  %4967 = vmatprep.subr.bf16.mxu0 %v5282_v6 }
 0x1f3   : > { %4989 = vmatprep.subr.bf16.mxu1 %v5284_v8 }
 0x1f5   : > { %4968 = vmatpush3.bf16.msra.mxu0 %v5283_v7 }
 0x1f6   : > { %4990 = vmatpush3.bf16.msra.mxu1 %v5285_v9  ;;  %4969 = vmatprep.subr.bf16.mxu0 %v5286_v10 }
 0x1f7   : > { %4991 = vmatprep.subr.bf16.mxu1 %v5288_v12 }
 0x1f9   : > { %4970 = vmatpush3.bf16.msra.mxu0 %v5287_v11 }
 0x1fa   : > { %4992 = vmatpush3.bf16.msra.mxu1 %v5291_v16  ;;  %4999 = vmatprep.subr.bf16.mxu0 %v5292_v17 }
 0x1fb   : > { %5030 = vmatprep.subr.bf16.mxu1 %v5345_v24 }
 0x1fc   : > { %4260 = vmatmul.mubr.bf16.vlgmr.msra.gmra.mrb[20].mxu0 %v4508_v14 }
 0x1fd   : > { %5000 = vmatpush3.bf16.msra.mxu0 %v5295_v21  ;;  %4300 = vmatmul.mubr.bf16.vlgmr.msra.gmra.mrb[20].mxu1 %v4510_v19 }
 0x1fe   : > { %5031 = vmatpush3.bf16.msra.mxu1 %v5296_v22  ;;  %5001 = vmatprep.subr.bf16.mxu0 %v5297_v23 }
 0x1ff   : > { %5032 = vmatprep.subr.bf16.mxu1 %v5345_v24  ;;  %5046 = vmatprep.mubr.msk.bf16.mxu1 %vm5346_vm0, %v5345_v24 }
 0x200   : > { %4339 = vmatprep.mubr.bf16.mxu0 %v4513_v43 }
 0x201   : > { %5002 = vmatpush3.bf16.msra.mxu0 %v5298_v25 }
 0x202   : > { %5003 = vmatprep.subr.bf16.mxu0 %v5300_v27  ;;  %5033 = vmatpush3.bf16.msra.mxu1 %v5299_v26 }
 0x203   : > { %5034 = vmatprep.subr.bf16.mxu1 %v5345_v24 }
 0x205   : > { %5004 = vmatpush3.bf16.msra.mxu0 %v5301_v28 }
 0x206   : > { %5005 = vmatprep.subr.bf16.mxu0 %v5303_v30  ;;  %5035 = vmatpush3.bf16.msra.mxu1 %v5302_v29 }
 0x207   : > { %5036 = vmatprep.subr.bf16.mxu1 %v5345_v24 }
 0x209   : > { %5006 = vmatpush3.bf16.msra.mxu0 %v5304_v31 }
 0x20a   : > { %5007 = vmatprep.subr.bf16.mxu0 %v5306_v32  ;;  %5037 = vmatpush3.bf16.msra.mxu1 %v5305_v33 }
 0x20b   : > { %5038 = vmatprep.subr.bf16.mxu1 %v5345_v24 }
 0x20d   : > { %5008 = vmatpush3.bf16.msra.mxu0 %v5307_v34 }
 0x20e   : > { %5009 = vmatprep.subr.bf16.mxu0 %v5309_v35  ;;  %5039 = vmatpush3.bf16.msra.mxu1 %v5308_v36 }
 0x20f   : > { %5040 = vmatprep.subr.bf16.mxu1 %v5345_v24 }
 0x211   : > { %5010 = vmatpush3.bf16.msra.mxu0 %v5310_v37 }
 0x212   : > { %5011 = vmatprep.subr.bf16.mxu0 %v5312_v38  ;;  %5041 = vmatpush3.bf16.msra.mxu1 %v5311_v39 }
 0x213   : > { %5042 = vmatprep.subr.bf16.mxu1 %v5345_v24 }
 0x215   : > { %5012 = vmatpush3.bf16.msra.mxu0 %v5313_v40 }
 0x216   : > { %5013 = vmatprep.subr.bf16.mxu0 %v5315_v42  ;;  %5043 = vmatpush3.bf16.msra.mxu1 %v5314_v44 }
 0x217   : > { %5044 = vmatprep.subr.bf16.mxu1 %v5345_v24 }
 0x219   : > { %5014 = vmatpush3.bf16.msra.mxu0 %v5316_v45 }
 0x21a   : > { %5045 = vmatpush3.bf16.msra.mxu1 %v5319_v46 }
 0x21c   : > { %4340 = vmatmul.mubr.bf16.vlgmr.msra.gmra.mrb[24].mxu0 %v4512_v47 }
 0x21d   : > { %5047 = vmatmul.mubr.bf16.vlgmr.msra.gmra.mrb[24].mxu1 %v5320_v48 }
 0x22f   : > { %v4751_v49 = vpop.f32.mrb[0].mxu0 }
 0x230   : > { %v4773_v50 = vpop.f32.mrb[0].mxu1  ;;  %v4752_v51 = vpop.f32.mrb[1].mxu0 }
 0x231   : > { %v4753_v52 = vadd.f32 %v4752_v51, %v4751_v49  ;;  %v4774_v53 = vpop.f32.mrb[1].mxu1  ;;  %v4754_v54 = vpop.f32.mrb[2].mxu0 }
 0x232   : > { %v4775_v55 = vadd.f32 %v4774_v53, %v4773_v50  ;;  %v4755_v56 = vpop.f32.mrb[3].mxu0  ;;  %v4776_v57 = vpop.f32.mrb[2].mxu1 }
 0x233   : > { %v4777_v58 = vpop.f32.mrb[3].mxu1 }
 0x234   : > { %v3902_v59 = vadd.f32 %v4775_v55, %v4753_v52 }
 0x24f   : > { %v4795_v60 = vpop.f32.mrb[4].mxu0 }
 0x250   : > { %v4796_v61 = vpop.f32.mrb[5].mxu0  ;;  %v4817_v0 = vpop.f32.mrb[4].mxu1 }
 0x251   : > { %v4797_v62 = vadd.f32 %v4796_v61, %v4795_v60  ;;  %v4798_v63 = vpop.f32.mrb[6].mxu0  ;;  %v4818_v2 = vpop.f32.mrb[5].mxu1 }
 0x252   : > { %v4799_v1 = vpop.f32.mrb[7].mxu0  ;;  %v4819_v4 = vadd.f32 %v4818_v2, %v4817_v0  ;;  %v4820_v5 = vpop.f32.mrb[6].mxu1 }
 0x253   : > { %v3942_v3 = vadd.f32 %v4797_v62, %v3902_v59  ;;  %v4821_v6 = vpop.f32.mrb[7].mxu1  ;;  %v4731_v1 = vld [vmem:[%s1981_s20] ss:$0 sm:$0xff] }
 0x255   : > { %v3982_v7 = vadd.f32 %v4819_v4, %v3942_v3  ;;  %v4732_v4 = vld [vmem:[%s1984_s24] ss:$0 sm:$0xff] }
 0x26f   : > { %v4839_v8 = vpop.f32.mrb[8].mxu0 }
 0x270   : > { %v4840_v9 = vpop.f32.mrb[9].mxu0  ;;  %v4861_v12 = vpop.f32.mrb[8].mxu1 }
 0x271   : > { %v4841_v10 = vadd.f32 %v4840_v9, %v4839_v8  ;;  %v4842_v11 = vpop.f32.mrb[10].mxu0  ;;  %v4862_v14 = vpop.f32.mrb[9].mxu1 }
 0x272   : > { %v4843_v13 = vpop.f32.mrb[11].mxu0  ;;  %v4863_v16 = vadd.f32 %v4862_v14, %v4861_v12  ;;  %v4864_v17 = vpop.f32.mrb[10].mxu1 }
 0x273   : > { %v4022_v15 = vadd.f32 %v4841_v10, %v3982_v7  ;;  %v4865_v18 = vpop.f32.mrb[11].mxu1 }
 0x275   : > { %v4062_v19 = vadd.f32 %v4863_v16, %v4022_v15 }
 0x28f   : > { %v4883_v20 = vpop.f32.mrb[12].mxu0 }
 0x290   : > { %v4884_v21 = vpop.f32.mrb[13].mxu0  ;;  %v4905_v24 = vpop.f32.mrb[12].mxu1 }
 0x291   : > { %v4885_v22 = vadd.f32 %v4884_v21, %v4883_v20  ;;  %v4886_v23 = vpop.f32.mrb[14].mxu0  ;;  %v4906_v26 = vpop.f32.mrb[13].mxu1 }
 0x292   : > { %v4887_v25 = vpop.f32.mrb[15].mxu0  ;;  %v4907_v28 = vadd.f32 %v4906_v26, %v4905_v24  ;;  %v4908_v29 = vpop.f32.mrb[14].mxu1 }
 0x293   : > { %v4102_v27 = vadd.f32 %v4885_v22, %v4062_v19  ;;  %v4909_v30 = vpop.f32.mrb[15].mxu1 }
 0x295   : > { %v4142_v31 = vadd.f32 %v4907_v28, %v4102_v27 }
 0x2af   : > { %v4927_v32 = vpop.f32.mrb[16].mxu0 }
 0x2b0   : > { %v4928_v33 = vpop.f32.mrb[17].mxu0  ;;  %v4949_v36 = vpop.f32.mrb[16].mxu1 }
 0x2b1   : > { %v4929_v34 = vadd.f32 %v4928_v33, %v4927_v32  ;;  %v4930_v35 = vpop.f32.mrb[18].mxu0  ;;  %v4950_v39 = vpop.f32.mrb[17].mxu1 }
 0x2b2   : > { %v4931_v37 = vpop.f32.mrb[19].mxu0  ;;  %v4951_v40 = vadd.f32 %v4950_v39, %v4949_v36  ;;  %v4952_v41 = vpop.f32.mrb[18].mxu1 }
 0x2b3   : > { %v4182_v38 = vadd.f32 %v4929_v34, %v4142_v31  ;;  %v4953_v42 = vpop.f32.mrb[19].mxu1 }
 0x2b5   : > { %v4222_v43 = vadd.f32 %v4951_v40, %v4182_v38 }
 0x2cf   : > { %v4971_v44 = vpop.f32.mrb[20].mxu0 }
 0x2d0   : > { %v4972_v45 = vpop.f32.mrb[21].mxu0  ;;  %v4993_v48 = vpop.f32.mrb[20].mxu1 }
 0x2d1   : > { %v4973_v46 = vadd.f32 %v4972_v45, %v4971_v44  ;;  %v4974_v47 = vpop.f32.mrb[22].mxu0  ;;  %v4994_v50 = vpop.f32.mrb[21].mxu1 }
 0x2d2   : > { %v4975_v49 = vpop.f32.mrb[23].mxu0  ;;  %v4995_v52 = vadd.f32 %v4994_v50, %v4993_v48  ;;  %v4996_v53 = vpop.f32.mrb[22].mxu1 }
 0x2d3   : > { %v4262_v51 = vadd.f32 %v4973_v46, %v4222_v43  ;;  %v4997_v54 = vpop.f32.mrb[23].mxu1 }
 0x2d5   : > { %v4302_v55 = vadd.f32 %v4995_v52, %v4262_v51 }
 0x2ef   : > { %v5015_v56 = vpop.f32.mrb[24].mxu0 }
 0x2f0   : > { %v5016_v57 = vpop.f32.mrb[25].mxu0  ;;  %v4381_v60 = vpop.f32.mrb[24].mxu1 }
 0x2f1   : > { %v5017_v58 = vadd.f32 %v5016_v57, %v5015_v56  ;;  %v5018_v59 = vpop.f32.mrb[26].mxu0  ;;  %v5048_v62 = vpop.f32.mrb[25].mxu1 }
 0x2f2   : > { %v5019_v61 = vpop.f32.mrb[27].mxu0  ;;  %v4384_v0 = vpop.f32.mrb[26].mxu1 }
 0x2f3   : > { %v4342_v63 = vadd.f32 %v5017_v58, %v4302_v55  ;;  %v5049_v2 = vpop.f32.mrb[27].mxu1 }
 0x2f5   : > { %v4382_v3 = vadd.f32 %v4381_v60, %v4342_v63 }
 0x2f7   : > { %v4394_v5 = vmul.f32 %v4731_v1, %v4382_v3 }
 0x2f9   : > { %v4402_v6 = vadd.f32 %v4732_v4, %v4394_v5 }
 0x2fb   : > { %4403 = vst [vmem:[%s1988_s27] sm:$0xff] %v4402_v6 }
 0x2fc PF: > { %p11_p9 = scmp.ge.s32.totalorder %s5389_s19, 4   ;;  %s6601_s15 = smov %s5339_s16 }
 0x2fd   : > { %s6602_s16 = smov %s5398_s22  ;;  %s6603_s17 = smov %s5389_s19 }
 0x2fe   :  { %13 = sbr.rel (!%p11_p9) target bundleno = 2 (0x2), region = 118 }

</bundles_post_ra>
